<compile_context>
chip_gen: v7x
topology: tpu7x:2x2x1
jax: 0.10.0
libtpu: 0.0.40
codegen_flags: <defaults>
</compile_context>

<pallas_src>
import functools

import jax
import jax.numpy as jnp
import numpy as np
from jax.experimental import pallas as pl
from jax.experimental.pallas import tpu as pltpu

_LANE = 128   # lane width: channels are padded to a multiple of this
_LH = 8       # left halo width on W, so the interior write starts sublane-aligned


def _basic_block_kernel(x_ref, w1_ref, w2_ref, g1_ref, b1_ref, g2_ref, b2_ref,
                        out_ref, xpad_ref, col_ref, yraw_ref, *, eps):
    """Fused BasicBlock forward.

    x_ref    : (N, H, W, Cp)            input activations (NHWC, lane-padded channels), f32
    w1_ref   : (9*Cp, Cp)               conv1 weights, (kh, kw, cin) folded into K, bf16
    w2_ref   : (9*Cp, Cp)               conv2 weights, bf16
    g*_ref   : (1, Cp)  b*_ref: (1, Cp) BN gamma / beta (padded channels = 0), f32
    out_ref  : (N, H, W, Cp)            output, f32
    xpad_ref : (N, H+2, W_PAD, Cp)      scratch: zero halo implements padding=1, f32
    col_ref  : (H*W, 9*Cp)              scratch: per-image im2col MXU operand, bf16
    yraw_ref : (N, H, W, Cp)            scratch: raw (pre-BN) conv output, f32
    """
    N, H, W, C = x_ref.shape
    HW = H * W
    M = N * HW
    inv_m = 1.0 / M
    f32 = jnp.float32

    # ---- zero ONLY the halo strips the 3x3 taps actually read (no full-buffer zero).
    # Taps read W columns [_LH-1, _LH+W+1); interior [_LH, _LH+W) is overwritten by
    # both staging passes, so only the border strips need zeros.
    xpad_ref[:, 0:1, _LH - 1:_LH + W + 1, :] = jnp.zeros((N, 1, W + 2, C), f32)
    xpad_ref[:, H + 1:H + 2, _LH - 1:_LH + W + 1, :] = jnp.zeros((N, 1, W + 2, C), f32)
    xpad_ref[:, 1:H + 1, _LH - 1:_LH, :] = jnp.zeros((N, H, 1, C), f32)
    xpad_ref[:, 1:H + 1, _LH + W:_LH + W + 1, :] = jnp.zeros((N, H, 1, C), f32)

    def conv3x3_bn_scale_shift(w_bf16, gamma, beta):
        """Per-image im2col + one bf16 MXU contraction per image.

        BN statistics (sum / sum-of-squares) are accumulated across images
        (P3-style partials + finalize); the raw conv output is staged in
        yraw_ref (f32) and normalization is applied by the caller, fused into
        the consumer's write.  Returns (scale, shift), each (1, 1, 1, Cp).
        """
        s1 = jnp.zeros((1, C), f32)
        s2 = jnp.zeros((1, C), f32)
        for n in range(N):  # TODO(synk): fori_loop / pallas grid at production N
            # im2col: 9 shifted windows packed side-by-side on K, so the whole
            # 3x3 conv is a single (HW, 9*Cp) x (9*Cp, Cp) bf16 MXU contraction.
            for dy in range(3):
                for dx in range(3):
                    t = dy * 3 + dx
                    col_ref[:, t * C:(t + 1) * C] = (
                        xpad_ref[n, dy:dy + H, _LH - 1 + dx:_LH - 1 + dx + W, :]
                        .reshape(HW, C).astype(jnp.bfloat16))
            acc = jnp.dot(col_ref[...], w_bf16, preferred_element_type=f32)
            yraw_ref[n] = acc.reshape(H, W, C)
            s1 = s1 + jnp.sum(acc, axis=0, keepdims=True)
            s2 = s2 + jnp.sum(acc * acc, axis=0, keepdims=True)
        mean = s1 * inv_m
        # clamp: E[x^2] - mean^2 can go slightly negative by cancellation
        var = jnp.maximum(s2 * inv_m - mean * mean, 0.0)
        scale = jax.lax.rsqrt(var + eps) * gamma            # (1, Cp), hoisted
        shift = beta - mean * scale                         # (1, Cp), hoisted
        return scale.reshape(1, 1, 1, C), shift.reshape(1, 1, 1, C)

    # ---- stage 1: conv1 -> bn1 -> relu --------------------------------------
    # Interior write starts at W offset _LH (multiple of 8) -> unmasked stores.
    xpad_ref[:, 1:H + 1, _LH:_LH + W, :] = x_ref[...]
    sc1, sh1 = conv3x3_bn_scale_shift(w1_ref[...], g1_ref[...], b1_ref[...])
    # Fuse normalize + ReLU into the conv2 staging write (halo is still zero).
    xpad_ref[:, 1:H + 1, _LH:_LH + W, :] = jnp.maximum(
        yraw_ref[...] * sc1 + sh1, 0.0)

    # ---- stage 2: conv2 -> bn2 -> +residual -> relu --------------------------
    sc2, sh2 = conv3x3_bn_scale_shift(w2_ref[...], g2_ref[...], b2_ref[...])
    residual = x_ref[...]   # re-read at the point of use (short live range)
    out_ref[...] = jnp.maximum(
        yraw_ref[...] * sc2 + sh2 + residual, 0.0).astype(out_ref.dtype)


def basic_block_forward(x_nchw, params, eps=1e-5):
    """Mirrors BasicBlock.forward(x) with x in NCHW (PyTorch convention)."""
    x = jnp.transpose(x_nchw, (0, 2, 3, 1)).astype(jnp.float32)  # NCHW -> NHWC
    N, H, W, C = x.shape
    assert params["w1"].shape == (3, 3, C, C), \
        "no downsample branch: inplanes == planes and stride == 1"

    # Lane-dense channel padding (multiples of 128).  Padded channels are zero
    # everywhere (x, weights, gamma, beta), so they stay exactly zero through
    # conv/BN/ReLU/residual and are sliced away at the end.
    Cp = ((C + _LANE - 1) // _LANE) * _LANE
    pad_c = Cp - C
    xp = jnp.pad(x, ((0, 0), (0, 0), (0, 0), (0, pad_c)))

    def fold_w(w):  # HWIO (3,3,C,C) -> (9*Cp, Cp), bf16; row = (dy*3+dx)*Cp + cin
        w = jnp.pad(w, ((0, 0), (0, 0), (0, pad_c), (0, pad_c)))
        return w.reshape(9 * Cp, Cp).astype(jnp.bfloat16)

    def pad_vec(v):
        return jnp.pad(v.astype(jnp.float32), ((0, pad_c),)).reshape(1, Cp)

    w1, w2 = fold_w(params["w1"]), fold_w(params["w2"])
    g1, b1 = pad_vec(params["g1"]), pad_vec(params["b1"])
    g2, b2 = pad_vec(params["g2"]), pad_vec(params["b2"])

    # W axis of the padded scratch: 8-wide left halo (aligned interior writes),
    # >=1 right halo, rounded so the total is a multiple of 8 sublanes.
    w_pad_total = _LH + ((W + 1 + 7) // 8) * 8

    kernel = functools.partial(_basic_block_kernel, eps=float(eps))
    out = pl.pallas_call(
        kernel,
        out_shape=jax.ShapeDtypeStruct((N, H, W, Cp), jnp.float32),
        in_specs=[pl.BlockSpec(memory_space=pltpu.MemorySpace.VMEM)] * 7,
        out_specs=pl.BlockSpec(memory_space=pltpu.MemorySpace.VMEM),
        scratch_shapes=[
            pltpu.VMEM((N, H + 2, w_pad_total, Cp), jnp.float32),  # padded activations
            pltpu.VMEM((H * W, 9 * Cp), jnp.bfloat16),             # per-image im2col
            pltpu.VMEM((N, H, W, Cp), jnp.float32),                # raw conv output
        ],
        compiler_params=pltpu.CompilerParams(vmem_limit_bytes=32 * 1024 * 1024),
    )(xp, w1, w2, g1, b1, g2, b2)
    out = out[..., :C]
    return jnp.transpose(out, (0, 3, 1, 2))                 # NHWC -> NCHW


# ----------------------------- pure-JAX reference -----------------------------

def _ref_conv_bn_relu(x, w, g, b, residual=None, eps=1e-5):
    y = jax.lax.conv_general_dilated(
        x, w, window_strides=(1, 1), padding="SAME",
        dimension_numbers=("NHWC", "HWIO", "NHWC"))
    mean = y.mean(axis=(0, 1, 2), keepdims=True)
    var = y.var(axis=(0, 1, 2), keepdims=True)  # biased, as train-mode BN uses
    y = (y - mean) / jnp.sqrt(var + eps) * g.reshape(1, 1, 1, -1) + b.reshape(1, 1, 1, -1)
    if residual is not None:
        y = y + residual
    return jnp.maximum(y, 0.0)


def _ref_basic_block(x_nchw, params, eps=1e-5):
    x = jnp.transpose(x_nchw, (0, 2, 3, 1))
    out = _ref_conv_bn_relu(x, params["w1"], params["g1"], params["b1"], eps=eps)
    out = _ref_conv_bn_relu(out, params["w2"], params["g2"], params["b2"],
                            residual=x, eps=eps)
    return jnp.transpose(out, (0, 3, 1, 2))


if __name__ == "__main__":
    # BasicBlock(inplanes=4, planes=4, stride=1) on a (2, 4, 16, 16) NCHW input.
    # TODO(synk): nn.BatchNorm2d in train() also updates running_mean/running_var;
    # this kernel only normalizes with batch statistics (pure forward).
    N, C, H, W = 2, 4, 16, 16
    key = jax.random.PRNGKey(0)
    kx, kw1, kw2, kg1, kb1, kg2, kb2 = jax.random.split(key, 7)

    x = jax.random.normal(kx, (N, C, H, W), dtype=jnp.float32)

    params = {
        # conv weights generated directly in HWIO (kh, kw, cin, cout)
        "w1": 0.2 * jax.random.normal(kw1, (3, 3, C, C), dtype=jnp.float32),
        "w2": 0.2 * jax.random.normal(kw2, (3, 3, C, C), dtype=jnp.float32),
        "g1": 1.0 + 0.1 * jax.random.normal(kg1, (C,), dtype=jnp.float32),
        "b1": 0.1 * jax.random.normal(kb1, (C,), dtype=jnp.float32),
        "g2": 1.0 + 0.1 * jax.random.normal(kg2, (C,), dtype=jnp.float32),
        "b2": 0.1 * jax.random.normal(kb2, (C,), dtype=jnp.float32),
    }

    out = jax.block_until_ready(basic_block_forward(x, params))
    ref = jax.block_until_ready(_ref_basic_block(x, params))

    assert out.shape == (N, C, H, W), out.shape
    # bf16 MXU operands (f32 accumulation / BN) -> compare at bf16-level tolerance
    np.testing.assert_allclose(np.asarray(out), np.asarray(ref), atol=1e-1, rtol=1e-1)
    print("KERNEL_OK")
</pallas_src>

<mosaic_0001>
module attributes {stable_mosaic.version = 11 : i64} {
  func.func @_basic_block_kernel(%arg0: memref<2x16x16x128xf32, #tpu.memory_space<vmem>>, %arg1: memref<1152x128xbf16, #tpu.memory_space<vmem>>, %arg2: memref<1152x128xbf16, #tpu.memory_space<vmem>>, %arg3: memref<1x128xf32, #tpu.memory_space<vmem>>, %arg4: memref<1x128xf32, #tpu.memory_space<vmem>>, %arg5: memref<1x128xf32, #tpu.memory_space<vmem>>, %arg6: memref<1x128xf32, #tpu.memory_space<vmem>>, %arg7: memref<2x16x16x128xf32, #tpu.memory_space<vmem>>, %arg8: memref<2x18x32x128xf32, #tpu.memory_space<vmem>>, %arg9: memref<256x1152xbf16, #tpu.memory_space<vmem>>, %arg10: memref<2x16x16x128xf32, #tpu.memory_space<vmem>>) attributes {dimension_semantics = [], scalar_prefetch = 0 : i64, scratch_operands = 3 : i64, tpu.core_type = #tpu.core_type<tc>} {
    %cst = arith.constant 0.000000e+00 : f32
    %0 = vector.broadcast %cst : f32 to vector<2x1x18x128xf32>
    %c0 = arith.constant 0 : index
    %c0_0 = arith.constant 0 : index
    %c7 = arith.constant 7 : index
    %c0_1 = arith.constant 0 : index
    %1 = vector.load %arg8[%c0, %c0_0, %c7, %c0_1] : memref<2x18x32x128xf32, #tpu.memory_space<vmem>>, vector<2x1x18x128xf32>
    tpu.vector_store %arg8[%c0, %c0_0, %c7, %c0_1], %0 {strides = array<i32>} : memref<2x18x32x128xf32, #tpu.memory_space<vmem>>, vector<2x1x18x128xf32>,
    %cst_2 = arith.constant 0.000000e+00 : f32
    %2 = vector.broadcast %cst_2 : f32 to vector<2x1x18x128xf32>
    %c0_3 = arith.constant 0 : index
    %c17 = arith.constant 17 : index
    %c7_4 = arith.constant 7 : index
    %c0_5 = arith.constant 0 : index
    %3 = vector.load %arg8[%c0_3, %c17, %c7_4, %c0_5] : memref<2x18x32x128xf32, #tpu.memory_space<vmem>>, vector<2x1x18x128xf32>
    tpu.vector_store %arg8[%c0_3, %c17, %c7_4, %c0_5], %2 {strides = array<i32>} : memref<2x18x32x128xf32, #tpu.memory_space<vmem>>, vector<2x1x18x128xf32>,
    %cst_6 = arith.constant 0.000000e+00 : f32
    %4 = vector.broadcast %cst_6 : f32 to vector<2x16x1x128xf32>
    %c0_7 = arith.constant 0 : index
    %c1 = arith.constant 1 : index
    %c7_8 = arith.constant 7 : index
    %c0_9 = arith.constant 0 : index
    %5 = vector.load %arg8[%c0_7, %c1, %c7_8, %c0_9] : memref<2x18x32x128xf32, #tpu.memory_space<vmem>>, vector<2x16x1x128xf32>
    tpu.vector_store %arg8[%c0_7, %c1, %c7_8, %c0_9], %4 {strides = array<i32>} : memref<2x18x32x128xf32, #tpu.memory_space<vmem>>, vector<2x16x1x128xf32>,
    %cst_10 = arith.constant 0.000000e+00 : f32
    %6 = vector.broadcast %cst_10 : f32 to vector<2x16x1x128xf32>
    %c0_11 = arith.constant 0 : index
    %c1_12 = arith.constant 1 : index
    %c24 = arith.constant 24 : index
    %c0_13 = arith.constant 0 : index
    %7 = vector.load %arg8[%c0_11, %c1_12, %c24, %c0_13] : memref<2x18x32x128xf32, #tpu.memory_space<vmem>>, vector<2x16x1x128xf32>
    tpu.vector_store %arg8[%c0_11, %c1_12, %c24, %c0_13], %6 {strides = array<i32>} : memref<2x18x32x128xf32, #tpu.memory_space<vmem>>, vector<2x16x1x128xf32>,
    %c0_14 = arith.constant 0 : index
    %c0_15 = arith.constant 0 : index
    %c0_16 = arith.constant 0 : index
    %c0_17 = arith.constant 0 : index
    %8 = vector.load %arg0[%c0_14, %c0_15, %c0_16, %c0_17] : memref<2x16x16x128xf32, #tpu.memory_space<vmem>>, vector<2x16x16x128xf32>
    %c0_18 = arith.constant 0 : index
    %c1_19 = arith.constant 1 : index
    %c8 = arith.constant 8 : index
    %c0_20 = arith.constant 0 : index
    %9 = vector.load %arg8[%c0_18, %c1_19, %c8, %c0_20] : memref<2x18x32x128xf32, #tpu.memory_space<vmem>>, vector<2x16x16x128xf32>
    tpu.vector_store %arg8[%c0_18, %c1_19, %c8, %c0_20], %8 {strides = array<i32>} : memref<2x18x32x128xf32, #tpu.memory_space<vmem>>, vector<2x16x16x128xf32>,
    %c0_21 = arith.constant 0 : index
    %c0_22 = arith.constant 0 : index
    %10 = vector.load %arg1[%c0_21, %c0_22] : memref<1152x128xbf16, #tpu.memory_space<vmem>>, vector<1152x128xbf16>
    %c0_23 = arith.constant 0 : index
    %c0_24 = arith.constant 0 : index
    %11 = vector.load %arg3[%c0_23, %c0_24] : memref<1x128xf32, #tpu.memory_space<vmem>>, vector<1x128xf32>
    %c0_25 = arith.constant 0 : index
    %c0_26 = arith.constant 0 : index
    %12 = vector.load %arg4[%c0_25, %c0_26] : memref<1x128xf32, #tpu.memory_space<vmem>>, vector<1x128xf32>
    %cst_27 = arith.constant 0.000000e+00 : f32
    %13 = vector.broadcast %cst_27 : f32 to vector<1x128xf32>
    %cst_28 = arith.constant 0.000000e+00 : f32
    %14 = vector.broadcast %cst_28 : f32 to vector<1x128xf32>
    %c0_29 = arith.constant 0 : index
    %c0_30 = arith.constant 0 : index
    %c7_31 = arith.constant 7 : index
    %c0_32 = arith.constant 0 : index
    %15 = vector.load %arg8[%c0_29, %c0_30, %c7_31, %c0_32] : memref<2x18x32x128xf32, #tpu.memory_space<vmem>>, vector<1x16x16x128xf32>
    %16 = vector.shape_cast %15 : vector<1x16x16x128xf32> to vector<16x16x128xf32>
    %17 = vector.shape_cast %16 : vector<16x16x128xf32> to vector<256x128xf32>
    %18 = arith.truncf %17 : vector<256x128xf32> to vector<256x128xbf16>
    %c0_33 = arith.constant 0 : index
    %c0_34 = arith.constant 0 : index
    %19 = vector.load %arg9[%c0_33, %c0_34] : memref<256x1152xbf16, #tpu.memory_space<vmem>>, vector<256x128xbf16>
    tpu.vector_store %arg9[%c0_33, %c0_34], %18 {strides = array<i32>} : memref<256x1152xbf16, #tpu.memory_space<vmem>>, vector<256x128xbf16>,
    %c0_35 = arith.constant 0 : index
    %c0_36 = arith.constant 0 : index
    %c8_37 = arith.constant 8 : index
    %c0_38 = arith.constant 0 : index
    %20 = vector.load %arg8[%c0_35, %c0_36, %c8_37, %c0_38] : memref<2x18x32x128xf32, #tpu.memory_space<vmem>>, vector<1x16x16x128xf32>
    %21 = vector.shape_cast %20 : vector<1x16x16x128xf32> to vector<16x16x128xf32>
    %22 = vector.shape_cast %21 : vector<16x16x128xf32> to vector<256x128xf32>
    %23 = arith.truncf %22 : vector<256x128xf32> to vector<256x128xbf16>
    %c0_39 = arith.constant 0 : index
    %c128 = arith.constant 128 : index
    %24 = vector.load %arg9[%c0_39, %c128] : memref<256x1152xbf16, #tpu.memory_space<vmem>>, vector<256x128xbf16>
    tpu.vector_store %arg9[%c0_39, %c128], %23 {strides = array<i32>} : memref<256x1152xbf16, #tpu.memory_space<vmem>>, vector<256x128xbf16>,
    %c0_40 = arith.constant 0 : index
    %c0_41 = arith.constant 0 : index
    %c9 = arith.constant 9 : index
    %c0_42 = arith.constant 0 : index
    %25 = vector.load %arg8[%c0_40, %c0_41, %c9, %c0_42] : memref<2x18x32x128xf32, #tpu.memory_space<vmem>>, vector<1x16x16x128xf32>
    %26 = vector.shape_cast %25 : vector<1x16x16x128xf32> to vector<16x16x128xf32>
    %27 = vector.shape_cast %26 : vector<16x16x128xf32> to vector<256x128xf32>
    %28 = arith.truncf %27 : vector<256x128xf32> to vector<256x128xbf16>
    %c0_43 = arith.constant 0 : index
    %c256 = arith.constant 256 : index
    %29 = vector.load %arg9[%c0_43, %c256] : memref<256x1152xbf16, #tpu.memory_space<vmem>>, vector<256x128xbf16>
    tpu.vector_store %arg9[%c0_43, %c256], %28 {strides = array<i32>} : memref<256x1152xbf16, #tpu.memory_space<vmem>>, vector<256x128xbf16>,
    %c0_44 = arith.constant 0 : index
    %c1_45 = arith.constant 1 : index
    %c7_46 = arith.constant 7 : index
    %c0_47 = arith.constant 0 : index
    %30 = vector.load %arg8[%c0_44, %c1_45, %c7_46, %c0_47] : memref<2x18x32x128xf32, #tpu.memory_space<vmem>>, vector<1x16x16x128xf32>
    %31 = vector.shape_cast %30 : vector<1x16x16x128xf32> to vector<16x16x128xf32>
    %32 = vector.shape_cast %31 : vector<16x16x128xf32> to vector<256x128xf32>
    %33 = arith.truncf %32 : vector<256x128xf32> to vector<256x128xbf16>
    %c0_48 = arith.constant 0 : index
    %c384 = arith.constant 384 : index
    %34 = vector.load %arg9[%c0_48, %c384] : memref<256x1152xbf16, #tpu.memory_space<vmem>>, vector<256x128xbf16>
    tpu.vector_store %arg9[%c0_48, %c384], %33 {strides = array<i32>} : memref<256x1152xbf16, #tpu.memory_space<vmem>>, vector<256x128xbf16>,
    %c0_49 = arith.constant 0 : index
    %c1_50 = arith.constant 1 : index
    %c8_51 = arith.constant 8 : index
    %c0_52 = arith.constant 0 : index
    %35 = vector.load %arg8[%c0_49, %c1_50, %c8_51, %c0_52] : memref<2x18x32x128xf32, #tpu.memory_space<vmem>>, vector<1x16x16x128xf32>
    %36 = vector.shape_cast %35 : vector<1x16x16x128xf32> to vector<16x16x128xf32>
    %37 = vector.shape_cast %36 : vector<16x16x128xf32> to vector<256x128xf32>
    %38 = arith.truncf %37 : vector<256x128xf32> to vector<256x128xbf16>
    %c0_53 = arith.constant 0 : index
    %c512 = arith.constant 512 : index
    %39 = vector.load %arg9[%c0_53, %c512] : memref<256x1152xbf16, #tpu.memory_space<vmem>>, vector<256x128xbf16>
    tpu.vector_store %arg9[%c0_53, %c512], %38 {strides = array<i32>} : memref<256x1152xbf16, #tpu.memory_space<vmem>>, vector<256x128xbf16>,
    %c0_54 = arith.constant 0 : index
    %c1_55 = arith.constant 1 : index
    %c9_56 = arith.constant 9 : index
    %c0_57 = arith.constant 0 : index
    %40 = vector.load %arg8[%c0_54, %c1_55, %c9_56, %c0_57] : memref<2x18x32x128xf32, #tpu.memory_space<vmem>>, vector<1x16x16x128xf32>
    %41 = vector.shape_cast %40 : vector<1x16x16x128xf32> to vector<16x16x128xf32>
    %42 = vector.shape_cast %41 : vector<16x16x128xf32> to vector<256x128xf32>
    %43 = arith.truncf %42 : vector<256x128xf32> to vector<256x128xbf16>
    %c0_58 = arith.constant 0 : index
    %c640 = arith.constant 640 : index
    %44 = vector.load %arg9[%c0_58, %c640] : memref<256x1152xbf16, #tpu.memory_space<vmem>>, vector<256x128xbf16>
    tpu.vector_store %arg9[%c0_58, %c640], %43 {strides = array<i32>} : memref<256x1152xbf16, #tpu.memory_space<vmem>>, vector<256x128xbf16>,
    %c0_59 = arith.constant 0 : index
    %c2 = arith.constant 2 : index
    %c7_60 = arith.constant 7 : index
    %c0_61 = arith.constant 0 : index
    %45 = vector.load %arg8[%c0_59, %c2, %c7_60, %c0_61] : memref<2x18x32x128xf32, #tpu.memory_space<vmem>>, vector<1x16x16x128xf32>
    %46 = vector.shape_cast %45 : vector<1x16x16x128xf32> to vector<16x16x128xf32>
    %47 = vector.shape_cast %46 : vector<16x16x128xf32> to vector<256x128xf32>
    %48 = arith.truncf %47 : vector<256x128xf32> to vector<256x128xbf16>
    %c0_62 = arith.constant 0 : index
    %c768 = arith.constant 768 : index
    %49 = vector.load %arg9[%c0_62, %c768] : memref<256x1152xbf16, #tpu.memory_space<vmem>>, vector<256x128xbf16>
    tpu.vector_store %arg9[%c0_62, %c768], %48 {strides = array<i32>} : memref<256x1152xbf16, #tpu.memory_space<vmem>>, vector<256x128xbf16>,
    %c0_63 = arith.constant 0 : index
    %c2_64 = arith.constant 2 : index
    %c8_65 = arith.constant 8 : index
    %c0_66 = arith.constant 0 : index
    %50 = vector.load %arg8[%c0_63, %c2_64, %c8_65, %c0_66] : memref<2x18x32x128xf32, #tpu.memory_space<vmem>>, vector<1x16x16x128xf32>
    %51 = vector.shape_cast %50 : vector<1x16x16x128xf32> to vector<16x16x128xf32>
    %52 = vector.shape_cast %51 : vector<16x16x128xf32> to vector<256x128xf32>
    %53 = arith.truncf %52 : vector<256x128xf32> to vector<256x128xbf16>
    %c0_67 = arith.constant 0 : index
    %c896 = arith.constant 896 : index
    %54 = vector.load %arg9[%c0_67, %c896] : memref<256x1152xbf16, #tpu.memory_space<vmem>>, vector<256x128xbf16>
    tpu.vector_store %arg9[%c0_67, %c896], %53 {strides = array<i32>} : memref<256x1152xbf16, #tpu.memory_space<vmem>>, vector<256x128xbf16>,
    %c0_68 = arith.constant 0 : index
    %c2_69 = arith.constant 2 : index
    %c9_70 = arith.constant 9 : index
    %c0_71 = arith.constant 0 : index
    %55 = vector.load %arg8[%c0_68, %c2_69, %c9_70, %c0_71] : memref<2x18x32x128xf32, #tpu.memory_space<vmem>>, vector<1x16x16x128xf32>
    %56 = vector.shape_cast %55 : vector<1x16x16x128xf32> to vector<16x16x128xf32>
    %57 = vector.shape_cast %56 : vector<16x16x128xf32> to vector<256x128xf32>
    %58 = arith.truncf %57 : vector<256x128xf32> to vector<256x128xbf16>
    %c0_72 = arith.constant 0 : index
    %c1024 = arith.constant 1024 : index
    %59 = vector.load %arg9[%c0_72, %c1024] : memref<256x1152xbf16, #tpu.memory_space<vmem>>, vector<256x128xbf16>
    tpu.vector_store %arg9[%c0_72, %c1024], %58 {strides = array<i32>} : memref<256x1152xbf16, #tpu.memory_space<vmem>>, vector<256x128xbf16>,
    %c0_73 = arith.constant 0 : index
    %c0_74 = arith.constant 0 : index
    %60 = vector.load %arg9[%c0_73, %c0_74] : memref<256x1152xbf16, #tpu.memory_space<vmem>>, vector<256x1152xbf16>
    %cst_75 = arith.constant dense<0.000000e+00> : vector<256x128xf32>
    %61 = tpu.matmul %60, %10, %cst_75 {dimension_numbers = #tpu.dot_dimension_numbers<[1], [0], [0], [1], [0, 0, 1, 1], [], []>} : vector<256x1152xbf16>, vector<1152x128xbf16>, vector<256x128xf32> -> vector<256x128xf32>
    %62 = vector.shape_cast %61 : vector<256x128xf32> to vector<16x16x128xf32>
    %c0_76 = arith.constant 0 : index
    %c0_77 = arith.constant 0 : index
    %c0_78 = arith.constant 0 : index
    %c0_79 = arith.constant 0 : index
    %63 = vector.load %arg10[%c0_76, %c0_77, %c0_78, %c0_79] : memref<2x16x16x128xf32, #tpu.memory_space<vmem>>, vector<1x16x16x128xf32>
    %64 = vector.shape_cast %63 : vector<1x16x16x128xf32> to vector<16x16x128xf32>
    %65 = vector.shape_cast %62 : vector<16x16x128xf32> to vector<1x16x16x128xf32>
    tpu.vector_store %arg10[%c0_76, %c0_77, %c0_78, %c0_79], %65 {strides = array<i32>} : memref<2x16x16x128xf32, #tpu.memory_space<vmem>>, vector<1x16x16x128xf32>,
    %cst_80 = arith.constant dense<0.000000e+00> : vector<128xf32>
    %66 = vector.multi_reduction <add>, %61, %cst_80 [0] : vector<256x128xf32> to vector<128xf32>
    %67 = vector.shape_cast %66 : vector<128xf32> to vector<1x128xf32>
    %68 = arith.addf %13, %67 : vector<1x128xf32>
    %69 = arith.mulf %61, %61 : vector<256x128xf32>
    %cst_81 = arith.constant dense<0.000000e+00> : vector<128xf32>
    %70 = vector.multi_reduction <add>, %69, %cst_81 [0] : vector<256x128xf32> to vector<128xf32>
    %71 = vector.shape_cast %70 : vector<128xf32> to vector<1x128xf32>
    %72 = arith.addf %14, %71 : vector<1x128xf32>
    %c1_82 = arith.constant 1 : index
    %c0_83 = arith.constant 0 : index
    %c7_84 = arith.constant 7 : index
    %c0_85 = arith.constant 0 : index
    %73 = vector.load %arg8[%c1_82, %c0_83, %c7_84, %c0_85] : memref<2x18x32x128xf32, #tpu.memory_space<vmem>>, vector<1x16x16x128xf32>
    %74 = vector.shape_cast %73 : vector<1x16x16x128xf32> to vector<16x16x128xf32>
    %75 = vector.shape_cast %74 : vector<16x16x128xf32> to vector<256x128xf32>
    %76 = arith.truncf %75 : vector<256x128xf32> to vector<256x128xbf16>
    %c0_86 = arith.constant 0 : index
    %c0_87 = arith.constant 0 : index
    %77 = vector.load %arg9[%c0_86, %c0_87] : memref<256x1152xbf16, #tpu.memory_space<vmem>>, vector<256x128xbf16>
    tpu.vector_store %arg9[%c0_86, %c0_87], %76 {strides = array<i32>} : memref<256x1152xbf16, #tpu.memory_space<vmem>>, vector<256x128xbf16>,
    %c1_88 = arith.constant 1 : index
    %c0_89 = arith.constant 0 : index
    %c8_90 = arith.constant 8 : index
    %c0_91 = arith.constant 0 : index
    %78 = vector.load %arg8[%c1_88, %c0_89, %c8_90, %c0_91] : memref<2x18x32x128xf32, #tpu.memory_space<vmem>>, vector<1x16x16x128xf32>
    %79 = vector.shape_cast %78 : vector<1x16x16x128xf32> to vector<16x16x128xf32>
    %80 = vector.shape_cast %79 : vector<16x16x128xf32> to vector<256x128xf32>
    %81 = arith.truncf %80 : vector<256x128xf32> to vector<256x128xbf16>
    %c0_92 = arith.constant 0 : index
    %c128_93 = arith.constant 128 : index
    %82 = vector.load %arg9[%c0_92, %c128_93] : memref<256x1152xbf16, #tpu.memory_space<vmem>>, vector<256x128xbf16>
    tpu.vector_store %arg9[%c0_92, %c128_93], %81 {strides = array<i32>} : memref<256x1152xbf16, #tpu.memory_space<vmem>>, vector<256x128xbf16>,
    %c1_94 = arith.constant 1 : index
    %c0_95 = arith.constant 0 : index
    %c9_96 = arith.constant 9 : index
    %c0_97 = arith.constant 0 : index
    %83 = vector.load %arg8[%c1_94, %c0_95, %c9_96, %c0_97] : memref<2x18x32x128xf32, #tpu.memory_space<vmem>>, vector<1x16x16x128xf32>
    %84 = vector.shape_cast %83 : vector<1x16x16x128xf32> to vector<16x16x128xf32>
    %85 = vector.shape_cast %84 : vector<16x16x128xf32> to vector<256x128xf32>
    %86 = arith.truncf %85 : vector<256x128xf32> to vector<256x128xbf16>
    %c0_98 = arith.constant 0 : index
    %c256_99 = arith.constant 256 : index
    %87 = vector.load %arg9[%c0_98, %c256_99] : memref<256x1152xbf16, #tpu.memory_space<vmem>>, vector<256x128xbf16>
    tpu.vector_store %arg9[%c0_98, %c256_99], %86 {strides = array<i32>} : memref<256x1152xbf16, #tpu.memory_space<vmem>>, vector<256x128xbf16>,
    %c1_100 = arith.constant 1 : index
    %c1_101 = arith.constant 1 : index
    %c7_102 = arith.constant 7 : index
    %c0_103 = arith.constant 0 : index
    %88 = vector.load %arg8[%c1_100, %c1_101, %c7_102, %c0_103] : memref<2x18x32x128xf32, #tpu.memory_space<vmem>>, vector<1x16x16x128xf32>
    %89 = vector.shape_cast %88 : vector<1x16x16x128xf32> to vector<16x16x128xf32>
    %90 = vector.shape_cast %89 : vector<16x16x128xf32> to vector<256x128xf32>
    %91 = arith.truncf %90 : vector<256x128xf32> to vector<256x128xbf16>
    %c0_104 = arith.constant 0 : index
    %c384_105 = arith.constant 384 : index
    %92 = vector.load %arg9[%c0_104, %c384_105] : memref<256x1152xbf16, #tpu.memory_space<vmem>>, vector<256x128xbf16>
    tpu.vector_store %arg9[%c0_104, %c384_105], %91 {strides = array<i32>} : memref<256x1152xbf16, #tpu.memory_space<vmem>>, vector<256x128xbf16>,
    %c1_106 = arith.constant 1 : index
    %c1_107 = arith.constant 1 : index
    %c8_108 = arith.constant 8 : index
    %c0_109 = arith.constant 0 : index
    %93 = vector.load %arg8[%c1_106, %c1_107, %c8_108, %c0_109] : memref<2x18x32x128xf32, #tpu.memory_space<vmem>>, vector<1x16x16x128xf32>
    %94 = vector.shape_cast %93 : vector<1x16x16x128xf32> to vector<16x16x128xf32>
    %95 = vector.shape_cast %94 : vector<16x16x128xf32> to vector<256x128xf32>
    %96 = arith.truncf %95 : vector<256x128xf32> to vector<256x128xbf16>
    %c0_110 = arith.constant 0 : index
    %c512_111 = arith.constant 512 : index
    %97 = vector.load %arg9[%c0_110, %c512_111] : memref<256x1152xbf16, #tpu.memory_space<vmem>>, vector<256x128xbf16>
    tpu.vector_store %arg9[%c0_110, %c512_111], %96 {strides = array<i32>} : memref<256x1152xbf16, #tpu.memory_space<vmem>>, vector<256x128xbf16>,
    %c1_112 = arith.constant 1 : index
    %c1_113 = arith.constant 1 : index
    %c9_114 = arith.constant 9 : index
    %c0_115 = arith.constant 0 : index
    %98 = vector.load %arg8[%c1_112, %c1_113, %c9_114, %c0_115] : memref<2x18x32x128xf32, #tpu.memory_space<vmem>>, vector<1x16x16x128xf32>
    %99 = vector.shape_cast %98 : vector<1x16x16x128xf32> to vector<16x16x128xf32>
    %100 = vector.shape_cast %99 : vector<16x16x128xf32> to vector<256x128xf32>
    %101 = arith.truncf %100 : vector<256x128xf32> to vector<256x128xbf16>
    %c0_116 = arith.constant 0 : index
    %c640_117 = arith.constant 640 : index
    %102 = vector.load %arg9[%c0_116, %c640_117] : memref<256x1152xbf16, #tpu.memory_space<vmem>>, vector<256x128xbf16>
    tpu.vector_store %arg9[%c0_116, %c640_117], %101 {strides = array<i32>} : memref<256x1152xbf16, #tpu.memory_space<vmem>>, vector<256x128xbf16>,
    %c1_118 = arith.constant 1 : index
    %c2_119 = arith.constant 2 : index
    %c7_120 = arith.constant 7 : index
    %c0_121 = arith.constant 0 : index
    %103 = vector.load %arg8[%c1_118, %c2_119, %c7_120, %c0_121] : memref<2x18x32x128xf32, #tpu.memory_space<vmem>>, vector<1x16x16x128xf32>
    %104 = vector.shape_cast %103 : vector<1x16x16x128xf32> to vector<16x16x128xf32>
    %105 = vector.shape_cast %104 : vector<16x16x128xf32> to vector<256x128xf32>
    %106 = arith.truncf %105 : vector<256x128xf32> to vector<256x128xbf16>
    %c0_122 = arith.constant 0 : index
    %c768_123 = arith.constant 768 : index
    %107 = vector.load %arg9[%c0_122, %c768_123] : memref<256x1152xbf16, #tpu.memory_space<vmem>>, vector<256x128xbf16>
    tpu.vector_store %arg9[%c0_122, %c768_123], %106 {strides = array<i32>} : memref<256x1152xbf16, #tpu.memory_space<vmem>>, vector<256x128xbf16>,
    %c1_124 = arith.constant 1 : index
    %c2_125 = arith.constant 2 : index
    %c8_126 = arith.constant 8 : index
    %c0_127 = arith.constant 0 : index
    %108 = vector.load %arg8[%c1_124, %c2_125, %c8_126, %c0_127] : memref<2x18x32x128xf32, #tpu.memory_space<vmem>>, vector<1x16x16x128xf32>
    %109 = vector.shape_cast %108 : vector<1x16x16x128xf32> to vector<16x16x128xf32>
    %110 = vector.shape_cast %109 : vector<16x16x128xf32> to vector<256x128xf32>
    %111 = arith.truncf %110 : vector<256x128xf32> to vector<256x128xbf16>
    %c0_128 = arith.constant 0 : index
    %c896_129 = arith.constant 896 : index
    %112 = vector.load %arg9[%c0_128, %c896_129] : memref<256x1152xbf16, #tpu.memory_space<vmem>>, vector<256x128xbf16>
    tpu.vector_store %arg9[%c0_128, %c896_129], %111 {strides = array<i32>} : memref<256x1152xbf16, #tpu.memory_space<vmem>>, vector<256x128xbf16>,
    %c1_130 = arith.constant 1 : index
    %c2_131 = arith.constant 2 : index
    %c9_132 = arith.constant 9 : index
    %c0_133 = arith.constant 0 : index
    %113 = vector.load %arg8[%c1_130, %c2_131, %c9_132, %c0_133] : memref<2x18x32x128xf32, #tpu.memory_space<vmem>>, vector<1x16x16x128xf32>
    %114 = vector.shape_cast %113 : vector<1x16x16x128xf32> to vector<16x16x128xf32>
    %115 = vector.shape_cast %114 : vector<16x16x128xf32> to vector<256x128xf32>
    %116 = arith.truncf %115 : vector<256x128xf32> to vector<256x128xbf16>
    %c0_134 = arith.constant 0 : index
    %c1024_135 = arith.constant 1024 : index
    %117 = vector.load %arg9[%c0_134, %c1024_135] : memref<256x1152xbf16, #tpu.memory_space<vmem>>, vector<256x128xbf16>
    tpu.vector_store %arg9[%c0_134, %c1024_135], %116 {strides = array<i32>} : memref<256x1152xbf16, #tpu.memory_space<vmem>>, vector<256x128xbf16>,
    %c0_136 = arith.constant 0 : index
    %c0_137 = arith.constant 0 : index
    %118 = vector.load %arg9[%c0_136, %c0_137] : memref<256x1152xbf16, #tpu.memory_space<vmem>>, vector<256x1152xbf16>
    %cst_138 = arith.constant dense<0.000000e+00> : vector<256x128xf32>
    %119 = tpu.matmul %118, %10, %cst_138 {dimension_numbers = #tpu.dot_dimension_numbers<[1], [0], [0], [1], [0, 0, 1, 1], [], []>} : vector<256x1152xbf16>, vector<1152x128xbf16>, vector<256x128xf32> -> vector<256x128xf32>
    %120 = vector.shape_cast %119 : vector<256x128xf32> to vector<16x16x128xf32>
    %c1_139 = arith.constant 1 : index
    %c0_140 = arith.constant 0 : index
    %c0_141 = arith.constant 0 : index
    %c0_142 = arith.constant 0 : index
    %121 = vector.load %arg10[%c1_139, %c0_140, %c0_141, %c0_142] : memref<2x16x16x128xf32, #tpu.memory_space<vmem>>, vector<1x16x16x128xf32>
    %122 = vector.shape_cast %121 : vector<1x16x16x128xf32> to vector<16x16x128xf32>
    %123 = vector.shape_cast %120 : vector<16x16x128xf32> to vector<1x16x16x128xf32>
    tpu.vector_store %arg10[%c1_139, %c0_140, %c0_141, %c0_142], %123 {strides = array<i32>} : memref<2x16x16x128xf32, #tpu.memory_space<vmem>>, vector<1x16x16x128xf32>,
    %cst_143 = arith.constant dense<0.000000e+00> : vector<128xf32>
    %124 = vector.multi_reduction <add>, %119, %cst_143 [0] : vector<256x128xf32> to vector<128xf32>
    %125 = vector.shape_cast %124 : vector<128xf32> to vector<1x128xf32>
    %126 = arith.addf %68, %125 : vector<1x128xf32>
    %127 = arith.mulf %119, %119 : vector<256x128xf32>
    %cst_144 = arith.constant dense<0.000000e+00> : vector<128xf32>
    %128 = vector.multi_reduction <add>, %127, %cst_144 [0] : vector<256x128xf32> to vector<128xf32>
    %129 = vector.shape_cast %128 : vector<128xf32> to vector<1x128xf32>
    %130 = arith.addf %72, %129 : vector<1x128xf32>
    %cst_145 = arith.constant 0.001953125 : f32
    %131 = vector.broadcast %cst_145 : f32 to vector<1x128xf32>
    %132 = arith.mulf %126, %131 : vector<1x128xf32>
    %cst_146 = arith.constant 0.001953125 : f32
    %133 = vector.broadcast %cst_146 : f32 to vector<1x128xf32>
    %134 = arith.mulf %130, %133 : vector<1x128xf32>
    %135 = arith.mulf %132, %132 : vector<1x128xf32>
    %136 = arith.subf %134, %135 : vector<1x128xf32>
    %cst_147 = arith.constant 0.000000e+00 : f32
    %137 = vector.broadcast %cst_147 : f32 to vector<1x128xf32>
    %138 = arith.maximumf %136, %137 : vector<1x128xf32>
    %cst_148 = arith.constant 9.99999974E-6 : f32
    %139 = vector.broadcast %cst_148 : f32 to vector<1x128xf32>
    %140 = arith.addf %138, %139 : vector<1x128xf32>
    %141 = math.rsqrt %140 : vector<1x128xf32>
    %142 = arith.mulf %141, %11 : vector<1x128xf32>
    %143 = arith.mulf %132, %142 : vector<1x128xf32>
    %144 = arith.subf %12, %143 : vector<1x128xf32>
    %145 = vector.shape_cast %142 : vector<1x128xf32> to vector<1x1x1x128xf32>
    %146 = vector.shape_cast %144 : vector<1x128xf32> to vector<1x1x1x128xf32>
    %c0_149 = arith.constant 0 : index
    %c0_150 = arith.constant 0 : index
    %c0_151 = arith.constant 0 : index
    %c0_152 = arith.constant 0 : index
    %147 = vector.load %arg10[%c0_149, %c0_150, %c0_151, %c0_152] : memref<2x16x16x128xf32, #tpu.memory_space<vmem>>, vector<2x16x16x128xf32>
    %148 = vector.broadcast %145 : vector<1x1x1x128xf32> to vector<2x16x16x128xf32>
    %149 = arith.mulf %147, %148 : vector<2x16x16x128xf32>
    %150 = vector.broadcast %146 : vector<1x1x1x128xf32> to vector<2x16x16x128xf32>
    %151 = arith.addf %149, %150 : vector<2x16x16x128xf32>
    %cst_153 = arith.constant 0.000000e+00 : f32
    %152 = vector.broadcast %cst_153 : f32 to vector<2x16x16x128xf32>
    %153 = arith.maximumf %151, %152 : vector<2x16x16x128xf32>
    %c0_154 = arith.constant 0 : index
    %c1_155 = arith.constant 1 : index
    %c8_156 = arith.constant 8 : index
    %c0_157 = arith.constant 0 : index
    %154 = vector.load %arg8[%c0_154, %c1_155, %c8_156, %c0_157] : memref<2x18x32x128xf32, #tpu.memory_space<vmem>>, vector<2x16x16x128xf32>
    tpu.vector_store %arg8[%c0_154, %c1_155, %c8_156, %c0_157], %153 {strides = array<i32>} : memref<2x18x32x128xf32, #tpu.memory_space<vmem>>, vector<2x16x16x128xf32>,
    %c0_158 = arith.constant 0 : index
    %c0_159 = arith.constant 0 : index
    %155 = vector.load %arg2[%c0_158, %c0_159] : memref<1152x128xbf16, #tpu.memory_space<vmem>>, vector<1152x128xbf16>
    %c0_160 = arith.constant 0 : index
    %c0_161 = arith.constant 0 : index
    %156 = vector.load %arg5[%c0_160, %c0_161] : memref<1x128xf32, #tpu.memory_space<vmem>>, vector<1x128xf32>
    %c0_162 = arith.constant 0 : index
    %c0_163 = arith.constant 0 : index
    %157 = vector.load %arg6[%c0_162, %c0_163] : memref<1x128xf32, #tpu.memory_space<vmem>>, vector<1x128xf32>
    %cst_164 = arith.constant 0.000000e+00 : f32
    %158 = vector.broadcast %cst_164 : f32 to vector<1x128xf32>
    %cst_165 = arith.constant 0.000000e+00 : f32
    %159 = vector.broadcast %cst_165 : f32 to vector<1x128xf32>
    %c0_166 = arith.constant 0 : index
    %c0_167 = arith.constant 0 : index
    %c7_168 = arith.constant 7 : index
    %c0_169 = arith.constant 0 : index
    %160 = vector.load %arg8[%c0_166, %c0_167, %c7_168, %c0_169] : memref<2x18x32x128xf32, #tpu.memory_space<vmem>>, vector<1x16x16x128xf32>
    %161 = vector.shape_cast %160 : vector<1x16x16x128xf32> to vector<16x16x128xf32>
    %162 = vector.shape_cast %161 : vector<16x16x128xf32> to vector<256x128xf32>
    %163 = arith.truncf %162 : vector<256x128xf32> to vector<256x128xbf16>
    %c0_170 = arith.constant 0 : index
    %c0_171 = arith.constant 0 : index
    %164 = vector.load %arg9[%c0_170, %c0_171] : memref<256x1152xbf16, #tpu.memory_space<vmem>>, vector<256x128xbf16>
    tpu.vector_store %arg9[%c0_170, %c0_171], %163 {strides = array<i32>} : memref<256x1152xbf16, #tpu.memory_space<vmem>>, vector<256x128xbf16>,
    %c0_172 = arith.constant 0 : index
    %c0_173 = arith.constant 0 : index
    %c8_174 = arith.constant 8 : index
    %c0_175 = arith.constant 0 : index
    %165 = vector.load %arg8[%c0_172, %c0_173, %c8_174, %c0_175] : memref<2x18x32x128xf32, #tpu.memory_space<vmem>>, vector<1x16x16x128xf32>
    %166 = vector.shape_cast %165 : vector<1x16x16x128xf32> to vector<16x16x128xf32>
    %167 = vector.shape_cast %166 : vector<16x16x128xf32> to vector<256x128xf32>
    %168 = arith.truncf %167 : vector<256x128xf32> to vector<256x128xbf16>
    %c0_176 = arith.constant 0 : index
    %c128_177 = arith.constant 128 : index
    %169 = vector.load %arg9[%c0_176, %c128_177] : memref<256x1152xbf16, #tpu.memory_space<vmem>>, vector<256x128xbf16>
    tpu.vector_store %arg9[%c0_176, %c128_177], %168 {strides = array<i32>} : memref<256x1152xbf16, #tpu.memory_space<vmem>>, vector<256x128xbf16>,
    %c0_178 = arith.constant 0 : index
    %c0_179 = arith.constant 0 : index
    %c9_180 = arith.constant 9 : index
    %c0_181 = arith.constant 0 : index
    %170 = vector.load %arg8[%c0_178, %c0_179, %c9_180, %c0_181] : memref<2x18x32x128xf32, #tpu.memory_space<vmem>>, vector<1x16x16x128xf32>
    %171 = vector.shape_cast %170 : vector<1x16x16x128xf32> to vector<16x16x128xf32>
    %172 = vector.shape_cast %171 : vector<16x16x128xf32> to vector<256x128xf32>
    %173 = arith.truncf %172 : vector<256x128xf32> to vector<256x128xbf16>
    %c0_182 = arith.constant 0 : index
    %c256_183 = arith.constant 256 : index
    %174 = vector.load %arg9[%c0_182, %c256_183] : memref<256x1152xbf16, #tpu.memory_space<vmem>>, vector<256x128xbf16>
    tpu.vector_store %arg9[%c0_182, %c256_183], %173 {strides = array<i32>} : memref<256x1152xbf16, #tpu.memory_space<vmem>>, vector<256x128xbf16>,
    %c0_184 = arith.constant 0 : index
    %c1_185 = arith.constant 1 : index
    %c7_186 = arith.constant 7 : index
    %c0_187 = arith.constant 0 : index
    %175 = vector.load %arg8[%c0_184, %c1_185, %c7_186, %c0_187] : memref<2x18x32x128xf32, #tpu.memory_space<vmem>>, vector<1x16x16x128xf32>
    %176 = vector.shape_cast %175 : vector<1x16x16x128xf32> to vector<16x16x128xf32>
    %177 = vector.shape_cast %176 : vector<16x16x128xf32> to vector<256x128xf32>
    %178 = arith.truncf %177 : vector<256x128xf32> to vector<256x128xbf16>
    %c0_188 = arith.constant 0 : index
    %c384_189 = arith.constant 384 : index
    %179 = vector.load %arg9[%c0_188, %c384_189] : memref<256x1152xbf16, #tpu.memory_space<vmem>>, vector<256x128xbf16>
    tpu.vector_store %arg9[%c0_188, %c384_189], %178 {strides = array<i32>} : memref<256x1152xbf16, #tpu.memory_space<vmem>>, vector<256x128xbf16>,
    %c0_190 = arith.constant 0 : index
    %c1_191 = arith.constant 1 : index
    %c8_192 = arith.constant 8 : index
    %c0_193 = arith.constant 0 : index
    %180 = vector.load %arg8[%c0_190, %c1_191, %c8_192, %c0_193] : memref<2x18x32x128xf32, #tpu.memory_space<vmem>>, vector<1x16x16x128xf32>
    %181 = vector.shape_cast %180 : vector<1x16x16x128xf32> to vector<16x16x128xf32>
    %182 = vector.shape_cast %181 : vector<16x16x128xf32> to vector<256x128xf32>
    %183 = arith.truncf %182 : vector<256x128xf32> to vector<256x128xbf16>
    %c0_194 = arith.constant 0 : index
    %c512_195 = arith.constant 512 : index
    %184 = vector.load %arg9[%c0_194, %c512_195] : memref<256x1152xbf16, #tpu.memory_space<vmem>>, vector<256x128xbf16>
    tpu.vector_store %arg9[%c0_194, %c512_195], %183 {strides = array<i32>} : memref<256x1152xbf16, #tpu.memory_space<vmem>>, vector<256x128xbf16>,
    %c0_196 = arith.constant 0 : index
    %c1_197 = arith.constant 1 : index
    %c9_198 = arith.constant 9 : index
    %c0_199 = arith.constant 0 : index
    %185 = vector.load %arg8[%c0_196, %c1_197, %c9_198, %c0_199] : memref<2x18x32x128xf32, #tpu.memory_space<vmem>>, vector<1x16x16x128xf32>
    %186 = vector.shape_cast %185 : vector<1x16x16x128xf32> to vector<16x16x128xf32>
    %187 = vector.shape_cast %186 : vector<16x16x128xf32> to vector<256x128xf32>
    %188 = arith.truncf %187 : vector<256x128xf32> to vector<256x128xbf16>
    %c0_200 = arith.constant 0 : index
    %c640_201 = arith.constant 640 : index
    %189 = vector.load %arg9[%c0_200, %c640_201] : memref<256x1152xbf16, #tpu.memory_space<vmem>>, vector<256x128xbf16>
    tpu.vector_store %arg9[%c0_200, %c640_201], %188 {strides = array<i32>} : memref<256x1152xbf16, #tpu.memory_space<vmem>>, vector<256x128xbf16>,
    %c0_202 = arith.constant 0 : index
    %c2_203 = arith.constant 2 : index
    %c7_204 = arith.constant 7 : index
    %c0_205 = arith.constant 0 : index
    %190 = vector.load %arg8[%c0_202, %c2_203, %c7_204, %c0_205] : memref<2x18x32x128xf32, #tpu.memory_space<vmem>>, vector<1x16x16x128xf32>
    %191 = vector.shape_cast %190 : vector<1x16x16x128xf32> to vector<16x16x128xf32>
    %192 = vector.shape_cast %191 : vector<16x16x128xf32> to vector<256x128xf32>
    %193 = arith.truncf %192 : vector<256x128xf32> to vector<256x128xbf16>
    %c0_206 = arith.constant 0 : index
    %c768_207 = arith.constant 768 : index
    %194 = vector.load %arg9[%c0_206, %c768_207] : memref<256x1152xbf16, #tpu.memory_space<vmem>>, vector<256x128xbf16>
    tpu.vector_store %arg9[%c0_206, %c768_207], %193 {strides = array<i32>} : memref<256x1152xbf16, #tpu.memory_space<vmem>>, vector<256x128xbf16>,
    %c0_208 = arith.constant 0 : index
    %c2_209 = arith.constant 2 : index
    %c8_210 = arith.constant 8 : index
    %c0_211 = arith.constant 0 : index
    %195 = vector.load %arg8[%c0_208, %c2_209, %c8_210, %c0_211] : memref<2x18x32x128xf32, #tpu.memory_space<vmem>>, vector<1x16x16x128xf32>
    %196 = vector.shape_cast %195 : vector<1x16x16x128xf32> to vector<16x16x128xf32>
    %197 = vector.shape_cast %196 : vector<16x16x128xf32> to vector<256x128xf32>
    %198 = arith.truncf %197 : vector<256x128xf32> to vector<256x128xbf16>
    %c0_212 = arith.constant 0 : index
    %c896_213 = arith.constant 896 : index
    %199 = vector.load %arg9[%c0_212, %c896_213] : memref<256x1152xbf16, #tpu.memory_space<vmem>>, vector<256x128xbf16>
    tpu.vector_store %arg9[%c0_212, %c896_213], %198 {strides = array<i32>} : memref<256x1152xbf16, #tpu.memory_space<vmem>>, vector<256x128xbf16>,
    %c0_214 = arith.constant 0 : index
    %c2_215 = arith.constant 2 : index
    %c9_216 = arith.constant 9 : index
    %c0_217 = arith.constant 0 : index
    %200 = vector.load %arg8[%c0_214, %c2_215, %c9_216, %c0_217] : memref<2x18x32x128xf32, #tpu.memory_space<vmem>>, vector<1x16x16x128xf32>
    %201 = vector.shape_cast %200 : vector<1x16x16x128xf32> to vector<16x16x128xf32>
    %202 = vector.shape_cast %201 : vector<16x16x128xf32> to vector<256x128xf32>
    %203 = arith.truncf %202 : vector<256x128xf32> to vector<256x128xbf16>
    %c0_218 = arith.constant 0 : index
    %c1024_219 = arith.constant 1024 : index
    %204 = vector.load %arg9[%c0_218, %c1024_219] : memref<256x1152xbf16, #tpu.memory_space<vmem>>, vector<256x128xbf16>
    tpu.vector_store %arg9[%c0_218, %c1024_219], %203 {strides = array<i32>} : memref<256x1152xbf16, #tpu.memory_space<vmem>>, vector<256x128xbf16>,
    %c0_220 = arith.constant 0 : index
    %c0_221 = arith.constant 0 : index
    %205 = vector.load %arg9[%c0_220, %c0_221] : memref<256x1152xbf16, #tpu.memory_space<vmem>>, vector<256x1152xbf16>
    %cst_222 = arith.constant dense<0.000000e+00> : vector<256x128xf32>
    %206 = tpu.matmul %205, %155, %cst_222 {dimension_numbers = #tpu.dot_dimension_numbers<[1], [0], [0], [1], [0, 0, 1, 1], [], []>} : vector<256x1152xbf16>, vector<1152x128xbf16>, vector<256x128xf32> -> vector<256x128xf32>
    %207 = vector.shape_cast %206 : vector<256x128xf32> to vector<16x16x128xf32>
    %c0_223 = arith.constant 0 : index
    %c0_224 = arith.constant 0 : index
    %c0_225 = arith.constant 0 : index
    %c0_226 = arith.constant 0 : index
    %208 = vector.load %arg10[%c0_223, %c0_224, %c0_225, %c0_226] : memref<2x16x16x128xf32, #tpu.memory_space<vmem>>, vector<1x16x16x128xf32>
    %209 = vector.shape_cast %208 : vector<1x16x16x128xf32> to vector<16x16x128xf32>
    %210 = vector.shape_cast %207 : vector<16x16x128xf32> to vector<1x16x16x128xf32>
    tpu.vector_store %arg10[%c0_223, %c0_224, %c0_225, %c0_226], %210 {strides = array<i32>} : memref<2x16x16x128xf32, #tpu.memory_space<vmem>>, vector<1x16x16x128xf32>,
    %cst_227 = arith.constant dense<0.000000e+00> : vector<128xf32>
    %211 = vector.multi_reduction <add>, %206, %cst_227 [0] : vector<256x128xf32> to vector<128xf32>
    %212 = vector.shape_cast %211 : vector<128xf32> to vector<1x128xf32>
    %213 = arith.addf %158, %212 : vector<1x128xf32>
    %214 = arith.mulf %206, %206 : vector<256x128xf32>
    %cst_228 = arith.constant dense<0.000000e+00> : vector<128xf32>
    %215 = vector.multi_reduction <add>, %214, %cst_228 [0] : vector<256x128xf32> to vector<128xf32>
    %216 = vector.shape_cast %215 : vector<128xf32> to vector<1x128xf32>
    %217 = arith.addf %159, %216 : vector<1x128xf32>
    %c1_229 = arith.constant 1 : index
    %c0_230 = arith.constant 0 : index
    %c7_231 = arith.constant 7 : index
    %c0_232 = arith.constant 0 : index
    %218 = vector.load %arg8[%c1_229, %c0_230, %c7_231, %c0_232] : memref<2x18x32x128xf32, #tpu.memory_space<vmem>>, vector<1x16x16x128xf32>
    %219 = vector.shape_cast %218 : vector<1x16x16x128xf32> to vector<16x16x128xf32>
    %220 = vector.shape_cast %219 : vector<16x16x128xf32> to vector<256x128xf32>
    %221 = arith.truncf %220 : vector<256x128xf32> to vector<256x128xbf16>
    %c0_233 = arith.constant 0 : index
    %c0_234 = arith.constant 0 : index
    %222 = vector.load %arg9[%c0_233, %c0_234] : memref<256x1152xbf16, #tpu.memory_space<vmem>>, vector<256x128xbf16>
    tpu.vector_store %arg9[%c0_233, %c0_234], %221 {strides = array<i32>} : memref<256x1152xbf16, #tpu.memory_space<vmem>>, vector<256x128xbf16>,
    %c1_235 = arith.constant 1 : index
    %c0_236 = arith.constant 0 : index
    %c8_237 = arith.constant 8 : index
    %c0_238 = arith.constant 0 : index
    %223 = vector.load %arg8[%c1_235, %c0_236, %c8_237, %c0_238] : memref<2x18x32x128xf32, #tpu.memory_space<vmem>>, vector<1x16x16x128xf32>
    %224 = vector.shape_cast %223 : vector<1x16x16x128xf32> to vector<16x16x128xf32>
    %225 = vector.shape_cast %224 : vector<16x16x128xf32> to vector<256x128xf32>
    %226 = arith.truncf %225 : vector<256x128xf32> to vector<256x128xbf16>
    %c0_239 = arith.constant 0 : index
    %c128_240 = arith.constant 128 : index
    %227 = vector.load %arg9[%c0_239, %c128_240] : memref<256x1152xbf16, #tpu.memory_space<vmem>>, vector<256x128xbf16>
    tpu.vector_store %arg9[%c0_239, %c128_240], %226 {strides = array<i32>} : memref<256x1152xbf16, #tpu.memory_space<vmem>>, vector<256x128xbf16>,
    %c1_241 = arith.constant 1 : index
    %c0_242 = arith.constant 0 : index
    %c9_243 = arith.constant 9 : index
    %c0_244 = arith.constant 0 : index
    %228 = vector.load %arg8[%c1_241, %c0_242, %c9_243, %c0_244] : memref<2x18x32x128xf32, #tpu.memory_space<vmem>>, vector<1x16x16x128xf32>
    %229 = vector.shape_cast %228 : vector<1x16x16x128xf32> to vector<16x16x128xf32>
    %230 = vector.shape_cast %229 : vector<16x16x128xf32> to vector<256x128xf32>
    %231 = arith.truncf %230 : vector<256x128xf32> to vector<256x128xbf16>
    %c0_245 = arith.constant 0 : index
    %c256_246 = arith.constant 256 : index
    %232 = vector.load %arg9[%c0_245, %c256_246] : memref<256x1152xbf16, #tpu.memory_space<vmem>>, vector<256x128xbf16>
    tpu.vector_store %arg9[%c0_245, %c256_246], %231 {strides = array<i32>} : memref<256x1152xbf16, #tpu.memory_space<vmem>>, vector<256x128xbf16>,
    %c1_247 = arith.constant 1 : index
    %c1_248 = arith.constant 1 : index
    %c7_249 = arith.constant 7 : index
    %c0_250 = arith.constant 0 : index
    %233 = vector.load %arg8[%c1_247, %c1_248, %c7_249, %c0_250] : memref<2x18x32x128xf32, #tpu.memory_space<vmem>>, vector<1x16x16x128xf32>
    %234 = vector.shape_cast %233 : vector<1x16x16x128xf32> to vector<16x16x128xf32>
    %235 = vector.shape_cast %234 : vector<16x16x128xf32> to vector<256x128xf32>
    %236 = arith.truncf %235 : vector<256x128xf32> to vector<256x128xbf16>
    %c0_251 = arith.constant 0 : index
    %c384_252 = arith.constant 384 : index
    %237 = vector.load %arg9[%c0_251, %c384_252] : memref<256x1152xbf16, #tpu.memory_space<vmem>>, vector<256x128xbf16>
    tpu.vector_store %arg9[%c0_251, %c384_252], %236 {strides = array<i32>} : memref<256x1152xbf16, #tpu.memory_space<vmem>>, vector<256x128xbf16>,
    %c1_253 = arith.constant 1 : index
    %c1_254 = arith.constant 1 : index
    %c8_255 = arith.constant 8 : index
    %c0_256 = arith.constant 0 : index
    %238 = vector.load %arg8[%c1_253, %c1_254, %c8_255, %c0_256] : memref<2x18x32x128xf32, #tpu.memory_space<vmem>>, vector<1x16x16x128xf32>
    %239 = vector.shape_cast %238 : vector<1x16x16x128xf32> to vector<16x16x128xf32>
    %240 = vector.shape_cast %239 : vector<16x16x128xf32> to vector<256x128xf32>
    %241 = arith.truncf %240 : vector<256x128xf32> to vector<256x128xbf16>
    %c0_257 = arith.constant 0 : index
    %c512_258 = arith.constant 512 : index
    %242 = vector.load %arg9[%c0_257, %c512_258] : memref<256x1152xbf16, #tpu.memory_space<vmem>>, vector<256x128xbf16>
    tpu.vector_store %arg9[%c0_257, %c512_258], %241 {strides = array<i32>} : memref<256x1152xbf16, #tpu.memory_space<vmem>>, vector<256x128xbf16>,
    %c1_259 = arith.constant 1 : index
    %c1_260 = arith.constant 1 : index
    %c9_261 = arith.constant 9 : index
    %c0_262 = arith.constant 0 : index
    %243 = vector.load %arg8[%c1_259, %c1_260, %c9_261, %c0_262] : memref<2x18x32x128xf32, #tpu.memory_space<vmem>>, vector<1x16x16x128xf32>
    %244 = vector.shape_cast %243 : vector<1x16x16x128xf32> to vector<16x16x128xf32>
    %245 = vector.shape_cast %244 : vector<16x16x128xf32> to vector<256x128xf32>
    %246 = arith.truncf %245 : vector<256x128xf32> to vector<256x128xbf16>
    %c0_263 = arith.constant 0 : index
    %c640_264 = arith.constant 640 : index
    %247 = vector.load %arg9[%c0_263, %c640_264] : memref<256x1152xbf16, #tpu.memory_space<vmem>>, vector<256x128xbf16>
    tpu.vector_store %arg9[%c0_263, %c640_264], %246 {strides = array<i32>} : memref<256x1152xbf16, #tpu.memory_space<vmem>>, vector<256x128xbf16>,
    %c1_265 = arith.constant 1 : index
    %c2_266 = arith.constant 2 : index
    %c7_267 = arith.constant 7 : index
    %c0_268 = arith.constant 0 : index
    %248 = vector.load %arg8[%c1_265, %c2_266, %c7_267, %c0_268] : memref<2x18x32x128xf32, #tpu.memory_space<vmem>>, vector<1x16x16x128xf32>
    %249 = vector.shape_cast %248 : vector<1x16x16x128xf32> to vector<16x16x128xf32>
    %250 = vector.shape_cast %249 : vector<16x16x128xf32> to vector<256x128xf32>
    %251 = arith.truncf %250 : vector<256x128xf32> to vector<256x128xbf16>
    %c0_269 = arith.constant 0 : index
    %c768_270 = arith.constant 768 : index
    %252 = vector.load %arg9[%c0_269, %c768_270] : memref<256x1152xbf16, #tpu.memory_space<vmem>>, vector<256x128xbf16>
    tpu.vector_store %arg9[%c0_269, %c768_270], %251 {strides = array<i32>} : memref<256x1152xbf16, #tpu.memory_space<vmem>>, vector<256x128xbf16>,
    %c1_271 = arith.constant 1 : index
    %c2_272 = arith.constant 2 : index
    %c8_273 = arith.constant 8 : index
    %c0_274 = arith.constant 0 : index
    %253 = vector.load %arg8[%c1_271, %c2_272, %c8_273, %c0_274] : memref<2x18x32x128xf32, #tpu.memory_space<vmem>>, vector<1x16x16x128xf32>
    %254 = vector.shape_cast %253 : vector<1x16x16x128xf32> to vector<16x16x128xf32>
    %255 = vector.shape_cast %254 : vector<16x16x128xf32> to vector<256x128xf32>
    %256 = arith.truncf %255 : vector<256x128xf32> to vector<256x128xbf16>
    %c0_275 = arith.constant 0 : index
    %c896_276 = arith.constant 896 : index
    %257 = vector.load %arg9[%c0_275, %c896_276] : memref<256x1152xbf16, #tpu.memory_space<vmem>>, vector<256x128xbf16>
    tpu.vector_store %arg9[%c0_275, %c896_276], %256 {strides = array<i32>} : memref<256x1152xbf16, #tpu.memory_space<vmem>>, vector<256x128xbf16>,
    %c1_277 = arith.constant 1 : index
    %c2_278 = arith.constant 2 : index
    %c9_279 = arith.constant 9 : index
    %c0_280 = arith.constant 0 : index
    %258 = vector.load %arg8[%c1_277, %c2_278, %c9_279, %c0_280] : memref<2x18x32x128xf32, #tpu.memory_space<vmem>>, vector<1x16x16x128xf32>
    %259 = vector.shape_cast %258 : vector<1x16x16x128xf32> to vector<16x16x128xf32>
    %260 = vector.shape_cast %259 : vector<16x16x128xf32> to vector<256x128xf32>
    %261 = arith.truncf %260 : vector<256x128xf32> to vector<256x128xbf16>
    %c0_281 = arith.constant 0 : index
    %c1024_282 = arith.constant 1024 : index
    %262 = vector.load %arg9[%c0_281, %c1024_282] : memref<256x1152xbf16, #tpu.memory_space<vmem>>, vector<256x128xbf16>
    tpu.vector_store %arg9[%c0_281, %c1024_282], %261 {strides = array<i32>} : memref<256x1152xbf16, #tpu.memory_space<vmem>>, vector<256x128xbf16>,
    %c0_283 = arith.constant 0 : index
    %c0_284 = arith.constant 0 : index
    %263 = vector.load %arg9[%c0_283, %c0_284] : memref<256x1152xbf16, #tpu.memory_space<vmem>>, vector<256x1152xbf16>
    %cst_285 = arith.constant dense<0.000000e+00> : vector<256x128xf32>
    %264 = tpu.matmul %263, %155, %cst_285 {dimension_numbers = #tpu.dot_dimension_numbers<[1], [0], [0], [1], [0, 0, 1, 1], [], []>} : vector<256x1152xbf16>, vector<1152x128xbf16>, vector<256x128xf32> -> vector<256x128xf32>
    %265 = vector.shape_cast %264 : vector<256x128xf32> to vector<16x16x128xf32>
    %c1_286 = arith.constant 1 : index
    %c0_287 = arith.constant 0 : index
    %c0_288 = arith.constant 0 : index
    %c0_289 = arith.constant 0 : index
    %266 = vector.load %arg10[%c1_286, %c0_287, %c0_288, %c0_289] : memref<2x16x16x128xf32, #tpu.memory_space<vmem>>, vector<1x16x16x128xf32>
    %267 = vector.shape_cast %266 : vector<1x16x16x128xf32> to vector<16x16x128xf32>
    %268 = vector.shape_cast %265 : vector<16x16x128xf32> to vector<1x16x16x128xf32>
    tpu.vector_store %arg10[%c1_286, %c0_287, %c0_288, %c0_289], %268 {strides = array<i32>} : memref<2x16x16x128xf32, #tpu.memory_space<vmem>>, vector<1x16x16x128xf32>,
    %cst_290 = arith.constant dense<0.000000e+00> : vector<128xf32>
    %269 = vector.multi_reduction <add>, %264, %cst_290 [0] : vector<256x128xf32> to vector<128xf32>
    %270 = vector.shape_cast %269 : vector<128xf32> to vector<1x128xf32>
    %271 = arith.addf %213, %270 : vector<1x128xf32>
    %272 = arith.mulf %264, %264 : vector<256x128xf32>
    %cst_291 = arith.constant dense<0.000000e+00> : vector<128xf32>
    %273 = vector.multi_reduction <add>, %272, %cst_291 [0] : vector<256x128xf32> to vector<128xf32>
    %274 = vector.shape_cast %273 : vector<128xf32> to vector<1x128xf32>
    %275 = arith.addf %217, %274 : vector<1x128xf32>
    %cst_292 = arith.constant 0.001953125 : f32
    %276 = vector.broadcast %cst_292 : f32 to vector<1x128xf32>
    %277 = arith.mulf %271, %276 : vector<1x128xf32>
    %cst_293 = arith.constant 0.001953125 : f32
    %278 = vector.broadcast %cst_293 : f32 to vector<1x128xf32>
    %279 = arith.mulf %275, %278 : vector<1x128xf32>
    %280 = arith.mulf %277, %277 : vector<1x128xf32>
    %281 = arith.subf %279, %280 : vector<1x128xf32>
    %cst_294 = arith.constant 0.000000e+00 : f32
    %282 = vector.broadcast %cst_294 : f32 to vector<1x128xf32>
    %283 = arith.maximumf %281, %282 : vector<1x128xf32>
    %cst_295 = arith.constant 9.99999974E-6 : f32
    %284 = vector.broadcast %cst_295 : f32 to vector<1x128xf32>
    %285 = arith.addf %283, %284 : vector<1x128xf32>
    %286 = math.rsqrt %285 : vector<1x128xf32>
    %287 = arith.mulf %286, %156 : vector<1x128xf32>
    %288 = arith.mulf %277, %287 : vector<1x128xf32>
    %289 = arith.subf %157, %288 : vector<1x128xf32>
    %290 = vector.shape_cast %287 : vector<1x128xf32> to vector<1x1x1x128xf32>
    %291 = vector.shape_cast %289 : vector<1x128xf32> to vector<1x1x1x128xf32>
    %c0_296 = arith.constant 0 : index
    %c0_297 = arith.constant 0 : index
    %c0_298 = arith.constant 0 : index
    %c0_299 = arith.constant 0 : index
    %292 = vector.load %arg0[%c0_296, %c0_297, %c0_298, %c0_299] : memref<2x16x16x128xf32, #tpu.memory_space<vmem>>, vector<2x16x16x128xf32>
    %c0_300 = arith.constant 0 : index
    %c0_301 = arith.constant 0 : index
    %c0_302 = arith.constant 0 : index
    %c0_303 = arith.constant 0 : index
    %293 = vector.load %arg10[%c0_300, %c0_301, %c0_302, %c0_303] : memref<2x16x16x128xf32, #tpu.memory_space<vmem>>, vector<2x16x16x128xf32>
    %294 = vector.broadcast %290 : vector<1x1x1x128xf32> to vector<2x16x16x128xf32>
    %295 = arith.mulf %293, %294 : vector<2x16x16x128xf32>
    %296 = vector.broadcast %291 : vector<1x1x1x128xf32> to vector<2x16x16x128xf32>
    %297 = arith.addf %295, %296 : vector<2x16x16x128xf32>
    %298 = arith.addf %297, %292 : vector<2x16x16x128xf32>
    %cst_304 = arith.constant 0.000000e+00 : f32
    %299 = vector.broadcast %cst_304 : f32 to vector<2x16x16x128xf32>
    %300 = arith.maximumf %298, %299 : vector<2x16x16x128xf32>
    %c0_305 = arith.constant 0 : index
    %c0_306 = arith.constant 0 : index
    %c0_307 = arith.constant 0 : index
    %c0_308 = arith.constant 0 : index
    %301 = vector.load %arg7[%c0_305, %c0_306, %c0_307, %c0_308] : memref<2x16x16x128xf32, #tpu.memory_space<vmem>>, vector<2x16x16x128xf32>
    tpu.vector_store %arg7[%c0_305, %c0_306, %c0_307, %c0_308], %300 {strides = array<i32>} : memref<2x16x16x128xf32, #tpu.memory_space<vmem>>, vector<2x16x16x128xf32>,
    return
  }
}

</mosaic_0001>

<bundles_post_ra>
// kernel: tpu_custom_call.1
= control target key start
LH: loop header
LB: loop body
LE: loop exit
PB: predicated region body
PF: predicated region fallthrough
CT: control target
= control target key end

     0   :  { %12 = vsyncpa [#allocation6], 0  ;;  %s15993_s0 = inlined_call_operand.hbm [shape: f32[2,16,16,128], index: 0, kind: input, shape index: {}]   ;;  %s15994_s1 = inlined_call_operand.hbm [shape: bf16[1152,128], index: 1, kind: input, shape index: {}]   ;;  %s15995_s2 = inlined_call_operand.hbm [shape: bf16[1152,128], index: 2, kind: input, shape index: {}]   ;;  %s15996_s3 = inlined_call_operand.vmem [shape: f32[1,128], index: 3, kind: input, shape index: {}]   ;;  %s15997_s4 = inlined_call_operand.vmem [shape: f32[1,128], index: 4, kind: input, shape index: {}]   ;;  %s15998_s5 = inlined_call_operand.vmem [shape: f32[1,128], index: 5, kind: input, shape index: {}]   ;;  %s15999_s6 = inlined_call_operand.vmem [shape: f32[1,128], index: 6, kind: input, shape index: {}]   ;;  %s16000_s7 = inlined_call_operand.hbm [shape: f32[2,16,16,128], index: 7, kind: output, shape index: {}]  }
   0x1   :  { %13 = vsyncpa [#allocation9], 0 }
   0x2   :  { %14 = vsyncpa [#allocation7], 0  ;;  %s11547_s24 = smov [#allocation8]   ;;  %s11453_s28 = scalar_lea.hbm %s15994_s1, 9216 }
   0x3   :  { %s32_s25 = sshll.u32 %s11547_s24, 4  ;;  %p11454_p0 = scmp.ne.s32.totalorder %s15994_s1, %s11453_s28  ;;  %s33_s25 = int_to_ptr.vmem [resolvable:$true] %s32_s25 }
   0x4   :  { %p11457_p1 = scmp.lt.u32.totalorder %s11453_s28, %s15994_s1 }
   0x6   :  { %p11459_p2 = pnand %p11457_p1, %p11454_p0 }
   0x8   :  { %11462 = shalt.err (!%p11459_p2)
}
   0x9   :  { %s11463_s10 = scalar_lea.vmem %s33_s25, 9216  ;;  %p11468_p4 = scmp.lt.s32.totalorder %s33_s25, %s33_s25 }
   0xa   :  { %p11464_p3 = scmp.ne.s32.totalorder %s33_s25, %s11463_s10  ;;  %p11469_p5 = scmp.lt.s32.totalorder %s11463_s10, %s11463_s10 }
   0xc   :  { %p11470_p6 = por %p11469_p5, %p11468_p4 }
   0xe   :  { %p11471_p7 = pnand %p11470_p6, %p11464_p3 }
  0x10   :  { %11474 = shalt.err (!%p11471_p7)
}
  0x11   :  { %s11548_s11 = smov 64   ;;  %s11549_s12 = smov 4  }
  0x12   :  { %38 = dma.hbm_to_vmem [thread:$0]  %s15994_s1, 9216, %s33_s25, [#allocation9], %s11548_s11, %s11548_s11, %s11549_s12  }
  0x13   :  { %s11550_s15 = smov [#allocation5]   ;;  %s11475_s19 = scalar_lea.hbm %s15993_s0, 8192 }
  0x14   :  { %s20_s16 = sshll.u32 %s11550_s15, 4  ;;  %p11476_p8 = scmp.ne.s32.totalorder %s15993_s0, %s11475_s19  ;;  %s21_s16 = int_to_ptr.vmem [resolvable:$true] %s20_s16 }
  0x15   :  { %p11479_p9 = scmp.lt.u32.totalorder %s11475_s19, %s15993_s0 }
  0x17   :  { %p11481_p10 = pnand %p11479_p9, %p11476_p8 }
  0x19   :  { %11484 = shalt.err (!%p11481_p10)
}
  0x1a   :  { %s11485_s24 = scalar_lea.vmem %s21_s16, 8192  ;;  %p11490_p12 = scmp.lt.s32.totalorder %s21_s16, %s21_s16 }
  0x1b   :  { %p11486_p11 = scmp.ne.s32.totalorder %s21_s16, %s11485_s24  ;;  %p11491_p13 = scmp.lt.s32.totalorder %s11485_s24, %s11485_s24 }
  0x1d   :  { %p11492_p0 = por %p11491_p13, %p11490_p12 }
  0x1f   :  { %p11493_p1 = pnand %p11492_p0, %p11486_p11 }
  0x21   :  { %11496 = shalt.err (!%p11493_p1)
}
  0x22   :  { %s11551_s1 = smov 128   ;;  %s11552_s25 = smov 8  }
  0x23   :  { %26 = dma.hbm_to_vmem [thread:$0]  %s15993_s0, 8192, %s21_s16, [#allocation6], %s11551_s1, %s11551_s1, %s11552_s25  }
  0x24   :  { %s11553_s28 = smov [#allocation10]   ;;  %s11497_s9 = scalar_lea.hbm %s15995_s2, 9216 }
  0x25   :  { %s44_s29 = sshll.u32 %s11553_s28, 4  ;;  %p11498_p2 = scmp.ne.s32.totalorder %s15995_s2, %s11497_s9  ;;  %s45_s29 = int_to_ptr.vmem [resolvable:$true] %s44_s29 }
  0x26   :  { %p11501_p3 = scmp.lt.u32.totalorder %s11497_s9, %s15995_s2 }
  0x28   :  { %p11503_p4 = pnand %p11501_p3, %p11498_p2 }
  0x2a   :  { %11506 = shalt.err (!%p11503_p4)
}
  0x2b   :  { %s11507_s17 = scalar_lea.vmem %s45_s29, 9216  ;;  %p11512_p6 = scmp.lt.s32.totalorder %s45_s29, %s45_s29 }
  0x2c   :  { %p11508_p5 = scmp.ne.s32.totalorder %s45_s29, %s11507_s17  ;;  %p11513_p7 = scmp.lt.s32.totalorder %s11507_s17, %s11507_s17 }
  0x2e   :  { %p11514_p8 = por %p11513_p7, %p11512_p6 }
  0x30   :  { %p11515_p9 = pnand %p11514_p8, %p11508_p5 }
  0x32   :  { %11518 = shalt.err (!%p11515_p9)
}
  0x33   :  { %50 = dma.hbm_to_vmem [thread:$0]  %s15995_s2, 9216, %s45_s29, [#allocation9], %s11548_s11, %s11548_s11, %s11549_s12  }
  0x34   :  { %11541 = dma.done.wait [#allocation6], 8192  }
  0x35   :  { %11542 = vsyncadd [#allocation6], 4294959104 }
  0x36   :  { %11543 = dma.done.wait [#allocation9], 18432  }
  0x37   :  { %11544 = vsyncadd [#allocation9], 4294948864  ;;  %v11554_v0 = vmov 0.0   ;;  %v11718_v1 = vld [vmem:[#allocation8 + $0x40] sm:$0xff]   ;;  %v11159_v5 = vld [vmem:[#allocation8 + $0x48] sm:$0xff]   ;;  %v11555_v41 = vmov 0.0|0.0  }
  0x38   :  { %69 = vst [vmem:[#allocation2 + $0x7] sm:$0xff] %v11554_v0  ;;  %70 = vst [vmem:[#allocation2 + $0xf] sm:$0xff] %v11554_v0  ;;  %v11156_v2 = vld [vmem:[#allocation8 + $0xc0] sm:$0xff]   ;;  %9066 = vmatprep.subr.bf16.mxu0 %v11718_v1  ;;  %v11160_v6 = vld [vmem:[#allocation8 + $0xc8] sm:$0xff]  }
  0x39   :  { %71 = vst [vmem:[#allocation2 + $0x17] sm:$0x3] %v11554_v0  ;;  %72 = vst [vmem:[#allocation2 + $0x247] sm:$0xff] %v11554_v0  ;;  %v11157_v3 = vld [vmem:[#allocation8] sm:$0xff]   ;;  %9178 = vmatprep.subr.bf16.mxu1 %v11156_v2  ;;  %v11161_v7 = vld [vmem:[#allocation8 + $0x8] sm:$0xff]  }
  0x3a   :  { %73 = vst [vmem:[#allocation2 + $0x24f] sm:$0xff] %v11554_v0  ;;  %74 = vst [vmem:[#allocation2 + $0x257] sm:$0x3] %v11554_v0  ;;  %v11158_v4 = vld [vmem:[#allocation8 + $0x80] sm:$0xff]   ;;  %9067 = vmatpush3.bf16.msra.mxu0 %v11157_v3  ;;  %v11162_v8 = vld [vmem:[#allocation8 + $0x88] sm:$0xff]  }
  0x3b   :  { %76 = vst [vmem:[#allocation2 + $0x227] sm:$0xff] %v11554_v0  ;;  %77 = vst [vmem:[#allocation2 + $0x22f] sm:$0xff] %v11554_v0  ;;  %9179 = vmatpush3.bf16.msra.mxu1 %v11158_v4  ;;  %9068 = vmatprep.subr.bf16.mxu0 %v11159_v5  ;;  %v11163_v9 = vld [vmem:[#allocation8 + $0x50] sm:$0xff]   ;;  %v11167_v13 = vld [vmem:[#allocation8 + $0x58] sm:$0xff]  }
  0x3c   :  { %78 = vst [vmem:[#allocation2 + $0x237] sm:$0x3] %v11554_v0  ;;  %79 = vst [vmem:[#allocation2 + $0x467] sm:$0xff] %v11554_v0  ;;  %9180 = vmatprep.subr.bf16.mxu1 %v11160_v6  ;;  %v11164_v10 = vld [vmem:[#allocation8 + $0xd0] sm:$0xff]   ;;  %v11168_v14 = vld [vmem:[#allocation8 + $0xd8] sm:$0xff]  }
  0x3d   :  { %80 = vst [vmem:[#allocation2 + $0x46f] sm:$0xff] %v11554_v0  ;;  %81 = vst [vmem:[#allocation2 + $0x477] sm:$0x3] %v11554_v0  ;;  %v11165_v11 = vld [vmem:[#allocation8 + $0x10] sm:$0xff]   ;;  %v11169_v15 = vld [vmem:[#allocation8 + $0x18] sm:$0xff]  }
  0x3e   :  { %83 = vst [vmem:[#allocation2 + $0x27] sm:$0x1] %v11554_v0  ;;  %84 = vst [vmem:[#allocation2 + $0x47] sm:$0x1] %v11554_v0  ;;  %9069 = vmatpush3.bf16.msra.mxu0 %v11161_v7  ;;  %v11166_v12 = vld [vmem:[#allocation8 + $0x90] sm:$0xff]   ;;  %v11170_v16 = vld [vmem:[#allocation8 + $0x98] sm:$0xff]  }
  0x3f   :  { %85 = vst [vmem:[#allocation2 + $0x67] sm:$0x1] %v11554_v0  ;;  %86 = vst [vmem:[#allocation2 + $0x87] sm:$0x1] %v11554_v0  ;;  %9181 = vmatpush3.bf16.msra.mxu1 %v11162_v8  ;;  %9070 = vmatprep.subr.bf16.mxu0 %v11163_v9  ;;  %v11171_v17 = vld [vmem:[#allocation8 + $0x60] sm:$0xff]   ;;  %v11175_v21 = vld [vmem:[#allocation8 + $0x68] sm:$0xff]  }
  0x40   :  { %87 = vst [vmem:[#allocation2 + $0xa7] sm:$0x1] %v11554_v0  ;;  %88 = vst [vmem:[#allocation2 + $0xc7] sm:$0x1] %v11554_v0  ;;  %9182 = vmatprep.subr.bf16.mxu1 %v11164_v10  ;;  %v11172_v18 = vld [vmem:[#allocation8 + $0xe0] sm:$0xff]   ;;  %v11176_v22 = vld [vmem:[#allocation8 + $0xe8] sm:$0xff]  }
  0x41   :  { %89 = vst [vmem:[#allocation2 + $0xe7] sm:$0x1] %v11554_v0  ;;  %90 = vst [vmem:[#allocation2 + $0x107] sm:$0x1] %v11554_v0  ;;  %v11173_v19 = vld [vmem:[#allocation8 + $0x20] sm:$0xff]   ;;  %v11177_v23 = vld [vmem:[#allocation8 + $0x28] sm:$0xff]  }
  0x42   :  { %91 = vst [vmem:[#allocation2 + $0x127] sm:$0x1] %v11554_v0  ;;  %92 = vst [vmem:[#allocation2 + $0x147] sm:$0x1] %v11554_v0  ;;  %9071 = vmatpush3.bf16.msra.mxu0 %v11165_v11  ;;  %v11174_v20 = vld [vmem:[#allocation8 + $0xa0] sm:$0xff]   ;;  %v11178_v24 = vld [vmem:[#allocation8 + $0xa8] sm:$0xff]  }
  0x43   :  { %93 = vst [vmem:[#allocation2 + $0x167] sm:$0x1] %v11554_v0  ;;  %94 = vst [vmem:[#allocation2 + $0x187] sm:$0x1] %v11554_v0  ;;  %9183 = vmatpush3.bf16.msra.mxu1 %v11166_v12  ;;  %9072 = vmatprep.subr.bf16.mxu0 %v11167_v13  ;;  %v11179_v25 = vld [vmem:[#allocation8 + $0x70] sm:$0xff]   ;;  %v11183_v29 = vld [vmem:[#allocation8 + $0x78] sm:$0xff]  }
  0x44   :  { %95 = vst [vmem:[#allocation2 + $0x1a7] sm:$0x1] %v11554_v0  ;;  %96 = vst [vmem:[#allocation2 + $0x1c7] sm:$0x1] %v11554_v0  ;;  %9184 = vmatprep.subr.bf16.mxu1 %v11168_v14  ;;  %v11180_v26 = vld [vmem:[#allocation8 + $0xf0] sm:$0xff]   ;;  %v11184_v30 = vld [vmem:[#allocation8 + $0xf8] sm:$0xff]  }
  0x45   :  { %97 = vst [vmem:[#allocation2 + $0x1e7] sm:$0x1] %v11554_v0  ;;  %98 = vst [vmem:[#allocation2 + $0x207] sm:$0x1] %v11554_v0  ;;  %v11181_v27 = vld [vmem:[#allocation8 + $0x30] sm:$0xff]   ;;  %v11185_v31 = vld [vmem:[#allocation8 + $0x38] sm:$0xff]  }
  0x46   :  { %99 = vst [vmem:[#allocation2 + $0x267] sm:$0x1] %v11554_v0  ;;  %100 = vst [vmem:[#allocation2 + $0x287] sm:$0x1] %v11554_v0  ;;  %9073 = vmatpush3.bf16.msra.mxu0 %v11169_v15  ;;  %v11182_v28 = vld [vmem:[#allocation8 + $0xb0] sm:$0xff]   ;;  %v11186_v32 = vld [vmem:[#allocation8 + $0xb8] sm:$0xff]  }
  0x47   :  { %101 = vst [vmem:[#allocation2 + $0x2a7] sm:$0x1] %v11554_v0  ;;  %102 = vst [vmem:[#allocation2 + $0x2c7] sm:$0x1] %v11554_v0  ;;  %9185 = vmatpush3.bf16.msra.mxu1 %v11170_v16  ;;  %9074 = vmatprep.subr.bf16.mxu0 %v11171_v17  ;;  %v485_v33 = vld [vmem:[#allocation2 + $0x8] sm:$0xff]  ;;  %v486_v34 = vld [vmem:[#allocation2 + $0x10] sm:$0xff] }
  0x48   :  { %103 = vst [vmem:[#allocation2 + $0x2e7] sm:$0x1] %v11554_v0  ;;  %104 = vst [vmem:[#allocation2 + $0x307] sm:$0x1] %v11554_v0  ;;  %9186 = vmatprep.subr.bf16.mxu1 %v11172_v18  ;;  %v147_v35 = vld [vmem:[#allocation5] sm:$0xff]  ;;  %v517_v36 = vpack.c.bf16 %v486_v34, %v485_v33  ;;  %v148_v37 = vld [vmem:[#allocation5 + $0x8] sm:$0xff] }
  0x49   :  { %105 = vst [vmem:[#allocation2 + $0x327] sm:$0x1] %v11554_v0  ;;  %106 = vst [vmem:[#allocation2 + $0x347] sm:$0x1] %v11554_v0  ;;  %v11187_v38 = vld [vmem:[#allocation8 + $0x140] sm:$0xff]   ;;  %v11721_v39 = vpack.c.bf16 %v148_v37, %v147_v35  ;;  %v549_v42 = vld [vmem:[#allocation2 + $0x9] sm:$0xff] }
  0x4a   :  { %107 = vst [vmem:[#allocation2 + $0x367] sm:$0x1] %v11554_v0  ;;  %108 = vst [vmem:[#allocation2 + $0x387] sm:$0x1] %v11554_v0  ;;  %9075 = vmatpush3.bf16.msra.mxu0 %v11173_v19  ;;  %1606 = vmatprep.mubr.bf16.mxu0 %v517_v36  ;;  %v11188_v40 = vld [vmem:[#allocation8 + $0x1c0] sm:$0xff]   ;;  %v550_v44 = vld [vmem:[#allocation2 + $0x11] sm:$0xff] }
  0x4b   :  { %109 = vst [vmem:[#allocation2 + $0x3a7] sm:$0x1] %v11554_v0  ;;  %110 = vst [vmem:[#allocation2 + $0x3c7] sm:$0x1] %v11554_v0  ;;  %9187 = vmatpush3.bf16.msra.mxu1 %v11174_v20  ;;  %9076 = vmatprep.subr.bf16.mxu0 %v11175_v21  ;;  %v11189_v43 = vld [vmem:[#allocation8 + $0x100] sm:$0xff]   ;;  %v149_v45 = vld [vmem:[#allocation5 + $0x10] sm:$0xff]  ;;  %v581_v52 = vpack.c.bf16 %v550_v44, %v549_v42 }
  0x4c   :  { %111 = vst [vmem:[#allocation2 + $0x3e7] sm:$0x1] %v11554_v0  ;;  %112 = vst [vmem:[#allocation2 + $0x407] sm:$0x1] %v11554_v0  ;;  %9188 = vmatprep.subr.bf16.mxu1 %v11176_v22  ;;  %v150_v46 = vld [vmem:[#allocation5 + $0x18] sm:$0xff]  ;;  %v151_v47 = vld [vmem:[#allocation5 + $0x20] sm:$0xff] }
  0x4d   :  { %113 = vst [vmem:[#allocation2 + $0x427] sm:$0x1] %v11554_v0  ;;  %114 = vst [vmem:[#allocation2 + $0x447] sm:$0x1] %v11554_v0  ;;  %v152_v48 = vld [vmem:[#allocation5 + $0x28] sm:$0xff]  ;;  %v11190_v53 = vld [vmem:[#allocation8 + $0x180] sm:$0xff]   ;;  %v11724_v54 = vpack.c.bf16 %v150_v46, %v149_v45 }
  0x4e   :  { %115 = vst [vmem:[#allocation2 + $0x38] sm:$0x1] %v11554_v0  ;;  %116 = vst [vmem:[#allocation2 + $0x58] sm:$0x1] %v11554_v0  ;;  %9077 = vmatpush3.bf16.msra.mxu0 %v11177_v23  ;;  %v11191_v50 = vld [vmem:[#allocation8 + $0x148] sm:$0xff]   ;;  %v153_v60 = vld [vmem:[#allocation5 + $0x30] sm:$0xff]  ;;  %v11738_v8 = vpack.c.bf16 %v152_v48, %v151_v47 }
  0x4f   :  { %117 = vst [vmem:[#allocation2 + $0x78] sm:$0x1] %v11554_v0  ;;  %118 = vst [vmem:[#allocation2 + $0x98] sm:$0x1] %v11554_v0  ;;  %9189 = vmatpush3.bf16.msra.mxu1 %v11178_v24  ;;  %9078 = vmatprep.subr.bf16.mxu0 %v11179_v25  ;;  %v11192_v56 = vld [vmem:[#allocation8 + $0x1c8] sm:$0xff]   ;;  %v154_v61 = vld [vmem:[#allocation5 + $0x38] sm:$0xff] }
  0x50   :  { %119 = vst [vmem:[#allocation2 + $0xb8] sm:$0x1] %v11554_v0  ;;  %120 = vst [vmem:[#allocation2 + $0xd8] sm:$0x1] %v11554_v0  ;;  %9190 = vmatprep.subr.bf16.mxu1 %v11180_v26  ;;  %v11193_v57 = vld [vmem:[#allocation8 + $0x108] sm:$0xff]   ;;  %v11727_v62 = vld [vmem:[#allocation5 + $0x40] sm:$0xff]  ;;  %v11755_v23 = vpack.c.bf16 %v154_v61, %v153_v60 }
  0x51   :  { %121 = vst [vmem:[#allocation2 + $0xf8] sm:$0x1] %v11554_v0  ;;  %122 = vst [vmem:[#allocation2 + $0x118] sm:$0x1] %v11554_v0  ;;  %v11729_v63 = vld [vmem:[#allocation5 + $0x48] sm:$0xff]  ;;  %v11195_v9 = vld [vmem:[#allocation8 + $0x150] sm:$0xff]  }
  0x52   :  { %123 = vst [vmem:[#allocation2 + $0x138] sm:$0x1] %v11554_v0  ;;  %124 = vst [vmem:[#allocation2 + $0x158] sm:$0x1] %v11554_v0  ;;  %9079 = vmatpush3.bf16.msra.mxu0 %v11181_v27  ;;  %v11194_v3 = vld [vmem:[#allocation8 + $0x188] sm:$0xff]   ;;  %v11196_v11 = vld [vmem:[#allocation8 + $0x1d0] sm:$0xff]  }
  0x53   :  { %125 = vst [vmem:[#allocation2 + $0x178] sm:$0x1] %v11554_v0  ;;  %126 = vst [vmem:[#allocation2 + $0x198] sm:$0x1] %v11554_v0  ;;  %9191 = vmatpush3.bf16.msra.mxu1 %v11182_v28  ;;  %9080 = vmatprep.subr.bf16.mxu0 %v11183_v29  ;;  %v11197_v12 = vld [vmem:[#allocation8 + $0x110] sm:$0xff]   ;;  %v158_v19 = vld [vmem:[#allocation5 + $0x58] sm:$0xff] }
  0x54   :  { %127 = vst [vmem:[#allocation2 + $0x1b8] sm:$0x1] %v11554_v0  ;;  %128 = vst [vmem:[#allocation2 + $0x1d8] sm:$0x1] %v11554_v0  ;;  %9192 = vmatprep.subr.bf16.mxu1 %v11184_v30  ;;  %v11198_v13 = vld [vmem:[#allocation8 + $0x190] sm:$0xff]   ;;  %v11749_v20 = vld [vmem:[#allocation5 + $0x60] sm:$0xff] }
  0x55   :  { %129 = vst [vmem:[#allocation2 + $0x1f8] sm:$0x1] %v11554_v0  ;;  %130 = vst [vmem:[#allocation2 + $0x218] sm:$0x1] %v11554_v0  ;;  %v11746_v16 = vld [vmem:[#allocation5 + $0x50] sm:$0xff]  ;;  %v11751_v21 = vld [vmem:[#allocation5 + $0x68] sm:$0xff] }
  0x56   :  { %131 = vst [vmem:[#allocation2 + $0x278] sm:$0x1] %v11554_v0  ;;  %132 = vst [vmem:[#allocation2 + $0x298] sm:$0x1] %v11554_v0  ;;  %9081 = vmatpush3.bf16.msra.mxu0 %v11185_v31  ;;  %v11199_v24 = vld [vmem:[#allocation8 + $0x158] sm:$0xff]   ;;  %v11762_v30 = vld [vmem:[#allocation5 + $0x70] sm:$0xff] }
  0x57   :  { %133 = vst [vmem:[#allocation2 + $0x2b8] sm:$0x1] %v11554_v0  ;;  %134 = vst [vmem:[#allocation2 + $0x2d8] sm:$0x1] %v11554_v0  ;;  %9193 = vmatpush3.bf16.msra.mxu1 %v11186_v32  ;;  %9290 = vmatprep.subr.bf16.mxu0 %v11187_v38  ;;  %v11200_v26 = vld [vmem:[#allocation8 + $0x1d8] sm:$0xff]   ;;  %v11769_v32 = vld [vmem:[#allocation5 + $0x80] sm:$0xff]  ;;  %v11781_v38 = vpack.c.bf16 %v11729_v63, %v11727_v62 }
  0x58   :  { %135 = vst [vmem:[#allocation2 + $0x2f8] sm:$0x1] %v11554_v0  ;;  %136 = vst [vmem:[#allocation2 + $0x318] sm:$0x1] %v11554_v0  ;;  %9402 = vmatprep.subr.bf16.mxu1 %v11188_v40  ;;  %v11201_v27 = vld [vmem:[#allocation8 + $0x118] sm:$0xff]   ;;  %v11771_v33 = vld [vmem:[#allocation5 + $0x88] sm:$0xff] }
  0x59   :  { %137 = vst [vmem:[#allocation2 + $0x338] sm:$0x1] %v11554_v0  ;;  %138 = vst [vmem:[#allocation2 + $0x358] sm:$0x1] %v11554_v0  ;;  %1607 = vmatmul.mubr.bf16.vlgmr.msra.gmra.mrb[0].mxu0 %v11555_v41  ;;  %v11202_v29 = vld [vmem:[#allocation8 + $0x198] sm:$0xff]   ;;  %v11203_v40 = vld [vmem:[#allocation8 + $0x160] sm:$0xff]  }
  0x5a   :  { %139 = vst [vmem:[#allocation2 + $0x378] sm:$0x1] %v11554_v0  ;;  %140 = vst [vmem:[#allocation2 + $0x398] sm:$0x1] %v11554_v0  ;;  %1614 = vmatprep.mubr.bf16.mxu0 %v11721_v39  ;;  %9291 = vmatpush3.bf16.msra.mxu0 %v11189_v43  ;;  %v11766_v31 = vld [vmem:[#allocation5 + $0x78] sm:$0xff]  ;;  %v11204_v42 = vld [vmem:[#allocation8 + $0x1e0] sm:$0xff]  }
  0x5b   :  { %141 = vst [vmem:[#allocation2 + $0x3b8] sm:$0x1] %v11554_v0  ;;  %142 = vst [vmem:[#allocation2 + $0x3d8] sm:$0x1] %v11554_v0  ;;  %9292 = vmatprep.subr.bf16.mxu0 %v11191_v50  ;;  %v11205_v43 = vld [vmem:[#allocation8 + $0x120] sm:$0xff]   ;;  %v11791_v50 = vld [vmem:[#allocation5 + $0x98] sm:$0xff] }
  0x5c   :  { %143 = vst [vmem:[#allocation2 + $0x3f8] sm:$0x1] %v11554_v0  ;;  %144 = vst [vmem:[#allocation2 + $0x418] sm:$0x1] %v11554_v0  ;;  %v11206_v44 = vld [vmem:[#allocation8 + $0x1a0] sm:$0xff]  }
  0x5d   :  { %145 = vst [vmem:[#allocation2 + $0x438] sm:$0x1] %v11554_v0  ;;  %146 = vst [vmem:[#allocation2 + $0x458] sm:$0x1] %v11554_v0 }
  0x5e   :  { %211 = vst [vmem:[#allocation2 + $0x28] sm:$0xff] %v147_v35  ;;  %212 = vst [vmem:[#allocation2 + $0x30] sm:$0xff] %v148_v37  ;;  %9293 = vmatpush3.bf16.msra.mxu0 %v11193_v57 }
  0x5f   :  { %213 = vst [vmem:[#allocation2 + $0x48] sm:$0xff] %v149_v45  ;;  %214 = vst [vmem:[#allocation2 + $0x50] sm:$0xff] %v150_v46  ;;  %9294 = vmatprep.subr.bf16.mxu0 %v11195_v9 }
  0x60   :  { %215 = vst [vmem:[#allocation2 + $0x68] sm:$0xff] %v151_v47  ;;  %216 = vst [vmem:[#allocation2 + $0x70] sm:$0xff] %v152_v48  ;;  %v11789_v47 = vld [vmem:[#allocation5 + $0x90] sm:$0xff] }
  0x61   :  { %217 = vst [vmem:[#allocation2 + $0x88] sm:$0xff] %v153_v60  ;;  %218 = vst [vmem:[#allocation2 + $0x90] sm:$0xff] %v154_v61  ;;  %v11210_v61 = vld [vmem:[#allocation8 + $0x1a8] sm:$0xff]  }
  0x62   :  { %219 = vst [vmem:[#allocation2 + $0xa8] sm:$0xff] %v11727_v62  ;;  %220 = vst [vmem:[#allocation2 + $0xb0] sm:$0xff] %v11729_v63  ;;  %9295 = vmatpush3.bf16.msra.mxu0 %v11197_v12  ;;  %v11809_v62 = vld [vmem:[#allocation5 + $0xb0] sm:$0xff]  ;;  %v11813_v63 = vld [vmem:[#allocation5 + $0xb8] sm:$0xff] }
  0x63   :  { %221 = vst [vmem:[#allocation2 + $0xc8] sm:$0xff] %v11746_v16  ;;  %222 = vst [vmem:[#allocation2 + $0xd0] sm:$0xff] %v158_v19  ;;  %9296 = vmatprep.subr.bf16.mxu0 %v11199_v24  ;;  %v11211_v12 = vld [vmem:[#allocation8 + $0x170] sm:$0xff]   ;;  %v11838_v24 = vld [vmem:[#allocation5 + $0xd8] sm:$0xff] }
  0x64   :  { %223 = vst [vmem:[#allocation2 + $0xe8] sm:$0xff] %v11749_v20  ;;  %224 = vst [vmem:[#allocation2 + $0xf0] sm:$0xff] %v11751_v21 }
  0x65   :  { %v613_v49 = vld [vmem:[#allocation2 + $0x27] sm:$0xff]  ;;  %v614_v51 = vld [vmem:[#allocation2 + $0x2f] sm:$0xff]  ;;  %225 = vst [vmem:[#allocation2 + $0x108] sm:$0xff] %v11762_v30  ;;  %226 = vst [vmem:[#allocation2 + $0x110] sm:$0xff] %v11766_v31 }
  0x66   :  { %v645_v55 = vpack.c.bf16 %v614_v51, %v613_v49  ;;  %v551_v58 = vld [vmem:[#allocation2 + $0x29] sm:$0xff]  ;;  %v552_v59 = vld [vmem:[#allocation2 + $0x31] sm:$0xff]  ;;  %9297 = vmatpush3.bf16.msra.mxu0 %v11201_v27  ;;  %227 = vst [vmem:[#allocation2 + $0x128] sm:$0xff] %v11769_v32  ;;  %228 = vst [vmem:[#allocation2 + $0x130] sm:$0xff] %v11771_v33 }
  0x67   :  { %v615_v0 = vld [vmem:[#allocation2 + $0x47] sm:$0xff]  ;;  %v616_v2 = vld [vmem:[#allocation2 + $0x4f] sm:$0xff]  ;;  %v11736_v7 = vpack.c.bf16 %v552_v59, %v551_v58  ;;  %9298 = vmatprep.subr.bf16.mxu0 %v11203_v40  ;;  %229 = vst [vmem:[#allocation2 + $0x148] sm:$0xff] %v11789_v47  ;;  %230 = vst [vmem:[#allocation2 + $0x150] sm:$0xff] %v11791_v50 }
  0x68   :  { %1767 = vmatprep.mubr.bf16.mxu1 %v645_v55  ;;  %1615 = vmatmul.mubr.bf16.gmra.mrb[4].mxu0 %v645_v55  ;;  %v11733_v4 = vpack.c.bf16 %v616_v2, %v615_v0  ;;  %v617_v5 = vld [vmem:[#allocation2 + $0x67] sm:$0xff]  ;;  %v618_v6 = vld [vmem:[#allocation2 + $0x6f] sm:$0xff]  ;;  %v11802_v55 = vpack.c.bf16 %v158_v19, %v11746_v16  ;;  %233 = vst [vmem:[#allocation2 + $0x188] sm:$0xff] %v11809_v62  ;;  %234 = vst [vmem:[#allocation2 + $0x190] sm:$0xff] %v11813_v63 }
  0x69   :  { %1768 = vmatmul.mubr.bf16.vlgmr.msra.gmra.mrb[0].mxu1 %v581_v52  ;;  %1622 = vmatprep.mubr.bf16.mxu0 %v11724_v54  ;;  %v11740_v10 = vpack.c.bf16 %v618_v6, %v617_v5  ;;  %v553_v14 = vld [vmem:[#allocation2 + $0x49] sm:$0xff]  ;;  %v554_v15 = vld [vmem:[#allocation2 + $0x51] sm:$0xff]  ;;  %v11795_v51 = vld [vmem:[#allocation5 + $0xa0] sm:$0xff]  ;;  %238 = vst [vmem:[#allocation2 + $0x1d0] sm:$0xff] %v11838_v24 }
  0x6a   :  { %9403 = vmatpush3.bf16.msra.mxu1 %v11190_v53  ;;  %1775 = vmatprep.mubr.bf16.mxu1 %v11733_v4  ;;  %v619_v17 = vld [vmem:[#allocation2 + $0x87] sm:$0xff]  ;;  %v620_v18 = vld [vmem:[#allocation2 + $0x8f] sm:$0xff]  ;;  %v11753_v22 = vpack.c.bf16 %v554_v15, %v553_v14  ;;  %231 = vst [vmem:[#allocation2 + $0x168] sm:$0xff] %v11795_v51  ;;  %v11217_v40 = vld [vmem:[#allocation8 + $0x138] sm:$0xff]  }
  0x6b   :  { %9404 = vmatprep.subr.bf16.mxu1 %v11192_v56  ;;  %v11759_v25 = vpack.c.bf16 %v620_v18, %v619_v17  ;;  %v555_v28 = vld [vmem:[#allocation2 + $0x69] sm:$0xff]  ;;  %v556_v34 = vld [vmem:[#allocation2 + $0x71] sm:$0xff]  ;;  %9299 = vmatpush3.bf16.msra.mxu0 %v11205_v43  ;;  %v11816_v0 = vld [vmem:[#allocation5 + $0xc0] sm:$0xff] }
  0x6c   :  { %v621_v35 = vld [vmem:[#allocation2 + $0xa7] sm:$0xff]  ;;  %v622_v36 = vld [vmem:[#allocation2 + $0xaf] sm:$0xff]  ;;  %v11777_v37 = vpack.c.bf16 %v556_v34, %v555_v28  ;;  %235 = vst [vmem:[#allocation2 + $0x1a8] sm:$0xff] %v11816_v0  ;;  %v11215_v34 = vld [vmem:[#allocation8 + $0x178] sm:$0xff]  }
  0x6d   :  { %v11783_v41 = vpack.c.bf16 %v622_v36, %v621_v35  ;;  %v557_v45 = vld [vmem:[#allocation2 + $0x89] sm:$0xff]  ;;  %v558_v46 = vld [vmem:[#allocation2 + $0x91] sm:$0xff] }
  0x6e   :  { %9405 = vmatpush3.bf16.msra.mxu1 %v11194_v3  ;;  %v623_v48 = vld [vmem:[#allocation2 + $0xc7] sm:$0xff]  ;;  %v624_v49 = vld [vmem:[#allocation2 + $0xcf] sm:$0xff]  ;;  %v11799_v53 = vpack.c.bf16 %v558_v46, %v557_v45  ;;  %v11216_v36 = vld [vmem:[#allocation8 + $0x1f8] sm:$0xff]  }
  0x6f   :  { %9406 = vmatprep.subr.bf16.mxu1 %v11196_v11  ;;  %v11797_v52 = vld [vmem:[#allocation5 + $0xa8] sm:$0xff]  ;;  %v11806_v57 = vpack.c.bf16 %v624_v49, %v623_v48  ;;  %v560_v3 = vld [vmem:[#allocation2 + $0xb1] sm:$0xff]  ;;  %v11828_v11 = vpack.c.bf16 %v11751_v21, %v11749_v20  ;;  %v11866_v45 = vld [vmem:[#allocation8 + $0x200] sm:$0xff]  }
  0x70   :  { %1623 = vmatmul.mubr.bf16.gmra.mrb[8].mxu0 %v11733_v4  ;;  %232 = vst [vmem:[#allocation2 + $0x170] sm:$0xff] %v11797_v52  ;;  %v11207_v56 = vld [vmem:[#allocation8 + $0x168] sm:$0xff]   ;;  %v11212_v14 = vld [vmem:[#allocation8 + $0x1f0] sm:$0xff]   ;;  %v11218_v43 = vld [vmem:[#allocation8 + $0x1b8] sm:$0xff]  }
  0x71   :  { %1776 = vmatmul.mubr.bf16.gmra.mrb[4].mxu1 %v11736_v7  ;;  %1630 = vmatprep.mubr.bf16.mxu0 %v11738_v8  ;;  %v11208_v58 = vld [vmem:[#allocation8 + $0x1e8] sm:$0xff]   ;;  %v11213_v15 = vld [vmem:[#allocation8 + $0x130] sm:$0xff]  }
  0x72   :  { %1783 = vmatprep.mubr.bf16.mxu1 %v11740_v10  ;;  %9407 = vmatpush3.bf16.msra.mxu1 %v11198_v13  ;;  %v11209_v59 = vld [vmem:[#allocation8 + $0x128] sm:$0xff]   ;;  %v11214_v16 = vld [vmem:[#allocation8 + $0x1b0] sm:$0xff]  }
  0x73   :  { %9408 = vmatprep.subr.bf16.mxu1 %v11200_v26  ;;  %9300 = vmatprep.subr.bf16.mxu0 %v11207_v56  ;;  %v559_v60 = vld [vmem:[#allocation2 + $0xa9] sm:$0xff]  ;;  %v562_v18 = vld [vmem:[#allocation2 + $0xd1] sm:$0xff]  ;;  %v11842_v26 = vld [vmem:[#allocation5 + $0xe0] sm:$0xff]  ;;  %v11874_v56 = vpack.c.bf16 %v11771_v33, %v11769_v32  ;;  %v11886_v32 = vpack.c.bf16 %v11791_v50, %v11789_v47  ;;  %v11898_v47 = vpack.c.bf16 %v11797_v52, %v11795_v51 }
  0x74   :  { %v11818_v2 = vld [vmem:[#allocation5 + $0xc8] sm:$0xff]  ;;  %9301 = vmatpush3.bf16.msra.mxu0 %v11209_v59  ;;  %v11824_v9 = vpack.c.bf16 %v560_v3, %v559_v60  ;;  %v11836_v19 = vld [vmem:[#allocation5 + $0xd0] sm:$0xff]  ;;  %239 = vst [vmem:[#allocation2 + $0x1e8] sm:$0xff] %v11842_v26  ;;  %v11910_v51 = vpack.c.bf16 %v11813_v63, %v11809_v62 }
  0x75   :  { %236 = vst [vmem:[#allocation2 + $0x1b0] sm:$0xff] %v11818_v2  ;;  %v625_v5 = vld [vmem:[#allocation2 + $0xe7] sm:$0xff]  ;;  %v626_v6 = vld [vmem:[#allocation2 + $0xef] sm:$0xff]  ;;  %9302 = vmatprep.subr.bf16.mxu0 %v11211_v12  ;;  %237 = vst [vmem:[#allocation2 + $0x1c8] sm:$0xff] %v11836_v19  ;;  %v11922_v62 = vpack.c.bf16 %v11818_v2, %v11816_v0  ;;  %v11934_v0 = vpack.c.bf16 %v11838_v24, %v11836_v19 }
  0x76   :  { %9409 = vmatpush3.bf16.msra.mxu1 %v11202_v29  ;;  %v11830_v13 = vpack.c.bf16 %v626_v6, %v625_v5  ;;  %v561_v17 = vld [vmem:[#allocation2 + $0xc9] sm:$0xff]  ;;  %v11850_v29 = vpack.c.bf16 %v11766_v31, %v11762_v30  ;;  %v11861_v30 = vld [vmem:[#allocation5 + $0xf8] sm:$0xff] }
  0x77   :  { %9410 = vmatprep.subr.bf16.mxu1 %v11204_v42  ;;  %v627_v20 = vld [vmem:[#allocation2 + $0x107] sm:$0xff]  ;;  %v628_v21 = vld [vmem:[#allocation2 + $0x10f] sm:$0xff]  ;;  %v11846_v28 = vpack.c.bf16 %v562_v18, %v561_v17  ;;  %242 = vst [vmem:[#allocation2 + $0x210] sm:$0xff] %v11861_v30 }
  0x78   :  { %1631 = vmatmul.mubr.bf16.gmra.mrb[12].mxu0 %v11740_v10  ;;  %v11844_v27 = vld [vmem:[#allocation5 + $0xe8] sm:$0xff]  ;;  %v11854_v35 = vpack.c.bf16 %v628_v21, %v627_v20  ;;  %v564_v31 = vld [vmem:[#allocation2 + $0xf1] sm:$0xff] }
  0x79   :  { %1784 = vmatmul.mubr.bf16.gmra.mrb[8].mxu1 %v11753_v22  ;;  %1638 = vmatprep.mubr.bf16.mxu0 %v11755_v23  ;;  %240 = vst [vmem:[#allocation2 + $0x1f0] sm:$0xff] %v11844_v27  ;;  %v563_v42 = vld [vmem:[#allocation2 + $0xe9] sm:$0xff]  ;;  %v566_v60 = vld [vmem:[#allocation2 + $0x111] sm:$0xff]  ;;  %v11946_v19 = vpack.c.bf16 %v11844_v27, %v11842_v26 }
  0x7a   :  { %1791 = vmatprep.mubr.bf16.mxu1 %v11759_v25  ;;  %9411 = vmatpush3.bf16.msra.mxu1 %v11206_v44  ;;  %v11857_v44 = vld [vmem:[#allocation5 + $0xf0] sm:$0xff]  ;;  %v629_v46 = vld [vmem:[#allocation2 + $0x127] sm:$0xff]  ;;  %v11870_v49 = vpack.c.bf16 %v564_v31, %v563_v42 }
  0x7b   :  { %9412 = vmatprep.subr.bf16.mxu1 %v11208_v58  ;;  %9303 = vmatpush3.bf16.msra.mxu0 %v11213_v15  ;;  %241 = vst [vmem:[#allocation2 + $0x208] sm:$0xff] %v11857_v44  ;;  %v630_v48 = vld [vmem:[#allocation2 + $0x12f] sm:$0xff]  ;;  %v633_v12 = vld [vmem:[#allocation2 + $0x167] sm:$0xff]  ;;  %v11960_v26 = vpack.c.bf16 %v11861_v30, %v11857_v44 }
  0x7c   :  { %9304 = vmatprep.subr.bf16.mxu0 %v11215_v34  ;;  %v11876_v58 = vpack.c.bf16 %v630_v48, %v629_v46  ;;  %v565_v59 = vld [vmem:[#allocation2 + $0x109] sm:$0xff]  ;;  %v568_v6 = vld [vmem:[#allocation2 + $0x131] sm:$0xff] }
  0x7d   :  { %v632_v3 = vld [vmem:[#allocation2 + $0x14f] sm:$0xff]  ;;  %v635_v18 = vld [vmem:[#allocation2 + $0x187] sm:$0xff] }
  0x7e   :  { %9413 = vmatpush3.bf16.msra.mxu1 %v11210_v61  ;;  %v631_v61 = vld [vmem:[#allocation2 + $0x147] sm:$0xff]  ;;  %v570_v17 = vld [vmem:[#allocation2 + $0x151] sm:$0xff] }
  0x7f   :  { %9414 = vmatprep.subr.bf16.mxu1 %v11212_v14  ;;  %9305 = vmatpush3.bf16.msra.mxu0 %v11217_v40  ;;  %v11888_v33 = vpack.c.bf16 %v632_v3, %v631_v61  ;;  %v567_v5 = vld [vmem:[#allocation2 + $0x129] sm:$0xff]  ;;  %v574_v46 = vld [vmem:[#allocation2 + $0x191] sm:$0xff] }
  0x80   :  { %1639 = vmatmul.mubr.bf16.gmra.mrb[16].mxu0 %v11759_v25  ;;  %10954 = vmatprep.subr.bf16.mxu0 %v11866_v45  ;;  %v634_v14 = vld [vmem:[#allocation2 + $0x16f] sm:$0xff]  ;;  %v11894_v15 = vpack.c.bf16 %v568_v6, %v567_v5  ;;  %v637_v40 = vld [vmem:[#allocation2 + $0x1a7] sm:$0xff] }
  0x81   :  { %1792 = vmatmul.mubr.bf16.gmra.mrb[12].mxu1 %v11777_v37  ;;  %1646 = vmatprep.mubr.bf16.mxu0 %v11781_v38  ;;  %v11900_v50 = vpack.c.bf16 %v634_v14, %v633_v12  ;;  %v636_v20 = vld [vmem:[#allocation2 + $0x18f] sm:$0xff]  ;;  %v639_v48 = vld [vmem:[#allocation2 + $0x1c7] sm:$0xff] }
  0x82   :  { %1799 = vmatprep.mubr.bf16.mxu1 %v11783_v41  ;;  %9415 = vmatpush3.bf16.msra.mxu1 %v11214_v16  ;;  %v569_v16 = vld [vmem:[#allocation2 + $0x149] sm:$0xff]  ;;  %v11912_v52 = vpack.c.bf16 %v636_v20, %v635_v18  ;;  %v576_v3 = vld [vmem:[#allocation2 + $0x1b1] sm:$0xff] }
  0x83   :  { %9416 = vmatprep.subr.bf16.mxu1 %v11216_v36  ;;  %v11906_v21 = vpack.c.bf16 %v570_v17, %v569_v16  ;;  %v571_v34 = vld [vmem:[#allocation2 + $0x169] sm:$0xff]  ;;  %v572_v36 = vld [vmem:[#allocation2 + $0x171] sm:$0xff] }
  0x84   :  { %v638_v42 = vld [vmem:[#allocation2 + $0x1af] sm:$0xff]  ;;  %v641_v5 = vld [vmem:[#allocation2 + $0x1e7] sm:$0xff] }
  0x85   :  { %v11924_v63 = vpack.c.bf16 %v638_v42, %v637_v40  ;;  %v573_v31 = vld [vmem:[#allocation2 + $0x189] sm:$0xff]  ;;  %v578_v16 = vld [vmem:[#allocation2 + $0x1d1] sm:$0xff] }
  0x86   :  { %9417 = vmatpush3.bf16.msra.mxu1 %v11218_v43  ;;  %v11918_v43 = vpack.c.bf16 %v572_v36, %v571_v34  ;;  %v575_v61 = vld [vmem:[#allocation2 + $0x1a9] sm:$0xff]  ;;  %v580_v36 = vld [vmem:[#allocation2 + $0x1f1] sm:$0xff] }
  0x87   :  { %9538 = vmatprep.subr.bf16.mxu1 %v11718_v1  ;;  %v11882_v1 = vpack.c.bf16 %v566_v60, %v565_v59  ;;  %v640_v59 = vld [vmem:[#allocation2 + $0x1cf] sm:$0xff]  ;;  %v11930_v60 = vpack.c.bf16 %v574_v46, %v573_v31  ;;  %v11942_v12 = vpack.c.bf16 %v576_v3, %v575_v61  ;;  %v643_v17 = vld [vmem:[#allocation2 + $0x207] sm:$0xff]  ;;  %v11222_v31 = vld [vmem:[#allocation8 + $0x218] sm:$0xff]  }
  0x88   :  { %1647 = vmatmul.mubr.bf16.gmra.mrb[20].mxu0 %v11783_v41  ;;  %v11936_v2 = vpack.c.bf16 %v640_v59, %v639_v48  ;;  %v642_v6 = vld [vmem:[#allocation2 + $0x1ef] sm:$0xff]  ;;  %v11308_v3 = vld [vmem:[#allocation8 + $0x58] sm:$0xff]  }
  0x89   :  { %1800 = vmatmul.mubr.bf16.gmra.mrb[16].mxu1 %v11799_v53  ;;  %1654 = vmatprep.mubr.bf16.mxu0 %v11802_v55  ;;  %v11948_v24 = vpack.c.bf16 %v642_v6, %v641_v5  ;;  %v577_v14 = vld [vmem:[#allocation2 + $0x1c9] sm:$0xff]  ;;  %v11309_v6 = vld [vmem:[#allocation8 + $0x18] sm:$0xff]  }
  0x8a   :  { %1807 = vmatprep.mubr.bf16.mxu1 %v11806_v57  ;;  %v644_v18 = vld [vmem:[#allocation2 + $0x20f] sm:$0xff]  ;;  %v11954_v20 = vpack.c.bf16 %v578_v16, %v577_v14  ;;  %v11310_v14 = vld [vmem:[#allocation8 + $0x60] sm:$0xff]   ;;  %v11226_v16 = vld [vmem:[#allocation8 + $0x238] sm:$0xff]  }
  0x8b   :  { %v11956_v34 = vpack.c.bf16 %v644_v18, %v643_v17  ;;  %v579_v27 = vld [vmem:[#allocation2 + $0x1e9] sm:$0xff]  ;;  %v11311_v17 = vld [vmem:[#allocation8 + $0x20] sm:$0xff]  }
  0x8c   :  { %v11966_v40 = vpack.c.bf16 %v580_v36, %v579_v27  ;;  %v11220_v42 = vld [vmem:[#allocation8 + $0x208] sm:$0xff]   ;;  %v11221_v44 = vld [vmem:[#allocation8 + $0x210] sm:$0xff]  }
  0x8d   :  { %v11975_v30 = vld [vmem:[#allocation5 + $0x108] sm:$0xff]  ;;  %v11985_v48 = vld [vmem:[#allocation5 + $0x110] sm:$0xff] }
  0x8e   :  { %244 = vst [vmem:[#allocation2 + $0x270] sm:$0xff] %v11975_v30  ;;  %v11305_v46 = vld [vmem:[#allocation8 + $0x8] sm:$0xff]   ;;  %v11306_v59 = vld [vmem:[#allocation8 + $0x50] sm:$0xff]   ;;  %245 = vst [vmem:[#allocation2 + $0x288] sm:$0xff] %v11985_v48 }
  0x8f   :  { %v11307_v61 = vld [vmem:[#allocation8 + $0x10] sm:$0xff]   ;;  %v11312_v18 = vld [vmem:[#allocation8 + $0x68] sm:$0xff]  }
  0x90   :  { %1655 = vmatmul.mubr.bf16.gmra.mrb[24].mxu0 %v11806_v57  ;;  %v11225_v5 = vld [vmem:[#allocation8 + $0x230] sm:$0xff]   ;;  %v11313_v27 = vld [vmem:[#allocation8 + $0x28] sm:$0xff]  }
  0x91   :  { %1808 = vmatmul.mubr.bf16.gmra.mrb[20].mxu1 %v11824_v9  ;;  %1662 = vmatprep.mubr.bf16.mxu0 %v11828_v11  ;;  %v12009_v36 = vld [vmem:[#allocation5 + $0x130] sm:$0xff] }
  0x92   :  { %1815 = vmatprep.mubr.bf16.mxu1 %v11830_v13  ;;  %249 = vst [vmem:[#allocation2 + $0x2c8] sm:$0xff] %v12009_v36 }
  0x98   :  { %1663 = vmatmul.mubr.bf16.gmra.mrb[28].mxu0 %v11830_v13 }
  0x99   :  { %1816 = vmatmul.mubr.bf16.gmra.mrb[24].mxu1 %v11846_v28  ;;  %1670 = vmatprep.mubr.bf16.mxu0 %v11850_v29 }
  0x9a   :  { %1823 = vmatprep.mubr.bf16.mxu1 %v11854_v35 }
  0xa0   :  { %1671 = vmatmul.mubr.bf16.gmra.mrb[32].mxu0 %v11854_v35 }
  0xa1   :  { %1824 = vmatmul.mubr.bf16.gmra.mrb[28].mxu1 %v11870_v49  ;;  %1678 = vmatprep.mubr.bf16.mxu0 %v11874_v56 }
  0xa2   :  { %1831 = vmatprep.mubr.bf16.mxu1 %v11876_v58 }
  0xa8   :  { %1679 = vmatmul.mubr.bf16.gmra.mrb[36].mxu0 %v11876_v58 }
  0xa9   :  { %1832 = vmatmul.mubr.bf16.gmra.mrb[32].mxu1 %v11882_v1  ;;  %1686 = vmatprep.mubr.bf16.mxu0 %v11886_v32 }
  0xaa   :  { %1839 = vmatprep.mubr.bf16.mxu1 %v11888_v33 }
  0xb0   :  { %1687 = vmatmul.mubr.bf16.gmra.mrb[40].mxu0 %v11888_v33 }
  0xb1   :  { %1840 = vmatmul.mubr.bf16.gmra.mrb[36].mxu1 %v11894_v15  ;;  %1694 = vmatprep.mubr.bf16.mxu0 %v11898_v47 }
  0xb2   :  { %1847 = vmatprep.mubr.bf16.mxu1 %v11900_v50 }
  0xb8   :  { %1695 = vmatmul.mubr.bf16.gmra.mrb[44].mxu0 %v11900_v50 }
  0xb9   :  { %1848 = vmatmul.mubr.bf16.gmra.mrb[40].mxu1 %v11906_v21  ;;  %1702 = vmatprep.mubr.bf16.mxu0 %v11910_v51 }
  0xba   :  { %1855 = vmatprep.mubr.bf16.mxu1 %v11912_v52 }
  0xc0   :  { %1703 = vmatmul.mubr.bf16.gmra.mrb[48].mxu0 %v11912_v52 }
  0xc1   :  { %1856 = vmatmul.mubr.bf16.gmra.mrb[44].mxu1 %v11918_v43  ;;  %1710 = vmatprep.mubr.bf16.mxu0 %v11922_v62 }
  0xc2   :  { %1863 = vmatprep.mubr.bf16.mxu1 %v11924_v63 }
  0xc8   :  { %1711 = vmatmul.mubr.bf16.gmra.mrb[52].mxu0 %v11924_v63 }
  0xc9   :  { %1864 = vmatmul.mubr.bf16.gmra.mrb[48].mxu1 %v11930_v60  ;;  %1718 = vmatprep.mubr.bf16.mxu0 %v11934_v0 }
  0xca   :  { %1871 = vmatprep.mubr.bf16.mxu1 %v11936_v2 }
  0xd0   :  { %1719 = vmatmul.mubr.bf16.gmra.mrb[56].mxu0 %v11936_v2 }
  0xd1   :  { %1872 = vmatmul.mubr.bf16.gmra.mrb[52].mxu1 %v11942_v12  ;;  %1726 = vmatprep.mubr.bf16.mxu0 %v11946_v19 }
  0xd2   :  { %1879 = vmatprep.mubr.bf16.mxu1 %v11948_v24 }
  0xd8   :  { %1727 = vmatmul.mubr.bf16.gmra.mrb[60].mxu0 %v11948_v24 }
  0xd9   :  { %1880 = vmatmul.mubr.bf16.gmra.mrb[56].mxu1 %v11954_v20  ;;  %1928 = vmatprep.mubr.bf16.mxu0 %v11736_v7  ;;  %v11973_v7 = vld [vmem:[#allocation5 + $0x100] sm:$0xff] }
  0xda   :  { %1887 = vmatprep.mubr.bf16.mxu1 %v11956_v34  ;;  %243 = vst [vmem:[#allocation2 + $0x268] sm:$0xff] %v11973_v7 }
  0xe0   :  { %1929 = vmatmul.mubr.bf16.vlgmr.msra.gmra.mrb[64].mxu0 %v11721_v39  ;;  %v11303_v39 = vld [vmem:[#allocation8] sm:$0xff]  }
  0xe1   :  { %1888 = vmatmul.mubr.bf16.gmra.mrb[60].mxu1 %v11966_v40  ;;  %10955 = vmatpush3.bf16.msra.mxu0 %v11866_v45  ;;  %v11223_v45 = vld [vmem:[#allocation8 + $0x220] sm:$0xff]  }
  0xe2   :  { %2089 = vmatprep.mubr.bf16.mxu1 %v11724_v54  ;;  %1936 = vmatprep.mubr.bf16.mxu0 %v11753_v22  ;;  %v11304_v22 = vld [vmem:[#allocation8 + $0x48] sm:$0xff]  }
  0xe3   :  { %10956 = vmatprep.subr.bf16.mxu0 %v11220_v42 }
  0xe5   :  { %10957 = vmatpush3.bf16.msra.mxu0 %v11220_v42  ;;  %v11314_v42 = vld [vmem:[#allocation8 + $0x70] sm:$0xff]  }
  0xe6   :  { %10958 = vmatprep.subr.bf16.mxu0 %v11221_v44 }
  0xe8   :  { %1937 = vmatmul.mubr.bf16.gmra.mrb[68].mxu0 %v11724_v54 }
  0xe9   :  { %2090 = vmatmul.mubr.bf16.vlgmr.msra.gmra.mrb[64].mxu1 %v11733_v4  ;;  %1944 = vmatprep.mubr.bf16.mxu0 %v11777_v37  ;;  %v11987_v4 = vld [vmem:[#allocation5 + $0x118] sm:$0xff]  ;;  %v11224_v37 = vld [vmem:[#allocation8 + $0x228] sm:$0xff]  }
  0xea   :  { %9539 = vmatpush3.bf16.msra.mxu1 %v11303_v39  ;;  %2097 = vmatprep.mubr.bf16.mxu1 %v11738_v8  ;;  %246 = vst [vmem:[#allocation2 + $0x290] sm:$0xff] %v11987_v4  ;;  %v11318_v39 = vld [vmem:[#allocation8 + $0x38] sm:$0xff]  }
  0xeb   :  { %9540 = vmatprep.subr.bf16.mxu1 %v11304_v22  ;;  %10959 = vmatpush3.bf16.msra.mxu0 %v11221_v44  ;;  %v11316_v44 = vld [vmem:[#allocation8 + $0x30] sm:$0xff]  }
  0xec   :  { %10960 = vmatprep.subr.bf16.mxu0 %v11222_v31 }
  0xee   :  { %9541 = vmatpush3.bf16.msra.mxu1 %v11305_v46  ;;  %v12023_v46 = vld [vmem:[#allocation5 + $0x148] sm:$0xff] }
  0xef   :  { %9542 = vmatprep.subr.bf16.mxu1 %v11306_v59  ;;  %10961 = vmatpush3.bf16.msra.mxu0 %v11222_v31  ;;  %v11317_v31 = vld [vmem:[#allocation8 + $0x78] sm:$0xff]   ;;  %252 = vst [vmem:[#allocation2 + $0x2f0] sm:$0xff] %v12023_v46 }
  0xf0   :  { %1945 = vmatmul.mubr.bf16.gmra.mrb[72].mxu0 %v11738_v8  ;;  %10962 = vmatprep.subr.bf16.mxu0 %v11223_v45  ;;  %v12035_v59 = vld [vmem:[#allocation5 + $0x158] sm:$0xff] }
  0xf1   :  { %2098 = vmatmul.mubr.bf16.gmra.mrb[68].mxu1 %v11740_v10  ;;  %1952 = vmatprep.mubr.bf16.mxu0 %v11799_v53  ;;  %v11997_v10 = vld [vmem:[#allocation5 + $0x120] sm:$0xff]  ;;  %v11999_v53 = vld [vmem:[#allocation5 + $0x128] sm:$0xff]  ;;  %254 = vst [vmem:[#allocation2 + $0x310] sm:$0xff] %v12035_v59 }
  0xf2   :  { %2105 = vmatprep.mubr.bf16.mxu1 %v11755_v23  ;;  %9543 = vmatpush3.bf16.msra.mxu1 %v11307_v61  ;;  %247 = vst [vmem:[#allocation2 + $0x2a8] sm:$0xff] %v11997_v10  ;;  %248 = vst [vmem:[#allocation2 + $0x2b0] sm:$0xff] %v11999_v53 }
  0xf3   :  { %9544 = vmatprep.subr.bf16.mxu1 %v11308_v3  ;;  %10963 = vmatpush3.bf16.msra.mxu0 %v11223_v45  ;;  %v12021_v45 = vld [vmem:[#allocation5 + $0x140] sm:$0xff] }
  0xf4   :  { %10964 = vmatprep.subr.bf16.mxu0 %v11224_v37  ;;  %251 = vst [vmem:[#allocation2 + $0x2e8] sm:$0xff] %v12021_v45 }
  0xf6   :  { %9545 = vmatpush3.bf16.msra.mxu1 %v11309_v6  ;;  %v199_v6 = vld [vmem:[#allocation5 + $0x1a0] sm:$0xff] }
  0xf7   :  { %9546 = vmatprep.subr.bf16.mxu1 %v11310_v14  ;;  %10965 = vmatpush3.bf16.msra.mxu0 %v11224_v37  ;;  %v200_v14 = vld [vmem:[#allocation5 + $0x1a8] sm:$0xff]  ;;  %263 = vst [vmem:[#allocation2 + $0x3a8] sm:$0xff] %v199_v6 }
  0xf8   :  { %1953 = vmatmul.mubr.bf16.gmra.mrb[76].mxu0 %v11755_v23  ;;  %10966 = vmatprep.subr.bf16.mxu0 %v11225_v5  ;;  %264 = vst [vmem:[#allocation2 + $0x3b0] sm:$0xff] %v200_v14 }
  0xf9   :  { %2106 = vmatmul.mubr.bf16.gmra.mrb[72].mxu1 %v11759_v25  ;;  %1960 = vmatprep.mubr.bf16.mxu0 %v11824_v9  ;;  %v12011_v25 = vld [vmem:[#allocation5 + $0x138] sm:$0xff]  ;;  %v11315_v9 = vld [vmem:[#allocation8 + $0xc0] sm:$0xff]  }
  0xfa   :  { %2113 = vmatprep.mubr.bf16.mxu1 %v11781_v38  ;;  %9547 = vmatpush3.bf16.msra.mxu1 %v11311_v17  ;;  %250 = vst [vmem:[#allocation2 + $0x2d0] sm:$0xff] %v12011_v25 }
  0xfb   :  { %9548 = vmatprep.subr.bf16.mxu1 %v11312_v18  ;;  %10967 = vmatpush3.bf16.msra.mxu0 %v11225_v5 }
  0xfc   :  { %10968 = vmatprep.subr.bf16.mxu0 %v11226_v16 }
  0xfe   :  { %9549 = vmatpush3.bf16.msra.mxu1 %v11313_v27 }
  0xff   :  { %9550 = vmatprep.subr.bf16.mxu1 %v11314_v42  ;;  %10969 = vmatpush3.bf16.msra.mxu0 %v11226_v16 }
 0x100   :  { %1961 = vmatmul.mubr.bf16.gmra.mrb[80].mxu0 %v11781_v38  ;;  %9650 = vmatprep.subr.bf16.mxu0 %v11315_v9  ;;  %v11319_v38 = vld [vmem:[#allocation8 + $0x140] sm:$0xff]  }
 0x101   :  { %2114 = vmatmul.mubr.bf16.gmra.mrb[76].mxu1 %v11783_v41  ;;  %1968 = vmatprep.mubr.bf16.mxu0 %v11846_v28  ;;  %v12033_v28 = vld [vmem:[#allocation5 + $0x150] sm:$0xff] }
 0x102   :  { %2121 = vmatprep.mubr.bf16.mxu1 %v11802_v55  ;;  %9551 = vmatpush3.bf16.msra.mxu1 %v11316_v44  ;;  %253 = vst [vmem:[#allocation2 + $0x308] sm:$0xff] %v12033_v28  ;;  %v12097_v44 = vpack.c.bf16 %v200_v14, %v199_v6 }
 0x103   :  { %9552 = vmatprep.subr.bf16.mxu1 %v11317_v31 }
 0x104   :  { %16106 = vst [vmem:[#allocation15_spill] sm:$0xff] %v12097_v44 }
 0x106   :  { %9553 = vmatpush3.bf16.msra.mxu1 %v11318_v39 }
 0x107   :  { %9762 = vmatprep.subr.bf16.mxu1 %v11319_v38 }
 0x108   :  { %1969 = vmatmul.mubr.bf16.gmra.mrb[84].mxu0 %v11802_v55 }
 0x109   :  { %2122 = vmatmul.mubr.bf16.gmra.mrb[80].mxu1 %v11806_v57  ;;  %1976 = vmatprep.mubr.bf16.mxu0 %v11870_v49  ;;  %v12045_v57 = vld [vmem:[#allocation5 + $0x160] sm:$0xff]  ;;  %v12047_v49 = vld [vmem:[#allocation5 + $0x168] sm:$0xff] }
 0x10a   :  { %2129 = vmatprep.mubr.bf16.mxu1 %v11828_v11  ;;  %255 = vst [vmem:[#allocation2 + $0x328] sm:$0xff] %v12045_v57  ;;  %256 = vst [vmem:[#allocation2 + $0x330] sm:$0xff] %v12047_v49 }
 0x110   :  { %1977 = vmatmul.mubr.bf16.gmra.mrb[88].mxu0 %v11828_v11  ;;  %v12151_v11 = vld [vmem:[#allocation5 + $0x1e8] sm:$0xff] }
 0x111   :  { %2130 = vmatmul.mubr.bf16.gmra.mrb[84].mxu1 %v11830_v13  ;;  %1984 = vmatprep.mubr.bf16.mxu0 %v11882_v1  ;;  %v12057_v13 = vld [vmem:[#allocation5 + $0x170] sm:$0xff]  ;;  %v12059_v1 = vld [vmem:[#allocation5 + $0x178] sm:$0xff]  ;;  %272 = vst [vmem:[#allocation2 + $0x430] sm:$0xff] %v12151_v11 }
 0x112   :  { %2137 = vmatprep.mubr.bf16.mxu1 %v11850_v29  ;;  %257 = vst [vmem:[#allocation2 + $0x348] sm:$0xff] %v12057_v13  ;;  %258 = vst [vmem:[#allocation2 + $0x350] sm:$0xff] %v12059_v1 }
 0x118   :  { %1985 = vmatmul.mubr.bf16.gmra.mrb[92].mxu0 %v11850_v29  ;;  %v12149_v29 = vld [vmem:[#allocation5 + $0x1e0] sm:$0xff] }
 0x119   :  { %2138 = vmatmul.mubr.bf16.gmra.mrb[88].mxu1 %v11854_v35  ;;  %1992 = vmatprep.mubr.bf16.mxu0 %v11894_v15  ;;  %v12069_v35 = vld [vmem:[#allocation5 + $0x180] sm:$0xff]  ;;  %v12071_v15 = vld [vmem:[#allocation5 + $0x188] sm:$0xff]  ;;  %271 = vst [vmem:[#allocation2 + $0x428] sm:$0xff] %v12149_v29 }
 0x11a   :  { %2145 = vmatprep.mubr.bf16.mxu1 %v11874_v56  ;;  %259 = vst [vmem:[#allocation2 + $0x368] sm:$0xff] %v12069_v35  ;;  %260 = vst [vmem:[#allocation2 + $0x370] sm:$0xff] %v12071_v15 }
 0x120   :  { %1993 = vmatmul.mubr.bf16.gmra.mrb[96].mxu0 %v11874_v56 }
 0x121   :  { %2146 = vmatmul.mubr.bf16.gmra.mrb[92].mxu1 %v11876_v58  ;;  %2000 = vmatprep.mubr.bf16.mxu0 %v11906_v21  ;;  %v12081_v58 = vld [vmem:[#allocation5 + $0x190] sm:$0xff]  ;;  %v12083_v21 = vld [vmem:[#allocation5 + $0x198] sm:$0xff] }
 0x122   :  { %2153 = vmatprep.mubr.bf16.mxu1 %v11886_v32  ;;  %261 = vst [vmem:[#allocation2 + $0x388] sm:$0xff] %v12081_v58  ;;  %262 = vst [vmem:[#allocation2 + $0x390] sm:$0xff] %v12083_v21 }
 0x128   :  { %2001 = vmatmul.mubr.bf16.gmra.mrb[100].mxu0 %v11886_v32 }
 0x129   :  { %2154 = vmatmul.mubr.bf16.gmra.mrb[96].mxu1 %v11888_v33  ;;  %2008 = vmatprep.mubr.bf16.mxu0 %v11918_v43 }
 0x12a   :  { %2161 = vmatprep.mubr.bf16.mxu1 %v11898_v47 }
 0x12c   :  { %v9082_v32 = vpop.f32.mrb[0].mxu0 }
 0x12d   :  { %v9083_v33 = vpop.f32.mrb[1].mxu0 }
 0x12e   :  { %v9084_v43 = vadd.f32 %v9083_v33, %v9082_v32  ;;  %v9085_v37 = vpop.f32.mrb[2].mxu0 }
 0x12f   :  { %v9086_v61 = vpop.f32.mrb[3].mxu0 }
 0x130   :  { %2009 = vmatmul.mubr.bf16.gmra.mrb[104].mxu0 %v11898_v47  ;;  %v9087_v5 = vadd.f32 %v9086_v61, %v9085_v37 }
 0x131   :  { %2162 = vmatmul.mubr.bf16.gmra.mrb[100].mxu1 %v11900_v50  ;;  %2016 = vmatprep.mubr.bf16.mxu0 %v11930_v60 }
 0x132   :  { %2169 = vmatprep.mubr.bf16.mxu1 %v11910_v51 }
 0x138   :  { %2017 = vmatmul.mubr.bf16.gmra.mrb[108].mxu0 %v11910_v51  ;;  %v12099_v51 = vld [vmem:[#allocation5 + $0x1b0] sm:$0xff] }
 0x139   :  { %2170 = vmatmul.mubr.bf16.gmra.mrb[104].mxu1 %v11912_v52  ;;  %2024 = vmatprep.mubr.bf16.mxu0 %v11942_v12  ;;  %v12101_v52 = vld [vmem:[#allocation5 + $0x1b8] sm:$0xff]  ;;  %265 = vst [vmem:[#allocation2 + $0x3c8] sm:$0xff] %v12099_v51 }
 0x13a   :  { %2177 = vmatprep.mubr.bf16.mxu1 %v11922_v62  ;;  %266 = vst [vmem:[#allocation2 + $0x3d0] sm:$0xff] %v12101_v52 }
 0x13b   :  { %v9088_v47 = vpop.f32.mrb[4].mxu0 }
 0x13c   :  { %v9194_v50 = vpop.f32.mrb[0].mxu1  ;;  %v9089_v60 = vpop.f32.mrb[5].mxu0 }
 0x13d   :  { %v9195_v16 = vpop.f32.mrb[1].mxu1  ;;  %v9090_v17 = vadd.f32 %v9089_v60, %v9088_v47  ;;  %v9091_v18 = vpop.f32.mrb[6].mxu0 }
 0x13e   :  { %v9196_v27 = vadd.f32 %v9195_v16, %v9194_v50  ;;  %v9197_v42 = vpop.f32.mrb[2].mxu1  ;;  %v9092_v9 = vpop.f32.mrb[7].mxu0 }
 0x13f   :  { %v9198_v31 = vpop.f32.mrb[3].mxu1  ;;  %v9093_v39 = vadd.f32 %v9092_v9, %v9091_v18  ;;  %v12115_v18 = vld [vmem:[#allocation5 + $0x1c0] sm:$0xff]  ;;  %v771_v9 = vld [vmem:[#allocation2 + $0x209] sm:$0xff] }
 0x140   :  { %v12104_v12 = vadd.f32 %v9196_v27, %v9084_v43  ;;  %v9199_v38 = vadd.f32 %v9198_v31, %v9197_v42  ;;  %2025 = vmatmul.mubr.bf16.gmra.mrb[112].mxu0 %v11922_v62  ;;  %267 = vst [vmem:[#allocation2 + $0x3e8] sm:$0xff] %v12115_v18  ;;  %v772_v31 = vld [vmem:[#allocation2 + $0x211] sm:$0xff] }
 0x141   :  { %2178 = vmatmul.mubr.bf16.gmra.mrb[108].mxu1 %v11924_v63  ;;  %2032 = vmatprep.mubr.bf16.mxu0 %v11954_v20  ;;  %v12117_v20 = vld [vmem:[#allocation5 + $0x1c8] sm:$0xff] }
 0x142   :  { %v12110_v32 = vadd.f32 %v9199_v38, %v9087_v5  ;;  %2185 = vmatprep.mubr.bf16.mxu1 %v11934_v0  ;;  %268 = vst [vmem:[#allocation2 + $0x3f0] sm:$0xff] %v12117_v20 }
 0x143   :  { %v9094_v33 = vpop.f32.mrb[8].mxu0 }
 0x144   :  { %v9200_v37 = vpop.f32.mrb[4].mxu1  ;;  %v9095_v61 = vpop.f32.mrb[9].mxu0 }
 0x145   :  { %v9201_v6 = vpop.f32.mrb[5].mxu1  ;;  %v9096_v14 = vadd.f32 %v9095_v61, %v9094_v33  ;;  %v9097_v43 = vpop.f32.mrb[10].mxu0 }
 0x146   :  { %v9202_v47 = vadd.f32 %v9201_v6, %v9200_v37  ;;  %v9203_v50 = vpop.f32.mrb[6].mxu1  ;;  %v9098_v60 = vpop.f32.mrb[11].mxu0  ;;  %v12129_v6 = vpack.c.bf16 %v772_v31, %v771_v9  ;;  %v934_v31 = vld [vmem:[#allocation2 + $0x49] sm:$0xff] }
 0x147   :  { %v9204_v16 = vpop.f32.mrb[7].mxu1  ;;  %v9099_v63 = vadd.f32 %v9098_v60, %v9097_v43 }
 0x148   :  { %v12119_v5 = vadd.f32 %v9202_v47, %v9090_v17  ;;  %v9205_v27 = vadd.f32 %v9204_v16, %v9203_v50  ;;  %2033 = vmatmul.mubr.bf16.gmra.mrb[116].mxu0 %v11934_v0  ;;  %v12135_v16 = vld [vmem:[#allocation5 + $0x1d8] sm:$0xff] }
 0x149   :  { %2186 = vmatmul.mubr.bf16.gmra.mrb[112].mxu1 %v11936_v2  ;;  %2040 = vmatprep.mubr.bf16.mxu0 %v11966_v40  ;;  %v12133_v40 = vld [vmem:[#allocation5 + $0x1d0] sm:$0xff]  ;;  %270 = vst [vmem:[#allocation2 + $0x410] sm:$0xff] %v12135_v16 }
 0x14a   :  { %v12126_v42 = vadd.f32 %v9205_v27, %v9093_v39  ;;  %2193 = vmatprep.mubr.bf16.mxu1 %v11946_v19  ;;  %16107 = vst [vmem:[#allocation16_spill] sm:$0xff] %v12133_v40  ;;  %269 = vst [vmem:[#allocation2 + $0x408] sm:$0xff] %v12133_v40 }
 0x14b   :  { %v9100_v38 = vpop.f32.mrb[12].mxu0 }
 0x14c   :  { %v9206_v17 = vpop.f32.mrb[8].mxu1  ;;  %v9101_v33 = vpop.f32.mrb[13].mxu0 }
 0x14d   :  { %v9207_v37 = vpop.f32.mrb[9].mxu1  ;;  %v9102_v61 = vadd.f32 %v9101_v33, %v9100_v38  ;;  %v9103_v0 = vpop.f32.mrb[14].mxu0 }
 0x14e   :  { %v9208_v43 = vadd.f32 %v9207_v37, %v9206_v17  ;;  %v9209_v47 = vpop.f32.mrb[10].mxu1  ;;  %v9104_v50 = vpop.f32.mrb[15].mxu0  ;;  %v935_v17 = vld [vmem:[#allocation2 + $0x51] sm:$0xff]  ;;  %v900_v37 = vld [vmem:[#allocation2 + $0x228] sm:$0xff] }
 0x14f   :  { %v9210_v39 = vpop.f32.mrb[11].mxu1  ;;  %v9105_v60 = vadd.f32 %v9104_v50, %v9103_v0  ;;  %v901_v0 = vld [vmem:[#allocation2 + $0x230] sm:$0xff] }
 0x150   :  { %v12138_v27 = vadd.f32 %v9208_v43, %v9096_v14  ;;  %v9211_v38 = vadd.f32 %v9210_v39, %v9209_v47  ;;  %2041 = vmatmul.mubr.bf16.gmra.mrb[120].mxu0 %v11946_v19  ;;  %v966_v39 = vpack.c.bf16 %v935_v17, %v934_v31  ;;  %v917_v3 = vpack.c.bf16 %v901_v0, %v900_v37  ;;  %v936_v31 = vld [vmem:[#allocation2 + $0x69] sm:$0xff]  ;;  %v937_v17 = vld [vmem:[#allocation2 + $0x71] sm:$0xff] }
 0x151   :  { %2194 = vmatmul.mubr.bf16.gmra.mrb[116].mxu1 %v11948_v24  ;;  %2048 = vmatprep.mubr.bf16.mxu0 %v12129_v6  ;;  %v2584_v37 = vld [vmem:[#allocation2 + $0x248] sm:$0xff] }
 0x152   :  { %v12144_v9 = vadd.f32 %v9211_v38, %v9099_v63  ;;  %2201 = vmatprep.mubr.bf16.mxu1 %v11960_v26 }
 0x153   :  { %v9106_v33 = vpop.f32.mrb[16].mxu0 }
 0x154   :  { %v9212_v14 = vpop.f32.mrb[12].mxu1  ;;  %v9107_v43 = vpop.f32.mrb[17].mxu0 }
 0x155   :  { %v9213_v47 = vpop.f32.mrb[13].mxu1  ;;  %v9108_v50 = vadd.f32 %v9107_v43, %v9106_v33  ;;  %v9109_v19 = vpop.f32.mrb[18].mxu0 }
 0x156   :  { %v9214_v2 = vadd.f32 %v9213_v47, %v9212_v14  ;;  %v9215_v62 = vpop.f32.mrb[14].mxu1  ;;  %v9110_v24 = vpop.f32.mrb[19].mxu0  ;;  %v2585_v14 = vld [vmem:[#allocation2 + $0x250] sm:$0xff] }
 0x157   :  { %v9216_v38 = vpop.f32.mrb[15].mxu1  ;;  %v9111_v56 = vadd.f32 %v9110_v24, %v9109_v19  ;;  %v11320_v19 = vld [vmem:[#allocation2 + $0x7] sm:$0xff]  ;;  %v2616_v23 = vpack.c.bf16 %v2585_v14, %v2584_v37  ;;  %v943_v14 = vld [vmem:[#allocation2 + $0xd1] sm:$0xff] }
 0x158   :  { %v12153_v55 = vadd.f32 %v9214_v2, %v9102_v61  ;;  %v9217_v41 = vadd.f32 %v9216_v38, %v9215_v62  ;;  %2049 = vmatmul.mubr.bf16.gmra.mrb[124].mxu0 %v11960_v26  ;;  %v938_v61 = vld [vmem:[#allocation2 + $0x89] sm:$0xff]  ;;  %v939_v2 = vld [vmem:[#allocation2 + $0x91] sm:$0xff]  ;;  %v967_v26 = vpack.c.bf16 %v937_v17, %v936_v31  ;;  %v853_v24 = vpack.c.bf16 %v11320_v19, %v11320_v19  ;;  %v11321_v31 = vld [vmem:[#allocation8 + $0x80] sm:$0xff]  }
 0x159   :  { %2202 = vmatmul.mubr.bf16.gmra.mrb[120].mxu1 %v11956_v34  ;;  %10970 = vmatprep.mubr.bf16.mxu0 %v966_v39  ;;  %v940_v17 = vld [vmem:[#allocation2 + $0xa9] sm:$0xff] }
 0x15a   :  { %v12159_v33 = vadd.f32 %v9217_v41, %v9105_v60  ;;  %2209 = vmatprep.mubr.bf16.mxu1 %v917_v3  ;;  %v968_v41 = vpack.c.bf16 %v939_v2, %v938_v61  ;;  %v942_v37 = vld [vmem:[#allocation2 + $0xc9] sm:$0xff] }
 0x15b   :  { %v9112_v0 = vpop.f32.mrb[20].mxu0  ;;  %v11322_v2 = vld [vmem:[#allocation8 + $0xc8] sm:$0xff]  }
 0x15c   :  { %v9218_v62 = vpop.f32.mrb[16].mxu1  ;;  %v9113_v43 = vpop.f32.mrb[21].mxu0  ;;  %v11323_v19 = vld [vmem:[#allocation8 + $0x88] sm:$0xff]  }
 0x15d   :  { %v9219_v47 = vpop.f32.mrb[17].mxu1  ;;  %v9114_v38 = vadd.f32 %v9113_v43, %v9112_v0  ;;  %v9115_v63 = vpop.f32.mrb[22].mxu0  ;;  %v941_v0 = vld [vmem:[#allocation2 + $0xb1] sm:$0xff] }
 0x15e   :  { %v9220_v34 = vadd.f32 %v9219_v47, %v9218_v62  ;;  %v9221_v39 = vpop.f32.mrb[18].mxu1  ;;  %v9116_v22 = vpop.f32.mrb[23].mxu0 }
 0x15f   :  { %v9222_v60 = vpop.f32.mrb[19].mxu1  ;;  %v9117_v8 = vadd.f32 %v9116_v22, %v9115_v63 }
 0x160   :  { %v12163_v54 = vadd.f32 %v9220_v34, %v9108_v50  ;;  %v9223_v40 = vadd.f32 %v9222_v60, %v9221_v39  ;;  %10971 = vmatmul.mubr.bf16.vlgmr.msra.gmra.mrb[128].mxu0 %v967_v26  ;;  %v969_v50 = vpack.c.bf16 %v941_v0, %v940_v17  ;;  %v970_v34 = vpack.c.bf16 %v943_v14, %v942_v37  ;;  %v944_v17 = vld [vmem:[#allocation2 + $0xe9] sm:$0xff]  ;;  %v945_v0 = vld [vmem:[#allocation2 + $0xf1] sm:$0xff] }
 0x161   :  { %2210 = vmatmul.mubr.bf16.gmra.mrb[124].mxu1 %v853_v24  ;;  %9651 = vmatpush3.bf16.msra.mxu0 %v11321_v31  ;;  %v16109_v37 = vpack.c.bf16 %v11975_v30, %v11973_v7  ;;  %v2523_v14 = vld [vmem:[#allocation2 + $0x26f] sm:$0xff] }
 0x162   :  { %v12165_v43 = vadd.f32 %v9223_v40, %v9111_v56  ;;  %3274 = vmatprep.mubr.bf16.mxu1 %v2616_v23  ;;  %10974 = vmatprep.mubr.bf16.mxu0 %v968_v41  ;;  %v11324_v40 = vld [vmem:[#allocation8 + $0xd0] sm:$0xff]  }
 0x163   :  { %v9118_v61 = vpop.f32.mrb[24].mxu0  ;;  %9652 = vmatprep.subr.bf16.mxu0 %v11322_v2  ;;  %v2522_v2 = vld [vmem:[#allocation2 + $0x267] sm:$0xff] }
 0x164   :  { %v9224_v62 = vpop.f32.mrb[20].mxu1  ;;  %v9119_v22 = vpop.f32.mrb[25].mxu0 }
 0x165   :  { %v9225_v63 = vpop.f32.mrb[21].mxu1  ;;  %v9120_v47 = vadd.f32 %v9119_v22, %v9118_v61  ;;  %v9121_v26 = vpop.f32.mrb[26].mxu0  ;;  %9653 = vmatpush3.bf16.msra.mxu0 %v11323_v19  ;;  %v11325_v22 = vld [vmem:[#allocation8 + $0x100] sm:$0xff]  }
 0x166   :  { %v9226_v39 = vadd.f32 %v9225_v63, %v9224_v62  ;;  %v9227_v60 = vpop.f32.mrb[22].mxu1  ;;  %v9122_v56 = vpop.f32.mrb[27].mxu0  ;;  %9654 = vmatprep.subr.bf16.mxu0 %v11324_v40  ;;  %v946_v62 = vld [vmem:[#allocation2 + $0x109] sm:$0xff]  ;;  %v947_v63 = vld [vmem:[#allocation2 + $0x111] sm:$0xff] }
 0x167   :  { %v9228_v23 = vpop.f32.mrb[23].mxu1  ;;  %v9123_v41 = vadd.f32 %v9122_v56, %v9121_v26  ;;  %v11326_v26 = vld [vmem:[#allocation8 + $0x148] sm:$0xff]   ;;  %v972_v7 = vpack.c.bf16 %v947_v63, %v946_v62  ;;  %v949_v63 = vld [vmem:[#allocation2 + $0x131] sm:$0xff] }
 0x168   :  { %v12167_v31 = vadd.f32 %v9226_v39, %v9114_v38  ;;  %v9229_v3 = vadd.f32 %v9228_v23, %v9227_v60  ;;  %10975 = vmatmul.mubr.bf16.gmra.mrb[132].mxu0 %v969_v50  ;;  %v11327_v50 = vld [vmem:[#allocation8 + $0x90] sm:$0xff]   ;;  %v11328_v39 = vld [vmem:[#allocation8 + $0xd8] sm:$0xff]  }
 0x169   :  { %3275 = vmatmul.mubr.bf16.vlgmr.msra.gmra.mrb[128].mxu1 %v853_v24  ;;  %10978 = vmatprep.mubr.bf16.mxu0 %v970_v34  ;;  %v971_v34 = vpack.c.bf16 %v945_v0, %v944_v17  ;;  %v948_v62 = vld [vmem:[#allocation2 + $0x129] sm:$0xff] }
 0x16a   :  { %v12169_v61 = vadd.f32 %v9229_v3, %v9117_v8  ;;  %9763 = vmatpush3.bf16.msra.mxu1 %v11325_v22  ;;  %3282 = vmatprep.mubr.bf16.mxu1 %v16109_v37  ;;  %v12174_v3 = vpack.c.bf16 %v2523_v14, %v2522_v2  ;;  %v11329_v22 = vld [vmem:[#allocation8 + $0x108] sm:$0xff]   ;;  %v11332_v2 = vld [vmem:[#allocation8 + $0xe0] sm:$0xff]  }
 0x16b   :  { %v9124_v38 = vpop.f32.mrb[28].mxu0  ;;  %9764 = vmatprep.subr.bf16.mxu1 %v11326_v26  ;;  %9655 = vmatpush3.bf16.msra.mxu0 %v11327_v50  ;;  %v11331_v50 = vld [vmem:[#allocation8 + $0x150] sm:$0xff]   ;;  %v2524_v14 = vld [vmem:[#allocation2 + $0x287] sm:$0xff] }
 0x16c   :  { %16108 = vst [vmem:[#allocation17_spill] sm:$0xff] %v12169_v61  ;;  %v9230_v24 = vpop.f32.mrb[24].mxu1  ;;  %v9125_v19 = vpop.f32.mrb[29].mxu0  ;;  %9656 = vmatprep.subr.bf16.mxu0 %v11328_v39  ;;  %v11330_v61 = vld [vmem:[#allocation8 + $0x98] sm:$0xff]   ;;  %v11333_v39 = vld [vmem:[#allocation8 + $0x110] sm:$0xff]  }
 0x16d   :  { %v9231_v8 = vpop.f32.mrb[25].mxu1  ;;  %v9126_v60 = vadd.f32 %v9125_v19, %v9124_v38  ;;  %v9127_v56 = vpop.f32.mrb[30].mxu0  ;;  %v950_v19 = vld [vmem:[#allocation2 + $0x149] sm:$0xff] }
 0x16e   :  { %v9232_v30 = vadd.f32 %v9231_v8, %v9230_v24  ;;  %v9233_v40 = vpop.f32.mrb[26].mxu1  ;;  %v9128_v23 = vpop.f32.mrb[31].mxu0  ;;  %9765 = vmatpush3.bf16.msra.mxu1 %v11329_v22  ;;  %v16111_v24 = vpack.c.bf16 %v11987_v4, %v11985_v48  ;;  %v11334_v8 = vld [vmem:[#allocation8 + $0xa0] sm:$0xff]  }
 0x16f   :  { %v9234_v37 = vpop.f32.mrb[27].mxu1  ;;  %v9129_v26 = vadd.f32 %v9128_v23, %v9127_v56  ;;  %9657 = vmatpush3.bf16.msra.mxu0 %v11330_v61  ;;  %9766 = vmatprep.subr.bf16.mxu1 %v11331_v50  ;;  %v2525_v61 = vld [vmem:[#allocation2 + $0x28f] sm:$0xff]  ;;  %v11335_v56 = vld [vmem:[#allocation8 + $0x158] sm:$0xff]  }
 0x170   :  { %v12176_v17 = vadd.f32 %v9232_v30, %v9120_v47  ;;  %v9235_v0 = vadd.f32 %v9234_v37, %v9233_v40  ;;  %10979 = vmatmul.mubr.bf16.gmra.mrb[136].mxu0 %v971_v34  ;;  %9658 = vmatprep.subr.bf16.mxu0 %v11332_v2  ;;  %v951_v47 = vld [vmem:[#allocation2 + $0x151] sm:$0xff]  ;;  %v973_v40 = vpack.c.bf16 %v949_v63, %v948_v62  ;;  %v11336_v23 = vld [vmem:[#allocation8 + $0xe8] sm:$0xff]  }
 0x171   :  { %3283 = vmatmul.mubr.bf16.gmra.mrb[132].mxu1 %v12174_v3  ;;  %10982 = vmatprep.mubr.bf16.mxu0 %v972_v7  ;;  %v12184_v22 = vpack.c.bf16 %v2525_v61, %v2524_v14  ;;  %v974_v37 = vpack.c.bf16 %v951_v47, %v950_v19  ;;  %v11340_v14 = vld [vmem:[#allocation8 + $0xf0] sm:$0xff]   ;;  %v2526_v61 = vld [vmem:[#allocation2 + $0x2a7] sm:$0xff] }
 0x172   :  { %v12179_v38 = vadd.f32 %v9235_v0, %v9123_v41  ;;  %3290 = vmatprep.mubr.bf16.mxu1 %v16111_v24  ;;  %9767 = vmatpush3.bf16.msra.mxu1 %v11333_v39  ;;  %v11337_v24 = vld [vmem:[#allocation8 + $0x118] sm:$0xff]   ;;  %v952_v19 = vld [vmem:[#allocation2 + $0x169] sm:$0xff] }
 0x173   :  { %v9130_v34 = vpop.f32.mrb[32].mxu0  ;;  %9659 = vmatpush3.bf16.msra.mxu0 %v11334_v8  ;;  %9768 = vmatprep.subr.bf16.mxu1 %v11335_v56  ;;  %v11339_v56 = vld [vmem:[#allocation8 + $0x160] sm:$0xff]   ;;  %v953_v47 = vld [vmem:[#allocation2 + $0x171] sm:$0xff] }
 0x174   :  { %16110 = vst [vmem:[#allocation18_spill] sm:$0xff] %v12179_v38  ;;  %v9236_v30 = vpop.f32.mrb[28].mxu1  ;;  %v9131_v7 = vpop.f32.mrb[33].mxu0  ;;  %9660 = vmatprep.subr.bf16.mxu0 %v11336_v23  ;;  %v11338_v38 = vld [vmem:[#allocation8 + $0xa8] sm:$0xff]   ;;  %v11341_v23 = vld [vmem:[#allocation8 + $0x120] sm:$0xff]  }
 0x175   :  { %v9237_v41 = vpop.f32.mrb[29].mxu1  ;;  %v9132_v48 = vadd.f32 %v9131_v7, %v9130_v34  ;;  %v9133_v4 = vpop.f32.mrb[34].mxu0  ;;  %v954_v7 = vld [vmem:[#allocation2 + $0x189] sm:$0xff] }
 0x176   :  { %v9238_v50 = vadd.f32 %v9237_v41, %v9236_v30  ;;  %v9239_v0 = vpop.f32.mrb[30].mxu1  ;;  %v9134_v2 = vpop.f32.mrb[35].mxu0  ;;  %9769 = vmatpush3.bf16.msra.mxu1 %v11337_v24  ;;  %v16113_v30 = vpack.c.bf16 %v11999_v53, %v11997_v10  ;;  %v11342_v41 = vld [vmem:[#allocation8 + $0xb0] sm:$0xff]  }
 0x177   :  { %v9240_v39 = vpop.f32.mrb[31].mxu1  ;;  %v9135_v8 = vadd.f32 %v9134_v2, %v9133_v4  ;;  %9661 = vmatpush3.bf16.msra.mxu0 %v11338_v38  ;;  %9770 = vmatprep.subr.bf16.mxu1 %v11339_v56  ;;  %v2527_v38 = vld [vmem:[#allocation2 + $0x2af] sm:$0xff]  ;;  %v11344_v2 = vld [vmem:[#allocation8 + $0xf8] sm:$0xff]  }
 0x178   :  { %v12186_v62 = vadd.f32 %v9238_v50, %v9126_v60  ;;  %v9241_v63 = vadd.f32 %v9240_v39, %v9239_v0  ;;  %10983 = vmatmul.mubr.bf16.gmra.mrb[140].mxu0 %v973_v40  ;;  %9662 = vmatprep.subr.bf16.mxu0 %v11340_v14  ;;  %v955_v60 = vld [vmem:[#allocation2 + $0x191] sm:$0xff]  ;;  %v11343_v4 = vld [vmem:[#allocation8 + $0x168] sm:$0xff]   ;;  %v975_v0 = vpack.c.bf16 %v953_v47, %v952_v19 }
 0x179   :  { %3291 = vmatmul.mubr.bf16.gmra.mrb[136].mxu1 %v12184_v22  ;;  %10986 = vmatprep.mubr.bf16.mxu0 %v974_v37  ;;  %v12194_v24 = vpack.c.bf16 %v2527_v38, %v2526_v61  ;;  %v976_v39 = vpack.c.bf16 %v955_v60, %v954_v7  ;;  %v11348_v61 = vld [vmem:[#allocation8 + $0x1c0] sm:$0xff]   ;;  %v956_v7 = vld [vmem:[#allocation2 + $0x1a9] sm:$0xff]  ;;  %v957_v60 = vld [vmem:[#allocation2 + $0x1b1] sm:$0xff] }
 0x17a   :  { %v12189_v34 = vadd.f32 %v9241_v63, %v9129_v26  ;;  %3298 = vmatprep.mubr.bf16.mxu1 %v16113_v30  ;;  %9771 = vmatpush3.bf16.msra.mxu1 %v11341_v23  ;;  %v11345_v30 = vld [vmem:[#allocation8 + $0x128] sm:$0xff]  }
 0x17b   :  { %v9136_v40 = vpop.f32.mrb[36].mxu0  ;;  %9663 = vmatpush3.bf16.msra.mxu0 %v11342_v41  ;;  %9772 = vmatprep.subr.bf16.mxu1 %v11343_v4  ;;  %v11347_v4 = vld [vmem:[#allocation8 + $0x170] sm:$0xff]   ;;  %v2528_v38 = vld [vmem:[#allocation2 + $0x2c7] sm:$0xff] }
 0x17c   :  { %16112 = vst [vmem:[#allocation19_spill] sm:$0xff] %v12189_v34  ;;  %v9242_v50 = vpop.f32.mrb[32].mxu1  ;;  %v9137_v37 = vpop.f32.mrb[37].mxu0  ;;  %9664 = vmatprep.subr.bf16.mxu0 %v11344_v2  ;;  %v11346_v34 = vld [vmem:[#allocation8 + $0xb8] sm:$0xff]   ;;  %v11349_v2 = vld [vmem:[#allocation8 + $0x130] sm:$0xff]  }
 0x17d   :  { %v9243_v26 = vpop.f32.mrb[33].mxu1  ;;  %v9138_v10 = vadd.f32 %v9137_v37, %v9136_v40  ;;  %v9139_v53 = vpop.f32.mrb[38].mxu0  ;;  %v958_v37 = vld [vmem:[#allocation2 + $0x1c9] sm:$0xff] }
 0x17e   :  { %v9244_v56 = vadd.f32 %v9243_v26, %v9242_v50  ;;  %v9245_v63 = vpop.f32.mrb[34].mxu1  ;;  %v9140_v14 = vpop.f32.mrb[39].mxu0  ;;  %9773 = vmatpush3.bf16.msra.mxu1 %v11345_v30  ;;  %v16114_v50 = vpack.c.bf16 %v12011_v25, %v12009_v36  ;;  %v11350_v26 = vld [vmem:[#allocation8 + $0x178] sm:$0xff]  }
 0x17f   :  { %v9246_v23 = vpop.f32.mrb[35].mxu1  ;;  %v9141_v41 = vadd.f32 %v9140_v14, %v9139_v53  ;;  %9665 = vmatpush3.bf16.msra.mxu0 %v11346_v34  ;;  %9774 = vmatprep.subr.bf16.mxu1 %v11347_v4  ;;  %v2529_v34 = vld [vmem:[#allocation2 + $0x2cf] sm:$0xff] }
 0x180   :  { %v12196_v19 = vadd.f32 %v9244_v56, %v9132_v48  ;;  %v9247_v47 = vadd.f32 %v9246_v23, %v9245_v63  ;;  %10987 = vmatmul.mubr.bf16.gmra.mrb[144].mxu0 %v975_v0  ;;  %9874 = vmatprep.subr.bf16.mxu0 %v11348_v61  ;;  %v959_v48 = vld [vmem:[#allocation2 + $0x1d1] sm:$0xff]  ;;  %v977_v63 = vpack.c.bf16 %v957_v60, %v956_v7 }
 0x181   :  { %3299 = vmatmul.mubr.bf16.gmra.mrb[140].mxu1 %v12194_v24  ;;  %10990 = vmatprep.mubr.bf16.mxu0 %v976_v39  ;;  %v12204_v14 = vpack.c.bf16 %v2529_v34, %v2528_v38  ;;  %v978_v23 = vpack.c.bf16 %v959_v48, %v958_v37  ;;  %v960_v38 = vld [vmem:[#allocation2 + $0x1e9] sm:$0xff]  ;;  %v961_v60 = vld [vmem:[#allocation2 + $0x1f1] sm:$0xff]  ;;  %v16115_v37 = vpack.c.bf16 %v12023_v46, %v12021_v45 }
 0x182   :  { %v12199_v40 = vadd.f32 %v9247_v47, %v9135_v8  ;;  %3306 = vmatprep.mubr.bf16.mxu1 %v16114_v50  ;;  %9775 = vmatpush3.bf16.msra.mxu1 %v11349_v2  ;;  %v11351_v47 = vld [vmem:[#allocation8 + $0x138] sm:$0xff]   ;;  %v12206_v2 = vld [vmem:[#allocation8 + $0x200] sm:$0xff]   ;;  %v964_v46 = vld [vmem:[#allocation2 + $0x229] sm:$0xff] }
 0x183   :  { %v9142_v0 = vpop.f32.mrb[40].mxu0  ;;  %9776 = vmatprep.subr.bf16.mxu1 %v11350_v26  ;;  %v2530_v48 = vld [vmem:[#allocation2 + $0x2e7] sm:$0xff] }
 0x184   :  { %v9248_v53 = vpop.f32.mrb[36].mxu1  ;;  %v9143_v56 = vpop.f32.mrb[41].mxu0 }
 0x185   :  { %v9249_v39 = vpop.f32.mrb[37].mxu1  ;;  %v9144_v8 = vadd.f32 %v9143_v56, %v9142_v0  ;;  %v9145_v30 = vpop.f32.mrb[42].mxu0  ;;  %v2531_v0 = vld [vmem:[#allocation2 + $0x2ef] sm:$0xff] }
 0x186   :  { %v9250_v4 = vadd.f32 %v9249_v39, %v9248_v53  ;;  %v9251_v36 = vpop.f32.mrb[38].mxu1  ;;  %v9146_v25 = vpop.f32.mrb[43].mxu0  ;;  %9777 = vmatpush3.bf16.msra.mxu1 %v11351_v47 }
 0x187   :  { %v9252_v61 = vpop.f32.mrb[39].mxu1  ;;  %v9147_v50 = vadd.f32 %v9146_v25, %v9145_v30  ;;  %11002 = vmatprep.subr.bf16.mxu1 %v12206_v2 }
 0x188   :  { %v12209_v26 = vadd.f32 %v9250_v4, %v9138_v10  ;;  %v9253_v7 = vadd.f32 %v9252_v61, %v9251_v36  ;;  %10991 = vmatmul.mubr.bf16.gmra.mrb[148].mxu0 %v977_v63  ;;  %v979_v10 = vpack.c.bf16 %v961_v60, %v960_v38  ;;  %v12217_v4 = vpack.c.bf16 %v2531_v0, %v2530_v48  ;;  %v965_v38 = vld [vmem:[#allocation2 + $0x231] sm:$0xff]  ;;  %v2532_v48 = vld [vmem:[#allocation2 + $0x307] sm:$0xff] }
 0x189   :  { %3307 = vmatmul.mubr.bf16.gmra.mrb[144].mxu1 %v12204_v14  ;;  %10994 = vmatprep.mubr.bf16.mxu0 %v978_v23  ;;  %v2533_v0 = vld [vmem:[#allocation2 + $0x30f] sm:$0xff] }
 0x18a   :  { %v12212_v34 = vadd.f32 %v9253_v7, %v9141_v41  ;;  %3314 = vmatprep.mubr.bf16.mxu1 %v16115_v37  ;;  %v16116_v37 = vpack.c.bf16 %v12035_v59, %v12033_v28 }
 0x18b   :  { %v9148_v53 = vpop.f32.mrb[44].mxu0 }
 0x18c   :  { %v9254_v56 = vpop.f32.mrb[40].mxu1  ;;  %v9149_v39 = vpop.f32.mrb[45].mxu0 }
 0x18d   :  { %v9255_v30 = vpop.f32.mrb[41].mxu1  ;;  %v9150_v63 = vadd.f32 %v9149_v39, %v9148_v53  ;;  %v9151_v36 = vpop.f32.mrb[46].mxu0  ;;  %v981_v39 = vpack.c.bf16 %v965_v38, %v964_v46  ;;  %v2648_v46 = vld [vmem:[#allocation2 + $0x249] sm:$0xff]  ;;  %v2649_v38 = vld [vmem:[#allocation2 + $0x251] sm:$0xff] }
 0x18e   :  { %v9256_v23 = vadd.f32 %v9255_v30, %v9254_v56  ;;  %v9257_v25 = vpop.f32.mrb[42].mxu1  ;;  %v9152_v47 = vpop.f32.mrb[47].mxu0 }
 0x18f   :  { %v9258_v41 = vpop.f32.mrb[43].mxu1  ;;  %v9153_v61 = vadd.f32 %v9152_v47, %v9151_v36 }
 0x190   :  { %v12219_v7 = vadd.f32 %v9256_v23, %v9144_v8  ;;  %v9259_v45 = vadd.f32 %v9258_v41, %v9257_v25  ;;  %10995 = vmatmul.mubr.bf16.gmra.mrb[152].mxu0 %v979_v10  ;;  %v12228_v10 = vpack.c.bf16 %v2533_v0, %v2532_v48  ;;  %v210_v25 = vld [vmem:[#allocation5 + $0x1f8] sm:$0xff]  ;;  %v16117_v0 = vpack.c.bf16 %v12047_v49, %v12045_v57  ;;  %v11353_v49 = vld [vmem:[#allocation8 + $0x180] sm:$0xff]  }
 0x191   :  { %3315 = vmatmul.mubr.bf16.gmra.mrb[148].mxu1 %v12217_v4  ;;  %10998 = vmatprep.mubr.bf16.mxu0 %v12129_v6  ;;  %v209_v6 = vld [vmem:[#allocation5 + $0x1f0] sm:$0xff]  ;;  %274 = vst [vmem:[#allocation2 + $0x450] sm:$0xff] %v210_v25 }
 0x192   :  { %v12223_v60 = vadd.f32 %v9259_v45, %v9147_v50  ;;  %3322 = vmatprep.mubr.bf16.mxu1 %v16116_v37  ;;  %273 = vst [vmem:[#allocation2 + $0x448] sm:$0xff] %v209_v6 }
 0x193   :  { %v9154_v53 = vpop.f32.mrb[48].mxu0 }
 0x194   :  { %v9260_v56 = vpop.f32.mrb[44].mxu1  ;;  %v9155_v8 = vpop.f32.mrb[49].mxu0 }
 0x195   :  { %v9261_v30 = vpop.f32.mrb[45].mxu1  ;;  %v9156_v36 = vadd.f32 %v9155_v8, %v9154_v53  ;;  %v9157_v23 = vpop.f32.mrb[50].mxu0  ;;  %v2534_v53 = vld [vmem:[#allocation2 + $0x327] sm:$0xff] }
 0x196   :  { %v9262_v47 = vadd.f32 %v9261_v30, %v9260_v56  ;;  %v9263_v50 = vpop.f32.mrb[46].mxu1  ;;  %v9158_v41 = vpop.f32.mrb[51].mxu0  ;;  %v2535_v56 = vld [vmem:[#allocation2 + $0x32f] sm:$0xff] }
 0x197   :  { %v9264_v28 = vpop.f32.mrb[47].mxu1  ;;  %v9159_v59 = vadd.f32 %v9158_v41, %v9157_v23  ;;  %v2680_v23 = vpack.c.bf16 %v2649_v38, %v2648_v46  ;;  %v2651_v46 = vld [vmem:[#allocation2 + $0x271] sm:$0xff] }
 0x198   :  { %v12230_v45 = vadd.f32 %v9262_v47, %v9150_v63  ;;  %v9265_v37 = vadd.f32 %v9264_v28, %v9263_v50  ;;  %10999 = vmatmul.mubr.bf16.gmra.mrb[156].mxu0 %v981_v39  ;;  %v12239_v39 = vpack.c.bf16 %v2535_v56, %v2534_v53  ;;  %v16118_v53 = vpack.c.bf16 %v12059_v1, %v12057_v13  ;;  %v2536_v56 = vld [vmem:[#allocation2 + $0x347] sm:$0xff] }
 0x199   :  { %3323 = vmatmul.mubr.bf16.gmra.mrb[152].mxu1 %v12228_v10  ;;  %3435 = vmatprep.mubr.bf16.mxu0 %v12174_v3 }
 0x19a   :  { %v12234_v48 = vadd.f32 %v9265_v37, %v9153_v61  ;;  %3330 = vmatprep.mubr.bf16.mxu1 %v16117_v0  ;;  %v2650_v0 = vld [vmem:[#allocation2 + $0x269] sm:$0xff] }
 0x19b   :  { %v9160_v8 = vpop.f32.mrb[52].mxu0 }
 0x19c   :  { %v9266_v30 = vpop.f32.mrb[48].mxu1  ;;  %v9161_v63 = vpop.f32.mrb[53].mxu0 }
 0x19d   :  { %v9267_v6 = vpop.f32.mrb[49].mxu1  ;;  %v9162_v25 = vadd.f32 %v9161_v63, %v9160_v8  ;;  %v9163_v47 = vpop.f32.mrb[54].mxu0  ;;  %v2537_v8 = vld [vmem:[#allocation2 + $0x34f] sm:$0xff] }
 0x19e   :  { %v9268_v3 = vadd.f32 %v9267_v6, %v9266_v30  ;;  %v9269_v50 = vpop.f32.mrb[50].mxu1  ;;  %v9164_v41 = vpop.f32.mrb[55].mxu0  ;;  %v11354_v30 = vld [vmem:[#allocation8 + $0x1c8] sm:$0xff]   ;;  %v12250_v6 = vpack.c.bf16 %v2651_v46, %v2650_v0  ;;  %v2653_v46 = vld [vmem:[#allocation2 + $0x291] sm:$0xff] }
 0x19f   :  { %v9270_v61 = vpop.f32.mrb[51].mxu1  ;;  %v9165_v28 = vadd.f32 %v9164_v41, %v9163_v47  ;;  %v11355_v41 = vld [vmem:[#allocation8 + $0x188] sm:$0xff]  }
 0x1a0   :  { %v12241_v37 = vadd.f32 %v9268_v3, %v9156_v36  ;;  %v9271_v57 = vadd.f32 %v9270_v61, %v9269_v50  ;;  %3436 = vmatmul.mubr.bf16.vlgmr.msra.gmra.mrb[160].mxu0 %v2680_v23  ;;  %v12252_v3 = vpack.c.bf16 %v2537_v8, %v2536_v56  ;;  %v2652_v0 = vld [vmem:[#allocation2 + $0x289] sm:$0xff]  ;;  %v16120_v8 = vpack.c.bf16 %v12071_v15, %v12069_v35  ;;  %v11359_v15 = vld [vmem:[#allocation8 + $0x198] sm:$0xff]  }
 0x1a1   :  { %3331 = vmatmul.mubr.bf16.gmra.mrb[156].mxu1 %v12239_v39  ;;  %9875 = vmatpush3.bf16.msra.mxu0 %v11353_v49 }
 0x1a2   :  { %v12244_v38 = vadd.f32 %v9271_v57, %v9159_v59  ;;  %3338 = vmatprep.mubr.bf16.mxu1 %v16118_v53  ;;  %3443 = vmatprep.mubr.bf16.mxu0 %v12184_v22  ;;  %v11356_v57 = vld [vmem:[#allocation8 + $0x1d0] sm:$0xff]  }
 0x1a3   :  { %v9166_v36 = vpop.f32.mrb[56].mxu0  ;;  %9876 = vmatprep.subr.bf16.mxu0 %v11354_v30 }
 0x1a4   :  { %v9272_v63 = vpop.f32.mrb[52].mxu1  ;;  %v9167_v23 = vpop.f32.mrb[57].mxu0 }
 0x1a5   :  { %v9273_v47 = vpop.f32.mrb[53].mxu1  ;;  %v9168_v59 = vadd.f32 %v9167_v23, %v9166_v36  ;;  %v9169_v50 = vpop.f32.mrb[58].mxu0  ;;  %9877 = vmatpush3.bf16.msra.mxu0 %v11355_v41  ;;  %v2538_v36 = vld [vmem:[#allocation2 + $0x367] sm:$0xff]  ;;  %v11357_v23 = vld [vmem:[#allocation8 + $0x190] sm:$0xff]  }
 0x1a6   :  { %v9274_v13 = vadd.f32 %v9273_v47, %v9272_v63  ;;  %v9275_v1 = vpop.f32.mrb[54].mxu1  ;;  %v9170_v61 = vpop.f32.mrb[59].mxu0  ;;  %9878 = vmatprep.subr.bf16.mxu0 %v11356_v57  ;;  %v2539_v63 = vld [vmem:[#allocation2 + $0x36f] sm:$0xff]  ;;  %v11358_v47 = vld [vmem:[#allocation8 + $0x1d8] sm:$0xff]  }
 0x1a7   :  { %v9276_v22 = vpop.f32.mrb[55].mxu1  ;;  %v9171_v49 = vadd.f32 %v9170_v61, %v9169_v50 }
 0x1a8   :  { %v12254_v53 = vadd.f32 %v9274_v13, %v9162_v25  ;;  %v9277_v30 = vadd.f32 %v9276_v22, %v9275_v1  ;;  %3444 = vmatmul.mubr.bf16.gmra.mrb[164].mxu0 %v12250_v6  ;;  %v12264_v13 = vpack.c.bf16 %v2653_v46, %v2652_v0  ;;  %v12266_v1 = vpack.c.bf16 %v2539_v63, %v2538_v36  ;;  %v2654_v0 = vld [vmem:[#allocation2 + $0x2a9] sm:$0xff]  ;;  %v2655_v46 = vld [vmem:[#allocation2 + $0x2b1] sm:$0xff] }
 0x1a9   :  { %3339 = vmatmul.mubr.bf16.gmra.mrb[160].mxu1 %v12252_v3  ;;  %3451 = vmatprep.mubr.bf16.mxu0 %v12194_v24  ;;  %v16122_v63 = vpack.c.bf16 %v12083_v21, %v12081_v58  ;;  %v11363_v21 = vld [vmem:[#allocation8 + $0x1a8] sm:$0xff]  }
 0x1aa   :  { %v12259_v56 = vadd.f32 %v9277_v30, %v9165_v28  ;;  %3346 = vmatprep.mubr.bf16.mxu1 %v16120_v8  ;;  %9879 = vmatpush3.bf16.msra.mxu0 %v11357_v23  ;;  %v11360_v23 = vld [vmem:[#allocation8 + $0x1e0] sm:$0xff]  }
 0x1ab   :  { %v9172_v25 = vpop.f32.mrb[60].mxu0  ;;  %9880 = vmatprep.subr.bf16.mxu0 %v11358_v47 }
 0x1ac   :  { %16119 = vst [vmem:[#allocation20_spill] sm:$0xff] %v12259_v56  ;;  %v9278_v50 = vpop.f32.mrb[56].mxu1  ;;  %v9173_v41 = vpop.f32.mrb[61].mxu0 }
 0x1ad   :  { %v9279_v24 = vpop.f32.mrb[57].mxu1  ;;  %v9174_v28 = vadd.f32 %v9173_v41, %v9172_v25  ;;  %v9175_v61 = vpop.f32.mrb[62].mxu0  ;;  %v2540_v25 = vld [vmem:[#allocation2 + $0x387] sm:$0xff] }
 0x1ae   :  { %v9280_v57 = vadd.f32 %v9279_v24, %v9278_v50  ;;  %v9281_v22 = vpop.f32.mrb[58].mxu1  ;;  %v9176_v35 = vpop.f32.mrb[63].mxu0  ;;  %9881 = vmatpush3.bf16.msra.mxu0 %v11359_v15  ;;  %v2541_v50 = vld [vmem:[#allocation2 + $0x38f] sm:$0xff]  ;;  %v11361_v41 = vld [vmem:[#allocation8 + $0x1a0] sm:$0xff]  }
 0x1af   :  { %v9282_v30 = vpop.f32.mrb[59].mxu1  ;;  %v9177_v8 = vadd.f32 %v9176_v35, %v9175_v61  ;;  %9882 = vmatprep.subr.bf16.mxu0 %v11360_v23  ;;  %v11362_v24 = vld [vmem:[#allocation8 + $0x1e8] sm:$0xff]   ;;  %v12280_v35 = vpack.c.bf16 %v2541_v50, %v2540_v25  ;;  %v2657_v50 = vld [vmem:[#allocation2 + $0x2d1] sm:$0xff] }
 0x1b0   :  { %v12268_v56 = vadd.f32 %v9280_v57, %v9168_v59  ;;  %v9283_v47 = vadd.f32 %v9282_v30, %v9281_v22  ;;  %3452 = vmatmul.mubr.bf16.gmra.mrb[168].mxu0 %v12264_v13  ;;  %v12278_v22 = vpack.c.bf16 %v2655_v46, %v2654_v0  ;;  %v2656_v25 = vld [vmem:[#allocation2 + $0x2c9] sm:$0xff] }
 0x1b1   :  { %3347 = vmatmul.mubr.bf16.gmra.mrb[164].mxu1 %v12266_v1  ;;  %3459 = vmatprep.mubr.bf16.mxu0 %v12204_v14 }
 0x1b2   :  { %v12273_v36 = vadd.f32 %v9283_v47, %v9171_v49  ;;  %3354 = vmatprep.mubr.bf16.mxu1 %v16122_v63  ;;  %9883 = vmatpush3.bf16.msra.mxu0 %v11361_v41 }
 0x1b3   :  { %v9306_v59 = vpop.f32.mrb[64].mxu0  ;;  %9884 = vmatprep.subr.bf16.mxu0 %v11362_v24 }
 0x1b4   :  { %16121 = vst [vmem:[#allocation21_spill] sm:$0xff] %v12273_v36  ;;  %v9284_v61 = vpop.f32.mrb[60].mxu1  ;;  %v9307_v57 = vpop.f32.mrb[65].mxu0  ;;  %v11364_v36 = vld [vmem:[#allocation8 + $0x1f0] sm:$0xff]  }
 0x1b5   :  { %v9285_v14 = vpop.f32.mrb[61].mxu1  ;;  %v9308_v49 = vadd.f32 %v9307_v57, %v9306_v59  ;;  %v9309_v15 = vpop.f32.mrb[66].mxu0  ;;  %v11366_v57 = vld [vmem:[#allocation8 + $0x1f8] sm:$0xff]  }
 0x1b6   :  { %v9286_v30 = vadd.f32 %v9285_v14, %v9284_v61  ;;  %v9287_v23 = vpop.f32.mrb[62].mxu1  ;;  %v9310_v58 = vpop.f32.mrb[67].mxu0  ;;  %9885 = vmatpush3.bf16.msra.mxu0 %v11363_v21  ;;  %v2543_v61 = vld [vmem:[#allocation2 + $0x3af] sm:$0xff] }
 0x1b7   :  { %v9288_v47 = vpop.f32.mrb[63].mxu1  ;;  %v1931_v63 = vadd.f32 %v9308_v49, %v12104_v12  ;;  %v9311_v41 = vadd.f32 %v9310_v58, %v9309_v15  ;;  %9886 = vmatprep.subr.bf16.mxu0 %v11364_v36  ;;  %v2542_v12 = vld [vmem:[#allocation2 + $0x3a7] sm:$0xff]  ;;  %v11365_v36 = vld [vmem:[#allocation8 + $0x1b0] sm:$0xff]   ;;  %v12292_v15 = vpack.c.bf16 %v2657_v50, %v2656_v25 }
 0x1b8   :  { %v12283_v24 = vadd.f32 %v9286_v30, %v9174_v28  ;;  %v9289_v0 = vadd.f32 %v9288_v47, %v9287_v23  ;;  %3460 = vmatmul.mubr.bf16.gmra.mrb[172].mxu0 %v12278_v22  ;;  %v12294_v30 = vpack.c.bf16 %v2543_v61, %v2542_v12  ;;  %v11367_v47 = vld [vmem:[#allocation8 + $0x1b8] sm:$0xff]   ;;  %v2658_v50 = vld [vmem:[#allocation2 + $0x2e9] sm:$0xff]  ;;  %v16123_v61 = vpack.c.bf16 %v12101_v52, %v12099_v51 }
 0x1b9   :  { %3355 = vmatmul.mubr.bf16.gmra.mrb[168].mxu1 %v12280_v35  ;;  %v1934_v46 = vadd.f32 %v9311_v41, %v12110_v32  ;;  %3467 = vmatprep.mubr.bf16.mxu0 %v12217_v4  ;;  %v2659_v12 = vld [vmem:[#allocation2 + $0x2f1] sm:$0xff] }
 0x1ba   :  { %v12289_v59 = vadd.f32 %v9289_v0, %v9177_v8  ;;  %3362 = vmatprep.mubr.bf16.mxu1 %v12097_v44  ;;  %9887 = vmatpush3.bf16.msra.mxu0 %v11365_v36 }
 0x1bb   :  { %v9312_v28 = vpop.f32.mrb[68].mxu0  ;;  %9888 = vmatprep.subr.bf16.mxu0 %v11366_v57 }
 0x1bc   :  { %v9418_v14 = vpop.f32.mrb[64].mxu1  ;;  %v9313_v49 = vpop.f32.mrb[69].mxu0 }
 0x1bd   :  { %v9419_v32 = vpop.f32.mrb[65].mxu1  ;;  %v9314_v4 = vadd.f32 %v9313_v49, %v9312_v28  ;;  %v9315_v23 = vpop.f32.mrb[70].mxu0  ;;  %v2544_v28 = vld [vmem:[#allocation2 + $0x3c7] sm:$0xff] }
 0x1be   :  { %v9420_v8 = vadd.f32 %v9419_v32, %v9418_v14  ;;  %v9421_v58 = vpop.f32.mrb[66].mxu1  ;;  %v9316_v21 = vpop.f32.mrb[71].mxu0  ;;  %9889 = vmatpush3.bf16.msra.mxu0 %v11367_v47 }
 0x1bf   :  { %v9422_v41 = vpop.f32.mrb[67].mxu1  ;;  %v1939_v0 = vadd.f32 %v9314_v4, %v12119_v5  ;;  %v9317_v36 = vadd.f32 %v9316_v21, %v9315_v23  ;;  %v2545_v5 = vld [vmem:[#allocation2 + $0x3cf] sm:$0xff]  ;;  %v12308_v4 = vpack.c.bf16 %v2659_v12, %v2658_v50 }
 0x1c0   :  { %v9423_v44 = vadd.f32 %v9422_v41, %v9421_v58  ;;  %3468 = vmatmul.mubr.bf16.gmra.mrb[176].mxu0 %v12292_v15  ;;  %v12298_v57 = vadd.f32 %v9420_v8, %v1931_v63  ;;  %v12310_v8 = vpack.c.bf16 %v2545_v5, %v2544_v28  ;;  %v2660_v50 = vld [vmem:[#allocation2 + $0x309] sm:$0xff]  ;;  %v2661_v12 = vld [vmem:[#allocation2 + $0x311] sm:$0xff] }
 0x1c1   :  { %3363 = vmatmul.mubr.bf16.gmra.mrb[172].mxu1 %v12294_v30  ;;  %v1942_v25 = vadd.f32 %v9317_v36, %v12126_v42  ;;  %3475 = vmatprep.mubr.bf16.mxu0 %v12228_v10  ;;  %v2546_v28 = vld [vmem:[#allocation2 + $0x3e7] sm:$0xff] }
 0x1c2   :  { %3370 = vmatprep.mubr.bf16.mxu1 %v16123_v61  ;;  %v12306_v14 = vadd.f32 %v9423_v44, %v1934_v46  ;;  %v16124_v61 = vpack.c.bf16 %v12117_v20, %v12115_v18 }
 0x1c3   :  { %v9318_v49 = vpop.f32.mrb[72].mxu0 }
 0x1c4   :  { %v9424_v32 = vpop.f32.mrb[68].mxu1  ;;  %v9319_v63 = vpop.f32.mrb[73].mxu0 }
 0x1c5   :  { %v9425_v23 = vpop.f32.mrb[69].mxu1  ;;  %v9320_v42 = vadd.f32 %v9319_v63, %v9318_v49  ;;  %v9321_v10 = vpop.f32.mrb[74].mxu0  ;;  %v12324_v63 = vpack.c.bf16 %v2661_v12, %v2660_v50  ;;  %v2663_v50 = vld [vmem:[#allocation2 + $0x331] sm:$0xff]  ;;  %v16125_v12 = vld [vmem:[#allocation16_spill] sm:$0xff] }
 0x1c6   :  { %v9426_v58 = vadd.f32 %v9425_v23, %v9424_v32  ;;  %v9427_v21 = vpop.f32.mrb[70].mxu1  ;;  %v9322_v47 = vpop.f32.mrb[75].mxu0 }
 0x1c7   :  { %v9428_v41 = vpop.f32.mrb[71].mxu1  ;;  %v1947_v51 = vadd.f32 %v9320_v42, %v12138_v27  ;;  %v9323_v52 = vadd.f32 %v9322_v47, %v9321_v10  ;;  %v2547_v27 = vld [vmem:[#allocation2 + $0x3ef] sm:$0xff] }
 0x1c8   :  { %v9429_v36 = vadd.f32 %v9428_v41, %v9427_v21  ;;  %3476 = vmatmul.mubr.bf16.gmra.mrb[180].mxu0 %v12308_v4  ;;  %v12314_v44 = vadd.f32 %v9426_v58, %v1939_v0  ;;  %v12326_v42 = vpack.c.bf16 %v2547_v27, %v2546_v28  ;;  %v2548_v28 = vld [vmem:[#allocation2 + $0x407] sm:$0xff] }
 0x1c9   :  { %3371 = vmatmul.mubr.bf16.gmra.mrb[176].mxu1 %v12310_v8  ;;  %v1950_v46 = vadd.f32 %v9323_v52, %v12144_v9  ;;  %3483 = vmatprep.mubr.bf16.mxu0 %v12239_v39 }
 0x1ca   :  { %3378 = vmatprep.mubr.bf16.mxu1 %v16124_v61  ;;  %v12322_v5 = vadd.f32 %v9429_v36, %v1942_v25  ;;  %v2662_v36 = vld [vmem:[#allocation2 + $0x329] sm:$0xff]  ;;  %v16126_v61 = vpack.c.bf16 %v12135_v16, %v16125_v12  ;;  %v16127_v12 = vpack.c.bf16 %v12151_v11, %v12149_v29 }
 0x1cb   :  { %v9324_v49 = vpop.f32.mrb[76].mxu0 }
 0x1cc   :  { %v9430_v32 = vpop.f32.mrb[72].mxu1  ;;  %v9325_v0 = vpop.f32.mrb[77].mxu0 }
 0x1cd   :  { %v9431_v23 = vpop.f32.mrb[73].mxu1  ;;  %v9326_v9 = vadd.f32 %v9325_v0, %v9324_v49  ;;  %v9327_v39 = vpop.f32.mrb[78].mxu0  ;;  %v12340_v0 = vpack.c.bf16 %v2663_v50, %v2662_v36  ;;  %v2664_v36 = vld [vmem:[#allocation2 + $0x349] sm:$0xff]  ;;  %v2665_v50 = vld [vmem:[#allocation2 + $0x351] sm:$0xff] }
 0x1ce   :  { %v9432_v10 = vadd.f32 %v9431_v23, %v9430_v32  ;;  %v9433_v58 = vpop.f32.mrb[74].mxu1  ;;  %v9328_v21 = vpop.f32.mrb[79].mxu0 }
 0x1cf   :  { %v9434_v47 = vpop.f32.mrb[75].mxu1  ;;  %v1955_v18 = vadd.f32 %v9326_v9, %v12153_v55  ;;  %v9329_v20 = vadd.f32 %v9328_v21, %v9327_v39  ;;  %v2549_v55 = vld [vmem:[#allocation2 + $0x40f] sm:$0xff] }
 0x1d0   :  { %v9435_v41 = vadd.f32 %v9434_v47, %v9433_v58  ;;  %3484 = vmatmul.mubr.bf16.gmra.mrb[184].mxu0 %v12324_v63  ;;  %v12330_v25 = vadd.f32 %v9432_v10, %v1947_v51  ;;  %v12342_v9 = vpack.c.bf16 %v2549_v55, %v2548_v28 }
 0x1d1   :  { %3379 = vmatmul.mubr.bf16.gmra.mrb[180].mxu1 %v12326_v42  ;;  %v1958_v52 = vadd.f32 %v9329_v20, %v12159_v33  ;;  %3491 = vmatprep.mubr.bf16.mxu0 %v12252_v3 }
 0x1d2   :  { %3386 = vmatprep.mubr.bf16.mxu1 %v16126_v61  ;;  %v12338_v27 = vadd.f32 %v9435_v41, %v1950_v46  ;;  %v2550_v61 = vld [vmem:[#allocation2 + $0x427] sm:$0xff] }
 0x1d3   :  { %v9330_v49 = vpop.f32.mrb[80].mxu0 }
 0x1d4   :  { %v9436_v32 = vpop.f32.mrb[76].mxu1  ;;  %v9331_v51 = vpop.f32.mrb[81].mxu0 }
 0x1d5   :  { %v9437_v23 = vpop.f32.mrb[77].mxu1  ;;  %v9332_v33 = vadd.f32 %v9331_v51, %v9330_v49  ;;  %v9333_v3 = vpop.f32.mrb[82].mxu0 }
 0x1d6   :  { %v9438_v39 = vadd.f32 %v9437_v23, %v9436_v32  ;;  %v9439_v10 = vpop.f32.mrb[78].mxu1  ;;  %v9334_v58 = vpop.f32.mrb[83].mxu0  ;;  %v12356_v32 = vpack.c.bf16 %v2665_v50, %v2664_v36  ;;  %v2667_v36 = vld [vmem:[#allocation2 + $0x371] sm:$0xff]  ;;  %v2777_v50 = vld [vmem:[#allocation2 + $0x268] sm:$0xff] }
 0x1d7   :  { %v9440_v21 = vpop.f32.mrb[79].mxu1  ;;  %v1963_v16 = vadd.f32 %v9332_v33, %v12163_v54  ;;  %v9335_v47 = vadd.f32 %v9334_v58, %v9333_v3  ;;  %v2551_v54 = vld [vmem:[#allocation2 + $0x42f] sm:$0xff] }
 0x1d8   :  { %v9441_v20 = vadd.f32 %v9440_v21, %v9439_v10  ;;  %3492 = vmatmul.mubr.bf16.gmra.mrb[188].mxu0 %v12340_v0  ;;  %v12346_v46 = vadd.f32 %v9438_v39, %v1955_v18  ;;  %v12358_v23 = vpack.c.bf16 %v2551_v54, %v2550_v61  ;;  %v16128_v21 = vld [vmem:[#allocation17_spill] sm:$0xff] }
 0x1d9   :  { %3387 = vmatmul.mubr.bf16.gmra.mrb[184].mxu1 %v12342_v9  ;;  %v1966_v41 = vadd.f32 %v9335_v47, %v12165_v43  ;;  %3499 = vmatprep.mubr.bf16.mxu0 %v12266_v1 }
 0x1da   :  { %3394 = vmatprep.mubr.bf16.mxu1 %v16127_v12  ;;  %v12354_v28 = vadd.f32 %v9441_v20, %v1958_v52  ;;  %v2666_v20 = vld [vmem:[#allocation2 + $0x369] sm:$0xff] }
 0x1db   :  { %v9336_v55 = vpop.f32.mrb[84].mxu0  ;;  %v2778_v12 = vld [vmem:[#allocation2 + $0x270] sm:$0xff] }
 0x1dc   :  { %v9442_v49 = vpop.f32.mrb[80].mxu1  ;;  %v9337_v18 = vpop.f32.mrb[85].mxu0 }
 0x1dd   :  { %v9443_v51 = vpop.f32.mrb[81].mxu1  ;;  %v9338_v43 = vadd.f32 %v9337_v18, %v9336_v55  ;;  %v9339_v1 = vpop.f32.mrb[86].mxu0  ;;  %v2809_v18 = vpack.c.bf16 %v2778_v12, %v2777_v50  ;;  %v2780_v50 = vld [vmem:[#allocation2 + $0x290] sm:$0xff] }
 0x1de   :  { %v9444_v33 = vadd.f32 %v9443_v51, %v9442_v49  ;;  %v9445_v3 = vpop.f32.mrb[82].mxu1  ;;  %v9340_v39 = vpop.f32.mrb[87].mxu0  ;;  %v12370_v49 = vpack.c.bf16 %v2667_v36, %v2666_v20  ;;  %v2669_v20 = vld [vmem:[#allocation2 + $0x391] sm:$0xff]  ;;  %v2779_v36 = vld [vmem:[#allocation2 + $0x288] sm:$0xff] }
 0x1df   :  { %v9446_v10 = vpop.f32.mrb[83].mxu1  ;;  %v1971_v11 = vadd.f32 %v9338_v43, %v12167_v31  ;;  %v9341_v29 = vadd.f32 %v9340_v39, %v9339_v1 }
 0x1e0   :  { %v9447_v58 = vadd.f32 %v9446_v10, %v9445_v3  ;;  %3500 = vmatmul.mubr.bf16.gmra.mrb[192].mxu0 %v12356_v32  ;;  %v12362_v52 = vadd.f32 %v9444_v33, %v1963_v16 }
 0x1e1   :  { %3395 = vmatmul.mubr.bf16.gmra.mrb[188].mxu1 %v12358_v23  ;;  %v1974_v47 = vadd.f32 %v9341_v29, %v16128_v21  ;;  %3507 = vmatprep.mubr.bf16.mxu0 %v12280_v35  ;;  %v16129_v29 = vld [vmem:[#allocation18_spill] sm:$0xff]  ;;  %v2668_v21 = vld [vmem:[#allocation2 + $0x389] sm:$0xff] }
 0x1e2   :  { %3596 = vmatprep.mubr.bf16.mxu1 %v12250_v6  ;;  %v12368_v61 = vadd.f32 %v9447_v58, %v1966_v41 }
 0x1e3   :  { %v9342_v31 = vpop.f32.mrb[88].mxu0 }
 0x1e4   :  { %v9448_v54 = vpop.f32.mrb[84].mxu1  ;;  %v9343_v55 = vpop.f32.mrb[89].mxu0 }
 0x1e5   :  { %v9449_v16 = vpop.f32.mrb[85].mxu1  ;;  %v9344_v51 = vadd.f32 %v9343_v55, %v9342_v31  ;;  %v9345_v43 = vpop.f32.mrb[90].mxu0  ;;  %v11368_v31 = vld [vmem:[#allocation8 + $0x208] sm:$0xff]   ;;  %v12382_v55 = vpack.c.bf16 %v2669_v20, %v2668_v21  ;;  %v2671_v20 = vld [vmem:[#allocation2 + $0x3b1] sm:$0xff] }
 0x1e6   :  { %v9450_v1 = vadd.f32 %v9449_v16, %v9448_v54  ;;  %v9451_v33 = vpop.f32.mrb[86].mxu1  ;;  %v9346_v35 = vpop.f32.mrb[91].mxu0  ;;  %v2670_v21 = vld [vmem:[#allocation2 + $0x3a9] sm:$0xff] }
 0x1e7   :  { %v9452_v3 = vpop.f32.mrb[87].mxu1  ;;  %v1979_v39 = vadd.f32 %v9344_v51, %v12176_v17  ;;  %v9347_v6 = vadd.f32 %v9346_v35, %v9345_v43  ;;  %v11369_v35 = vld [vmem:[#allocation8 + $0x210] sm:$0xff]  }
 0x1e8   :  { %v9453_v10 = vadd.f32 %v9452_v3, %v9451_v33  ;;  %3508 = vmatmul.mubr.bf16.gmra.mrb[196].mxu0 %v12370_v49  ;;  %v12374_v41 = vadd.f32 %v9450_v1, %v1971_v11 }
 0x1e9   :  { %3597 = vmatmul.mubr.bf16.vlgmr.msra.gmra.mrb[192].mxu1 %v2809_v18  ;;  %v1982_v58 = vadd.f32 %v9347_v6, %v16129_v29  ;;  %3515 = vmatprep.mubr.bf16.mxu0 %v12294_v30  ;;  %v12384_v18 = vpack.c.bf16 %v2780_v50, %v2779_v36  ;;  %v2781_v36 = vld [vmem:[#allocation2 + $0x2a8] sm:$0xff] }
 0x1ea   :  { %11003 = vmatpush3.bf16.msra.mxu1 %v12206_v2  ;;  %3604 = vmatprep.mubr.bf16.mxu1 %v12264_v13  ;;  %v12380_v17 = vadd.f32 %v9453_v10, %v1974_v47  ;;  %v16130_v10 = vld [vmem:[#allocation19_spill] sm:$0xff] }
 0x1eb   :  { %v9348_v12 = vpop.f32.mrb[92].mxu0  ;;  %11004 = vmatprep.subr.bf16.mxu1 %v11368_v31 }
 0x1ec   :  { %v9454_v11 = vpop.f32.mrb[88].mxu1  ;;  %v9349_v54 = vpop.f32.mrb[93].mxu0 }
 0x1ed   :  { %v9455_v16 = vpop.f32.mrb[89].mxu1  ;;  %v9350_v30 = vadd.f32 %v9349_v54, %v9348_v12  ;;  %v9351_v51 = vpop.f32.mrb[94].mxu0  ;;  %v12396_v54 = vpack.c.bf16 %v2671_v20, %v2670_v21  ;;  %v2672_v21 = vld [vmem:[#allocation2 + $0x3c9] sm:$0xff]  ;;  %v2673_v20 = vld [vmem:[#allocation2 + $0x3d1] sm:$0xff] }
 0x1ee   :  { %v9456_v43 = vadd.f32 %v9455_v16, %v9454_v11  ;;  %v9457_v2 = vpop.f32.mrb[90].mxu1  ;;  %v9352_v1 = vpop.f32.mrb[95].mxu0  ;;  %11005 = vmatpush3.bf16.msra.mxu1 %v11368_v31  ;;  %v11370_v31 = vld [vmem:[#allocation8 + $0x218] sm:$0xff]  }
 0x1ef   :  { %v9458_v13 = vpop.f32.mrb[91].mxu1  ;;  %v1987_v47 = vadd.f32 %v9350_v30, %v12186_v62  ;;  %v9353_v33 = vadd.f32 %v9352_v1, %v9351_v51  ;;  %11006 = vmatprep.subr.bf16.mxu1 %v11369_v35  ;;  %v2782_v62 = vld [vmem:[#allocation2 + $0x2b0] sm:$0xff] }
 0x1f0   :  { %v9459_v3 = vadd.f32 %v9458_v13, %v9457_v2  ;;  %3516 = vmatmul.mubr.bf16.gmra.mrb[200].mxu0 %v12382_v55  ;;  %v12388_v6 = vadd.f32 %v9456_v43, %v1979_v39  ;;  %v12398_v30 = vpack.c.bf16 %v2782_v62, %v2781_v36  ;;  %v2783_v36 = vld [vmem:[#allocation2 + $0x2c8] sm:$0xff] }
 0x1f1   :  { %3605 = vmatmul.mubr.bf16.gmra.mrb[196].mxu1 %v12384_v18  ;;  %v1990_v29 = vadd.f32 %v9353_v33, %v16130_v10  ;;  %3523 = vmatprep.mubr.bf16.mxu0 %v12310_v8  ;;  %v11371_v33 = vld [vmem:[#allocation8 + $0x220] sm:$0xff]  }
 0x1f2   :  { %3612 = vmatprep.mubr.bf16.mxu1 %v12278_v22  ;;  %11007 = vmatpush3.bf16.msra.mxu1 %v11369_v35  ;;  %v12394_v50 = vadd.f32 %v9459_v3, %v1982_v58 }
 0x1f3   :  { %v9354_v12 = vpop.f32.mrb[96].mxu0  ;;  %11008 = vmatprep.subr.bf16.mxu1 %v11370_v31 }
 0x1f4   :  { %v9460_v39 = vpop.f32.mrb[92].mxu1  ;;  %v9355_v11 = vpop.f32.mrb[97].mxu0 }
 0x1f5   :  { %v9461_v16 = vpop.f32.mrb[93].mxu1  ;;  %v9356_v8 = vadd.f32 %v9355_v11, %v9354_v12  ;;  %v9357_v51 = vpop.f32.mrb[98].mxu0  ;;  %v12410_v11 = vpack.c.bf16 %v2673_v20, %v2672_v21  ;;  %v2674_v21 = vld [vmem:[#allocation2 + $0x3e9] sm:$0xff]  ;;  %v2675_v20 = vld [vmem:[#allocation2 + $0x3f1] sm:$0xff] }
 0x1f6   :  { %v9462_v43 = vadd.f32 %v9461_v16, %v9460_v39  ;;  %v9463_v2 = vpop.f32.mrb[94].mxu1  ;;  %v9358_v22 = vpop.f32.mrb[99].mxu0  ;;  %11009 = vmatpush3.bf16.msra.mxu1 %v11370_v31  ;;  %v11372_v31 = vld [vmem:[#allocation8 + $0x228] sm:$0xff]  }
 0x1f7   :  { %v9464_v1 = vpop.f32.mrb[95].mxu1  ;;  %v1995_v58 = vadd.f32 %v9356_v8, %v12196_v19  ;;  %v9359_v13 = vadd.f32 %v9358_v22, %v9357_v51  ;;  %11010 = vmatprep.subr.bf16.mxu1 %v11371_v33  ;;  %v2784_v19 = vld [vmem:[#allocation2 + $0x2d0] sm:$0xff] }
 0x1f8   :  { %v9465_v35 = vadd.f32 %v9464_v1, %v9463_v2  ;;  %3524 = vmatmul.mubr.bf16.gmra.mrb[204].mxu0 %v12396_v54  ;;  %v12402_v3 = vadd.f32 %v9462_v43, %v1987_v47  ;;  %v11373_v1 = vld [vmem:[#allocation8 + $0x230] sm:$0xff]  }
 0x1f9   :  { %3613 = vmatmul.mubr.bf16.gmra.mrb[200].mxu1 %v12398_v30  ;;  %v1998_v10 = vadd.f32 %v9359_v13, %v12199_v40  ;;  %3531 = vmatprep.mubr.bf16.mxu0 %v12326_v42  ;;  %v12412_v40 = vpack.c.bf16 %v2784_v19, %v2783_v36  ;;  %v2785_v36 = vld [vmem:[#allocation2 + $0x2e8] sm:$0xff] }
 0x1fa   :  { %3620 = vmatprep.mubr.bf16.mxu1 %v12292_v15  ;;  %11011 = vmatpush3.bf16.msra.mxu1 %v11371_v33  ;;  %v12408_v62 = vadd.f32 %v9465_v35, %v1990_v29 }
 0x1fb   :  { %v9360_v12 = vpop.f32.mrb[100].mxu0  ;;  %11012 = vmatprep.subr.bf16.mxu1 %v11372_v31 }
 0x1fc   :  { %v9466_v47 = vpop.f32.mrb[96].mxu1  ;;  %v9361_v39 = vpop.f32.mrb[101].mxu0 }
 0x1fd   :  { %v9467_v16 = vpop.f32.mrb[97].mxu1  ;;  %v9362_v42 = vadd.f32 %v9361_v39, %v9360_v12  ;;  %v9363_v8 = vpop.f32.mrb[102].mxu0  ;;  %v12424_v39 = vpack.c.bf16 %v2675_v20, %v2674_v21  ;;  %v2676_v21 = vld [vmem:[#allocation2 + $0x409] sm:$0xff]  ;;  %v2677_v20 = vld [vmem:[#allocation2 + $0x411] sm:$0xff] }
 0x1fe   :  { %v9468_v51 = vadd.f32 %v9467_v16, %v9466_v47  ;;  %v9469_v43 = vpop.f32.mrb[98].mxu1  ;;  %v9364_v15 = vpop.f32.mrb[103].mxu0  ;;  %11013 = vmatpush3.bf16.msra.mxu1 %v11372_v31  ;;  %v11374_v31 = vld [vmem:[#allocation8 + $0x238] sm:$0xff]  }
 0x1ff   :  { %v9470_v2 = vpop.f32.mrb[99].mxu1  ;;  %v2003_v29 = vadd.f32 %v9362_v42, %v12209_v26  ;;  %v9365_v22 = vadd.f32 %v9364_v15, %v9363_v8  ;;  %11014 = vmatprep.subr.bf16.mxu1 %v11373_v1  ;;  %v2786_v26 = vld [vmem:[#allocation2 + $0x2f0] sm:$0xff] }
 0x200   :  { %v9471_v13 = vadd.f32 %v9470_v2, %v9469_v43  ;;  %3532 = vmatmul.mubr.bf16.gmra.mrb[208].mxu0 %v12410_v11  ;;  %v12416_v33 = vadd.f32 %v9468_v51, %v1995_v58 }
 0x201   :  { %3621 = vmatmul.mubr.bf16.gmra.mrb[204].mxu1 %v12412_v40  ;;  %v2006_v35 = vadd.f32 %v9365_v22, %v12212_v34  ;;  %3539 = vmatprep.mubr.bf16.mxu0 %v12342_v9  ;;  %v12426_v34 = vpack.c.bf16 %v2786_v26, %v2785_v36  ;;  %v2788_v36 = vld [vmem:[#allocation2 + $0x310] sm:$0xff]  ;;  %v2743_v26 = vld [vmem:[#allocation2 + $0x447] sm:$0xff] }
 0x202   :  { %3628 = vmatprep.mubr.bf16.mxu1 %v12308_v4  ;;  %11015 = vmatpush3.bf16.msra.mxu1 %v11373_v1  ;;  %v12422_v19 = vadd.f32 %v9471_v13, %v1998_v10  ;;  %v2787_v13 = vld [vmem:[#allocation2 + $0x308] sm:$0xff] }
 0x203   :  { %v9366_v12 = vpop.f32.mrb[104].mxu0  ;;  %11016 = vmatprep.subr.bf16.mxu1 %v11374_v31 }
 0x204   :  { %v9472_v58 = vpop.f32.mrb[100].mxu1  ;;  %v9367_v47 = vpop.f32.mrb[105].mxu0 }
 0x205   :  { %v9473_v16 = vpop.f32.mrb[101].mxu1  ;;  %v9368_v9 = vadd.f32 %v9367_v47, %v9366_v12  ;;  %v9369_v42 = vpop.f32.mrb[106].mxu0  ;;  %v12438_v47 = vpack.c.bf16 %v2677_v20, %v2676_v21  ;;  %v2678_v21 = vld [vmem:[#allocation2 + $0x429] sm:$0xff]  ;;  %v2679_v20 = vld [vmem:[#allocation2 + $0x431] sm:$0xff] }
 0x206   :  { %v9474_v8 = vadd.f32 %v9473_v16, %v9472_v58  ;;  %v9475_v51 = vpop.f32.mrb[102].mxu1  ;;  %v9370_v4 = vpop.f32.mrb[107].mxu0  ;;  %11017 = vmatpush3.bf16.msra.mxu1 %v11374_v31 }
 0x207   :  { %v9476_v43 = vpop.f32.mrb[103].mxu1  ;;  %v2011_v10 = vadd.f32 %v9368_v9, %v12219_v7  ;;  %v9371_v15 = vadd.f32 %v9370_v4, %v9369_v42  ;;  %v2744_v7 = vld [vmem:[#allocation2 + $0x44f] sm:$0xff]  ;;  %v12440_v9 = vpack.c.bf16 %v2788_v36, %v2787_v13 }
 0x208   :  { %v9477_v2 = vadd.f32 %v9476_v43, %v9475_v51  ;;  %3540 = vmatmul.mubr.bf16.gmra.mrb[212].mxu0 %v12424_v39  ;;  %v12430_v22 = vadd.f32 %v9474_v8, %v2003_v29  ;;  %v2789_v36 = vld [vmem:[#allocation2 + $0x328] sm:$0xff] }
 0x209   :  { %3629 = vmatmul.mubr.bf16.gmra.mrb[208].mxu1 %v12426_v34  ;;  %v2014_v1 = vadd.f32 %v9371_v15, %v12223_v60  ;;  %3547 = vmatprep.mubr.bf16.mxu0 %v12358_v23  ;;  %v2760_v23 = vpack.c.bf16 %v2744_v7, %v2743_v26  ;;  %v2790_v26 = vld [vmem:[#allocation2 + $0x330] sm:$0xff] }
 0x20a   :  { %3636 = vmatprep.mubr.bf16.mxu1 %v12324_v63  ;;  %v12436_v12 = vadd.f32 %v9477_v2, %v2006_v35 }
 0x20b   :  { %v9372_v31 = vpop.f32.mrb[108].mxu0 }
 0x20c   :  { %v9478_v58 = vpop.f32.mrb[104].mxu1  ;;  %v9373_v29 = vpop.f32.mrb[109].mxu0 }
 0x20d   :  { %v9479_v16 = vpop.f32.mrb[105].mxu1  ;;  %v9374_v60 = vadd.f32 %v9373_v29, %v9372_v31  ;;  %v9375_v42 = vpop.f32.mrb[110].mxu0  ;;  %v12451_v29 = vpack.c.bf16 %v2679_v20, %v2678_v21  ;;  %v2907_v21 = vld [vmem:[#allocation2 + $0x28f] sm:$0xff] }
 0x20e   :  { %v9480_v8 = vadd.f32 %v9479_v16, %v9478_v58  ;;  %v9481_v51 = vpop.f32.mrb[106].mxu1  ;;  %v9376_v4 = vpop.f32.mrb[111].mxu0  ;;  %v12453_v16 = vpack.c.bf16 %v2790_v26, %v2789_v36  ;;  %v2791_v20 = vld [vmem:[#allocation2 + $0x348] sm:$0xff]  ;;  %v2792_v36 = vld [vmem:[#allocation2 + $0x350] sm:$0xff] }
 0x20f   :  { %v9482_v63 = vpop.f32.mrb[107].mxu1  ;;  %v2019_v43 = vadd.f32 %v9374_v60, %v12230_v45  ;;  %v9377_v15 = vadd.f32 %v9376_v4, %v9375_v42 }
 0x210   :  { %v9483_v35 = vadd.f32 %v9482_v63, %v9481_v51  ;;  %3548 = vmatmul.mubr.bf16.gmra.mrb[216].mxu0 %v12438_v47  ;;  %v12444_v2 = vadd.f32 %v9480_v8, %v2011_v10 }
 0x211   :  { %3637 = vmatmul.mubr.bf16.gmra.mrb[212].mxu1 %v12440_v9  ;;  %v2022_v13 = vadd.f32 %v9377_v15, %v12234_v48  ;;  %3555 = vmatprep.mubr.bf16.mxu0 %v2760_v23 }
 0x212   :  { %3644 = vmatprep.mubr.bf16.mxu1 %v12340_v0  ;;  %v12449_v7 = vadd.f32 %v9483_v35, %v2014_v1  ;;  %v2906_v35 = vld [vmem:[#allocation2 + $0x287] sm:$0xff] }
 0x213   :  { %v9378_v45 = vpop.f32.mrb[112].mxu0 }
 0x214   :  { %v9484_v31 = vpop.f32.mrb[108].mxu1  ;;  %v9379_v58 = vpop.f32.mrb[113].mxu0 }
 0x215   :  { %v9485_v10 = vpop.f32.mrb[109].mxu1  ;;  %v9380_v60 = vadd.f32 %v9379_v58, %v9378_v45  ;;  %v9381_v42 = vpop.f32.mrb[114].mxu0  ;;  %v2938_v58 = vpack.c.bf16 %v2907_v21, %v2906_v35  ;;  %v2908_v35 = vld [vmem:[#allocation2 + $0x2a7] sm:$0xff]  ;;  %v2909_v21 = vld [vmem:[#allocation2 + $0x2af] sm:$0xff] }
 0x216   :  { %v9486_v48 = vadd.f32 %v9485_v10, %v9484_v31  ;;  %v9487_v23 = vpop.f32.mrb[110].mxu1  ;;  %v9382_v8 = vpop.f32.mrb[115].mxu0  ;;  %v12465_v10 = vpack.c.bf16 %v2792_v36, %v2791_v20  ;;  %v2793_v20 = vld [vmem:[#allocation2 + $0x368] sm:$0xff]  ;;  %v2794_v36 = vld [vmem:[#allocation2 + $0x370] sm:$0xff] }
 0x217   :  { %v9488_v51 = vpop.f32.mrb[111].mxu1  ;;  %v2027_v0 = vadd.f32 %v9380_v60, %v12241_v37  ;;  %v9383_v4 = vadd.f32 %v9382_v8, %v9381_v42 }
 0x218   :  { %v9489_v63 = vadd.f32 %v9488_v51, %v9487_v23  ;;  %3556 = vmatmul.mubr.bf16.gmra.mrb[220].mxu0 %v12451_v29  ;;  %v12457_v1 = vadd.f32 %v9486_v48, %v2019_v43 }
 0x219   :  { %3645 = vmatmul.mubr.bf16.gmra.mrb[216].mxu1 %v12453_v16  ;;  %v2030_v15 = vadd.f32 %v9383_v4, %v12244_v38  ;;  %3757 = vmatprep.mubr.bf16.mxu0 %v12384_v18  ;;  %v16131_v4 = vld [vmem:[#allocation20_spill] sm:$0xff] }
 0x21a   :  { %3652 = vmatprep.mubr.bf16.mxu1 %v12356_v32  ;;  %v12463_v26 = vadd.f32 %v9489_v63, %v2022_v13 }
 0x21b   :  { %v9384_v37 = vpop.f32.mrb[116].mxu0 }
 0x21c   :  { %v9490_v45 = vpop.f32.mrb[112].mxu1  ;;  %v9385_v31 = vpop.f32.mrb[117].mxu0 }
 0x21d   :  { %v9491_v43 = vpop.f32.mrb[113].mxu1  ;;  %v9386_v60 = vadd.f32 %v9385_v31, %v9384_v37  ;;  %v9387_v42 = vpop.f32.mrb[118].mxu0 }
 0x21e   :  { %v9492_v38 = vadd.f32 %v9491_v43, %v9490_v45  ;;  %v9493_v48 = vpop.f32.mrb[114].mxu1  ;;  %v9388_v18 = vpop.f32.mrb[119].mxu0  ;;  %v12476_v43 = vpack.c.bf16 %v2794_v36, %v2793_v20  ;;  %v2795_v20 = vld [vmem:[#allocation2 + $0x388] sm:$0xff]  ;;  %v2796_v36 = vld [vmem:[#allocation2 + $0x390] sm:$0xff] }
 0x21f   :  { %v9494_v23 = vpop.f32.mrb[115].mxu1  ;;  %v2035_v8 = vadd.f32 %v9386_v60, %v12254_v53  ;;  %v9389_v32 = vadd.f32 %v9388_v18, %v9387_v42 }
 0x220   :  { %v9495_v51 = vadd.f32 %v9494_v23, %v9493_v48  ;;  %3758 = vmatmul.mubr.bf16.vlgmr.msra.gmra.mrb[224].mxu0 %v2938_v58  ;;  %v12468_v13 = vadd.f32 %v9492_v38, %v2027_v0  ;;  %v2939_v58 = vpack.c.bf16 %v2909_v21, %v2908_v35  ;;  %v2910_v35 = vld [vmem:[#allocation2 + $0x2c7] sm:$0xff]  ;;  %v2911_v21 = vld [vmem:[#allocation2 + $0x2cf] sm:$0xff] }
 0x221   :  { %3653 = vmatmul.mubr.bf16.gmra.mrb[220].mxu1 %v12465_v10  ;;  %v2038_v63 = vadd.f32 %v9389_v32, %v16131_v4  ;;  %3765 = vmatprep.mubr.bf16.mxu0 %v12398_v30 }
 0x222   :  { %3660 = vmatprep.mubr.bf16.mxu1 %v12370_v49  ;;  %v12474_v37 = vadd.f32 %v9495_v51, %v2030_v15  ;;  %v16132_v51 = vld [vmem:[#allocation21_spill] sm:$0xff] }
 0x223   :  { %v9390_v53 = vpop.f32.mrb[120].mxu0 }
 0x224   :  { %v9496_v45 = vpop.f32.mrb[116].mxu1  ;;  %v9391_v31 = vpop.f32.mrb[121].mxu0 }
 0x225   :  { %v9497_v0 = vpop.f32.mrb[117].mxu1  ;;  %v9392_v60 = vadd.f32 %v9391_v31, %v9390_v53  ;;  %v9393_v42 = vpop.f32.mrb[122].mxu0 }
 0x226   :  { %v9498_v38 = vadd.f32 %v9497_v0, %v9496_v45  ;;  %v9499_v48 = vpop.f32.mrb[118].mxu1  ;;  %v9394_v30 = vpop.f32.mrb[123].mxu0  ;;  %v12487_v0 = vpack.c.bf16 %v2796_v36, %v2795_v20 }
 0x227   :  { %v9500_v18 = vpop.f32.mrb[119].mxu1  ;;  %v2043_v23 = vadd.f32 %v9392_v60, %v12268_v56  ;;  %v9395_v49 = vadd.f32 %v9394_v30, %v9393_v42 }
 0x228   :  { %v9501_v32 = vadd.f32 %v9500_v18, %v9499_v48  ;;  %3766 = vmatmul.mubr.bf16.gmra.mrb[228].mxu0 %v2939_v58  ;;  %v12479_v15 = vadd.f32 %v9498_v38, %v2035_v8  ;;  %v2940_v58 = vpack.c.bf16 %v2911_v21, %v2910_v35  ;;  %v2913_v35 = vld [vmem:[#allocation2 + $0x2ef] sm:$0xff] }
 0x229   :  { %3661 = vmatmul.mubr.bf16.gmra.mrb[224].mxu1 %v12476_v43  ;;  %v2046_v4 = vadd.f32 %v9395_v49, %v16132_v51  ;;  %3773 = vmatprep.mubr.bf16.mxu0 %v12412_v40  ;;  %v2912_v51 = vld [vmem:[#allocation2 + $0x2e7] sm:$0xff] }
 0x22a   :  { %3668 = vmatprep.mubr.bf16.mxu1 %v12382_v55  ;;  %v12485_v53 = vadd.f32 %v9501_v32, %v2038_v63 }
 0x22b   :  { %v9396_v56 = vpop.f32.mrb[124].mxu0 }
 0x22c   :  { %v9502_v45 = vpop.f32.mrb[120].mxu1  ;;  %v9397_v31 = vpop.f32.mrb[125].mxu0 }
 0x22d   :  { %v9503_v8 = vpop.f32.mrb[121].mxu1  ;;  %v9398_v60 = vadd.f32 %v9397_v31, %v9396_v56  ;;  %v9399_v42 = vpop.f32.mrb[126].mxu0 }
 0x22e   :  { %v9504_v38 = vadd.f32 %v9503_v8, %v9502_v45  ;;  %v9505_v48 = vpop.f32.mrb[122].mxu1  ;;  %v9400_v40 = vpop.f32.mrb[127].mxu0 }
 0x22f   :  { %v9506_v30 = vpop.f32.mrb[123].mxu1  ;;  %v2051_v18 = vadd.f32 %v9398_v60, %v12283_v24  ;;  %v9401_v55 = vadd.f32 %v9400_v40, %v9399_v42  ;;  %v2799_v40 = vld [vmem:[#allocation2 + $0x3c8] sm:$0xff] }
 0x230   :  { %v9507_v49 = vadd.f32 %v9506_v30, %v9505_v48  ;;  %3774 = vmatmul.mubr.bf16.gmra.mrb[232].mxu0 %v2940_v58  ;;  %v12490_v63 = vadd.f32 %v9504_v38, %v2043_v23  ;;  %v2941_v23 = vpack.c.bf16 %v2913_v35, %v2912_v51  ;;  %v16134_v38 = vld [vmem:[#allocation15_spill] sm:$0xff]  ;;  %v2915_v48 = vld [vmem:[#allocation2 + $0x30f] sm:$0xff] }
 0x231   :  { %3669 = vmatmul.mubr.bf16.gmra.mrb[228].mxu1 %v12487_v0  ;;  %v2054_v32 = vadd.f32 %v9401_v55, %v12289_v59  ;;  %3781 = vmatprep.mubr.bf16.mxu0 %v12426_v34 }
 0x232   :  { %3676 = vmatprep.mubr.bf16.mxu1 %v12396_v54  ;;  %v12496_v21 = vadd.f32 %v9507_v49, %v2046_v4 }
 0x233   :  { %v10972_v20 = vpop.f32.mrb[128].mxu0 }
 0x234   :  { %v9508_v36 = vpop.f32.mrb[124].mxu1  ;;  %v12499_v24 = vadd.f32 %v10972_v20, %v12314_v44  ;;  %v2252_v56 = vpop.f32.mrb[129].mxu0 }
 0x235   :  { %v9509_v45 = vpop.f32.mrb[125].mxu1  ;;  %v12502_v31 = vadd.f32 %v2252_v56, %v12298_v57  ;;  %v10973_v59 = vpop.f32.mrb[130].mxu0  ;;  %v2914_v57 = vld [vmem:[#allocation2 + $0x307] sm:$0xff] }
 0x236   :  { %v9510_v58 = vadd.f32 %v9509_v45, %v9508_v36  ;;  %v9511_v34 = vpop.f32.mrb[126].mxu1  ;;  %v12505_v8 = vadd.f32 %v10973_v59, %v12322_v5  ;;  %v2255_v54 = vpop.f32.mrb[131].mxu0  ;;  %v2800_v5 = vld [vmem:[#allocation2 + $0x3d0] sm:$0xff] }
 0x237   :  { %v9512_v4 = vpop.f32.mrb[127].mxu1  ;;  %v12508_v60 = vadd.f32 %v2255_v54, %v12306_v14  ;;  %v12520_v20 = vpack.c.bf16 %v2800_v5, %v2799_v40  ;;  %v2802_v54 = vld [vmem:[#allocation2 + $0x3f0] sm:$0xff] }
 0x238   :  { %v9513_v42 = vadd.f32 %v9512_v4, %v9511_v34  ;;  %3782 = vmatmul.mubr.bf16.gmra.mrb[236].mxu0 %v2941_v23  ;;  %v12510_v44 = vadd.f32 %v9510_v58, %v2051_v18  ;;  %v2942_v18 = vpack.c.bf16 %v2915_v48, %v2914_v57  ;;  %v2917_v58 = vld [vmem:[#allocation2 + $0x32f] sm:$0xff] }
 0x239   :  { %16133 = vst [vmem:[#allocation16_spill] sm:$0xff] %v12508_v60  ;;  %3677 = vmatmul.mubr.bf16.gmra.mrb[232].mxu1 %v16134_v38  ;;  %3789 = vmatprep.mubr.bf16.mxu0 %v12440_v9  ;;  %v2801_v34 = vld [vmem:[#allocation2 + $0x3e8] sm:$0xff] }
 0x23a   :  { %3684 = vmatprep.mubr.bf16.mxu1 %v12410_v11  ;;  %v12515_v30 = vadd.f32 %v9513_v42, %v2054_v32  ;;  %v12541_v48 = vpack.c.bf16 %v2802_v54, %v2801_v34 }
 0x23b   :  { %v10976_v55 = vpop.f32.mrb[132].mxu0 }
 0x23c   :  { %v9554_v49 = vpop.f32.mrb[128].mxu1  ;;  %v12518_v14 = vadd.f32 %v10976_v55, %v12346_v46  ;;  %v2268_v51 = vpop.f32.mrb[133].mxu0 }
 0x23d   :  { %v9555_v35 = vpop.f32.mrb[129].mxu1  ;;  %v12523_v9 = vadd.f32 %v2268_v51, %v12330_v25  ;;  %v10977_v36 = vpop.f32.mrb[134].mxu0  ;;  %v2916_v25 = vld [vmem:[#allocation2 + $0x327] sm:$0xff] }
 0x23e   :  { %v12525_v56 = vadd.f32 %v9555_v35, %v9554_v49  ;;  %v9557_v11 = vpop.f32.mrb[130].mxu1  ;;  %v12528_v32 = vadd.f32 %v10977_v36, %v12354_v28  ;;  %v2271_v23 = vpop.f32.mrb[135].mxu0  ;;  %v2943_v38 = vpack.c.bf16 %v2917_v58, %v2916_v25  ;;  %v2919_v35 = vld [vmem:[#allocation2 + $0x34f] sm:$0xff] }
 0x23f   :  { %v9558_v45 = vpop.f32.mrb[131].mxu1  ;;  %v12531_v46 = vadd.f32 %v2271_v23, %v12338_v27  ;;  %v2803_v36 = vld [vmem:[#allocation2 + $0x408] sm:$0xff] }
 0x240   :  { %v12533_v59 = vadd.f32 %v9558_v45, %v9557_v11  ;;  %3790 = vmatmul.mubr.bf16.gmra.mrb[240].mxu0 %v2942_v18  ;;  %v2804_v11 = vld [vmem:[#allocation2 + $0x410] sm:$0xff] }
 0x241   :  { %3685 = vmatmul.mubr.bf16.gmra.mrb[236].mxu1 %v12520_v20  ;;  %3797 = vmatprep.mubr.bf16.mxu0 %v12453_v16  ;;  %v12562_v34 = vpack.c.bf16 %v2804_v11, %v2803_v36 }
 0x242   :  { %3692 = vmatprep.mubr.bf16.mxu1 %v12424_v39 }
 0x243   :  { %v10980_v28 = vpop.f32.mrb[136].mxu0 }
 0x244   :  { %v9560_v4 = vpop.f32.mrb[132].mxu1  ;;  %v12539_v42 = vadd.f32 %v10980_v28, %v12374_v41  ;;  %v2284_v27 = vpop.f32.mrb[137].mxu0 }
 0x245   :  { %v9561_v57 = vpop.f32.mrb[133].mxu1  ;;  %v12544_v40 = vadd.f32 %v2284_v27, %v12362_v52  ;;  %v10981_v16 = vpop.f32.mrb[138].mxu0  ;;  %v2918_v52 = vld [vmem:[#allocation2 + $0x347] sm:$0xff] }
 0x246   :  { %v12546_v5 = vadd.f32 %v9561_v57, %v9560_v4  ;;  %v9563_v55 = vpop.f32.mrb[134].mxu1  ;;  %v12549_v39 = vadd.f32 %v10981_v16, %v12380_v17  ;;  %v2287_v49 = vpop.f32.mrb[139].mxu0  ;;  %v2944_v25 = vpack.c.bf16 %v2919_v35, %v2918_v52  ;;  %v2921_v16 = vld [vmem:[#allocation2 + $0x36f] sm:$0xff] }
 0x247   :  { %v9564_v51 = vpop.f32.mrb[135].mxu1  ;;  %v12552_v41 = vadd.f32 %v2287_v49, %v12368_v61  ;;  %v2806_v49 = vld [vmem:[#allocation2 + $0x430] sm:$0xff] }
 0x248   :  { %16135 = vst [vmem:[#allocation17_spill] sm:$0xff] %v12549_v39  ;;  %v12554_v18 = vadd.f32 %v9564_v51, %v9563_v55  ;;  %3798 = vmatmul.mubr.bf16.gmra.mrb[244].mxu0 %v2943_v38  ;;  %v2805_v55 = vld [vmem:[#allocation2 + $0x428] sm:$0xff]  ;;  %v2872_v52 = vld [vmem:[#allocation2 + $0x451] sm:$0xff] }
 0x249   :  { %3693 = vmatmul.mubr.bf16.gmra.mrb[240].mxu1 %v12541_v48  ;;  %3805 = vmatprep.mubr.bf16.mxu0 %v12465_v10  ;;  %v2871_v51 = vld [vmem:[#allocation2 + $0x449] sm:$0xff] }
 0x24a   :  { %3700 = vmatprep.mubr.bf16.mxu1 %v12438_v47 }
 0x24b   :  { %v10984_v17 = vpop.f32.mrb[140].mxu0 }
 0x24c   :  { %v9566_v23 = vpop.f32.mrb[136].mxu1  ;;  %v12560_v45 = vadd.f32 %v10984_v17, %v12402_v3  ;;  %v2300_v61 = vpop.f32.mrb[141].mxu0 }
 0x24d   :  { %v9567_v58 = vpop.f32.mrb[137].mxu1  ;;  %v12565_v54 = vadd.f32 %v2300_v61, %v12388_v6  ;;  %v10985_v10 = vpop.f32.mrb[142].mxu0  ;;  %v2920_v6 = vld [vmem:[#allocation2 + $0x367] sm:$0xff] }
 0x24e   :  { %16136 = vst [vmem:[#allocation18_spill] sm:$0xff] %v12560_v45  ;;  %v12567_v28 = vadd.f32 %v9567_v58, %v9566_v23  ;;  %v9569_v4 = vpop.f32.mrb[138].mxu1  ;;  %v12570_v47 = vadd.f32 %v10985_v10, %v12408_v62  ;;  %v2303_v27 = vpop.f32.mrb[143].mxu0  ;;  %v2945_v11 = vpack.c.bf16 %v2921_v16, %v2920_v6  ;;  %v12583_v23 = vpack.c.bf16 %v2806_v49, %v2805_v55  ;;  %v2923_v6 = vld [vmem:[#allocation2 + $0x38f] sm:$0xff] }
 0x24f   :  { %16137 = vst [vmem:[#allocation19_spill] sm:$0xff] %v12565_v54  ;;  %v9570_v38 = vpop.f32.mrb[139].mxu1  ;;  %v12573_v3 = vadd.f32 %v2303_v27, %v12394_v50  ;;  %v2989_v16 = vld [vmem:[#allocation2 + $0x3b0] sm:$0xff] }
 0x250   :  { %16138 = vst [vmem:[#allocation20_spill] sm:$0xff] %v12570_v47  ;;  %v12575_v57 = vadd.f32 %v9570_v38, %v9569_v4  ;;  %3806 = vmatmul.mubr.bf16.gmra.mrb[248].mxu0 %v2944_v25  ;;  %v12593_v4 = vpack.c.bf16 %v2872_v52, %v2871_v51  ;;  %v3034_v49 = vld [vmem:[#allocation2 + $0x289] sm:$0xff] }
 0x251   :  { %16139 = vst [vmem:[#allocation21_spill] sm:$0xff] %v12573_v3  ;;  %3701 = vmatmul.mubr.bf16.gmra.mrb[244].mxu1 %v12562_v34  ;;  %3813 = vmatprep.mubr.bf16.mxu0 %v12476_v43 }
 0x252   :  { %3708 = vmatprep.mubr.bf16.mxu1 %v12451_v29 }
 0x253   :  { %v10988_v62 = vpop.f32.mrb[144].mxu0 }
 0x254   :  { %v9572_v35 = vpop.f32.mrb[140].mxu1  ;;  %v12581_v50 = vadd.f32 %v10988_v62, %v12430_v22  ;;  %v2316_v36 = vpop.f32.mrb[145].mxu0  ;;  %v3035_v62 = vld [vmem:[#allocation2 + $0x291] sm:$0xff] }
 0x255   :  { %v9573_v17 = vpop.f32.mrb[141].mxu1  ;;  %v12586_v43 = vadd.f32 %v2316_v36, %v12416_v33  ;;  %v10989_v61 = vpop.f32.mrb[146].mxu0  ;;  %v2922_v33 = vld [vmem:[#allocation2 + $0x387] sm:$0xff] }
 0x256   :  { %16140 = vst [vmem:[#allocation15_spill] sm:$0xff] %v12581_v50  ;;  %v12588_v25 = vadd.f32 %v9573_v17, %v9572_v35  ;;  %v9575_v29 = vpop.f32.mrb[142].mxu1  ;;  %v12591_v58 = vadd.f32 %v10989_v61, %v12436_v12  ;;  %v2319_v10 = vpop.f32.mrb[147].mxu0  ;;  %v2988_v12 = vld [vmem:[#allocation2 + $0x3a8] sm:$0xff]  ;;  %v2946_v35 = vpack.c.bf16 %v2923_v6, %v2922_v33  ;;  %v11376_v17 = vld [vmem:[#allocation2 + $0x450] sm:$0xff] }
 0x257   :  { %16141 = vst [vmem:[#allocation22_spill] sm:$0xff] %v12586_v43  ;;  %v9576_v22 = vpop.f32.mrb[143].mxu1  ;;  %v12596_v27 = vadd.f32 %v2319_v10, %v12422_v19  ;;  %v3011_v10 = vpack.c.bf16 %v2989_v16, %v2988_v12  ;;  %v3036_v12 = vld [vmem:[#allocation2 + $0x2a9] sm:$0xff]  ;;  %v3037_v16 = vld [vmem:[#allocation2 + $0x2b1] sm:$0xff] }
 0x258   :  { %16142 = vst [vmem:[#allocation23_spill] sm:$0xff] %v12591_v58  ;;  %v12598_v38 = vadd.f32 %v9576_v22, %v9575_v29  ;;  %3814 = vmatmul.mubr.bf16.gmra.mrb[252].mxu0 %v2945_v11  ;;  %v11375_v11 = vld [vmem:[#allocation2 + $0x448] sm:$0xff] }
 0x259   :  { %16143 = vst [vmem:[#allocation24_spill] sm:$0xff] %v12596_v27  ;;  %3709 = vmatmul.mubr.bf16.gmra.mrb[248].mxu1 %v12583_v23  ;;  %3821 = vmatprep.mubr.bf16.mxu0 %v12487_v0  ;;  %v2824_v61 = vpack.c.bf16 %v11376_v17, %v11375_v11 }
 0x25a   :  { %3716 = vmatprep.mubr.bf16.mxu1 %v12593_v4 }
 0x25b   :  { %v10992_v55 = vpop.f32.mrb[148].mxu0 }
 0x25c   :  { %v9578_v51 = vpop.f32.mrb[144].mxu1  ;;  %v12604_v19 = vadd.f32 %v10992_v55, %v12457_v1  ;;  %v2332_v52 = vpop.f32.mrb[149].mxu0  ;;  %v3066_v1 = vpack.c.bf16 %v3035_v62, %v3034_v49 }
 0x25d   :  { %v9579_v36 = vpop.f32.mrb[145].mxu1  ;;  %v12607_v0 = vadd.f32 %v2332_v52, %v12444_v2  ;;  %v10993_v29 = vpop.f32.mrb[150].mxu0  ;;  %v2924_v2 = vld [vmem:[#allocation2 + $0x3a7] sm:$0xff]  ;;  %v2925_v52 = vld [vmem:[#allocation2 + $0x3af] sm:$0xff] }
 0x25e   :  { %16144 = vst [vmem:[#allocation25_spill] sm:$0xff] %v12604_v19  ;;  %v12609_v22 = vadd.f32 %v9579_v36, %v9578_v51  ;;  %v9581_v58 = vpop.f32.mrb[146].mxu1  ;;  %v12612_v50 = vadd.f32 %v10993_v29, %v12463_v26  ;;  %v2335_v27 = vpop.f32.mrb[151].mxu0  ;;  %v3038_v36 = vld [vmem:[#allocation2 + $0x2c9] sm:$0xff]  ;;  %v3039_v26 = vld [vmem:[#allocation2 + $0x2d1] sm:$0xff] }
 0x25f   :  { %16145 = vst [vmem:[#allocation26_spill] sm:$0xff] %v12607_v0  ;;  %v9582_v55 = vpop.f32.mrb[147].mxu1  ;;  %v12615_v33 = vadd.f32 %v2335_v27, %v12449_v7  ;;  %v2947_v7 = vpack.c.bf16 %v2925_v52, %v2924_v2  ;;  %v2927_v2 = vld [vmem:[#allocation2 + $0x3cf] sm:$0xff] }
 0x260   :  { %16146 = vst [vmem:[#allocation27_spill] sm:$0xff] %v12612_v50  ;;  %v12617_v6 = vadd.f32 %v9582_v55, %v9581_v58  ;;  %3822 = vmatmul.mubr.bf16.gmra.mrb[0].mxu0 %v2946_v35  ;;  %v3067_v58 = vpack.c.bf16 %v3037_v16, %v3036_v12  ;;  %v3068_v55 = vpack.c.bf16 %v3039_v26, %v3038_v36  ;;  %v3040_v52 = vld [vmem:[#allocation2 + $0x2e9] sm:$0xff]  ;;  %v3041_v12 = vld [vmem:[#allocation2 + $0x2f1] sm:$0xff] }
 0x261   :  { %16147 = vst [vmem:[#allocation28_spill] sm:$0xff] %v12615_v33  ;;  %3717 = vmatmul.mubr.bf16.gmra.mrb[252].mxu1 %v2824_v61  ;;  %3829 = vmatprep.mubr.bf16.mxu0 %v3011_v10 }
 0x262   :  { %11018 = vmatprep.mubr.bf16.mxu1 %v3066_v1 }
 0x263   :  { %v10996_v51 = vpop.f32.mrb[152].mxu0 }
 0x264   :  { %v9584_v11 = vpop.f32.mrb[148].mxu1  ;;  %v12620_v49 = vadd.f32 %v10996_v51, %v12479_v15  ;;  %v2348_v62 = vpop.f32.mrb[153].mxu0 }
 0x265   :  { %v9585_v27 = vpop.f32.mrb[149].mxu1  ;;  %v12623_v35 = vadd.f32 %v2348_v62, %v12468_v13  ;;  %v10997_v17 = vpop.f32.mrb[154].mxu0  ;;  %v2926_v13 = vld [vmem:[#allocation2 + $0x3c7] sm:$0xff] }
 0x266   :  { %16148 = vst [vmem:[#allocation29_spill] sm:$0xff] %v12620_v49  ;;  %v12625_v61 = vadd.f32 %v9585_v27, %v9584_v11  ;;  %v9587_v29 = vpop.f32.mrb[150].mxu1  ;;  %v12628_v10 = vadd.f32 %v10997_v17, %v12485_v53  ;;  %v2351_v1 = vpop.f32.mrb[155].mxu0  ;;  %v3042_v53 = vld [vmem:[#allocation2 + $0x309] sm:$0xff]  ;;  %v3043_v11 = vld [vmem:[#allocation2 + $0x311] sm:$0xff]  ;;  %v2948_v26 = vpack.c.bf16 %v2927_v2, %v2926_v13  ;;  %v3069_v27 = vpack.c.bf16 %v3041_v12, %v3040_v52 }
 0x267   :  { %16149 = vst [vmem:[#allocation30_spill] sm:$0xff] %v12623_v35  ;;  %v9588_v50 = vpop.f32.mrb[151].mxu1  ;;  %v12631_v15 = vadd.f32 %v2351_v1, %v12474_v37  ;;  %v2929_v13 = vld [vmem:[#allocation2 + $0x3ef] sm:$0xff] }
 0x268   :  { %16150 = vst [vmem:[#allocation31_spill] sm:$0xff] %v12628_v10  ;;  %v12633_v51 = vadd.f32 %v9588_v50, %v9587_v29  ;;  %3830 = vmatmul.mubr.bf16.gmra.mrb[4].mxu0 %v2947_v7  ;;  %v3044_v2 = vld [vmem:[#allocation2 + $0x329] sm:$0xff]  ;;  %v3045_v52 = vld [vmem:[#allocation2 + $0x331] sm:$0xff] }
 0x269   :  { %16151 = vst [vmem:[#allocation32_spill] sm:$0xff] %v12631_v15  ;;  %11019 = vmatmul.mubr.bf16.vlgmr.msra.gmra.mrb[0].mxu1 %v3067_v58  ;;  %3837 = vmatprep.mubr.bf16.mxu0 %v12520_v20 }
 0x26a   :  { %11022 = vmatprep.mubr.bf16.mxu1 %v3068_v55  ;;  %v3070_v55 = vpack.c.bf16 %v3043_v11, %v3042_v53 }
 0x26b   :  { %v11000_v16 = vpop.f32.mrb[156].mxu0 }
 0x26c   :  { %v9590_v62 = vpop.f32.mrb[152].mxu1  ;;  %v12637_v36 = vadd.f32 %v11000_v16, %v12510_v44  ;;  %v2364_v37 = vpop.f32.mrb[157].mxu0 }
 0x26d   :  { %v9591_v50 = vpop.f32.mrb[153].mxu1  ;;  %v12640_v7 = vadd.f32 %v2364_v37, %v12490_v63  ;;  %v11001_v20 = vpop.f32.mrb[158].mxu0  ;;  %v2928_v63 = vld [vmem:[#allocation2 + $0x3e7] sm:$0xff] }
 0x26e   :  { %16152 = vst [vmem:[#allocation33_spill] sm:$0xff] %v12637_v36  ;;  %v12642_v58 = vadd.f32 %v9591_v50, %v9590_v62  ;;  %v9593_v17 = vpop.f32.mrb[154].mxu1  ;;  %v12645_v29 = vadd.f32 %v11001_v20, %v12515_v30  ;;  %v2367_v1 = vpop.f32.mrb[159].mxu0  ;;  %v3046_v30 = vld [vmem:[#allocation2 + $0x349] sm:$0xff]  ;;  %v3047_v62 = vld [vmem:[#allocation2 + $0x351] sm:$0xff]  ;;  %v2949_v11 = vpack.c.bf16 %v2929_v13, %v2928_v63 }
 0x26f   :  { %16153 = vst [vmem:[#allocation34_spill] sm:$0xff] %v12640_v7  ;;  %v9594_v10 = vpop.f32.mrb[155].mxu1  ;;  %v12648_v44 = vadd.f32 %v2367_v1, %v12496_v21  ;;  %v3071_v21 = vpack.c.bf16 %v3045_v52, %v3044_v2  ;;  %v2930_v13 = vld [vmem:[#allocation2 + $0x407] sm:$0xff]  ;;  %v2931_v2 = vld [vmem:[#allocation2 + $0x40f] sm:$0xff] }
 0x270   :  { %16154 = vst [vmem:[#allocation35_spill] sm:$0xff] %v12645_v29  ;;  %v12650_v16 = vadd.f32 %v9594_v10, %v9593_v17  ;;  %3838 = vmatmul.mubr.bf16.gmra.mrb[8].mxu0 %v2948_v26  ;;  %v3048_v52 = vld [vmem:[#allocation2 + $0x369] sm:$0xff] }
 0x271   :  { %16155 = vst [vmem:[#allocation36_spill] sm:$0xff] %v12648_v44  ;;  %11023 = vmatmul.mubr.bf16.gmra.mrb[4].mxu1 %v3069_v27  ;;  %3845 = vmatprep.mubr.bf16.mxu0 %v12541_v48  ;;  %v3072_v48 = vpack.c.bf16 %v3047_v62, %v3046_v30  ;;  %v3050_v62 = vld [vmem:[#allocation2 + $0x389] sm:$0xff] }
 0x272   :  { %11026 = vmatprep.mubr.bf16.mxu1 %v3070_v55 }
 0x273   :  { %v9666_v12 = vpop.f32.mrb[160].mxu0 }
 0x274   :  { %v9596_v37 = vpop.f32.mrb[156].mxu1  ;;  %v9667_v53 = vpop.f32.mrb[161].mxu0 }
 0x275   :  { %v9597_v50 = vpop.f32.mrb[157].mxu1  ;;  %v9668_v20 = vadd.f32 %v9667_v53, %v9666_v12  ;;  %v9669_v10 = vpop.f32.mrb[162].mxu0  ;;  %v3049_v12 = vld [vmem:[#allocation2 + $0x371] sm:$0xff] }
 0x276   :  { %v12653_v17 = vadd.f32 %v9597_v50, %v9596_v37  ;;  %v9599_v26 = vpop.f32.mrb[158].mxu1  ;;  %v9670_v27 = vpop.f32.mrb[163].mxu0  ;;  %v3051_v37 = vld [vmem:[#allocation2 + $0x391] sm:$0xff]  ;;  %v2950_v50 = vpack.c.bf16 %v2931_v2, %v2930_v13  ;;  %v3052_v2 = vld [vmem:[#allocation2 + $0x3a9] sm:$0xff] }
 0x277   :  { %v9600_v1 = vpop.f32.mrb[159].mxu1  ;;  %v12656_v55 = vadd.f32 %v9668_v20, %v12525_v56  ;;  %v9671_v29 = vadd.f32 %v9670_v27, %v9669_v10  ;;  %v3073_v10 = vpack.c.bf16 %v3049_v12, %v3048_v52  ;;  %v2932_v52 = vld [vmem:[#allocation2 + $0x427] sm:$0xff]  ;;  %v2933_v12 = vld [vmem:[#allocation2 + $0x42f] sm:$0xff] }
 0x278   :  { %v12658_v36 = vadd.f32 %v9600_v1, %v9599_v26  ;;  %3846 = vmatmul.mubr.bf16.gmra.mrb[12].mxu0 %v2949_v11 }
 0x279   :  { %11027 = vmatmul.mubr.bf16.gmra.mrb[8].mxu1 %v3071_v21  ;;  %v12661_v63 = vadd.f32 %v9671_v29, %v12533_v59  ;;  %3853 = vmatprep.mubr.bf16.mxu0 %v12562_v34  ;;  %v3074_v34 = vpack.c.bf16 %v3051_v37, %v3050_v62  ;;  %v2998_v62 = vld [vmem:[#allocation2 + $0x448] sm:$0xff]  ;;  %v2999_v37 = vld [vmem:[#allocation2 + $0x450] sm:$0xff] }
 0x27a   :  { %11030 = vmatprep.mubr.bf16.mxu1 %v3072_v48 }
 0x27b   :  { %v9672_v30 = vpop.f32.mrb[164].mxu0 }
 0x27c   :  { %v9602_v56 = vpop.f32.mrb[160].mxu1  ;;  %v9673_v53 = vpop.f32.mrb[165].mxu0 }
 0x27d   :  { %v9603_v20 = vpop.f32.mrb[161].mxu1  ;;  %v9674_v11 = vadd.f32 %v9673_v53, %v9672_v30  ;;  %v9675_v21 = vpop.f32.mrb[166].mxu0  ;;  %v3053_v30 = vld [vmem:[#allocation2 + $0x3b1] sm:$0xff] }
 0x27e   :  { %v12664_v26 = vadd.f32 %v9603_v20, %v9602_v56  ;;  %v9605_v59 = vpop.f32.mrb[162].mxu1  ;;  %v9676_v29 = vpop.f32.mrb[167].mxu0  ;;  %v3055_v53 = vld [vmem:[#allocation2 + $0x3d1] sm:$0xff] }
 0x27f   :  { %v9606_v27 = vpop.f32.mrb[163].mxu1  ;;  %v12667_v48 = vadd.f32 %v9674_v11, %v12546_v5  ;;  %v9677_v1 = vadd.f32 %v9676_v29, %v9675_v21  ;;  %v3054_v5 = vld [vmem:[#allocation2 + $0x3c9] sm:$0xff]  ;;  %v2951_v21 = vpack.c.bf16 %v2933_v12, %v2932_v52  ;;  %v3016_v29 = vpack.c.bf16 %v2999_v37, %v2998_v62  ;;  %v3057_v62 = vld [vmem:[#allocation2 + $0x3f1] sm:$0xff] }
 0x280   :  { %v12669_v44 = vadd.f32 %v9606_v27, %v9605_v59  ;;  %3854 = vmatmul.mubr.bf16.gmra.mrb[16].mxu0 %v2950_v50  ;;  %v3076_v7 = vpack.c.bf16 %v3055_v53, %v3054_v5  ;;  %v2934_v12 = vld [vmem:[#allocation2 + $0x447] sm:$0xff] }
 0x281   :  { %11031 = vmatmul.mubr.bf16.gmra.mrb[12].mxu1 %v3073_v10  ;;  %v12672_v13 = vadd.f32 %v9677_v1, %v12554_v18  ;;  %3861 = vmatprep.mubr.bf16.mxu0 %v12583_v23  ;;  %v3075_v10 = vpack.c.bf16 %v3053_v30, %v3052_v2  ;;  %v3056_v2 = vld [vmem:[#allocation2 + $0x3e9] sm:$0xff] }
 0x282   :  { %11034 = vmatprep.mubr.bf16.mxu1 %v3074_v34  ;;  %v2935_v30 = vld [vmem:[#allocation2 + $0x44f] sm:$0xff] }
 0x283   :  { %v9678_v56 = vpop.f32.mrb[168].mxu0  ;;  %v3000_v37 = vld [vmem:[#allocation2 + $0x468] sm:$0xff] }
 0x284   :  { %v9608_v20 = vpop.f32.mrb[164].mxu1  ;;  %v9679_v11 = vpop.f32.mrb[169].mxu0  ;;  %v3058_v53 = vld [vmem:[#allocation2 + $0x409] sm:$0xff] }
 0x285   :  { %v9609_v50 = vpop.f32.mrb[165].mxu1  ;;  %v9680_v59 = vadd.f32 %v9679_v11, %v9678_v56  ;;  %v9681_v18 = vpop.f32.mrb[170].mxu0  ;;  %v3001_v56 = vld [vmem:[#allocation2 + $0x470] sm:$0xff] }
 0x286   :  { %v12675_v27 = vadd.f32 %v9609_v50, %v9608_v20  ;;  %v9611_v23 = vpop.f32.mrb[166].mxu1  ;;  %v9682_v1 = vpop.f32.mrb[171].mxu0  ;;  %v2952_v50 = vpack.c.bf16 %v2935_v30, %v2934_v12  ;;  %v3061_v30 = vld [vmem:[#allocation2 + $0x431] sm:$0xff] }
 0x287   :  { %v9612_v34 = vpop.f32.mrb[167].mxu1  ;;  %v12678_v49 = vadd.f32 %v9680_v59, %v12567_v28  ;;  %v9683_v15 = vadd.f32 %v9682_v1, %v9681_v18  ;;  %v3059_v28 = vld [vmem:[#allocation2 + $0x411] sm:$0xff] }
 0x288   :  { %v12680_v35 = vadd.f32 %v9612_v34, %v9611_v23  ;;  %3862 = vmatmul.mubr.bf16.gmra.mrb[20].mxu0 %v2951_v21  ;;  %v3077_v21 = vpack.c.bf16 %v3057_v62, %v3056_v2  ;;  %v3078_v1 = vpack.c.bf16 %v3059_v28, %v3058_v53  ;;  %v3060_v2 = vld [vmem:[#allocation2 + $0x429] sm:$0xff] }
 0x289   :  { %11035 = vmatmul.mubr.bf16.gmra.mrb[16].mxu1 %v3075_v10  ;;  %v12683_v52 = vadd.f32 %v9683_v15, %v12575_v57  ;;  %3869 = vmatprep.mubr.bf16.mxu0 %v3016_v29  ;;  %v3017_v57 = vpack.c.bf16 %v3001_v56, %v3000_v37 }
 0x28a   :  { %11038 = vmatprep.mubr.bf16.mxu1 %v3076_v7 }
 0x28b   :  { %v9684_v5 = vpop.f32.mrb[172].mxu0 }
 0x28c   :  { %v9614_v20 = vpop.f32.mrb[168].mxu1  ;;  %v9685_v11 = vpop.f32.mrb[173].mxu0 }
 0x28d   :  { %v9615_v59 = vpop.f32.mrb[169].mxu1  ;;  %v9686_v10 = vadd.f32 %v9685_v11, %v9684_v5  ;;  %v9687_v18 = vpop.f32.mrb[174].mxu0  ;;  %v11377_v5 = vld [vmem:[#allocation2 + $0x7] sm:$0xff] }
 0x28e   :  { %v12685_v15 = vadd.f32 %v9615_v59, %v9614_v20  ;;  %v9617_v29 = vpop.f32.mrb[170].mxu1  ;;  %v9688_v23 = vpop.f32.mrb[175].mxu0  ;;  %v2953_v53 = vpack.c.bf16 %v11377_v5, %v11377_v5 }
 0x28f   :  { %v9618_v7 = vpop.f32.mrb[171].mxu1  ;;  %v12688_v34 = vadd.f32 %v9686_v10, %v12588_v25  ;;  %v9689_v19 = vadd.f32 %v9688_v23, %v9687_v18  ;;  %v3079_v25 = vpack.c.bf16 %v3061_v30, %v3060_v2  ;;  %v3065_v23 = vld [vmem:[#allocation2 + $0x471] sm:$0xff] }
 0x290   :  { %v12690_v33 = vadd.f32 %v9618_v7, %v9617_v29  ;;  %3870 = vmatmul.mubr.bf16.gmra.mrb[24].mxu0 %v2952_v50  ;;  %v3064_v29 = vld [vmem:[#allocation2 + $0x469] sm:$0xff] }
 0x291   :  { %11039 = vmatmul.mubr.bf16.gmra.mrb[20].mxu1 %v3077_v21  ;;  %v12693_v12 = vadd.f32 %v9689_v19, %v12598_v38  ;;  %3877 = vmatprep.mubr.bf16.mxu0 %v3017_v57 }
 0x292   :  { %11042 = vmatprep.mubr.bf16.mxu1 %v3078_v1 }
 0x293   :  { %v9690_v62 = vpop.f32.mrb[176].mxu0 }
 0x294   :  { %v9620_v37 = vpop.f32.mrb[172].mxu1  ;;  %v9691_v56 = vpop.f32.mrb[177].mxu0 }
 0x295   :  { %v9621_v28 = vpop.f32.mrb[173].mxu1  ;;  %v9692_v20 = vadd.f32 %v9691_v56, %v9690_v62  ;;  %v9693_v11 = vpop.f32.mrb[178].mxu0  ;;  %v3081_v62 = vpack.c.bf16 %v3065_v23, %v3064_v29 }
 0x296   :  { %v12695_v59 = vadd.f32 %v9621_v28, %v9620_v37  ;;  %v9623_v50 = vpop.f32.mrb[174].mxu1  ;;  %v9694_v21 = vpop.f32.mrb[179].mxu0 }
 0x297   :  { %v9624_v10 = vpop.f32.mrb[175].mxu1  ;;  %v12698_v38 = vadd.f32 %v9692_v20, %v12609_v22  ;;  %v9695_v19 = vadd.f32 %v9694_v21, %v9693_v11 }
 0x298   :  { %v12700_v18 = vadd.f32 %v9624_v10, %v9623_v50  ;;  %3878 = vmatmul.mubr.bf16.gmra.mrb[28].mxu0 %v2953_v53 }
 0x299   :  { %11043 = vmatmul.mubr.bf16.gmra.mrb[24].mxu1 %v3079_v25  ;;  %v12703_v57 = vadd.f32 %v9695_v19, %v12617_v6 }
 0x29a   :  { %11046 = vmatprep.mubr.bf16.mxu1 %v12593_v4 }
 0x29b   :  { %v9696_v1 = vpop.f32.mrb[180].mxu0 }
 0x29c   :  { %v9626_v7 = vpop.f32.mrb[176].mxu1  ;;  %v9697_v2 = vpop.f32.mrb[181].mxu0 }
 0x29d   :  { %v9627_v30 = vpop.f32.mrb[177].mxu1  ;;  %v9698_v37 = vadd.f32 %v9697_v2, %v9696_v1  ;;  %v9699_v22 = vpop.f32.mrb[182].mxu0 }
 0x29e   :  { %v12706_v56 = vadd.f32 %v9627_v30, %v9626_v7  ;;  %v9629_v5 = vpop.f32.mrb[178].mxu1  ;;  %v9700_v28 = vpop.f32.mrb[183].mxu0 }
 0x29f   :  { %v9630_v53 = vpop.f32.mrb[179].mxu1  ;;  %v12709_v25 = vadd.f32 %v9698_v37, %v12625_v61  ;;  %v9701_v6 = vadd.f32 %v9700_v28, %v9699_v22 }
 0x2a0   :  { %v12711_v20 = vadd.f32 %v9630_v53, %v9629_v5 }
 0x2a1   :  { %11047 = vmatmul.mubr.bf16.gmra.mrb[28].mxu1 %v3081_v62  ;;  %v12714_v4 = vadd.f32 %v9701_v6, %v12633_v51 }
 0x2a3   :  { %v9702_v11 = vpop.f32.mrb[184].mxu0 }
 0x2a4   :  { %v9632_v50 = vpop.f32.mrb[180].mxu1  ;;  %v9703_v21 = vpop.f32.mrb[185].mxu0 }
 0x2a5   :  { %v9633_v10 = vpop.f32.mrb[181].mxu1  ;;  %v9704_v19 = vadd.f32 %v9703_v21, %v9702_v11  ;;  %v9705_v29 = vpop.f32.mrb[186].mxu0 }
 0x2a6   :  { %v12716_v23 = vadd.f32 %v9633_v10, %v9632_v50  ;;  %v9635_v1 = vpop.f32.mrb[182].mxu1  ;;  %v9706_v7 = vpop.f32.mrb[187].mxu0 }
 0x2a7   :  { %v9636_v2 = vpop.f32.mrb[183].mxu1  ;;  %v12719_v61 = vadd.f32 %v9704_v19, %v12642_v58  ;;  %v9707_v30 = vadd.f32 %v9706_v7, %v9705_v29 }
 0x2a8   :  { %v12721_v37 = vadd.f32 %v9636_v2, %v9635_v1 }
 0x2a9   :  { %v12724_v51 = vadd.f32 %v9707_v30, %v12650_v16 }
 0x2ab   :  { %v9708_v62 = vpop.f32.mrb[188].mxu0 }
 0x2ac   :  { %v9638_v22 = vpop.f32.mrb[184].mxu1  ;;  %v9709_v5 = vpop.f32.mrb[189].mxu0 }
 0x2ad   :  { %v9639_v28 = vpop.f32.mrb[185].mxu1  ;;  %v9710_v53 = vadd.f32 %v9709_v5, %v9708_v62  ;;  %v9711_v6 = vpop.f32.mrb[190].mxu0 }
 0x2ae   :  { %v12726_v11 = vadd.f32 %v9639_v28, %v9638_v22  ;;  %v9641_v50 = vpop.f32.mrb[186].mxu1  ;;  %v9712_v21 = vpop.f32.mrb[191].mxu0 }
 0x2af   :  { %v9642_v10 = vpop.f32.mrb[187].mxu1  ;;  %v12729_v58 = vadd.f32 %v9710_v53, %v12653_v17  ;;  %v9713_v19 = vadd.f32 %v9712_v21, %v9711_v6  ;;  %v11228_v21 = vld [vmem:[#allocation10] sm:$0xff]  }
 0x2b0   :  { %v12731_v29 = vadd.f32 %v9642_v10, %v9641_v50  ;;  %v11227_v50 = vld [vmem:[#allocation10 + $0x40] sm:$0xff]  }
 0x2b1   :  { %v12734_v16 = vadd.f32 %v9713_v19, %v12658_v36  ;;  %10010 = vmatprep.subr.bf16.mxu0 %v11227_v50 }
 0x2b2   :  { %10011 = vmatpush3.bf16.msra.mxu0 %v11228_v21 }
 0x2b3   :  { %v9714_v1 = vpop.f32.mrb[192].mxu0 }
 0x2b4   :  { %v9644_v7 = vpop.f32.mrb[188].mxu1  ;;  %v9715_v2 = vpop.f32.mrb[193].mxu0 }
 0x2b5   :  { %v9645_v30 = vpop.f32.mrb[189].mxu1  ;;  %v9716_v62 = vadd.f32 %v9715_v2, %v9714_v1  ;;  %v9717_v5 = vpop.f32.mrb[194].mxu0 }
 0x2b6   :  { %v12736_v22 = vadd.f32 %v9645_v30, %v9644_v7  ;;  %v9647_v28 = vpop.f32.mrb[190].mxu1  ;;  %v9718_v0 = vpop.f32.mrb[195].mxu0 }
 0x2b7   :  { %v9648_v43 = vpop.f32.mrb[191].mxu1  ;;  %v12739_v17 = vadd.f32 %v9716_v62, %v12664_v26  ;;  %v9719_v53 = vadd.f32 %v9718_v0, %v9717_v5 }
 0x2b8   :  { %v12741_v6 = vadd.f32 %v9648_v43, %v9647_v28 }
 0x2b9   :  { %v12744_v36 = vadd.f32 %v9719_v53, %v12669_v44 }
 0x2bb   :  { %v9720_v10 = vpop.f32.mrb[196].mxu0 }
 0x2bc   :  { %v9778_v19 = vpop.f32.mrb[192].mxu1  ;;  %v9721_v1 = vpop.f32.mrb[197].mxu0 }
 0x2bd   :  { %v9779_v7 = vpop.f32.mrb[193].mxu1  ;;  %v9722_v2 = vadd.f32 %v9721_v1, %v9720_v10  ;;  %v9723_v30 = vpop.f32.mrb[198].mxu0 }
 0x2be   :  { %v9780_v47 = vadd.f32 %v9779_v7, %v9778_v19  ;;  %v9781_v45 = vpop.f32.mrb[194].mxu1  ;;  %v9724_v26 = vpop.f32.mrb[199].mxu0 }
 0x2bf   :  { %v9782_v62 = vpop.f32.mrb[195].mxu1  ;;  %v12747_v43 = vadd.f32 %v9722_v2, %v12675_v27  ;;  %v9725_v0 = vadd.f32 %v9724_v26, %v9723_v30 }
 0x2c0   :  { %v12750_v44 = vadd.f32 %v9780_v47, %v12656_v55  ;;  %v9783_v5 = vadd.f32 %v9782_v62, %v9781_v45 }
 0x2c1   :  { %v12753_v28 = vadd.f32 %v9725_v0, %v12680_v35 }
 0x2c2   :  { %v12756_v53 = vadd.f32 %v9783_v5, %v12661_v63 }
 0x2c3   :  { %v9726_v50 = vpop.f32.mrb[200].mxu0 }
 0x2c4   :  { %v9784_v21 = vpop.f32.mrb[196].mxu1  ;;  %v9727_v10 = vpop.f32.mrb[201].mxu0 }
 0x2c5   :  { %v9785_v19 = vpop.f32.mrb[197].mxu1  ;;  %v9728_v1 = vadd.f32 %v9727_v10, %v9726_v50  ;;  %v9729_v7 = vpop.f32.mrb[202].mxu0 }
 0x2c6   :  { %v9786_v3 = vadd.f32 %v9785_v19, %v9784_v21  ;;  %v9787_v27 = vpop.f32.mrb[198].mxu1  ;;  %v9730_v2 = vpop.f32.mrb[203].mxu0 }
 0x2c7   :  { %v9788_v30 = vpop.f32.mrb[199].mxu1  ;;  %v12759_v47 = vadd.f32 %v9728_v1, %v12685_v15  ;;  %v9731_v45 = vadd.f32 %v9730_v2, %v9729_v7  ;;  %v11229_v7 = vld [vmem:[#allocation10 + $0x48] sm:$0xff]  }
 0x2c8   :  { %v12762_v35 = vadd.f32 %v9786_v3, %v12667_v48  ;;  %v9789_v55 = vadd.f32 %v9788_v30, %v9787_v27  ;;  %v11230_v2 = vld [vmem:[#allocation10 + $0x8] sm:$0xff]   ;;  %10012 = vmatprep.subr.bf16.mxu0 %v11229_v7 }
 0x2c9   :  { %v12765_v63 = vadd.f32 %v9731_v45, %v12690_v33  ;;  %10013 = vmatpush3.bf16.msra.mxu0 %v11230_v2 }
 0x2ca   :  { %v12768_v26 = vadd.f32 %v9789_v55, %v12672_v13 }
 0x2cb   :  { %v9732_v62 = vpop.f32.mrb[204].mxu0 }
 0x2cc   :  { %v9790_v0 = vpop.f32.mrb[200].mxu1  ;;  %v9733_v5 = vpop.f32.mrb[205].mxu0 }
 0x2cd   :  { %v9791_v50 = vpop.f32.mrb[201].mxu1  ;;  %v9734_v21 = vadd.f32 %v9733_v5, %v9732_v62  ;;  %v9735_v10 = vpop.f32.mrb[206].mxu0 }
 0x2ce   :  { %v9792_v19 = vadd.f32 %v9791_v50, %v9790_v0  ;;  %v9793_v15 = vpop.f32.mrb[202].mxu1  ;;  %v9736_v1 = vpop.f32.mrb[207].mxu0 }
 0x2cf   :  { %v9794_v3 = vpop.f32.mrb[203].mxu1  ;;  %v12771_v48 = vadd.f32 %v9734_v21, %v12695_v59  ;;  %v9737_v33 = vadd.f32 %v9736_v1, %v9735_v10 }
 0x2d0   :  { %v12774_v27 = vadd.f32 %v9792_v19, %v12678_v49  ;;  %v9795_v13 = vadd.f32 %v9794_v3, %v9793_v15 }
 0x2d1   :  { %v12777_v30 = vadd.f32 %v9737_v33, %v12700_v18 }
 0x2d2   :  { %v12780_v45 = vadd.f32 %v9795_v13, %v12683_v52 }
 0x2d3   :  { %v9738_v55 = vpop.f32.mrb[208].mxu0 }
 0x2d4   :  { %v9796_v62 = vpop.f32.mrb[204].mxu1  ;;  %v9739_v0 = vpop.f32.mrb[209].mxu0 }
 0x2d5   :  { %v9797_v5 = vpop.f32.mrb[205].mxu1  ;;  %v9740_v50 = vadd.f32 %v9739_v0, %v9738_v55  ;;  %v9741_v59 = vpop.f32.mrb[210].mxu0 }
 0x2d6   :  { %v9798_v21 = vadd.f32 %v9797_v5, %v9796_v62  ;;  %v9799_v10 = vpop.f32.mrb[206].mxu1  ;;  %v9742_v1 = vpop.f32.mrb[211].mxu0 }
 0x2d7   :  { %v9800_v49 = vpop.f32.mrb[207].mxu1  ;;  %v12783_v19 = vadd.f32 %v9740_v50, %v12706_v56  ;;  %v9743_v15 = vadd.f32 %v9742_v1, %v9741_v59  ;;  %v11231_v59 = vld [vmem:[#allocation10 + $0x50] sm:$0xff]  }
 0x2d8   :  { %v12786_v18 = vadd.f32 %v9798_v21, %v12688_v34  ;;  %v9801_v7 = vadd.f32 %v9800_v49, %v9799_v10  ;;  %v11232_v1 = vld [vmem:[#allocation10 + $0x10] sm:$0xff]   ;;  %10014 = vmatprep.subr.bf16.mxu0 %v11231_v59 }
 0x2d9   :  { %v12789_v52 = vadd.f32 %v9743_v15, %v12711_v20  ;;  %10015 = vmatpush3.bf16.msra.mxu0 %v11232_v1 }
 0x2da   :  { %v12792_v2 = vadd.f32 %v9801_v7, %v12693_v12 }
 0x2db   :  { %v9744_v3 = vpop.f32.mrb[212].mxu0 }
 0x2dc   :  { %v9802_v33 = vpop.f32.mrb[208].mxu1  ;;  %v9745_v13 = vpop.f32.mrb[213].mxu0 }
 0x2dd   :  { %v9803_v55 = vpop.f32.mrb[209].mxu1  ;;  %v9746_v62 = vadd.f32 %v9745_v13, %v9744_v3  ;;  %v9747_v0 = vpop.f32.mrb[214].mxu0 }
 0x2de   :  { %v9804_v5 = vadd.f32 %v9803_v55, %v9802_v33  ;;  %v9805_v56 = vpop.f32.mrb[210].mxu1  ;;  %v9748_v50 = vpop.f32.mrb[215].mxu0 }
 0x2df   :  { %v9806_v34 = vpop.f32.mrb[211].mxu1  ;;  %v12795_v21 = vadd.f32 %v9746_v62, %v12716_v23  ;;  %v9749_v20 = vadd.f32 %v9748_v50, %v9747_v0 }
 0x2e0   :  { %v12798_v10 = vadd.f32 %v9804_v5, %v12698_v38  ;;  %v9807_v12 = vadd.f32 %v9806_v34, %v9805_v56 }
 0x2e1   :  { %v12801_v49 = vadd.f32 %v9749_v20, %v12721_v37 }
 0x2e2   :  { %v12804_v15 = vadd.f32 %v9807_v12, %v12703_v57 }
 0x2e3   :  { %v9750_v7 = vpop.f32.mrb[216].mxu0 }
 0x2e4   :  { %v9808_v3 = vpop.f32.mrb[212].mxu1  ;;  %v9751_v33 = vpop.f32.mrb[217].mxu0 }
 0x2e5   :  { %v9809_v13 = vpop.f32.mrb[213].mxu1  ;;  %v9752_v55 = vadd.f32 %v9751_v33, %v9750_v7  ;;  %v9753_v23 = vpop.f32.mrb[218].mxu0 }
 0x2e6   :  { %v9810_v62 = vadd.f32 %v9809_v13, %v9808_v3  ;;  %v9811_v0 = vpop.f32.mrb[214].mxu1  ;;  %v9754_v50 = vpop.f32.mrb[219].mxu0 }
 0x2e7   :  { %v9812_v38 = vpop.f32.mrb[215].mxu1  ;;  %v12807_v5 = vadd.f32 %v9752_v55, %v12726_v11  ;;  %v9755_v56 = vadd.f32 %v9754_v50, %v9753_v23  ;;  %v11233_v23 = vld [vmem:[#allocation10 + $0x58] sm:$0xff]  }
 0x2e8   :  { %v12810_v37 = vadd.f32 %v9810_v62, %v12709_v25  ;;  %v9813_v59 = vadd.f32 %v9812_v38, %v9811_v0  ;;  %v11234_v50 = vld [vmem:[#allocation10 + $0x18] sm:$0xff]   ;;  %10016 = vmatprep.subr.bf16.mxu0 %v11233_v23 }
 0x2e9   :  { %v12813_v57 = vadd.f32 %v9755_v56, %v12731_v29  ;;  %10017 = vmatpush3.bf16.msra.mxu0 %v11234_v50 }
 0x2ea   :  { %v12816_v1 = vadd.f32 %v9813_v59, %v12714_v4  ;;  %v2450_v59 = vmul.f32 %v12508_v60, %v12508_v60 }
 0x2eb   :  { %v9756_v34 = vpop.f32.mrb[220].mxu0 }
 0x2ec   :  { %v9814_v20 = vpop.f32.mrb[216].mxu1  ;;  %v9757_v12 = vpop.f32.mrb[221].mxu0 }
 0x2ed   :  { %v9815_v7 = vpop.f32.mrb[217].mxu1  ;;  %v9758_v3 = vadd.f32 %v9757_v12, %v9756_v34  ;;  %v9759_v33 = vpop.f32.mrb[222].mxu0  ;;  %v2449_v12 = vmul.f32 %v12502_v31, %v12502_v31 }
 0x2ee   :  { %v9816_v13 = vadd.f32 %v9815_v7, %v9814_v20  ;;  %v9817_v11 = vpop.f32.mrb[218].mxu1  ;;  %v9760_v55 = vpop.f32.mrb[223].mxu0 }
 0x2ef   :  { %v9818_v25 = vpop.f32.mrb[219].mxu1  ;;  %v12819_v62 = vadd.f32 %v9758_v3, %v12736_v22  ;;  %v9761_v29 = vadd.f32 %v9760_v55, %v9759_v33 }
 0x2f0   :  { %v12822_v0 = vadd.f32 %v9816_v13, %v12719_v61  ;;  %v9819_v4 = vadd.f32 %v9818_v25, %v9817_v11  ;;  %v2411_v61 = vadd.f32 %v12508_v60, %v12502_v31 }
 0x2f1   :  { %v12825_v38 = vadd.f32 %v9761_v29, %v12741_v6 }
 0x2f2   :  { %v12828_v56 = vadd.f32 %v9819_v4, %v12724_v51  ;;  %v2481_v51 = vadd.f32 %v2450_v59, %v2449_v12  ;;  %v2451_v4 = vmul.f32 %v12499_v24, %v12499_v24  ;;  %v2412_v60 = vadd.f32 %v2411_v61, %v12499_v24 }
 0x2f3   :  { %v9890_v34 = vpop.f32.mrb[224].mxu0 }
 0x2f4   :  { %v9820_v20 = vpop.f32.mrb[220].mxu1  ;;  %v9891_v22 = vpop.f32.mrb[225].mxu0  ;;  %v2482_v59 = vadd.f32 %v2481_v51, %v2451_v4 }
 0x2f5   :  { %v9821_v7 = vpop.f32.mrb[221].mxu1  ;;  %v9892_v3 = vadd.f32 %v9891_v22, %v9890_v34  ;;  %v9893_v6 = vpop.f32.mrb[226].mxu0 }
 0x2f6   :  { %v9822_v33 = vadd.f32 %v9821_v7, %v9820_v20  ;;  %v9823_v13 = vpop.f32.mrb[222].mxu1  ;;  %v9894_v11 = vpop.f32.mrb[227].mxu0  ;;  %v2413_v7 = vadd.f32 %v2412_v60, %v12505_v8 }
 0x2f7   :  { %v9824_v55 = vpop.f32.mrb[223].mxu1  ;;  %v9895_v23 = vadd.f32 %v9894_v11, %v9893_v6  ;;  %v12837_v50 = vadd.f32 %v9892_v3, %v12750_v44 }
 0x2f8   :  { %v12840_v25 = vadd.f32 %v9822_v33, %v12729_v58  ;;  %v9825_v29 = vadd.f32 %v9824_v55, %v9823_v13  ;;  %v2452_v58 = vmul.f32 %v12505_v8, %v12505_v8  ;;  %v2414_v60 = vadd.f32 %v2413_v7, %v12523_v9 }
 0x2f9   :  { %v12846_v34 = vadd.f32 %v9895_v23, %v12756_v53  ;;  %v2453_v53 = vmul.f32 %v12523_v9, %v12523_v9 }
 0x2fa   :  { %v12849_v20 = vadd.f32 %v9825_v29, %v12734_v16  ;;  %v2483_v16 = vadd.f32 %v2482_v59, %v2452_v58  ;;  %v2454_v59 = vmul.f32 %v12531_v46, %v12531_v46 }
 0x2fb   :  { %v9896_v22 = vpop.f32.mrb[228].mxu0 }
 0x2fc   :  { %v9826_v12 = vpop.f32.mrb[224].mxu1  ;;  %v9897_v44 = vpop.f32.mrb[229].mxu0 }
 0x2fd   :  { %v9827_v3 = vpop.f32.mrb[225].mxu1  ;;  %v9898_v6 = vadd.f32 %v9897_v44, %v9896_v22  ;;  %v9899_v33 = vpop.f32.mrb[230].mxu0  ;;  %v2484_v44 = vadd.f32 %v2483_v16, %v2453_v53 }
 0x2fe   :  { %v9828_v13 = vadd.f32 %v9827_v3, %v9826_v12  ;;  %v9829_v61 = vpop.f32.mrb[226].mxu1  ;;  %v9900_v11 = vpop.f32.mrb[231].mxu0 }
 0x2ff   :  { %v9830_v55 = vpop.f32.mrb[227].mxu1  ;;  %v9901_v51 = vadd.f32 %v9900_v11, %v9899_v33  ;;  %v12857_v23 = vadd.f32 %v9898_v6, %v12762_v35  ;;  %v2415_v6 = vadd.f32 %v2414_v60, %v12531_v46 }
 0x300   :  { %v12860_v29 = vadd.f32 %v9828_v13, %v12739_v17  ;;  %v9831_v4 = vadd.f32 %v9830_v55, %v9829_v61 }
 0x301   :  { %v12864_v22 = vadd.f32 %v9901_v51, %v12768_v26  ;;  %v2485_v26 = vadd.f32 %v2484_v44, %v2454_v59  ;;  %v2416_v60 = vadd.f32 %v2415_v6, %v12518_v14 }
 0x302   :  { %v12867_v12 = vadd.f32 %v9831_v4, %v12744_v36  ;;  %v2455_v4 = vmul.f32 %v12518_v14, %v12518_v14 }
 0x303   :  { %v9902_v58 = vpop.f32.mrb[232].mxu0 }
 0x304   :  { %v9832_v3 = vpop.f32.mrb[228].mxu1  ;;  %v9903_v35 = vpop.f32.mrb[233].mxu0  ;;  %v2486_v44 = vadd.f32 %v2485_v26, %v2455_v4 }
 0x305   :  { %v9833_v17 = vpop.f32.mrb[229].mxu1  ;;  %v9904_v33 = vadd.f32 %v9903_v35, %v9902_v58  ;;  %v9905_v13 = vpop.f32.mrb[234].mxu0 }
 0x306   :  { %v9834_v61 = vadd.f32 %v9833_v17, %v9832_v3  ;;  %v9835_v7 = vpop.f32.mrb[230].mxu1  ;;  %v9906_v11 = vpop.f32.mrb[235].mxu0  ;;  %v2417_v17 = vadd.f32 %v2416_v60, %v12528_v32 }
 0x307   :  { %v9836_v55 = vpop.f32.mrb[231].mxu1  ;;  %v9907_v51 = vadd.f32 %v9906_v11, %v9905_v13  ;;  %v12873_v36 = vadd.f32 %v9904_v33, %v12774_v27 }
 0x308   :  { %v12876_v53 = vadd.f32 %v9834_v61, %v12747_v43  ;;  %v9837_v16 = vadd.f32 %v9836_v55, %v9835_v7  ;;  %v2456_v43 = vmul.f32 %v12528_v32, %v12528_v32  ;;  %v2418_v60 = vadd.f32 %v2417_v17, %v12544_v40 }
 0x309   :  { %v12882_v58 = vadd.f32 %v9907_v51, %v12780_v45  ;;  %v2457_v45 = vmul.f32 %v12544_v40, %v12544_v40 }
 0x30a   :  { %v12885_v3 = vadd.f32 %v9837_v16, %v12753_v28  ;;  %v2487_v28 = vadd.f32 %v2486_v44, %v2456_v43  ;;  %v2458_v44 = vmul.f32 %v12552_v41, %v12552_v41 }
 0x30b   :  { %v9908_v59 = vpop.f32.mrb[236].mxu0 }
 0x30c   :  { %v9838_v35 = vpop.f32.mrb[232].mxu1  ;;  %v9909_v27 = vpop.f32.mrb[237].mxu0 }
 0x30d   :  { %v9839_v33 = vpop.f32.mrb[233].mxu1  ;;  %v9910_v13 = vadd.f32 %v9909_v27, %v9908_v59  ;;  %v9911_v61 = vpop.f32.mrb[238].mxu0  ;;  %v2488_v27 = vadd.f32 %v2487_v28, %v2457_v45 }
 0x30e   :  { %v9840_v7 = vadd.f32 %v9839_v33, %v9838_v35  ;;  %v9841_v6 = vpop.f32.mrb[234].mxu1  ;;  %v9912_v11 = vpop.f32.mrb[239].mxu0 }
 0x30f   :  { %v9842_v55 = vpop.f32.mrb[235].mxu1  ;;  %v9913_v26 = vadd.f32 %v9912_v11, %v9911_v61  ;;  %v12893_v51 = vadd.f32 %v9910_v13, %v12786_v18  ;;  %v2419_v13 = vadd.f32 %v2418_v60, %v12552_v41 }
 0x310   :  { %v12896_v16 = vadd.f32 %v9840_v7, %v12759_v47  ;;  %v9843_v4 = vadd.f32 %v9842_v55, %v9841_v6 }
 0x311   :  { %v12900_v59 = vadd.f32 %v9913_v26, %v12792_v2  ;;  %v2489_v2 = vadd.f32 %v2488_v27, %v2458_v44  ;;  %v2420_v60 = vadd.f32 %v2419_v13, %v12539_v42 }
 0x312   :  { %v12903_v35 = vadd.f32 %v9843_v4, %v12765_v63  ;;  %v2459_v4 = vmul.f32 %v12539_v42, %v12539_v42 }
 0x313   :  { %v9914_v43 = vpop.f32.mrb[240].mxu0 }
 0x314   :  { %v9844_v33 = vpop.f32.mrb[236].mxu1  ;;  %v9915_v18 = vpop.f32.mrb[241].mxu0  ;;  %v2490_v27 = vadd.f32 %v2489_v2, %v2459_v4 }
 0x315   :  { %v9845_v47 = vpop.f32.mrb[237].mxu1  ;;  %v9916_v61 = vadd.f32 %v9915_v18, %v9914_v43  ;;  %v9917_v7 = vpop.f32.mrb[242].mxu0 }
 0x316   :  { %v9846_v6 = vadd.f32 %v9845_v47, %v9844_v33  ;;  %v9847_v17 = vpop.f32.mrb[238].mxu1  ;;  %v9918_v11 = vpop.f32.mrb[243].mxu0  ;;  %v2421_v47 = vadd.f32 %v2420_v60, %v12549_v39 }
 0x317   :  { %v9848_v55 = vpop.f32.mrb[239].mxu1  ;;  %v9919_v26 = vadd.f32 %v9918_v11, %v9917_v7  ;;  %v12909_v63 = vadd.f32 %v9916_v61, %v12798_v10 }
 0x318   :  { %v12912_v45 = vadd.f32 %v9846_v6, %v12771_v48  ;;  %v9849_v28 = vadd.f32 %v9848_v55, %v9847_v17  ;;  %v2460_v48 = vmul.f32 %v12549_v39, %v12549_v39  ;;  %v2422_v60 = vadd.f32 %v2421_v47, %v12565_v54 }
 0x319   :  { %v12918_v43 = vadd.f32 %v9919_v26, %v12804_v15  ;;  %v2461_v15 = vmul.f32 %v12565_v54, %v12565_v54 }
 0x31a   :  { %v12921_v33 = vadd.f32 %v9849_v28, %v12777_v30  ;;  %v2491_v30 = vadd.f32 %v2490_v27, %v2460_v48 }
 0x31b   :  { %v9920_v44 = vpop.f32.mrb[244].mxu0 }
 0x31c   :  { %v9850_v18 = vpop.f32.mrb[240].mxu1  ;;  %v9921_v10 = vpop.f32.mrb[245].mxu0 }
 0x31d   :  { %v9851_v61 = vpop.f32.mrb[241].mxu1  ;;  %v9922_v7 = vadd.f32 %v9921_v10, %v9920_v44  ;;  %v9923_v6 = vpop.f32.mrb[246].mxu0  ;;  %v2492_v10 = vadd.f32 %v2491_v30, %v2461_v15 }
 0x31e   :  { %v9852_v17 = vadd.f32 %v9851_v61, %v9850_v18  ;;  %v9853_v13 = vpop.f32.mrb[242].mxu1  ;;  %v9924_v11 = vpop.f32.mrb[247].mxu0  ;;  %v16156_v61 = vld [vmem:[#allocation21_spill] sm:$0xff] }
 0x31f   :  { %v9854_v55 = vpop.f32.mrb[243].mxu1  ;;  %v9925_v2 = vadd.f32 %v9924_v11, %v9923_v6  ;;  %v12929_v26 = vadd.f32 %v9922_v7, %v12810_v37  ;;  %v2462_v27 = vmul.f32 %v16156_v61, %v16156_v61  ;;  %v2423_v7 = vadd.f32 %v2422_v60, %v16156_v61 }
 0x320   :  { %v12932_v28 = vadd.f32 %v9852_v17, %v12783_v19  ;;  %v9855_v4 = vadd.f32 %v9854_v55, %v9853_v13 }
 0x321   :  { %v12936_v44 = vadd.f32 %v9925_v2, %v12816_v1  ;;  %v2493_v1 = vadd.f32 %v2492_v10, %v2462_v27 }
 0x322   :  { %v12939_v18 = vadd.f32 %v9855_v4, %v12789_v52  ;;  %v16157_v4 = vld [vmem:[#allocation18_spill] sm:$0xff] }
 0x323   :  { %v9926_v48 = vpop.f32.mrb[248].mxu0  ;;  %v2463_v39 = vmul.f32 %v16157_v4, %v16157_v4  ;;  %v2424_v60 = vadd.f32 %v2423_v7, %v16157_v4 }
 0x324   :  { %v9856_v6 = vpop.f32.mrb[244].mxu1  ;;  %v9927_v37 = vpop.f32.mrb[249].mxu0 }
 0x325   :  { %v9857_v19 = vpop.f32.mrb[245].mxu1  ;;  %v9928_v17 = vadd.f32 %v9927_v37, %v9926_v48  ;;  %v9929_v13 = vpop.f32.mrb[250].mxu0  ;;  %v2494_v10 = vadd.f32 %v2493_v1, %v2463_v39 }
 0x326   :  { %v9858_v11 = vadd.f32 %v9857_v19, %v9856_v6  ;;  %v9859_v47 = vpop.f32.mrb[246].mxu1  ;;  %v9930_v55 = vpop.f32.mrb[251].mxu0  ;;  %v16158_v19 = vld [vmem:[#allocation20_spill] sm:$0xff] }
 0x327   :  { %v9860_v2 = vpop.f32.mrb[247].mxu1  ;;  %v9931_v54 = vadd.f32 %v9930_v55, %v9929_v13  ;;  %v12945_v52 = vadd.f32 %v9928_v17, %v12822_v0  ;;  %v2425_v17 = vadd.f32 %v2424_v60, %v16158_v19 }
 0x328   :  { %v12948_v15 = vadd.f32 %v9858_v11, %v12795_v21  ;;  %v9861_v30 = vadd.f32 %v9860_v2, %v9859_v47  ;;  %v2464_v21 = vmul.f32 %v16158_v19, %v16158_v19 }
 0x329   :  { %v12954_v48 = vadd.f32 %v9931_v54, %v12828_v56  ;;  %v16159_v54 = vld [vmem:[#allocation22_spill] sm:$0xff] }
 0x32a   :  { %v12957_v6 = vadd.f32 %v9861_v30, %v12801_v49  ;;  %v2465_v56 = vmul.f32 %v16159_v54, %v16159_v54  ;;  %v2495_v49 = vadd.f32 %v2494_v10, %v2464_v21  ;;  %v2426_v60 = vadd.f32 %v2425_v17, %v16159_v54 }
 0x32b   :  { %v9932_v27 = vpop.f32.mrb[252].mxu0 }
 0x32c   :  { %v9862_v37 = vpop.f32.mrb[248].mxu1  ;;  %v9933_v0 = vpop.f32.mrb[253].mxu0 }
 0x32d   :  { %v9863_v13 = vpop.f32.mrb[249].mxu1  ;;  %v9934_v11 = vadd.f32 %v9933_v0, %v9932_v27  ;;  %v9935_v47 = vpop.f32.mrb[254].mxu0  ;;  %v2496_v0 = vadd.f32 %v2495_v49, %v2465_v56  ;;  %v16161_v49 = vld [vmem:[#allocation15_spill] sm:$0xff] }
 0x32e   :  { %v9864_v55 = vadd.f32 %v9863_v13, %v9862_v37  ;;  %v9865_v7 = vpop.f32.mrb[250].mxu1  ;;  %v9936_v2 = vpop.f32.mrb[255].mxu0  ;;  %v16160_v13 = vld [vmem:[#allocation24_spill] sm:$0xff]  ;;  %v2467_v19 = vmul.f32 %v16161_v49, %v16161_v49 }
 0x32f   :  { %v9866_v30 = vpop.f32.mrb[251].mxu1  ;;  %v9937_v39 = vadd.f32 %v9936_v2, %v9935_v47  ;;  %v12965_v1 = vadd.f32 %v9934_v11, %v12840_v25  ;;  %v2466_v10 = vmul.f32 %v16160_v13, %v16160_v13  ;;  %v2427_v11 = vadd.f32 %v2426_v60, %v16160_v13 }
 0x330   :  { %v12968_v4 = vadd.f32 %v9864_v55, %v12807_v5  ;;  %v9867_v61 = vadd.f32 %v9866_v30, %v9865_v7 }
 0x331   :  { %v12972_v27 = vadd.f32 %v9937_v39, %v12849_v20  ;;  %v2497_v20 = vadd.f32 %v2496_v0, %v2466_v10  ;;  %v2428_v60 = vadd.f32 %v2427_v11, %v16161_v49 }
 0x332   :  { %v12975_v37 = vadd.f32 %v9867_v61, %v12813_v57 }
 0x333   :  { %v9938_v21 = vpop.f32.mrb[0].mxu0  ;;  %v2498_v0 = vadd.f32 %v2497_v20, %v2467_v19 }
 0x334   :  { %v9868_v47 = vpop.f32.mrb[252].mxu1  ;;  %v9939_v25 = vpop.f32.mrb[1].mxu0 }
 0x335   :  { %v9869_v5 = vpop.f32.mrb[253].mxu1  ;;  %v9940_v55 = vadd.f32 %v9939_v25, %v9938_v21  ;;  %v9941_v7 = vpop.f32.mrb[2].mxu0 }
 0x336   :  { %v9870_v2 = vadd.f32 %v9869_v5, %v9868_v47  ;;  %v9871_v17 = vpop.f32.mrb[254].mxu1  ;;  %v9942_v30 = vpop.f32.mrb[3].mxu0  ;;  %v16162_v5 = vld [vmem:[#allocation23_spill] sm:$0xff] }
 0x337   :  { %v9872_v39 = vpop.f32.mrb[255].mxu1  ;;  %v9943_v54 = vadd.f32 %v9942_v30, %v9941_v7  ;;  %v12981_v57 = vadd.f32 %v9940_v55, %v12860_v29  ;;  %v2429_v55 = vadd.f32 %v2428_v60, %v16162_v5 }
 0x338   :  { %v12984_v61 = vadd.f32 %v9870_v2, %v12819_v62  ;;  %v9873_v56 = vadd.f32 %v9872_v39, %v9871_v17  ;;  %v2468_v62 = vmul.f32 %v16162_v5, %v16162_v5 }
 0x339   :  { %v12990_v21 = vadd.f32 %v9943_v54, %v12867_v12  ;;  %v16164_v12 = vld [vmem:[#allocation26_spill] sm:$0xff] }
 0x33a   :  { %v12993_v47 = vadd.f32 %v9873_v56, %v12825_v38  ;;  %v2469_v54 = vmul.f32 %v16164_v12, %v16164_v12  ;;  %v2499_v20 = vadd.f32 %v2498_v0, %v2468_v62  ;;  %v11236_v62 = vld [vmem:[#allocation10 + $0xc0] sm:$0xff]  }
 0x33b   :  { %v9944_v10 = vpop.f32.mrb[4].mxu0  ;;  %10122 = vmatprep.subr.bf16.mxu1 %v11236_v62  ;;  %v11239_v62 = vld [vmem:[#allocation10 + $0xc8] sm:$0xff]  }
 0x33c   :  { %v11020_v25 = vpop.f32.mrb[0].mxu1  ;;  %v9945_v29 = vpop.f32.mrb[5].mxu0 }
 0x33d   :  { %v12999_v7 = vadd.f32 %v11020_v25, %v12857_v23  ;;  %v3920_v2 = vpop.f32.mrb[1].mxu1  ;;  %v9946_v11 = vadd.f32 %v9945_v29, %v9944_v10  ;;  %v9947_v17 = vpop.f32.mrb[6].mxu0  ;;  %v2430_v25 = vadd.f32 %v2429_v55, %v16164_v12 }
 0x33e   :  { %v13004_v38 = vadd.f32 %v3920_v2, %v12837_v50  ;;  %v11021_v19 = vpop.f32.mrb[2].mxu1  ;;  %v9948_v30 = vpop.f32.mrb[7].mxu0  ;;  %v16168_v2 = vld [vmem:[#allocation28_spill] sm:$0xff] }
 0x33f   :  { %16163 = vst [vmem:[#allocation24_spill] sm:$0xff] %v12999_v7  ;;  %v13007_v39 = vadd.f32 %v11021_v19, %v12864_v22  ;;  %v3923_v56 = vpop.f32.mrb[3].mxu1  ;;  %v9949_v60 = vadd.f32 %v9948_v30, %v9947_v17  ;;  %v13010_v23 = vadd.f32 %v9946_v11, %v12876_v53  ;;  %v2500_v53 = vadd.f32 %v2499_v20, %v2469_v54  ;;  %v11238_v17 = vld [vmem:[#allocation10 + $0x80] sm:$0xff]  }
 0x340   :  { %16165 = vst [vmem:[#allocation37_spill] sm:$0xff] %v13004_v38  ;;  %v13013_v10 = vadd.f32 %v3923_v56, %v12846_v34  ;;  %v4118_v50 = vmul.f32 %v13004_v38, %v13004_v38  ;;  %v2470_v34 = vmul.f32 %v16168_v2, %v16168_v2  ;;  %10123 = vmatpush3.bf16.msra.mxu1 %v11238_v17 }
 0x341   :  { %16166 = vst [vmem:[#allocation38_spill] sm:$0xff] %v13007_v39  ;;  %v13017_v29 = vadd.f32 %v9949_v60, %v12885_v3  ;;  %v4120_v3 = vmul.f32 %v12999_v7, %v12999_v7  ;;  %v2431_v60 = vadd.f32 %v2430_v25, %v16168_v2  ;;  %v4121_v12 = vmul.f32 %v13007_v39, %v13007_v39 }
 0x342   :  { %16167 = vst [vmem:[#allocation39_spill] sm:$0xff] %v13013_v10  ;;  %v4080_v22 = vadd.f32 %v13013_v10, %v13004_v38  ;;  %v4119_v0 = vmul.f32 %v13013_v10, %v13013_v10  ;;  %v2501_v25 = vadd.f32 %v2500_v53, %v2470_v34  ;;  %10124 = vmatprep.subr.bf16.mxu1 %v11239_v62  ;;  %v16172_v53 = vld [vmem:[#allocation25_spill] sm:$0xff]  ;;  %v11237_v34 = vld [vmem:[#allocation10 + $0x20] sm:$0xff]  }
 0x343   :  { %v9950_v11 = vpop.f32.mrb[8].mxu0  ;;  %v16173_v62 = vld [vmem:[#allocation27_spill] sm:$0xff] }
 0x344   :  { %v4081_v55 = vadd.f32 %v4080_v22, %v12999_v7  ;;  %v4150_v19 = vadd.f32 %v4119_v0, %v4118_v50  ;;  %v11024_v30 = vpop.f32.mrb[4].mxu1  ;;  %v9951_v56 = vpop.f32.mrb[9].mxu0  ;;  %v11245_v7 = vld [vmem:[#allocation10 + $0xd8] sm:$0xff]  }
 0x345   :  { %v13032_v10 = vadd.f32 %v11024_v30, %v12893_v51  ;;  %v3936_v54 = vpop.f32.mrb[5].mxu1  ;;  %v9952_v20 = vadd.f32 %v9951_v56, %v9950_v11  ;;  %v9953_v38 = vpop.f32.mrb[10].mxu0  ;;  %v11240_v56 = vld [vmem:[#allocation10 + $0x88] sm:$0xff]  }
 0x346   :  { %v4151_v5 = vadd.f32 %v4150_v19, %v4120_v3  ;;  %v13037_v49 = vadd.f32 %v3936_v54, %v12873_v36  ;;  %v4082_v50 = vadd.f32 %v4081_v55, %v13007_v39  ;;  %v11025_v22 = vpop.f32.mrb[6].mxu1  ;;  %v9954_v0 = vpop.f32.mrb[11].mxu0  ;;  %v11235_v54 = vld [vmem:[#allocation10 + $0x60] sm:$0xff]   ;;  %10125 = vmatpush3.bf16.msra.mxu1 %v11240_v56  ;;  %v11243_v39 = vld [vmem:[#allocation10 + $0x28] sm:$0xff]  }
 0x347   :  { %16169 = vst [vmem:[#allocation28_spill] sm:$0xff] %v13032_v10  ;;  %v13041_v51 = vadd.f32 %v11025_v22, %v12900_v59  ;;  %v3939_v30 = vpop.f32.mrb[7].mxu1  ;;  %v9955_v11 = vadd.f32 %v9954_v0, %v9953_v38  ;;  %v13044_v17 = vadd.f32 %v9952_v20, %v12896_v16  ;;  %v2471_v59 = vmul.f32 %v16172_v53, %v16172_v53  ;;  %v11244_v0 = vld [vmem:[#allocation10 + $0x90] sm:$0xff]  }
 0x348   :  { %16170 = vst [vmem:[#allocation40_spill] sm:$0xff] %v13037_v49  ;;  %v4083_v3 = vadd.f32 %v4082_v50, %v13037_v49  ;;  %v4122_v36 = vmul.f32 %v13037_v49, %v13037_v49  ;;  %v4152_v19 = vadd.f32 %v4151_v5, %v4121_v12  ;;  %v13050_v55 = vadd.f32 %v3939_v30, %v12882_v58  ;;  %v11242_v58 = vld [vmem:[#allocation10 + $0xd0] sm:$0xff]  }
 0x349   :  { %v2432_v38 = vadd.f32 %v2431_v60, %v16172_v53  ;;  %v13056_v16 = vadd.f32 %v9955_v11, %v12903_v35  ;;  %10018 = vmatprep.subr.bf16.mxu0 %v11235_v54  ;;  %v2502_v12 = vadd.f32 %v2501_v25, %v2471_v59  ;;  %v2472_v60 = vmul.f32 %v16173_v62, %v16173_v62  ;;  %v16174_v54 = vld [vmem:[#allocation30_spill] sm:$0xff] }
 0x34a   :  { %16171 = vst [vmem:[#allocation41_spill] sm:$0xff] %v13050_v55  ;;  %v4153_v20 = vadd.f32 %v4152_v19, %v4122_v36  ;;  %v4084_v50 = vadd.f32 %v4083_v3, %v13050_v55  ;;  %v4123_v5 = vmul.f32 %v13050_v55, %v13050_v55  ;;  %10019 = vmatpush3.bf16.msra.mxu0 %v11237_v34  ;;  %v11241_v36 = vld [vmem:[#allocation10 + $0x68] sm:$0xff]  }
 0x34b   :  { %v9956_v22 = vpop.f32.mrb[12].mxu0  ;;  %v4124_v35 = vmul.f32 %v13032_v10, %v13032_v10  ;;  %10126 = vmatprep.subr.bf16.mxu1 %v11242_v58  ;;  %v2433_v19 = vadd.f32 %v2432_v38, %v16173_v62  ;;  %v2473_v25 = vmul.f32 %v16174_v54, %v16174_v54  ;;  %10020 = vmatprep.subr.bf16.mxu0 %v11241_v36 }
 0x34c   :  { %v4085_v30 = vadd.f32 %v4084_v50, %v13032_v10  ;;  %v4154_v11 = vadd.f32 %v4153_v20, %v4123_v5  ;;  %v11028_v56 = vpop.f32.mrb[8].mxu1  ;;  %v9957_v3 = vpop.f32.mrb[13].mxu0  ;;  %10127 = vmatpush3.bf16.msra.mxu1 %v11244_v0  ;;  %v4125_v20 = vmul.f32 %v13041_v51, %v13041_v51 }
 0x34d   :  { %v13070_v59 = vadd.f32 %v11028_v56, %v12929_v26  ;;  %v3952_v34 = vpop.f32.mrb[9].mxu1  ;;  %v9958_v55 = vadd.f32 %v9957_v3, %v9956_v22  ;;  %v9959_v49 = vpop.f32.mrb[14].mxu0  ;;  %v2503_v26 = vadd.f32 %v2502_v12, %v2472_v60  ;;  %10128 = vmatprep.subr.bf16.mxu1 %v11245_v7  ;;  %v11247_v12 = vld [vmem:[#allocation10 + $0x70] sm:$0xff]   ;;  %v11248_v60 = vld [vmem:[#allocation10 + $0xe0] sm:$0xff]  }
 0x34e   :  { %v4155_v50 = vadd.f32 %v4154_v11, %v4124_v35  ;;  %v13075_v5 = vadd.f32 %v3952_v34, %v12909_v63  ;;  %v4086_v38 = vadd.f32 %v4085_v30, %v13041_v51  ;;  %v11029_v58 = vpop.f32.mrb[10].mxu1  ;;  %v9960_v10 = vpop.f32.mrb[15].mxu0  ;;  %10021 = vmatpush3.bf16.msra.mxu0 %v11243_v39  ;;  %v11246_v35 = vld [vmem:[#allocation10 + $0x98] sm:$0xff]  }
 0x34f   :  { %16175 = vst [vmem:[#allocation25_spill] sm:$0xff] %v13070_v59  ;;  %v13079_v56 = vadd.f32 %v11029_v58, %v12936_v44  ;;  %v3955_v22 = vpop.f32.mrb[11].mxu1  ;;  %v9961_v3 = vadd.f32 %v9960_v10, %v9959_v49  ;;  %v13082_v0 = vadd.f32 %v9958_v55, %v12912_v45  ;;  %v2434_v44 = vadd.f32 %v2433_v19, %v16174_v54  ;;  %v11249_v45 = vld [vmem:[#allocation10 + $0x30] sm:$0xff]   ;;  %v11250_v19 = vld [vmem:[#allocation10 + $0xa0] sm:$0xff]  }
 0x350   :  { %v4087_v63 = vadd.f32 %v4086_v38, %v13075_v5  ;;  %v4126_v30 = vmul.f32 %v13075_v5, %v13075_v5  ;;  %v4156_v11 = vadd.f32 %v4155_v50, %v4125_v20  ;;  %v13088_v36 = vadd.f32 %v3955_v22, %v12918_v43  ;;  %10129 = vmatpush3.bf16.msra.mxu1 %v11246_v35  ;;  %v16177_v43 = vld [vmem:[#allocation32_spill] sm:$0xff] }
 0x351   :  { %v13092_v49 = vadd.f32 %v9961_v3, %v12921_v33  ;;  %10022 = vmatprep.subr.bf16.mxu0 %v11247_v12  ;;  %v2504_v34 = vadd.f32 %v2503_v26, %v2473_v25  ;;  %v2474_v7 = vmul.f32 %v16177_v43, %v16177_v43  ;;  %v4128_v33 = vmul.f32 %v13070_v59, %v13070_v59  ;;  %v11253_v3 = vld [vmem:[#allocation10 + $0x78] sm:$0xff]  }
 0x352   :  { %16176 = vst [vmem:[#allocation27_spill] sm:$0xff] %v13088_v36  ;;  %v4157_v39 = vadd.f32 %v4156_v11, %v4126_v30  ;;  %v4088_v10 = vadd.f32 %v4087_v63, %v13088_v36  ;;  %v4127_v55 = vmul.f32 %v13088_v36, %v13088_v36  ;;  %10023 = vmatpush3.bf16.msra.mxu0 %v11249_v45  ;;  %v11255_v11 = vld [vmem:[#allocation10 + $0x38] sm:$0xff]  }
 0x353   :  { %v9962_v20 = vpop.f32.mrb[16].mxu0  ;;  %10130 = vmatprep.subr.bf16.mxu1 %v11248_v60  ;;  %v2435_v35 = vadd.f32 %v2434_v44, %v16177_v43  ;;  %v4129_v12 = vmul.f32 %v13079_v56, %v13079_v56  ;;  %v11251_v44 = vld [vmem:[#allocation10 + $0xe8] sm:$0xff]   ;;  %10024 = vmatprep.subr.bf16.mxu0 %v11253_v3 }
 0x354   :  { %v4089_v50 = vadd.f32 %v4088_v10, %v13070_v59  ;;  %v4158_v38 = vadd.f32 %v4157_v39, %v4127_v55  ;;  %v11032_v58 = vpop.f32.mrb[12].mxu1  ;;  %v9963_v22 = vpop.f32.mrb[17].mxu0  ;;  %10131 = vmatpush3.bf16.msra.mxu1 %v11250_v19  ;;  %v2505_v59 = vadd.f32 %v2504_v34, %v2474_v7  ;;  %v11254_v34 = vld [vmem:[#allocation10 + $0xf0] sm:$0xff]  }
 0x355   :  { %v13104_v25 = vadd.f32 %v11032_v58, %v12965_v1  ;;  %v3968_v26 = vpop.f32.mrb[13].mxu1  ;;  %v9964_v63 = vadd.f32 %v9963_v22, %v9962_v20  ;;  %v9965_v30 = vpop.f32.mrb[18].mxu0  ;;  %v4738_v1 = vld [vmem:[#allocation2 + $0x8] sm:$0xff]  ;;  %v4739_v58 = vld [vmem:[#allocation2 + $0x10] sm:$0xff]  ;;  %10132 = vmatprep.subr.bf16.mxu1 %v11251_v44  ;;  %v11261_v44 = vld [vmem:[#allocation10 + $0x100] sm:$0xff]  }
 0x356   :  { %v4159_v45 = vadd.f32 %v4158_v38, %v4128_v33  ;;  %v13109_v39 = vadd.f32 %v3968_v26, %v12945_v52  ;;  %v4090_v10 = vadd.f32 %v4089_v50, %v13079_v56  ;;  %v11033_v55 = vpop.f32.mrb[14].mxu1  ;;  %v9966_v60 = vpop.f32.mrb[19].mxu0  ;;  %v11252_v33 = vld [vmem:[#allocation10 + $0xa8] sm:$0xff]   ;;  %10025 = vmatpush3.bf16.msra.mxu0 %v11255_v11  ;;  %v11256_v7 = vld [vmem:[#allocation10 + $0xb0] sm:$0xff]  }
 0x357   :  { %16178 = vst [vmem:[#allocation30_spill] sm:$0xff] %v13104_v25  ;;  %v13113_v20 = vadd.f32 %v11033_v55, %v12972_v27  ;;  %v3971_v19 = vpop.f32.mrb[15].mxu1  ;;  %v9967_v22 = vadd.f32 %v9966_v60, %v9965_v30  ;;  %v13116_v36 = vadd.f32 %v9964_v63, %v12932_v28  ;;  %v4770_v28 = vpack.c.bf16 %v4739_v58, %v4738_v1  ;;  %v11378_v26 = vld [vmem:[#allocation2 + $0x7] sm:$0xff]  ;;  %v16179_v30 = vld [vmem:[#allocation29_spill] sm:$0xff] }
 0x358   :  { %v4091_v52 = vadd.f32 %v4090_v10, %v13109_v39  ;;  %v4130_v50 = vmul.f32 %v13109_v39, %v13109_v39  ;;  %v4160_v38 = vadd.f32 %v4159_v45, %v4129_v12  ;;  %v13122_v3 = vadd.f32 %v3971_v19, %v12954_v48  ;;  %10133 = vmatpush3.bf16.msra.mxu1 %v11252_v33  ;;  %v11257_v12 = vld [vmem:[#allocation10 + $0xf8] sm:$0xff]   ;;  %v11259_v60 = vld [vmem:[#allocation10 + $0x140] sm:$0xff]  }
 0x359   :  { %v13125_v27 = vadd.f32 %v9967_v22, %v12939_v18  ;;  %v4706_v63 = vpack.c.bf16 %v11378_v26, %v11378_v26  ;;  %v2475_v11 = vmul.f32 %v16179_v30, %v16179_v30  ;;  %v2436_v45 = vadd.f32 %v2435_v35, %v16179_v30  ;;  %10134 = vmatprep.subr.bf16.mxu1 %v11254_v34 }
 0x35a   :  { %v4161_v10 = vadd.f32 %v4160_v38, %v4130_v50  ;;  %v4092_v55 = vadd.f32 %v4091_v52, %v13122_v3  ;;  %v4131_v48 = vmul.f32 %v13122_v3, %v13122_v3  ;;  %5858 = vmatprep.mubr.bf16.mxu0 %v4770_v28  ;;  %v4132_v58 = vmul.f32 %v13104_v25, %v13104_v25 }
 0x35b   :  { %v9968_v18 = vpop.f32.mrb[20].mxu0  ;;  %v2506_v1 = vadd.f32 %v2505_v59, %v2475_v11  ;;  %5859 = vmatmul.mubr.bf16.vlgmr.msra.gmra.mrb[32].mxu0 %v4706_v63  ;;  %v4133_v50 = vmul.f32 %v13113_v20, %v13113_v20  ;;  %v11258_v59 = vld [vmem:[#allocation10 + $0xb8] sm:$0xff]   ;;  %10234 = vmatprep.subr.bf16.mxu0 %v11259_v60 }
 0x35c   :  { %v4093_v19 = vadd.f32 %v4092_v55, %v13104_v25  ;;  %v4162_v22 = vadd.f32 %v4161_v10, %v4131_v48  ;;  %v11036_v33 = vpop.f32.mrb[16].mxu1  ;;  %v9969_v52 = vpop.f32.mrb[21].mxu0  ;;  %10135 = vmatpush3.bf16.msra.mxu1 %v11256_v7  ;;  %v11260_v48 = vld [vmem:[#allocation10 + $0x1c0] sm:$0xff]   ;;  %10235 = vmatpush3.bf16.msra.mxu0 %v11261_v44 }
 0x35d   :  { %v13139_v35 = vadd.f32 %v11036_v33, %v13010_v23  ;;  %v3984_v38 = vpop.f32.mrb[17].mxu1  ;;  %v9970_v34 = vadd.f32 %v9969_v52, %v9968_v18  ;;  %v9971_v28 = vpop.f32.mrb[22].mxu0  ;;  %10136 = vmatprep.subr.bf16.mxu1 %v11257_v12  ;;  %v16180_v25 = vld [vmem:[#allocation31_spill] sm:$0xff] }
 0x35e   :  { %v4163_v26 = vadd.f32 %v4162_v22, %v4132_v58  ;;  %v13142_v11 = vadd.f32 %v3984_v38, %v12981_v57  ;;  %v4094_v10 = vadd.f32 %v4093_v19, %v13113_v20  ;;  %v11037_v55 = vpop.f32.mrb[18].mxu1  ;;  %v9972_v63 = vpop.f32.mrb[23].mxu0  ;;  %v2476_v23 = vmul.f32 %v16180_v25, %v16180_v25  ;;  %v16181_v22 = vld [vmem:[#allocation34_spill] sm:$0xff] }
 0x35f   :  { %v13148_v18 = vadd.f32 %v11037_v55, %v13017_v29  ;;  %v3987_v7 = vpop.f32.mrb[19].mxu1  ;;  %v9973_v33 = vadd.f32 %v9972_v63, %v9971_v28  ;;  %v3864_v60 = vadd.f32 %v9970_v34, %v12948_v15  ;;  %v2437_v44 = vadd.f32 %v2436_v45, %v16180_v25 }
 0x360   :  { %v4095_v57 = vadd.f32 %v4094_v10, %v13142_v11  ;;  %v4134_v58 = vmul.f32 %v13142_v11, %v13142_v11  ;;  %v4164_v19 = vadd.f32 %v4163_v26, %v4133_v50  ;;  %v13155_v12 = vadd.f32 %v3987_v7, %v12990_v21  ;;  %10137 = vmatpush3.bf16.msra.mxu1 %v11258_v59 }
 0x361   :  { %v2477_v52 = vmul.f32 %v16181_v22, %v16181_v22  ;;  %v2507_v29 = vadd.f32 %v2506_v1, %v2476_v23  ;;  %v3867_v38 = vadd.f32 %v9973_v33, %v12957_v6  ;;  %10346 = vmatprep.subr.bf16.mxu1 %v11260_v48  ;;  %v4136_v21 = vmul.f32 %v13139_v35, %v13139_v35 }
 0x362   :  { %v4165_v28 = vadd.f32 %v4164_v19, %v4134_v58  ;;  %v4096_v15 = vadd.f32 %v4095_v57, %v13155_v12  ;;  %v4135_v34 = vmul.f32 %v13155_v12, %v13155_v12  ;;  %v2438_v1 = vadd.f32 %v2437_v44, %v16181_v22 }
 0x363   :  { %v9974_v50 = vpop.f32.mrb[24].mxu0  ;;  %v2508_v6 = vadd.f32 %v2507_v29, %v2477_v52  ;;  %v4137_v48 = vmul.f32 %v13148_v18, %v13148_v18 }
 0x364   :  { %v4097_v45 = vadd.f32 %v4096_v15, %v13139_v35  ;;  %v4166_v26 = vadd.f32 %v4165_v28, %v4135_v34  ;;  %v11040_v10 = vpop.f32.mrb[20].mxu1  ;;  %v9975_v55 = vpop.f32.mrb[25].mxu0  ;;  %v16183_v15 = vld [vmem:[#allocation36_spill] sm:$0xff] }
 0x365   :  { %v13169_v59 = vadd.f32 %v11040_v10, %v13082_v0  ;;  %v4000_v63 = vpop.f32.mrb[21].mxu1  ;;  %v9976_v23 = vadd.f32 %v9975_v55, %v9974_v50  ;;  %v9977_v7 = vpop.f32.mrb[26].mxu0  ;;  %v2478_v44 = vmul.f32 %v16183_v15, %v16183_v15 }
 0x366   :  { %v4167_v33 = vadd.f32 %v4166_v26, %v4136_v21  ;;  %v13174_v57 = vadd.f32 %v4000_v63, %v13044_v17  ;;  %v4098_v58 = vadd.f32 %v4097_v45, %v13148_v18  ;;  %v11041_v19 = vpop.f32.mrb[22].mxu1  ;;  %v9978_v28 = vpop.f32.mrb[27].mxu0  ;;  %v2439_v26 = vadd.f32 %v2438_v1, %v16183_v15 }
 0x367   :  { %16182 = vst [vmem:[#allocation32_spill] sm:$0xff] %v13169_v59  ;;  %v13180_v0 = vadd.f32 %v11041_v19, %v13092_v49  ;;  %v4003_v52 = vpop.f32.mrb[23].mxu1  ;;  %v9979_v29 = vadd.f32 %v9978_v28, %v9977_v7  ;;  %v3872_v34 = vadd.f32 %v9976_v23, %v12968_v4  ;;  %v11263_v4 = vld [vmem:[#allocation10 + $0x148] sm:$0xff]   ;;  %v2509_v23 = vadd.f32 %v2508_v6, %v2478_v44 }
 0x368   :  { %v4099_v50 = vadd.f32 %v4098_v58, %v13174_v57  ;;  %v4138_v17 = vmul.f32 %v13174_v57, %v13174_v57  ;;  %v4168_v21 = vadd.f32 %v4167_v33, %v4137_v48  ;;  %v13187_v45 = vadd.f32 %v4003_v52, %v13056_v16  ;;  %v11265_v58 = vld [vmem:[#allocation10 + $0x108] sm:$0xff]   ;;  %10236 = vmatprep.subr.bf16.mxu0 %v11263_v4 }
 0x369   :  { %v3875_v10 = vadd.f32 %v9979_v29, %v12975_v37  ;;  %v4140_v48 = vmul.f32 %v13169_v59, %v13169_v59  ;;  %v16185_v37 = vld [vmem:[#allocation33_spill] sm:$0xff]  ;;  %10237 = vmatpush3.bf16.msra.mxu0 %v11265_v58 }
 0x36a   :  { %16184 = vst [vmem:[#allocation29_spill] sm:$0xff] %v13187_v45  ;;  %v4169_v55 = vadd.f32 %v4168_v21, %v4138_v17  ;;  %v4100_v49 = vadd.f32 %v4099_v50, %v13187_v45  ;;  %v4139_v63 = vmul.f32 %v13187_v45, %v13187_v45  ;;  %v2479_v28 = vmul.f32 %v16185_v37, %v16185_v37 }
 0x36b   :  { %v9980_v7 = vpop.f32.mrb[28].mxu0  ;;  %v2440_v52 = vadd.f32 %v2439_v26, %v16185_v37  ;;  %v4141_v17 = vmul.f32 %v13180_v0, %v13180_v0 }
 0x36c   :  { %v4101_v16 = vadd.f32 %v4100_v49, %v13169_v59  ;;  %v4170_v33 = vadd.f32 %v4169_v55, %v4139_v63  ;;  %v11044_v19 = vpop.f32.mrb[24].mxu1  ;;  %v9981_v1 = vpop.f32.mrb[29].mxu0  ;;  %v2510_v59 = vadd.f32 %v2509_v23, %v2479_v28 }
 0x36d   :  { %v13200_v29 = vadd.f32 %v11044_v19, %v3864_v60  ;;  %v4016_v50 = vpop.f32.mrb[25].mxu1  ;;  %v9982_v6 = vadd.f32 %v9981_v1, %v9980_v7  ;;  %v9983_v44 = vpop.f32.mrb[30].mxu0 }
 0x36e   :  { %v4171_v21 = vadd.f32 %v4170_v33, %v4140_v48  ;;  %v13205_v55 = vadd.f32 %v4016_v50, %v13116_v36  ;;  %v4102_v49 = vadd.f32 %v4101_v16, %v13180_v0  ;;  %v11045_v63 = vpop.f32.mrb[26].mxu1  ;;  %v9984_v4 = vpop.f32.mrb[31].mxu0  ;;  %v16189_v33 = vld [vmem:[#allocation35_spill] sm:$0xff] }
 0x36f   :  { %16186 = vst [vmem:[#allocation31_spill] sm:$0xff] %v13200_v29  ;;  %v13208_v45 = vadd.f32 %v11045_v63, %v3867_v38  ;;  %v4019_v60 = vpop.f32.mrb[27].mxu1  ;;  %v3880_v26 = vadd.f32 %v9982_v6, %v12984_v61  ;;  %v9985_v7 = vadd.f32 %v9984_v4, %v9983_v44  ;;  %v2480_v16 = vmul.f32 %v16189_v33, %v16189_v33 }
 0x370   :  { %v4103_v58 = vadd.f32 %v4102_v49, %v13205_v55  ;;  %v4142_v19 = vmul.f32 %v13205_v55, %v13205_v55  ;;  %v4172_v48 = vadd.f32 %v4171_v21, %v4141_v17  ;;  %v13215_v36 = vadd.f32 %v4019_v60, %v13125_v27 }
 0x371   :  { %16187 = vst [vmem:[#allocation34_spill] sm:$0xff] %v13208_v45  ;;  %v2441_v23 = vadd.f32 %v2440_v52, %v16189_v33  ;;  %v3883_v38 = vadd.f32 %v9985_v7, %v12993_v47  ;;  %v2511_v50 = vadd.f32 %v2510_v59, %v2480_v16  ;;  %v4144_v6 = vmul.f32 %v13200_v29, %v13200_v29 }
 0x372   :  { %16188 = vst [vmem:[#allocation36_spill] sm:$0xff] %v13215_v36  ;;  %v4173_v1 = vadd.f32 %v4172_v48, %v4142_v19  ;;  %v4104_v61 = vadd.f32 %v4103_v58, %v13215_v36  ;;  %v4143_v28 = vmul.f32 %v13215_v36, %v13215_v36  ;;  %v4145_v47 = vmul.f32 %v13208_v45, %v13208_v45 }
 0x373   :  { %v2442_v21 = vrot.slane %v2441_v23, 4  ;;  %v2512_v7 = vrot.slane %v2511_v50, 4 }
 0x374   :  { %v4105_v27 = vadd.f32 %v4104_v61, %v13200_v29  ;;  %v4174_v44 = vadd.f32 %v4173_v1, %v4143_v28  ;;  %v11048_v17 = vpop.f32.mrb[28].mxu1 }
 0x375   :  { %v13227_v49 = vadd.f32 %v11048_v17, %v3880_v26  ;;  %v4032_v52 = vpop.f32.mrb[29].mxu1  ;;  %v2443_v61 = vadd.f32 %v2442_v21, %v2441_v23  ;;  %v2513_v17 = vadd.f32 %v2512_v7, %v2511_v50 }
 0x376   :  { %v4175_v63 = vadd.f32 %v4174_v44, %v4144_v6  ;;  %v13231_v4 = vadd.f32 %v4032_v52, %v3872_v34  ;;  %v4106_v60 = vadd.f32 %v4105_v27, %v13208_v45  ;;  %v11049_v59 = vpop.f32.mrb[30].mxu1  ;;  %v11267_v27 = vld [vmem:[#allocation10 + $0x150] sm:$0xff]  }
 0x377   :  { %16190 = vst [vmem:[#allocation33_spill] sm:$0xff] %v13227_v49  ;;  %v13234_v58 = vadd.f32 %v11049_v59, %v3883_v38  ;;  %v4035_v19 = vpop.f32.mrb[31].mxu1  ;;  %v4148_v34 = vmul.f32 %v13227_v49, %v13227_v49  ;;  %v11269_v44 = vld [vmem:[#allocation10 + $0x110] sm:$0xff]   ;;  %10238 = vmatprep.subr.bf16.mxu0 %v11267_v27  ;;  %v2444_v23 = vrot.slane %v2443_v61, 2 }
 0x378   :  { %16191 = vst [vmem:[#allocation35_spill] sm:$0xff] %v13231_v4  ;;  %v4107_v48 = vadd.f32 %v4106_v60, %v13231_v4  ;;  %v4146_v26 = vmul.f32 %v13231_v4, %v13231_v4  ;;  %v4176_v16 = vadd.f32 %v4175_v63, %v4145_v47  ;;  %v13239_v1 = vadd.f32 %v4035_v19, %v3875_v10 }
 0x379   :  { %16192 = vst [vmem:[#allocation42_spill] sm:$0xff] %v13234_v58  ;;  %v4149_v52 = vmul.f32 %v13234_v58, %v13234_v58  ;;  %10239 = vmatpush3.bf16.msra.mxu0 %v11269_v44  ;;  %v2514_v60 = vrot.slane %v2513_v17, 2 }
 0x37a   :  { %v4177_v28 = vadd.f32 %v4176_v16, %v4146_v26  ;;  %v4108_v6 = vadd.f32 %v4107_v48, %v13239_v1  ;;  %v4147_v38 = vmul.f32 %v13239_v1, %v13239_v1  ;;  %v2445_v48 = vadd.f32 %v2444_v23, %v2443_v61 }
 0x37b   :  { %v2515_v4 = vadd.f32 %v2514_v60, %v2513_v17 }
 0x37c   :  { %v4109_v47 = vadd.f32 %v4108_v6, %v13227_v49  ;;  %v4178_v10 = vadd.f32 %v4177_v28, %v4147_v38  ;;  %v2446_v45 = vrot.slane %v2445_v48, 1 }
 0x37d   :  { %v2516_v6 = vrot.slane %v2515_v4, 1 }
 0x37e   :  { %v4110_v21 = vadd.f32 %v4109_v47, %v13234_v58  ;;  %v4179_v63 = vadd.f32 %v4178_v10, %v4148_v34  ;;  %v2447_v27 = vadd.f32 %v2446_v45, %v2445_v48  ;;  %v11271_v47 = vld [vmem:[#allocation10 + $0x158] sm:$0xff]   ;;  %v11277_v45 = vld [vmem:[#allocation10 + $0x120] sm:$0xff]  }
 0x37f   :  { %v11273_v34 = vld [vmem:[#allocation10 + $0x118] sm:$0xff]   ;;  %v2517_v10 = vadd.f32 %v2516_v6, %v2515_v4  ;;  %10240 = vmatprep.subr.bf16.mxu0 %v11271_v47  ;;  %v16196_v47 = vld [vmem:[#allocation16_spill] sm:$0xff] }
 0x380   :  { %v4111_v59 = vrot.slane %v4110_v21, 4  ;;  %v4180_v19 = vadd.f32 %v4179_v63, %v4149_v52  ;;  %10241 = vmatpush3.bf16.msra.mxu0 %v11273_v34 }
 0x382   :  { %v4112_v26 = vadd.f32 %v4111_v59, %v4110_v21  ;;  %v4181_v16 = vrot.slane %v4180_v19, 4 }
 0x384   :  { %v4113_v50 = vrot.slane %v4112_v26, 2  ;;  %v4182_v7 = vadd.f32 %v4181_v16, %v4180_v19  ;;  %v4262_v19 = vlaneseq  ;;  %v13257_v16 = vld [vmem:[#allocation2 + $0x11] sm:$0xff] }
 0x385   :  { %16195 = vst [vmem:[#allocation45_spill] sm:$0xff] %v13257_v16  ;;  %v16220_v16 = vld [vmem:[#allocation32_spill] sm:$0xff] }
 0x386   :  { %v4114_v29 = vadd.f32 %v4113_v50, %v4112_v26  ;;  %v4183_v36 = vrot.slane %v4182_v7, 2  ;;  %v13255_v26 = vld [vmem:[#allocation2 + $0x9] sm:$0xff]  ;;  %v420_v50 = vld [vmem:[%s15997_s4] sm:$0x1] }
 0x387   :  { %16194 = vst [vmem:[#allocation44_spill] sm:$0xff] %v13255_v26  ;;  %v16218_v26 = vld [vmem:[#allocation29_spill] sm:$0xff] }
 0x388   :  { %v4115_v28 = vrot.slane %v4114_v29, 1  ;;  %v4184_v38 = vadd.f32 %v4183_v36, %v4182_v7  ;;  %v11275_v36 = vld [vmem:[#allocation10 + $0x160] sm:$0xff]  }
 0x389   :  { %10242 = vmatprep.subr.bf16.mxu0 %v11275_v36 }
 0x38a   :  { %v4116_v44 = vadd.f32 %v4115_v28, %v4114_v29  ;;  %v4185_v49 = vrot.slane %v4184_v38, 1  ;;  %v4263_v29 = vshrl.u32 %v4262_v19, 7  ;;  %10243 = vmatpush3.bf16.msra.mxu0 %v11277_v45  ;;  %v11281_v45 = vld [vmem:[#allocation10 + $0x128] sm:$0xff]   ;;  %v16214_v28 = vld [vmem:[#allocation25_spill] sm:$0xff] }
 0x38c   :  { %v4117_v58 = vadd.f32 %v4116_v44, %v2447_v27  ;;  %v4186_v52 = vadd.f32 %v4185_v49, %v4184_v38  ;;  %v419_v49 = vld [vmem:[%s15996_s3] sm:$0x1]  ;;  %v13253_v4 = vsub.s32 0, %v4263_v29  ;;  %v16202_v29 = vld [vmem:[#allocation22_spill] sm:$0xff] }
 0x38e   :  { %v4187_v61 = vadd.f32 %v4186_v52, %v2517_v10  ;;  %v4188_v17 = vmul.f32 0.001953125, %v4117_v58  ;;  %16193 = vst [vmem:[#allocation43_spill] sm:$0xff] %v13253_v4 }
 0x390   :  { %v4189_v23 = vmul.f32 0.001953125, %v4187_v61  ;;  %v4190_v21 = vmul.f32 %v4188_v17, %v4188_v17 }
 0x392   :  { %v4191_v63 = vsub.f32 %v4189_v23, %v4190_v21  ;;  %v16197_v23 = vld [vmem:[#allocation17_spill] sm:$0xff]  ;;  %v16198_v21 = vld [vmem:[#allocation19_spill] sm:$0xff] }
 0x394   :  { %v4192_v60 = vmax.f32 %v4191_v63, 0.0  ;;  %v11279_v63 = vld [vmem:[#allocation10 + $0x168] sm:$0xff]  }
 0x395   :  { %10244 = vmatprep.subr.bf16.mxu0 %v11279_v63 }
 0x396   :  { %v4193_v59 = vadd.f32 1e-05, %v4192_v60  ;;  %v16199_v60 = vld [vmem:[#allocation21_spill] sm:$0xff]  ;;  %10245 = vmatpush3.bf16.msra.mxu0 %v11281_v45  ;;  %v16208_v45 = vld [vmem:[#allocation24_spill] sm:$0xff] }
 0x398   :  { %11299 = vrsqrt.f32 %v4193_v59 }
 0x3a2   :  { %v11300_v48 = vpop.eup %11299 }
 0x3a3   :  { %v4195_v58 = vmul.f32 %v11300_v48, %v419_v49 }
 0x3a5   :  { %v4196_v7 = vmul.f32 %v4195_v58, %v4188_v17  ;;  %v13263_v6 = vrot.slane %v4195_v58, %v13253_v4  ;;  %v16203_v58 = vld [vmem:[#allocation15_spill] sm:$0xff] }
 0x3a7   :  { %v4197_v38 = vsub.f32 %v420_v50, %v4196_v7  ;;  %v4327_v27 = vmul.f32 %v13263_v6, %v13239_v1  ;;  %v13271_v44 = vmul.f32 %v13263_v6, %v12502_v31  ;;  %v13275_v34 = vmul.f32 %v13263_v6, %v16196_v47  ;;  %v16204_v7 = vld [vmem:[#allocation23_spill] sm:$0xff]  ;;  %v16205_v47 = vld [vmem:[#allocation26_spill] sm:$0xff] }
 0x3a8   :  { %v13279_v10 = vmul.f32 %v13263_v6, %v12499_v24  ;;  %v13283_v52 = vmul.f32 %v13263_v6, %v12505_v8  ;;  %v13287_v61 = vmul.f32 %v13263_v6, %v12523_v9  ;;  %v13291_v31 = vmul.f32 %v13263_v6, %v12531_v46 }
 0x3a9   :  { %v13294_v1 = vrot.slane %v4197_v38, %v13253_v4  ;;  %v13298_v17 = vmul.f32 %v13263_v6, %v12518_v14  ;;  %v13302_v24 = vmul.f32 %v13263_v6, %v12528_v32  ;;  %v13306_v8 = vmul.f32 %v13263_v6, %v12544_v40  ;;  %v16215_v4 = vld [vmem:[#allocation30_spill] sm:$0xff] }
 0x3aa   :  { %v13310_v9 = vmul.f32 %v13263_v6, %v12552_v41  ;;  %v13314_v46 = vmul.f32 %v13263_v6, %v12539_v42  ;;  %v13318_v14 = vmul.f32 %v13263_v6, %v16197_v23  ;;  %v13322_v32 = vmul.f32 %v13263_v6, %v16198_v21  ;;  %v16200_v41 = vld [vmem:[#allocation18_spill] sm:$0xff]  ;;  %v16201_v42 = vld [vmem:[#allocation20_spill] sm:$0xff] }
 0x3ab   :  { %v4397_v40 = vadd.f32 %v13294_v1, %v4327_v27  ;;  %v13327_v59 = vmul.f32 %v13263_v6, %v16199_v60  ;;  %v13331_v19 = vmul.f32 %v13263_v6, %v16200_v41  ;;  %v13335_v36 = vmul.f32 %v13263_v6, %v16201_v42  ;;  %v16206_v41 = vld [vmem:[#allocation37_spill] sm:$0xff]  ;;  %v16207_v42 = vld [vmem:[#allocation39_spill] sm:$0xff] }
 0x3ac   :  { %v13339_v49 = vmul.f32 %v13263_v6, %v16202_v29  ;;  %v13343_v48 = vmul.f32 %v13263_v6, %v16160_v13  ;;  %v13347_v50 = vmul.f32 %v13263_v6, %v16203_v58  ;;  %v13351_v38 = vmul.f32 %v13263_v6, %v16204_v7  ;;  %v16209_v29 = vld [vmem:[#allocation38_spill] sm:$0xff]  ;;  %v16210_v58 = vld [vmem:[#allocation40_spill] sm:$0xff]  ;;  %v16211_v7 = vld [vmem:[#allocation41_spill] sm:$0xff] }
 0x3ad   :  { %v4461_v27 = vmax.f32 %v4397_v40, 0.0  ;;  %v13355_v23 = vmul.f32 %v13263_v6, %v16205_v47  ;;  %v13359_v21 = vmul.f32 %v13263_v6, %v16168_v2  ;;  %v13363_v13 = vmul.f32 %v13263_v6, %v16172_v53  ;;  %v16212_v47 = vld [vmem:[#allocation28_spill] sm:$0xff] }
 0x3ae   :  { %v13367_v60 = vmul.f32 %v13263_v6, %v16173_v62  ;;  %v13371_v63 = vmul.f32 %v13263_v6, %v16174_v54  ;;  %v13375_v40 = vmul.f32 %v13263_v6, %v16177_v43  ;;  %v13379_v2 = vmul.f32 %v13263_v6, %v16179_v30 }
 0x3af   :  { %v13383_v53 = vmul.f32 %v13263_v6, %v16180_v25  ;;  %v13387_v62 = vmul.f32 %v13263_v6, %v16181_v22  ;;  %v13391_v54 = vmul.f32 %v13263_v6, %v16183_v15  ;;  %v13395_v43 = vmul.f32 %v13263_v6, %v16185_v37  ;;  %4525 = vst [vmem:[#allocation2 + $0x430] sm:$0xff] %v4461_v27 }
 0x3b0   :  { %v13399_v30 = vmul.f32 %v13263_v6, %v16189_v33  ;;  %v13403_v25 = vmul.f32 %v13263_v6, %v16206_v41  ;;  %v13407_v22 = vmul.f32 %v13263_v6, %v16207_v42  ;;  %v13411_v15 = vmul.f32 %v13263_v6, %v16208_v45 }
 0x3b1   :  { %v13415_v37 = vmul.f32 %v13263_v6, %v16209_v29  ;;  %v13419_v33 = vmul.f32 %v13263_v6, %v16210_v58  ;;  %v13423_v27 = vmul.f32 %v13263_v6, %v16211_v7  ;;  %v13427_v41 = vmul.f32 %v13263_v6, %v16212_v47  ;;  %v16213_v29 = vld [vmem:[#allocation27_spill] sm:$0xff] }
 0x3b2   :  { %v13431_v42 = vmul.f32 %v13263_v6, %v13041_v51  ;;  %v13435_v45 = vmul.f32 %v13263_v6, %v13075_v5  ;;  %v13439_v58 = vmul.f32 %v13263_v6, %v16213_v29  ;;  %v13443_v7 = vmul.f32 %v13263_v6, %v16214_v28 }
 0x3b3   :  { %v13447_v47 = vmul.f32 %v13263_v6, %v13079_v56  ;;  %v13451_v51 = vmul.f32 %v13263_v6, %v13109_v39  ;;  %v13455_v5 = vmul.f32 %v13263_v6, %v13122_v3  ;;  %v13459_v29 = vmul.f32 %v13263_v6, %v16215_v4 }
 0x3b4   :  { %v13463_v28 = vmul.f32 %v13263_v6, %v13113_v20  ;;  %v13467_v56 = vmul.f32 %v13263_v6, %v13142_v11  ;;  %v13471_v39 = vmul.f32 %v13263_v6, %v13155_v12  ;;  %v13475_v3 = vmul.f32 %v13263_v6, %v13139_v35 }
 0x3b5   :  { %v13479_v4 = vmul.f32 %v13263_v6, %v13148_v18  ;;  %v13483_v20 = vmul.f32 %v13263_v6, %v13174_v57  ;;  %v13487_v11 = vmul.f32 %v13263_v6, %v16218_v26  ;;  %v13491_v12 = vmul.f32 %v13263_v6, %v16220_v16 }
 0x3b6   :  { %v13495_v35 = vmul.f32 %v13263_v6, %v13180_v0  ;;  %v13499_v18 = vmul.f32 %v13263_v6, %v13205_v55 }
 0x3b7   :  { %16216 = vst [vmem:[#allocation16_spill] sm:$0xff] %v13479_v4  ;;  %16217 = vst [vmem:[#allocation17_spill] sm:$0xff] %v13483_v20  ;;  %v16224_v4 = vld [vmem:[#allocation36_spill] sm:$0xff]  ;;  %v16225_v20 = vld [vmem:[#allocation31_spill] sm:$0xff] }
 0x3b8   :  { %16219 = vst [vmem:[#allocation19_spill] sm:$0xff] %v13487_v11  ;;  %16221 = vst [vmem:[#allocation21_spill] sm:$0xff] %v13491_v12  ;;  %v13503_v57 = vmul.f32 %v13263_v6, %v16224_v4  ;;  %v13507_v26 = vmul.f32 %v13263_v6, %v16225_v20  ;;  %v16226_v11 = vld [vmem:[#allocation34_spill] sm:$0xff]  ;;  %v16227_v12 = vld [vmem:[#allocation35_spill] sm:$0xff]  ;;  %v13527_v20 = vadd.f32 %v13294_v1, %v13271_v44 }
 0x3b9   :  { %16222 = vst [vmem:[#allocation18_spill] sm:$0xff] %v13495_v35  ;;  %16223 = vst [vmem:[#allocation20_spill] sm:$0xff] %v13499_v18  ;;  %v13511_v16 = vmul.f32 %v13263_v6, %v16226_v11  ;;  %v13515_v0 = vmul.f32 %v13263_v6, %v16227_v12  ;;  %v16228_v35 = vld [vmem:[#allocation33_spill] sm:$0xff]  ;;  %v16229_v18 = vld [vmem:[#allocation42_spill] sm:$0xff]  ;;  %v13531_v11 = vadd.f32 %v13294_v1, %v13275_v34 }
 0x3ba   :  { %v13519_v55 = vmul.f32 %v13263_v6, %v16228_v35  ;;  %v13523_v4 = vmul.f32 %v13263_v6, %v16229_v18  ;;  %v13535_v12 = vadd.f32 %v13294_v1, %v13279_v10  ;;  %v13539_v35 = vadd.f32 %v13294_v1, %v13283_v52  ;;  %v11283_v18 = vld [vmem:[#allocation10 + $0x170] sm:$0xff]  }
 0x3bb   :  { %v13543_v6 = vadd.f32 %v13294_v1, %v13287_v61  ;;  %v13547_v44 = vadd.f32 %v13294_v1, %v13291_v31  ;;  %v13551_v34 = vadd.f32 %v13294_v1, %v13298_v17  ;;  %v13555_v10 = vadd.f32 %v13294_v1, %v13302_v24  ;;  %10246 = vmatprep.subr.bf16.mxu0 %v11283_v18 }
 0x3bc   :  { %v13559_v52 = vadd.f32 %v13294_v1, %v13306_v8  ;;  %v13563_v61 = vadd.f32 %v13294_v1, %v13310_v9  ;;  %v13567_v31 = vadd.f32 %v13294_v1, %v13314_v46  ;;  %v13571_v17 = vadd.f32 %v13294_v1, %v13318_v14 }
 0x3bd   :  { %v13575_v24 = vadd.f32 %v13294_v1, %v13322_v32  ;;  %v13579_v8 = vadd.f32 %v13294_v1, %v13327_v59  ;;  %v13583_v9 = vadd.f32 %v13294_v1, %v13331_v19  ;;  %v13587_v46 = vadd.f32 %v13294_v1, %v13335_v36 }
 0x3be   :  { %16230 = vst [vmem:[#allocation22_spill] sm:$0xff] %v13567_v31  ;;  %v11285_v31 = vld [vmem:[#allocation10 + $0x130] sm:$0xff]   ;;  %v13591_v14 = vadd.f32 %v13294_v1, %v13339_v49  ;;  %v13595_v32 = vadd.f32 %v13294_v1, %v13343_v48  ;;  %v13599_v59 = vadd.f32 %v13294_v1, %v13347_v50  ;;  %v13603_v19 = vadd.f32 %v13294_v1, %v13351_v38 }
 0x3bf   :  { %v13607_v36 = vadd.f32 %v13294_v1, %v13355_v23  ;;  %v13611_v49 = vadd.f32 %v13294_v1, %v13359_v21  ;;  %v13615_v48 = vadd.f32 %v13294_v1, %v13363_v13  ;;  %v13619_v50 = vadd.f32 %v13294_v1, %v13367_v60  ;;  %10247 = vmatpush3.bf16.msra.mxu0 %v11285_v31  ;;  %v16235_v31 = vld [vmem:[#allocation16_spill] sm:$0xff]  ;;  %v16236_v18 = vld [vmem:[#allocation17_spill] sm:$0xff] }
 0x3c0   :  { %v13623_v38 = vadd.f32 %v13294_v1, %v13371_v63  ;;  %v13627_v23 = vadd.f32 %v13294_v1, %v13375_v40  ;;  %v13631_v21 = vadd.f32 %v13294_v1, %v13379_v2  ;;  %v13635_v13 = vadd.f32 %v13294_v1, %v13383_v53 }
 0x3c1   :  { %v13639_v60 = vadd.f32 %v13294_v1, %v13387_v62  ;;  %v13643_v63 = vadd.f32 %v13294_v1, %v13391_v54  ;;  %v13647_v40 = vadd.f32 %v13294_v1, %v13395_v43  ;;  %v13651_v2 = vadd.f32 %v13294_v1, %v13399_v30 }
 0x3c2   :  { %v13655_v53 = vadd.f32 %v13294_v1, %v13403_v25  ;;  %v13659_v62 = vadd.f32 %v13294_v1, %v13407_v22  ;;  %v13663_v54 = vadd.f32 %v13294_v1, %v13411_v15  ;;  %v13667_v43 = vadd.f32 %v13294_v1, %v13415_v37 }
 0x3c3   :  { %v13671_v30 = vadd.f32 %v13294_v1, %v13419_v33  ;;  %v13675_v25 = vadd.f32 %v13294_v1, %v13423_v27  ;;  %v13679_v22 = vadd.f32 %v13294_v1, %v13427_v41  ;;  %v13683_v15 = vadd.f32 %v13294_v1, %v13431_v42 }
 0x3c4   :  { %v13687_v37 = vadd.f32 %v13294_v1, %v13435_v45  ;;  %v13691_v33 = vadd.f32 %v13294_v1, %v13439_v58  ;;  %v13695_v27 = vadd.f32 %v13294_v1, %v13443_v7  ;;  %v13699_v41 = vadd.f32 %v13294_v1, %v13447_v47 }
 0x3c5   :  { %v13703_v42 = vadd.f32 %v13294_v1, %v13451_v51  ;;  %v13707_v45 = vadd.f32 %v13294_v1, %v13455_v5  ;;  %v13711_v58 = vadd.f32 %v13294_v1, %v13459_v29  ;;  %v13715_v7 = vadd.f32 %v13294_v1, %v13463_v28 }
 0x3c6   :  { %v13719_v47 = vadd.f32 %v13294_v1, %v13467_v56  ;;  %v13723_v51 = vadd.f32 %v13294_v1, %v13471_v39  ;;  %v13727_v5 = vadd.f32 %v13294_v1, %v13475_v3  ;;  %v13731_v29 = vadd.f32 %v13294_v1, %v16235_v31 }
 0x3c7   :  { %16231 = vst [vmem:[#allocation15_spill] sm:$0xff] %v13715_v7  ;;  %v13735_v28 = vadd.f32 %v13294_v1, %v16236_v18  ;;  %v16237_v7 = vld [vmem:[#allocation19_spill] sm:$0xff]  ;;  %v13755_v18 = vadd.f32 %v13294_v1, %v13503_v57  ;;  %v13775_v57 = vadd.f32 %v13294_v1, %v13523_v4  ;;  %v16246_v4 = vld [vmem:[#allocation22_spill] sm:$0xff] }
 0x3c8   :  { %16232 = vst [vmem:[#allocation23_spill] sm:$0xff] %v13719_v47  ;;  %16233 = vst [vmem:[#allocation26_spill] sm:$0xff] %v13723_v51  ;;  %v13739_v56 = vadd.f32 %v13294_v1, %v16237_v7  ;;  %v16238_v47 = vld [vmem:[#allocation21_spill] sm:$0xff]  ;;  %v16239_v51 = vld [vmem:[#allocation18_spill] sm:$0xff]  ;;  %v13759_v7 = vadd.f32 %v13294_v1, %v13507_v26  ;;  %v4430_v26 = vmax.f32 %v13647_v40, 0.0  ;;  %v4434_v40 = vmax.f32 %v13663_v54, 0.0 }
 0x3c9   :  { %16234 = vst [vmem:[#allocation37_spill] sm:$0xff] %v13727_v5  ;;  %v13743_v39 = vadd.f32 %v13294_v1, %v16238_v47  ;;  %v13747_v3 = vadd.f32 %v13294_v1, %v16239_v51  ;;  %v16240_v5 = vld [vmem:[#allocation20_spill] sm:$0xff]  ;;  %16241 = vst [vmem:[#allocation39_spill] sm:$0xff] %v13755_v18  ;;  %v13763_v47 = vadd.f32 %v13294_v1, %v13511_v16  ;;  %v16055_v18 = vmax.f32 %v13527_v20, 0.0 }
 0x3ca   :  { %v13751_v31 = vadd.f32 %v13294_v1, %v16240_v5  ;;  %16242 = vst [vmem:[#allocation24_spill] sm:$0xff] %v13759_v7  ;;  %v13767_v51 = vadd.f32 %v13294_v1, %v13515_v0  ;;  %v13771_v5 = vadd.f32 %v13294_v1, %v13519_v55  ;;  %v16056_v0 = vmax.f32 %v13547_v44, 0.0  ;;  %4494 = vst [vmem:[#allocation2 + $0x208] sm:$0xff] %v4430_v26 }
 0x3cb   :  { %16243 = vst [vmem:[#allocation38_spill] sm:$0xff] %v13763_v47  ;;  %4464 = vst [vmem:[#allocation2 + $0x28] sm:$0xff] %v16055_v18  ;;  %v16247_v47 = vmax.f32 %v13531_v11, 0.0  ;;  %v16249_v55 = vmax.f32 %v13539_v35, 0.0  ;;  %v11287_v18 = vld [vmem:[#allocation10 + $0x178] sm:$0xff]   ;;  %v16057_v1 = vmax.f32 %v13611_v49, 0.0 }
 0x3cc   :  { %16244 = vst [vmem:[#allocation40_spill] sm:$0xff] %v13767_v51  ;;  %16245 = vst [vmem:[#allocation41_spill] sm:$0xff] %v13771_v5  ;;  %v16248_v51 = vmax.f32 %v13535_v12, 0.0  ;;  %v16250_v5 = vmax.f32 %v13543_v6, 0.0  ;;  %10248 = vmatprep.subr.bf16.mxu0 %v11287_v18  ;;  %v4425_v18 = vmax.f32 %v13627_v23, 0.0  ;;  %v4431_v7 = vmax.f32 %v13651_v2, 0.0 }
 0x3cd   :  { %4465 = vst [vmem:[#allocation2 + $0x30] sm:$0xff] %v16247_v47  ;;  %4467 = vst [vmem:[#allocation2 + $0x50] sm:$0xff] %v16249_v55  ;;  %v16251_v47 = vmax.f32 %v13551_v34, 0.0  ;;  %v11289_v55 = vld [vmem:[#allocation10 + $0x138] sm:$0xff]   ;;  %v4432_v16 = vmax.f32 %v13655_v53, 0.0  ;;  %v4435_v2 = vmax.f32 %v13667_v43, 0.0 }
 0x3ce   :  { %4466 = vst [vmem:[#allocation2 + $0x48] sm:$0xff] %v16248_v51  ;;  %4468 = vst [vmem:[#allocation2 + $0x68] sm:$0xff] %v16250_v5  ;;  %v16252_v51 = vmax.f32 %v13555_v10, 0.0  ;;  %v16253_v5 = vmax.f32 %v13559_v52, 0.0  ;;  %10249 = vmatpush3.bf16.msra.mxu0 %v11289_v55  ;;  %v4429_v55 = vmax.f32 %v13643_v63, 0.0  ;;  %v4436_v53 = vmax.f32 %v13671_v30, 0.0 }
 0x3cf   :  { %4469 = vst [vmem:[#allocation2 + $0x70] sm:$0xff] %v16056_v0  ;;  %4470 = vst [vmem:[#allocation2 + $0x88] sm:$0xff] %v16251_v47  ;;  %v16254_v0 = vmax.f32 %v13563_v61, 0.0  ;;  %v16255_v47 = vmax.f32 %v16246_v4, 0.0  ;;  %v4438_v54 = vmax.f32 %v13679_v22, 0.0  ;;  %v4439_v43 = vmax.f32 %v13683_v15, 0.0 }
 0x3d0   :  { %4471 = vst [vmem:[#allocation2 + $0x90] sm:$0xff] %v16252_v51  ;;  %4472 = vst [vmem:[#allocation2 + $0xa8] sm:$0xff] %v16253_v5  ;;  %v16256_v51 = vmax.f32 %v13571_v17, 0.0  ;;  %v16257_v5 = vmax.f32 %v13575_v24, 0.0  ;;  %v4440_v30 = vmax.f32 %v13687_v37, 0.0  ;;  %v4445_v22 = vmax.f32 %v13707_v45, 0.0 }
 0x3d1   :  { %4473 = vst [vmem:[#allocation2 + $0xb0] sm:$0xff] %v16254_v0  ;;  %4474 = vst [vmem:[#allocation2 + $0xc8] sm:$0xff] %v16255_v47  ;;  %v16258_v0 = vmax.f32 %v13579_v8, 0.0  ;;  %v16259_v47 = vmax.f32 %v13583_v9, 0.0  ;;  %v4446_v15 = vmax.f32 %v13711_v58, 0.0  ;;  %v16272_v37 = vld [vmem:[#allocation15_spill] sm:$0xff] }
 0x3d2   :  { %4475 = vst [vmem:[#allocation2 + $0xd0] sm:$0xff] %v16256_v51  ;;  %4476 = vst [vmem:[#allocation2 + $0xe8] sm:$0xff] %v16257_v5  ;;  %v16260_v51 = vmax.f32 %v13587_v46, 0.0  ;;  %v16261_v5 = vmax.f32 %v13591_v14, 0.0  ;;  %v4447_v26 = vmax.f32 %v16272_v37, 0.0  ;;  %v4866_v45 = vld [vmem:[#allocation2 + $0x27] sm:$0xff] }
 0x3d3   :  { %4477 = vst [vmem:[#allocation2 + $0xf0] sm:$0xff] %v16258_v0  ;;  %4478 = vst [vmem:[#allocation2 + $0x108] sm:$0xff] %v16259_v47  ;;  %v16262_v0 = vmax.f32 %v13595_v32, 0.0  ;;  %v16263_v47 = vmax.f32 %v13599_v59, 0.0  ;;  %v11272_v23 = vld [vmem:[#allocation10 + $0x1d8] sm:$0xff]  }
 0x3d4   :  { %4479 = vst [vmem:[#allocation2 + $0x110] sm:$0xff] %v16260_v51  ;;  %4480 = vst [vmem:[#allocation2 + $0x128] sm:$0xff] %v16261_v5  ;;  %v16264_v51 = vmax.f32 %v13603_v19, 0.0  ;;  %v16265_v5 = vmax.f32 %v13607_v36, 0.0  ;;  %v4867_v58 = vld [vmem:[#allocation2 + $0x2f] sm:$0xff] }
 0x3d5   :  { %4481 = vst [vmem:[#allocation2 + $0x130] sm:$0xff] %v16262_v0  ;;  %4482 = vst [vmem:[#allocation2 + $0x148] sm:$0xff] %v16263_v47  ;;  %v16266_v0 = vmax.f32 %v13615_v48, 0.0  ;;  %v16267_v47 = vmax.f32 %v13619_v50, 0.0 }
 0x3d6   :  { %4483 = vst [vmem:[#allocation2 + $0x150] sm:$0xff] %v16264_v51  ;;  %4484 = vst [vmem:[#allocation2 + $0x168] sm:$0xff] %v16265_v5  ;;  %v16268_v51 = vmax.f32 %v13623_v38, 0.0  ;;  %v4433_v5 = vmax.f32 %v13659_v62, 0.0  ;;  %v4437_v62 = vmax.f32 %v13675_v25, 0.0  ;;  %v4444_v25 = vmax.f32 %v13703_v42, 0.0 }
 0x3d7   :  { %4485 = vst [vmem:[#allocation2 + $0x170] sm:$0xff] %v16057_v1  ;;  %4486 = vst [vmem:[#allocation2 + $0x188] sm:$0xff] %v16266_v0  ;;  %v16269_v1 = vmax.f32 %v13631_v21, 0.0  ;;  %v16270_v0 = vmax.f32 %v13635_v13, 0.0  ;;  %v4872_v63 = vld [vmem:[#allocation2 + $0x87] sm:$0xff] }
 0x3d8   :  { %4487 = vst [vmem:[#allocation2 + $0x190] sm:$0xff] %v16267_v47  ;;  %4488 = vst [vmem:[#allocation2 + $0x1a8] sm:$0xff] %v16268_v51  ;;  %v16271_v47 = vmax.f32 %v13639_v60, 0.0  ;;  %v4442_v51 = vmax.f32 %v13695_v27, 0.0 }
 0x3d9   :  { %4489 = vst [vmem:[#allocation2 + $0x1b0] sm:$0xff] %v4425_v18  ;;  %4490 = vst [vmem:[#allocation2 + $0x1c8] sm:$0xff] %v16269_v1  ;;  %v4441_v1 = vmax.f32 %v13691_v33, 0.0  ;;  %v16274_v33 = vld [vmem:[#allocation26_spill] sm:$0xff] }
 0x3da   :  { %4491 = vst [vmem:[#allocation2 + $0x1d0] sm:$0xff] %v16270_v0  ;;  %4492 = vst [vmem:[#allocation2 + $0x1e8] sm:$0xff] %v16271_v47  ;;  %v4443_v0 = vmax.f32 %v13699_v41, 0.0  ;;  %v4449_v27 = vmax.f32 %v16274_v33, 0.0  ;;  %v16275_v41 = vld [vmem:[#allocation37_spill] sm:$0xff]  ;;  %v4455_v47 = vmax.f32 %v13747_v3, 0.0 }
 0x3db   :  { %4493 = vst [vmem:[#allocation2 + $0x1f0] sm:$0xff] %v4429_v55  ;;  %4495 = vst [vmem:[#allocation2 + $0x210] sm:$0xff] %v4431_v7  ;;  %v16273_v7 = vld [vmem:[#allocation23_spill] sm:$0xff]  ;;  %v4450_v42 = vmax.f32 %v16275_v41, 0.0  ;;  %v16280_v3 = vld [vmem:[#allocation41_spill] sm:$0xff]  ;;  %v16286_v41 = vmax.f32 %v13547_v44, 0.0 }
 0x3dc   :  { %4496 = vst [vmem:[#allocation2 + $0x268] sm:$0xff] %v4432_v16  ;;  %4497 = vst [vmem:[#allocation2 + $0x270] sm:$0xff] %v4433_v5  ;;  %v4448_v16 = vmax.f32 %v16273_v7, 0.0  ;;  %v4451_v5 = vmax.f32 %v13731_v29, 0.0  ;;  %v16276_v29 = vld [vmem:[#allocation39_spill] sm:$0xff]  ;;  %v16283_v7 = vmax.f32 %v13535_v12, 0.0 }
 0x3dd   :  { %4498 = vst [vmem:[#allocation2 + $0x288] sm:$0xff] %v4434_v40  ;;  %4499 = vst [vmem:[#allocation2 + $0x290] sm:$0xff] %v4435_v2  ;;  %v4452_v40 = vmax.f32 %v13735_v28, 0.0  ;;  %v4453_v2 = vmax.f32 %v13739_v56, 0.0  ;;  %v4457_v28 = vmax.f32 %v16276_v29, 0.0  ;;  %v4868_v56 = vld [vmem:[#allocation2 + $0x47] sm:$0xff] }
 0x3de   :  { %4500 = vst [vmem:[#allocation2 + $0x2a8] sm:$0xff] %v4436_v53  ;;  %4501 = vst [vmem:[#allocation2 + $0x2b0] sm:$0xff] %v4437_v62  ;;  %v4454_v53 = vmax.f32 %v13743_v39, 0.0  ;;  %v4456_v62 = vmax.f32 %v13751_v31, 0.0  ;;  %v4869_v39 = vld [vmem:[#allocation2 + $0x4f] sm:$0xff]  ;;  %v4462_v31 = vmax.f32 %v16280_v3, 0.0 }
 0x3df   :  { %4502 = vst [vmem:[#allocation2 + $0x2c8] sm:$0xff] %v4438_v54  ;;  %4503 = vst [vmem:[#allocation2 + $0x2d0] sm:$0xff] %v4439_v43  ;;  %v16277_v54 = vld [vmem:[#allocation24_spill] sm:$0xff]  ;;  %v16288_v12 = vmax.f32 %v13555_v10, 0.0  ;;  %v16293_v44 = vmax.f32 %v13563_v61, 0.0  ;;  %v16297_v29 = vmax.f32 %v13579_v8, 0.0 }
 0x3e0   :  { %4504 = vst [vmem:[#allocation2 + $0x2e8] sm:$0xff] %v4440_v30  ;;  %4505 = vst [vmem:[#allocation2 + $0x2f0] sm:$0xff] %v4441_v1  ;;  %v4458_v43 = vmax.f32 %v16277_v54, 0.0  ;;  %v16278_v30 = vld [vmem:[#allocation38_spill] sm:$0xff]  ;;  %v4804_v61 = vld [vmem:[#allocation2 + $0x29] sm:$0xff]  ;;  %v16302_v8 = vmax.f32 %v13599_v59, 0.0 }
 0x3e1   :  { %4506 = vst [vmem:[#allocation2 + $0x308] sm:$0xff] %v4442_v51  ;;  %4507 = vst [vmem:[#allocation2 + $0x310] sm:$0xff] %v4443_v0  ;;  %v4459_v1 = vmax.f32 %v16278_v30, 0.0  ;;  %v16279_v51 = vld [vmem:[#allocation40_spill] sm:$0xff]  ;;  %v11268_v54 = vld [vmem:[#allocation10 + $0x1d0] sm:$0xff]  }
 0x3e2   :  { %4508 = vst [vmem:[#allocation2 + $0x328] sm:$0xff] %v4444_v25  ;;  %4509 = vst [vmem:[#allocation2 + $0x330] sm:$0xff] %v4445_v22  ;;  %v4460_v0 = vmax.f32 %v16279_v51, 0.0  ;;  %v4463_v25 = vmax.f32 %v13775_v57, 0.0  ;;  %v16281_v22 = vmax.f32 %v13527_v20, 0.0  ;;  %v11262_v57 = vld [vmem:[#allocation10 + $0x180] sm:$0xff]   ;;  %v13912_v20 = vpack.c.bf16 %v4869_v39, %v4868_v56 }
 0x3e3   :  { %4510 = vst [vmem:[#allocation2 + $0x348] sm:$0xff] %v4446_v15  ;;  %4511 = vst [vmem:[#allocation2 + $0x350] sm:$0xff] %v4447_v26  ;;  %v16282_v15 = vmax.f32 %v13531_v11, 0.0  ;;  %v4898_v26 = vpack.c.bf16 %v4867_v58, %v4866_v45  ;;  %v11264_v11 = vld [vmem:[#allocation10 + $0x1c8] sm:$0xff]   ;;  %v16300_v51 = vmax.f32 %v13591_v14, 0.0  ;;  %v16303_v56 = vmax.f32 %v13603_v19, 0.0 }
 0x3e4   :  { %4512 = vst [vmem:[#allocation2 + $0x368] sm:$0xff] %v4448_v16  ;;  %4513 = vst [vmem:[#allocation2 + $0x370] sm:$0xff] %v4449_v27  ;;  %v16284_v16 = vmax.f32 %v13539_v35, 0.0  ;;  %v16285_v27 = vmax.f32 %v13543_v6, 0.0  ;;  %v16289_v35 = vld [vmem:[#allocation45_spill] sm:$0xff]  ;;  %v16290_v45 = vld [vmem:[#allocation44_spill] sm:$0xff] }
 0x3e5   :  { %4514 = vst [vmem:[#allocation2 + $0x388] sm:$0xff] %v4450_v42  ;;  %4515 = vst [vmem:[#allocation2 + $0x390] sm:$0xff] %v4451_v5  ;;  %v4771_v37 = vpack.c.bf16 %v16282_v15, %v16281_v22  ;;  %6019 = vmatprep.mubr.bf16.mxu1 %v4898_v26  ;;  %v16287_v5 = vmax.f32 %v13551_v34, 0.0  ;;  %v16291_v58 = vpack.c.bf16 %v16289_v35, %v16290_v45  ;;  %v16292_v6 = vmax.f32 %v13559_v52, 0.0  ;;  %v11286_v35 = vld [vmem:[#allocation10 + $0x1b0] sm:$0xff]  }
 0x3e6   :  { %4516 = vst [vmem:[#allocation2 + $0x3a8] sm:$0xff] %v4452_v40  ;;  %4517 = vst [vmem:[#allocation2 + $0x3b0] sm:$0xff] %v4453_v2  ;;  %v4772_v33 = vpack.c.bf16 %v16284_v16, %v16283_v7  ;;  %v4773_v42 = vpack.c.bf16 %v16286_v41, %v16285_v27  ;;  %v16295_v34 = vmax.f32 %v13571_v17, 0.0  ;;  %v4870_v17 = vld [vmem:[#allocation2 + $0x67] sm:$0xff]  ;;  %v13956_v39 = vpack.c.bf16 %v16303_v56, %v16302_v8  ;;  %v4809_v41 = vld [vmem:[#allocation2 + $0x71] sm:$0xff] }
 0x3e7   :  { %4518 = vst [vmem:[#allocation2 + $0x3c8] sm:$0xff] %v4454_v53  ;;  %4519 = vst [vmem:[#allocation2 + $0x3d0] sm:$0xff] %v4455_v47  ;;  %5866 = vmatprep.mubr.bf16.mxu0 %v4771_v37  ;;  %v4774_v40 = vpack.c.bf16 %v16288_v12, %v16287_v5  ;;  %6020 = vmatmul.mubr.bf16.vlgmr.msra.gmra.mrb[32].mxu1 %v16291_v58  ;;  %v13925_v2 = vpack.c.bf16 %v16293_v44, %v16292_v6  ;;  %v16294_v53 = vmax.f32 %v16246_v4, 0.0  ;;  %v11266_v47 = vld [vmem:[#allocation10 + $0x188] sm:$0xff]   ;;  %v13997_v7 = vld [vmem:[#allocation10 + $0x200] sm:$0xff]  }
 0x3e8   :  { %4520 = vst [vmem:[#allocation2 + $0x3e8] sm:$0xff] %v4456_v62  ;;  %4521 = vst [vmem:[#allocation2 + $0x3f0] sm:$0xff] %v4457_v28  ;;  %5867 = vmatmul.mubr.bf16.gmra.mrb[36].mxu0 %v4898_v26  ;;  %6027 = vmatprep.mubr.bf16.mxu1 %v13912_v20  ;;  %v16296_v62 = vmax.f32 %v13575_v24, 0.0  ;;  %v4805_v28 = vld [vmem:[#allocation2 + $0x31] sm:$0xff]  ;;  %v16299_v4 = vmax.f32 %v13587_v46, 0.0  ;;  %v16301_v24 = vmax.f32 %v13595_v32, 0.0 }
 0x3e9   :  { %4522 = vst [vmem:[#allocation2 + $0x408] sm:$0xff] %v4458_v43  ;;  %4523 = vst [vmem:[#allocation2 + $0x410] sm:$0xff] %v4459_v1  ;;  %5874 = vmatprep.mubr.bf16.mxu0 %v4772_v33  ;;  %v13932_v10 = vpack.c.bf16 %v16295_v34, %v16294_v53  ;;  %10347 = vmatpush3.bf16.msra.mxu1 %v11262_v57  ;;  %v16298_v43 = vmax.f32 %v13583_v9, 0.0  ;;  %v4871_v1 = vld [vmem:[#allocation2 + $0x6f] sm:$0xff]  ;;  %v16304_v9 = vmax.f32 %v13607_v36, 0.0  ;;  %v16305_v46 = vmax.f32 %v13611_v49, 0.0 }
 0x3ea   :  { %4524 = vst [vmem:[#allocation2 + $0x428] sm:$0xff] %v4460_v0  ;;  %4526 = vst [vmem:[#allocation2 + $0x448] sm:$0xff] %v4462_v31  ;;  %v13938_v52 = vpack.c.bf16 %v16297_v29, %v16296_v62  ;;  %10348 = vmatprep.subr.bf16.mxu1 %v11264_v11  ;;  %v13950_v0 = vpack.c.bf16 %v16301_v24, %v16300_v51  ;;  %v16306_v31 = vmax.f32 %v13615_v48, 0.0  ;;  %v16307_v14 = vmax.f32 %v13619_v50, 0.0  ;;  %v11270_v36 = vld [vmem:[#allocation10 + $0x190] sm:$0xff]   ;;  %v11278_v26 = vld [vmem:[#allocation10 + $0x1a0] sm:$0xff]  }
 0x3eb   :  { %4527 = vst [vmem:[#allocation2 + $0x450] sm:$0xff] %v4463_v25  ;;  %v13944_v30 = vpack.c.bf16 %v16299_v4, %v16298_v43  ;;  %v13962_v3 = vpack.c.bf16 %v16305_v46, %v16304_v9  ;;  %v16308_v32 = vmax.f32 %v13623_v38, 0.0  ;;  %v13976_v19 = vpack.c.bf16 %v4805_v28, %v4804_v61  ;;  %v11280_v33 = vld [vmem:[#allocation10 + $0x1e8] sm:$0xff]   ;;  %11050 = vmatprep.subr.bf16.mxu0 %v13997_v7  ;;  %v11290_v58 = vld [vmem:[#allocation10 + $0x1b8] sm:$0xff]   ;;  %v11379_v29 = vld [vmem:[#allocation10 + $0x40] sm:$0xff]  }
 0x3ec   :  { %v13968_v25 = vpack.c.bf16 %v16307_v14, %v16306_v31  ;;  %v16309_v49 = vmax.f32 %v13631_v21, 0.0  ;;  %v16310_v22 = vmax.f32 %v13635_v13, 0.0  ;;  %v16311_v48 = vmax.f32 %v13639_v60, 0.0  ;;  %v11274_v21 = vld [vmem:[#allocation10 + $0x198] sm:$0xff]   ;;  %v4806_v13 = vld [vmem:[#allocation2 + $0x49] sm:$0xff]  ;;  %v11276_v60 = vld [vmem:[#allocation10 + $0x1e0] sm:$0xff]  }
 0x3ed   :  { %v13974_v59 = vpack.c.bf16 %v4425_v18, %v16308_v32  ;;  %10349 = vmatpush3.bf16.msra.mxu1 %v11266_v47  ;;  %v13990_v38 = vpack.c.bf16 %v4871_v1, %v4870_v17  ;;  %v4807_v18 = vld [vmem:[#allocation2 + $0x51] sm:$0xff]  ;;  %v11282_v57 = vld [vmem:[#allocation10 + $0x1a8] sm:$0xff]  }
 0x3ee   :  { %v13982_v15 = vpack.c.bf16 %v16310_v22, %v16309_v49  ;;  %v13988_v50 = vpack.c.bf16 %v4429_v55, %v16311_v48  ;;  %10350 = vmatprep.subr.bf16.mxu1 %v11268_v54  ;;  %v4873_v55 = vld [vmem:[#allocation2 + $0x8f] sm:$0xff]  ;;  %v13995_v37 = vpack.c.bf16 %v4807_v18, %v4806_v13  ;;  %v4874_v11 = vld [vmem:[#allocation2 + $0xa7] sm:$0xff] }
 0x3ef   :  { %6028 = vmatmul.mubr.bf16.gmra.mrb[36].mxu1 %v13976_v19  ;;  %v13999_v16 = vpack.c.bf16 %v4873_v55, %v4872_v63  ;;  %v4808_v27 = vld [vmem:[#allocation2 + $0x69] sm:$0xff]  ;;  %v4811_v44 = vld [vmem:[#allocation2 + $0x91] sm:$0xff] }
 0x3f0   :  { %5875 = vmatmul.mubr.bf16.gmra.mrb[40].mxu0 %v13912_v20  ;;  %6035 = vmatprep.mubr.bf16.mxu1 %v13990_v38  ;;  %v4875_v5 = vld [vmem:[#allocation2 + $0xaf] sm:$0xff]  ;;  %v14005_v12 = vpack.c.bf16 %v4809_v41, %v4808_v27  ;;  %v4876_v53 = vld [vmem:[#allocation2 + $0xc7] sm:$0xff] }
 0x3f1   :  { %5882 = vmatprep.mubr.bf16.mxu0 %v4773_v42  ;;  %10351 = vmatpush3.bf16.msra.mxu1 %v11270_v36  ;;  %v11284_v42 = vld [vmem:[#allocation10 + $0x1f0] sm:$0xff]   ;;  %v14007_v45 = vpack.c.bf16 %v4875_v5, %v4874_v11  ;;  %v4878_v28 = vld [vmem:[#allocation2 + $0xe7] sm:$0xff] }
 0x3f2   :  { %10352 = vmatprep.subr.bf16.mxu1 %v11272_v23  ;;  %v4810_v6 = vld [vmem:[#allocation2 + $0x89] sm:$0xff]  ;;  %v4813_v61 = vld [vmem:[#allocation2 + $0xb1] sm:$0xff] }
 0x3f3   :  { %v4877_v34 = vld [vmem:[#allocation2 + $0xcf] sm:$0xff]  ;;  %v14013_v47 = vpack.c.bf16 %v4811_v44, %v4810_v6  ;;  %v4880_v1 = vld [vmem:[#allocation2 + $0x107] sm:$0xff] }
 0x3f4   :  { %v14015_v62 = vpack.c.bf16 %v4877_v34, %v4876_v53  ;;  %v4879_v54 = vld [vmem:[#allocation2 + $0xef] sm:$0xff]  ;;  %v4882_v9 = vld [vmem:[#allocation2 + $0x127] sm:$0xff] }
 0x3f5   :  { %10353 = vmatpush3.bf16.msra.mxu1 %v11274_v21  ;;  %v14023_v4 = vpack.c.bf16 %v4879_v54, %v4878_v28  ;;  %v4814_v17 = vld [vmem:[#allocation2 + $0xc9] sm:$0xff]  ;;  %v4827_v34 = vld [vmem:[#allocation2 + $0x191] sm:$0xff] }
 0x3f6   :  { %10354 = vmatprep.subr.bf16.mxu1 %v11276_v60  ;;  %v4881_v51 = vld [vmem:[#allocation2 + $0x10f] sm:$0xff]  ;;  %v4884_v36 = vld [vmem:[#allocation2 + $0x147] sm:$0xff] }
 0x3f7   :  { %6036 = vmatmul.mubr.bf16.gmra.mrb[40].mxu1 %v13995_v37  ;;  %v14031_v8 = vpack.c.bf16 %v4881_v51, %v4880_v1  ;;  %v4816_v56 = vld [vmem:[#allocation2 + $0xe9] sm:$0xff]  ;;  %v4829_v54 = vld [vmem:[#allocation2 + $0x1b1] sm:$0xff] }
 0x3f8   :  { %5883 = vmatmul.mubr.bf16.gmra.mrb[44].mxu0 %v13990_v38  ;;  %6043 = vmatprep.mubr.bf16.mxu1 %v13999_v16  ;;  %v4883_v46 = vld [vmem:[#allocation2 + $0x12f] sm:$0xff]  ;;  %v4886_v21 = vld [vmem:[#allocation2 + $0x167] sm:$0xff] }
 0x3f9   :  { %5890 = vmatprep.mubr.bf16.mxu0 %v4774_v40  ;;  %10355 = vmatpush3.bf16.msra.mxu1 %v11278_v26  ;;  %v11288_v40 = vld [vmem:[#allocation10 + $0x1f8] sm:$0xff]   ;;  %v14039_v14 = vpack.c.bf16 %v4883_v46, %v4882_v9  ;;  %v4818_v32 = vld [vmem:[#allocation2 + $0x109] sm:$0xff] }
 0x3fa   :  { %10356 = vmatprep.subr.bf16.mxu1 %v11280_v33  ;;  %v4885_v49 = vld [vmem:[#allocation2 + $0x14f] sm:$0xff]  ;;  %v4888_v55 = vld [vmem:[#allocation2 + $0x187] sm:$0xff] }
 0x3fb   :  { %v14047_v48 = vpack.c.bf16 %v4885_v49, %v4884_v36  ;;  %v4820_v23 = vld [vmem:[#allocation2 + $0x129] sm:$0xff]  ;;  %v4833_v36 = vld [vmem:[#allocation2 + $0x1f1] sm:$0xff] }
 0x3fc   :  { %v4887_v13 = vld [vmem:[#allocation2 + $0x16f] sm:$0xff]  ;;  %v4890_v41 = vld [vmem:[#allocation2 + $0x1a7] sm:$0xff] }
 0x3fd   :  { %10357 = vmatpush3.bf16.msra.mxu1 %v11282_v57  ;;  %v14055_v60 = vpack.c.bf16 %v4887_v13, %v4886_v21  ;;  %v4822_v63 = vld [vmem:[#allocation2 + $0x149] sm:$0xff] }
 0x3fe   :  { %10358 = vmatprep.subr.bf16.mxu1 %v11284_v42  ;;  %v4889_v26 = vld [vmem:[#allocation2 + $0x18f] sm:$0xff] }
 0x3ff   :  { %6044 = vmatmul.mubr.bf16.gmra.mrb[44].mxu1 %v14005_v12  ;;  %v14063_v57 = vpack.c.bf16 %v4889_v26, %v4888_v55  ;;  %v4824_v27 = vld [vmem:[#allocation2 + $0x169] sm:$0xff] }
 0x400   :  { %5891 = vmatmul.mubr.bf16.gmra.mrb[48].mxu0 %v13999_v16  ;;  %6051 = vmatprep.mubr.bf16.mxu1 %v14007_v45  ;;  %v4891_v42 = vld [vmem:[#allocation2 + $0x1af] sm:$0xff] }
 0x401   :  { %5898 = vmatprep.mubr.bf16.mxu0 %v13925_v2  ;;  %10359 = vmatpush3.bf16.msra.mxu1 %v11286_v35  ;;  %v4812_v2 = vld [vmem:[#allocation2 + $0xa9] sm:$0xff] }
 0x402   :  { %10360 = vmatprep.subr.bf16.mxu1 %v11288_v40  ;;  %v14021_v43 = vpack.c.bf16 %v4813_v61, %v4812_v2  ;;  %v14071_v40 = vpack.c.bf16 %v4891_v42, %v4890_v41  ;;  %v4826_v53 = vld [vmem:[#allocation2 + $0x189] sm:$0xff]  ;;  %v11380_v41 = vld [vmem:[#allocation10] sm:$0xff]  }
 0x403   :  { %v4893_v2 = vld [vmem:[#allocation2 + $0x1cf] sm:$0xff]  ;;  %v14081_v61 = vpack.c.bf16 %v4827_v34, %v4826_v53  ;;  %v11385_v53 = vld [vmem:[#allocation10 + $0x58] sm:$0xff]  }
 0x404   :  { %v4897_v9 = vld [vmem:[#allocation2 + $0x20f] sm:$0xff] }
 0x405   :  { %10361 = vmatpush3.bf16.msra.mxu1 %v11290_v58  ;;  %v4931_v49 = vld [vmem:[#allocation2 + $0x30] sm:$0xff]  ;;  %v5124_v55 = vld [vmem:[#allocation2 + $0x68] sm:$0xff] }
 0x406   :  { %10482 = vmatprep.subr.bf16.mxu1 %v11379_v29  ;;  %v4892_v29 = vld [vmem:[#allocation2 + $0x1c7] sm:$0xff]  ;;  %v5125_v26 = vld [vmem:[#allocation2 + $0x70] sm:$0xff] }
 0x407   :  { %6052 = vmatmul.mubr.bf16.gmra.mrb[48].mxu1 %v14013_v47  ;;  %v14083_v28 = vpack.c.bf16 %v4893_v2, %v4892_v29  ;;  %v5126_v42 = vld [vmem:[#allocation2 + $0x88] sm:$0xff]  ;;  %v11297_v34 = vld [vmem:[#allocation10 + $0x230] sm:$0xff]  }
 0x408   :  { %5899 = vmatmul.mubr.bf16.gmra.mrb[52].mxu0 %v14007_v45  ;;  %6059 = vmatprep.mubr.bf16.mxu1 %v14015_v62  ;;  %v5128_v29 = vld [vmem:[#allocation2 + $0xa8] sm:$0xff]  ;;  %v5129_v2 = vld [vmem:[#allocation2 + $0xb0] sm:$0xff] }
 0x409   :  { %5906 = vmatprep.mubr.bf16.mxu0 %v13932_v10  ;;  %v4815_v10 = vld [vmem:[#allocation2 + $0xd1] sm:$0xff] }
 0x40a   :  { %v14029_v24 = vpack.c.bf16 %v4815_v10, %v4814_v17  ;;  %v4894_v17 = vld [vmem:[#allocation2 + $0x1e7] sm:$0xff]  ;;  %v4895_v10 = vld [vmem:[#allocation2 + $0x1ef] sm:$0xff] }
 0x40b   :  { %v14091_v51 = vpack.c.bf16 %v4895_v10, %v4894_v17  ;;  %v11387_v17 = vld [vmem:[#allocation10 + $0x60] sm:$0xff]   ;;  %v11389_v10 = vld [vmem:[#allocation10 + $0x68] sm:$0xff]  }
 0x40f   :  { %6060 = vmatmul.mubr.bf16.gmra.mrb[52].mxu1 %v14021_v43 }
 0x410   :  { %5907 = vmatmul.mubr.bf16.gmra.mrb[56].mxu0 %v14015_v62  ;;  %6067 = vmatprep.mubr.bf16.mxu1 %v14023_v4 }
 0x411   :  { %5914 = vmatprep.mubr.bf16.mxu0 %v13938_v52  ;;  %v4817_v52 = vld [vmem:[#allocation2 + $0xf1] sm:$0xff] }
 0x412   :  { %v14037_v31 = vpack.c.bf16 %v4817_v52, %v4816_v56  ;;  %v4830_v56 = vld [vmem:[#allocation2 + $0x1c9] sm:$0xff] }
 0x413   :  { %v4896_v52 = vld [vmem:[#allocation2 + $0x207] sm:$0xff] }
 0x417   :  { %6068 = vmatmul.mubr.bf16.gmra.mrb[56].mxu1 %v14029_v24 }
 0x418   :  { %5915 = vmatmul.mubr.bf16.gmra.mrb[60].mxu0 %v14023_v4  ;;  %6075 = vmatprep.mubr.bf16.mxu1 %v14031_v8 }
 0x419   :  { %5922 = vmatprep.mubr.bf16.mxu0 %v13944_v30  ;;  %v4819_v30 = vld [vmem:[#allocation2 + $0x111] sm:$0xff] }
 0x41a   :  { %v14045_v22 = vpack.c.bf16 %v4819_v30, %v4818_v32  ;;  %v14099_v32 = vpack.c.bf16 %v4897_v9, %v4896_v52  ;;  %v4930_v30 = vld [vmem:[#allocation2 + $0x28] sm:$0xff] }
 0x41b   :  { %v4962_v13 = vpack.c.bf16 %v4931_v49, %v4930_v30  ;;  %v11390_v52 = vld [vmem:[#allocation10 + $0x28] sm:$0xff]   ;;  %v11391_v30 = vld [vmem:[#allocation10 + $0x70] sm:$0xff]  }
 0x41c   :  { %v5133_v49 = vld [vmem:[#allocation2 + $0xf0] sm:$0xff] }
 0x41f   :  { %6076 = vmatmul.mubr.bf16.gmra.mrb[60].mxu1 %v14037_v31 }
 0x420   :  { %5923 = vmatmul.mubr.bf16.gmra.mrb[64].mxu0 %v14031_v8  ;;  %6083 = vmatprep.mubr.bf16.mxu1 %v14039_v14 }
 0x421   :  { %5930 = vmatprep.mubr.bf16.mxu0 %v13950_v0  ;;  %v4821_v0 = vld [vmem:[#allocation2 + $0x131] sm:$0xff] }
 0x422   :  { %v14053_v18 = vpack.c.bf16 %v4821_v0, %v4820_v23  ;;  %v5122_v23 = vld [vmem:[#allocation2 + $0x48] sm:$0xff]  ;;  %v5123_v0 = vld [vmem:[#allocation2 + $0x50] sm:$0xff] }
 0x427   :  { %6084 = vmatmul.mubr.bf16.gmra.mrb[64].mxu1 %v14045_v22 }
 0x428   :  { %5931 = vmatmul.mubr.bf16.gmra.mrb[68].mxu0 %v14039_v14  ;;  %6091 = vmatprep.mubr.bf16.mxu1 %v14047_v48 }
 0x429   :  { %5938 = vmatprep.mubr.bf16.mxu0 %v13956_v39  ;;  %v4823_v39 = vld [vmem:[#allocation2 + $0x151] sm:$0xff] }
 0x42a   :  { %v14061_v33 = vpack.c.bf16 %v4823_v39, %v4822_v63  ;;  %v5154_v63 = vpack.c.bf16 %v5123_v0, %v5122_v23  ;;  %v11292_v39 = vld [vmem:[#allocation10 + $0x208] sm:$0xff]   ;;  %v11395_v23 = vld [vmem:[#allocation10 + $0x38] sm:$0xff]  }
 0x42e   :  { %v10026_v11 = vpop.f32.mrb[32].mxu0 }
 0x42f   :  { %6092 = vmatmul.mubr.bf16.gmra.mrb[68].mxu1 %v14053_v18  ;;  %v10027_v35 = vpop.f32.mrb[33].mxu0 }
 0x430   :  { %5939 = vmatmul.mubr.bf16.gmra.mrb[72].mxu0 %v14047_v48  ;;  %6099 = vmatprep.mubr.bf16.mxu1 %v14055_v60  ;;  %v14073_v58 = vadd.f32 %v10027_v35, %v10026_v11  ;;  %v10029_v6 = vpop.f32.mrb[34].mxu0  ;;  %v5127_v11 = vld [vmem:[#allocation2 + $0x90] sm:$0xff]  ;;  %v11382_v35 = vld [vmem:[#allocation10 + $0x8] sm:$0xff]  }
 0x431   :  { %5946 = vmatprep.mubr.bf16.mxu0 %v13962_v3  ;;  %v4825_v3 = vld [vmem:[#allocation2 + $0x171] sm:$0xff] }
 0x432   :  { %v14069_v5 = vpack.c.bf16 %v4825_v3, %v4824_v27  ;;  %v5155_v27 = vpack.c.bf16 %v5125_v26, %v5124_v55  ;;  %v11294_v3 = vld [vmem:[#allocation10 + $0x218] sm:$0xff]  }
 0x437   :  { %6100 = vmatmul.mubr.bf16.gmra.mrb[72].mxu1 %v14061_v33 }
 0x438   :  { %5947 = vmatmul.mubr.bf16.gmra.mrb[76].mxu0 %v14055_v60  ;;  %6107 = vmatprep.mubr.bf16.mxu1 %v14063_v57 }
 0x439   :  { %5954 = vmatprep.mubr.bf16.mxu0 %v13968_v25  ;;  %v10030_v25 = vpop.f32.mrb[35].mxu0 }
 0x43a   :  { %v14079_v44 = vadd.f32 %v10030_v25, %v10029_v6  ;;  %v5156_v6 = vpack.c.bf16 %v5127_v11, %v5126_v42  ;;  %v11383_v25 = vld [vmem:[#allocation10 + $0x50] sm:$0xff]   ;;  %v5146_v42 = vld [vmem:[#allocation2 + $0x1c8] sm:$0xff] }
 0x43b   :  { %v5147_v11 = vld [vmem:[#allocation2 + $0x1d0] sm:$0xff] }
 0x43f   :  { %6108 = vmatmul.mubr.bf16.gmra.mrb[76].mxu1 %v14069_v5 }
 0x440   :  { %5955 = vmatmul.mubr.bf16.gmra.mrb[80].mxu0 %v14063_v57  ;;  %6115 = vmatprep.mubr.bf16.mxu1 %v14071_v40 }
 0x441   :  { %5962 = vmatprep.mubr.bf16.mxu0 %v13974_v59  ;;  %v4828_v59 = vld [vmem:[#allocation2 + $0x1a9] sm:$0xff] }
 0x442   :  { %v14089_v1 = vpack.c.bf16 %v4829_v54, %v4828_v59  ;;  %v11386_v59 = vld [vmem:[#allocation10 + $0x18] sm:$0xff]   ;;  %v5157_v54 = vpack.c.bf16 %v5129_v2, %v5128_v29 }
 0x447   :  { %6116 = vmatmul.mubr.bf16.gmra.mrb[80].mxu1 %v14081_v61 }
 0x448   :  { %5963 = vmatmul.mubr.bf16.gmra.mrb[84].mxu0 %v14071_v40  ;;  %6123 = vmatprep.mubr.bf16.mxu1 %v14083_v28 }
 0x449   :  { %5970 = vmatprep.mubr.bf16.mxu0 %v13982_v15  ;;  %v4831_v15 = vld [vmem:[#allocation2 + $0x1d1] sm:$0xff] }
 0x44a   :  { %v14097_v46 = vpack.c.bf16 %v4831_v15, %v4830_v56  ;;  %v5130_v56 = vld [vmem:[#allocation2 + $0xc8] sm:$0xff]  ;;  %v5131_v15 = vld [vmem:[#allocation2 + $0xd0] sm:$0xff] }
 0x44b   :  { %v5158_v9 = vpack.c.bf16 %v5131_v15, %v5130_v56 }
 0x44f   :  { %6124 = vmatmul.mubr.bf16.gmra.mrb[84].mxu1 %v14089_v1 }
 0x450   :  { %5971 = vmatmul.mubr.bf16.gmra.mrb[88].mxu0 %v14083_v28  ;;  %6131 = vmatprep.mubr.bf16.mxu1 %v14091_v51 }
 0x451   :  { %5978 = vmatprep.mubr.bf16.mxu0 %v13988_v50  ;;  %v4832_v50 = vld [vmem:[#allocation2 + $0x1e9] sm:$0xff] }
 0x452   :  { %v14105_v21 = vpack.c.bf16 %v4833_v36, %v4832_v50  ;;  %v11392_v50 = vld [vmem:[#allocation10 + $0xc0] sm:$0xff]   ;;  %v5132_v36 = vld [vmem:[#allocation2 + $0xe8] sm:$0xff] }
 0x453   :  { %v5159_v0 = vpack.c.bf16 %v5133_v49, %v5132_v36  ;;  %v5025_v36 = vld [vmem:[#allocation2 + $0x211] sm:$0xff] }
 0x457   :  { %6132 = vmatmul.mubr.bf16.gmra.mrb[88].mxu1 %v14097_v46 }
 0x458   :  { %5979 = vmatmul.mubr.bf16.gmra.mrb[92].mxu0 %v14091_v51  ;;  %6139 = vmatprep.mubr.bf16.mxu1 %v14099_v32 }
 0x459   :  { %6180 = vmatprep.mubr.bf16.mxu0 %v13976_v19  ;;  %v11293_v19 = vld [vmem:[#allocation10 + $0x210] sm:$0xff]  }
 0x45f   :  { %6140 = vmatmul.mubr.bf16.gmra.mrb[92].mxu1 %v14105_v21 }
 0x460   :  { %6181 = vmatmul.mubr.bf16.vlgmr.msra.gmra.mrb[96].mxu0 %v4962_v13  ;;  %6341 = vmatprep.mubr.bf16.mxu1 %v5154_v63  ;;  %v11396_v13 = vld [vmem:[#allocation10 + $0x140] sm:$0xff]  }
 0x461   :  { %6188 = vmatprep.mubr.bf16.mxu0 %v13995_v37  ;;  %11051 = vmatpush3.bf16.msra.mxu0 %v13997_v7  ;;  %v11381_v37 = vld [vmem:[#allocation10 + $0x48] sm:$0xff]   ;;  %v11295_v7 = vld [vmem:[#allocation10 + $0x220] sm:$0xff]  }
 0x462   :  { %11052 = vmatprep.subr.bf16.mxu0 %v11292_v39 }
 0x465   :  { %11053 = vmatpush3.bf16.msra.mxu0 %v11292_v39  ;;  %v5136_v39 = vld [vmem:[#allocation2 + $0x128] sm:$0xff] }
 0x466   :  { %11054 = vmatprep.subr.bf16.mxu0 %v11293_v19 }
 0x467   :  { %6342 = vmatmul.mubr.bf16.vlgmr.msra.gmra.mrb[96].mxu1 %v13912_v20  ;;  %v11296_v20 = vld [vmem:[#allocation10 + $0x228] sm:$0xff]  }
 0x468   :  { %6189 = vmatmul.mubr.bf16.gmra.mrb[100].mxu0 %v5154_v63  ;;  %6349 = vmatprep.mubr.bf16.mxu1 %v5155_v27 }
 0x469   :  { %6196 = vmatprep.mubr.bf16.mxu0 %v14005_v12  ;;  %10483 = vmatpush3.bf16.msra.mxu1 %v11380_v41  ;;  %v11384_v12 = vld [vmem:[#allocation10 + $0x10] sm:$0xff]  }
 0x46a   :  { %11055 = vmatpush3.bf16.msra.mxu0 %v11293_v19  ;;  %10484 = vmatprep.subr.bf16.mxu1 %v11381_v37  ;;  %v5137_v19 = vld [vmem:[#allocation2 + $0x130] sm:$0xff] }
 0x46b   :  { %11056 = vmatprep.subr.bf16.mxu0 %v11294_v3  ;;  %v5161_v55 = vpack.c.bf16 %v5137_v19, %v5136_v39 }
 0x46d   :  { %10485 = vmatpush3.bf16.msra.mxu1 %v11382_v35 }
 0x46e   :  { %11057 = vmatpush3.bf16.msra.mxu0 %v11294_v3  ;;  %10486 = vmatprep.subr.bf16.mxu1 %v11383_v25 }
 0x46f   :  { %11058 = vmatprep.subr.bf16.mxu0 %v11295_v7  ;;  %6350 = vmatmul.mubr.bf16.gmra.mrb[100].mxu1 %v13990_v38  ;;  %v11298_v38 = vld [vmem:[#allocation10 + $0x238] sm:$0xff]  }
 0x470   :  { %6197 = vmatmul.mubr.bf16.gmra.mrb[104].mxu0 %v5155_v27  ;;  %6357 = vmatprep.mubr.bf16.mxu1 %v5156_v6 }
 0x471   :  { %6204 = vmatprep.mubr.bf16.mxu0 %v14013_v47  ;;  %10487 = vmatpush3.bf16.msra.mxu1 %v11384_v12  ;;  %v11388_v47 = vld [vmem:[#allocation10 + $0x20] sm:$0xff]  }
 0x472   :  { %11059 = vmatpush3.bf16.msra.mxu0 %v11295_v7  ;;  %10488 = vmatprep.subr.bf16.mxu1 %v11385_v53 }
 0x473   :  { %11060 = vmatprep.subr.bf16.mxu0 %v11296_v20 }
 0x475   :  { %10489 = vmatpush3.bf16.msra.mxu1 %v11386_v59 }
 0x476   :  { %11061 = vmatpush3.bf16.msra.mxu0 %v11296_v20  ;;  %10490 = vmatprep.subr.bf16.mxu1 %v11387_v17  ;;  %v5148_v17 = vld [vmem:[#allocation2 + $0x1e8] sm:$0xff] }
 0x477   :  { %11062 = vmatprep.subr.bf16.mxu0 %v11297_v34  ;;  %6358 = vmatmul.mubr.bf16.gmra.mrb[104].mxu1 %v13999_v16  ;;  %v11393_v16 = vld [vmem:[#allocation10 + $0x30] sm:$0xff]  }
 0x478   :  { %6205 = vmatmul.mubr.bf16.gmra.mrb[108].mxu0 %v5156_v6  ;;  %6365 = vmatprep.mubr.bf16.mxu1 %v5157_v54 }
 0x479   :  { %6212 = vmatprep.mubr.bf16.mxu0 %v14021_v43  ;;  %10491 = vmatpush3.bf16.msra.mxu1 %v11388_v47  ;;  %v11394_v43 = vld [vmem:[#allocation10 + $0x78] sm:$0xff]  }
 0x47a   :  { %11063 = vmatpush3.bf16.msra.mxu0 %v11297_v34  ;;  %10492 = vmatprep.subr.bf16.mxu1 %v11389_v10  ;;  %v5166_v34 = vpack.c.bf16 %v5147_v11, %v5146_v42 }
 0x47b   :  { %11064 = vmatprep.subr.bf16.mxu0 %v11298_v38 }
 0x47d   :  { %10493 = vmatpush3.bf16.msra.mxu1 %v11390_v52 }
 0x47e   :  { %11065 = vmatpush3.bf16.msra.mxu0 %v11298_v38  ;;  %10494 = vmatprep.subr.bf16.mxu1 %v11391_v30  ;;  %v5149_v38 = vld [vmem:[#allocation2 + $0x1f0] sm:$0xff] }
 0x47f   :  { %10594 = vmatprep.subr.bf16.mxu0 %v11392_v50  ;;  %6366 = vmatmul.mubr.bf16.gmra.mrb[108].mxu1 %v14007_v45  ;;  %v5134_v45 = vld [vmem:[#allocation2 + $0x108] sm:$0xff]  ;;  %v5167_v30 = vpack.c.bf16 %v5149_v38, %v5148_v17 }
 0x480   :  { %6213 = vmatmul.mubr.bf16.gmra.mrb[112].mxu0 %v5157_v54  ;;  %6373 = vmatprep.mubr.bf16.mxu1 %v5158_v9  ;;  %v11397_v17 = vld [vmem:[#allocation2 + $0x7] sm:$0xff] }
 0x481   :  { %6220 = vmatprep.mubr.bf16.mxu0 %v14029_v24  ;;  %10495 = vmatpush3.bf16.msra.mxu1 %v11393_v16  ;;  %v5135_v24 = vld [vmem:[#allocation2 + $0x110] sm:$0xff]  ;;  %v5105_v38 = vpack.c.bf16 %v11397_v17, %v11397_v17 }
 0x482   :  { %10496 = vmatprep.subr.bf16.mxu1 %v11394_v43  ;;  %v5160_v63 = vpack.c.bf16 %v5135_v24, %v5134_v45  ;;  %v5024_v43 = vld [vmem:[#allocation2 + $0x209] sm:$0xff] }
 0x483   :  { %v6840_v17 = vld [vmem:[#allocation2 + $0x290] sm:$0xff] }
 0x485   :  { %10497 = vmatpush3.bf16.msra.mxu1 %v11395_v23 }
 0x486   :  { %10706 = vmatprep.subr.bf16.mxu1 %v11396_v13  ;;  %v5151_v13 = vld [vmem:[#allocation2 + $0x210] sm:$0xff] }
 0x487   :  { %6374 = vmatmul.mubr.bf16.gmra.mrb[112].mxu1 %v14015_v62  ;;  %v5138_v62 = vld [vmem:[#allocation2 + $0x148] sm:$0xff] }
 0x488   :  { %6221 = vmatmul.mubr.bf16.gmra.mrb[116].mxu0 %v5158_v9  ;;  %6381 = vmatprep.mubr.bf16.mxu1 %v5159_v0 }
 0x489   :  { %6228 = vmatprep.mubr.bf16.mxu0 %v14037_v31  ;;  %v5139_v31 = vld [vmem:[#allocation2 + $0x150] sm:$0xff] }
 0x48a   :  { %v5162_v26 = vpack.c.bf16 %v5139_v31, %v5138_v62 }
 0x48f   :  { %6382 = vmatmul.mubr.bf16.gmra.mrb[116].mxu1 %v14023_v4  ;;  %v5140_v4 = vld [vmem:[#allocation2 + $0x168] sm:$0xff] }
 0x490   :  { %6229 = vmatmul.mubr.bf16.gmra.mrb[120].mxu0 %v5159_v0  ;;  %6389 = vmatprep.mubr.bf16.mxu1 %v5160_v63  ;;  %v5150_v0 = vld [vmem:[#allocation2 + $0x208] sm:$0xff] }
 0x491   :  { %6236 = vmatprep.mubr.bf16.mxu0 %v14045_v22  ;;  %v5141_v22 = vld [vmem:[#allocation2 + $0x170] sm:$0xff]  ;;  %v5168_v31 = vpack.c.bf16 %v5151_v13, %v5150_v0  ;;  %v11398_v0 = vld [vmem:[#allocation10 + $0x80] sm:$0xff]  }
 0x492   :  { %v5163_v27 = vpack.c.bf16 %v5141_v22, %v5140_v4  ;;  %v5152_v22 = vld [vmem:[#allocation2 + $0x228] sm:$0xff] }
 0x497   :  { %6390 = vmatmul.mubr.bf16.gmra.mrb[120].mxu1 %v14031_v8  ;;  %v5142_v8 = vld [vmem:[#allocation2 + $0x188] sm:$0xff] }
 0x498   :  { %6237 = vmatmul.mubr.bf16.gmra.mrb[124].mxu0 %v5160_v63  ;;  %6397 = vmatprep.mubr.bf16.mxu1 %v5161_v55 }
 0x499   :  { %6244 = vmatprep.mubr.bf16.mxu0 %v14053_v18  ;;  %v5143_v18 = vld [vmem:[#allocation2 + $0x190] sm:$0xff] }
 0x49a   :  { %v5164_v3 = vpack.c.bf16 %v5143_v18, %v5142_v8 }
 0x49f   :  { %6398 = vmatmul.mubr.bf16.gmra.mrb[124].mxu1 %v14039_v14  ;;  %v5144_v14 = vld [vmem:[#allocation2 + $0x1a8] sm:$0xff] }
 0x4a0   :  { %6245 = vmatmul.mubr.bf16.gmra.mrb[128].mxu0 %v5161_v55  ;;  %6405 = vmatprep.mubr.bf16.mxu1 %v5162_v26 }
 0x4a1   :  { %6252 = vmatprep.mubr.bf16.mxu0 %v14061_v33  ;;  %v5145_v33 = vld [vmem:[#allocation2 + $0x1b0] sm:$0xff] }
 0x4a2   :  { %v5165_v41 = vpack.c.bf16 %v5145_v33, %v5144_v14  ;;  %v5186_v33 = vld [vmem:[#allocation2 + $0x49] sm:$0xff] }
 0x4a7   :  { %6406 = vmatmul.mubr.bf16.gmra.mrb[128].mxu1 %v14047_v48 }
 0x4a8   :  { %6253 = vmatmul.mubr.bf16.gmra.mrb[132].mxu0 %v5162_v26  ;;  %6413 = vmatprep.mubr.bf16.mxu1 %v5163_v27 }
 0x4a9   :  { %6260 = vmatprep.mubr.bf16.mxu0 %v14069_v5 }
 0x4af   :  { %6414 = vmatmul.mubr.bf16.gmra.mrb[132].mxu1 %v14055_v60 }
 0x4b0   :  { %6261 = vmatmul.mubr.bf16.gmra.mrb[136].mxu0 %v5163_v27  ;;  %6421 = vmatprep.mubr.bf16.mxu1 %v5164_v3  ;;  %v5153_v27 = vld [vmem:[#allocation2 + $0x230] sm:$0xff] }
 0x4b1   :  { %6268 = vmatprep.mubr.bf16.mxu0 %v14081_v61  ;;  %v5169_v42 = vpack.c.bf16 %v5153_v27, %v5152_v22 }
 0x4b7   :  { %6422 = vmatmul.mubr.bf16.gmra.mrb[136].mxu1 %v14063_v57 }
 0x4b8   :  { %6269 = vmatmul.mubr.bf16.gmra.mrb[140].mxu0 %v5164_v3  ;;  %6429 = vmatprep.mubr.bf16.mxu1 %v5165_v41 }
 0x4b9   :  { %6276 = vmatprep.mubr.bf16.mxu0 %v14089_v1 }
 0x4ba   :  { %v10138_v5 = vpop.f32.mrb[32].mxu1 }
 0x4bb   :  { %v10032_v48 = vpop.f32.mrb[36].mxu0  ;;  %v10139_v7 = vpop.f32.mrb[33].mxu1 }
 0x4bc   :  { %v10033_v37 = vpop.f32.mrb[37].mxu0  ;;  %v10140_v60 = vadd.f32 %v10139_v7, %v10138_v5  ;;  %v10141_v61 = vpop.f32.mrb[34].mxu1 }
 0x4bd   :  { %v10034_v35 = vadd.f32 %v10033_v37, %v10032_v48  ;;  %v10035_v6 = vpop.f32.mrb[38].mxu0  ;;  %v10142_v20 = vpop.f32.mrb[35].mxu1 }
 0x4be   :  { %v10036_v25 = vpop.f32.mrb[39].mxu0  ;;  %v10143_v53 = vadd.f32 %v10142_v20, %v10141_v61  ;;  %v14133_v57 = vadd.f32 %v10140_v60, %v14073_v58  ;;  %v6835_v20 = vld [vmem:[#allocation2 + $0x248] sm:$0xff] }
 0x4bf   :  { %v10037_v12 = vadd.f32 %v10036_v25, %v10035_v6  ;;  %6430 = vmatmul.mubr.bf16.gmra.mrb[140].mxu1 %v14071_v40 }
 0x4c0   :  { %6277 = vmatmul.mubr.bf16.gmra.mrb[144].mxu0 %v5165_v41  ;;  %6437 = vmatprep.mubr.bf16.mxu1 %v5166_v34  ;;  %v14138_v1 = vadd.f32 %v10143_v53, %v14079_v44  ;;  %v5187_v41 = vld [vmem:[#allocation2 + $0x51] sm:$0xff] }
 0x4c1   :  { %6284 = vmatprep.mubr.bf16.mxu0 %v14097_v46  ;;  %v5218_v6 = vpack.c.bf16 %v5187_v41, %v5186_v33 }
 0x4c2   :  { %v10144_v2 = vpop.f32.mrb[36].mxu1 }
 0x4c3   :  { %v10038_v29 = vpop.f32.mrb[40].mxu0  ;;  %v10145_v54 = vpop.f32.mrb[37].mxu1 }
 0x4c4   :  { %v10039_v59 = vpop.f32.mrb[41].mxu0  ;;  %v10146_v10 = vadd.f32 %v10145_v54, %v10144_v2  ;;  %v10147_v58 = vpop.f32.mrb[38].mxu1  ;;  %v5189_v2 = vld [vmem:[#allocation2 + $0x71] sm:$0xff] }
 0x4c5   :  { %v10040_v47 = vadd.f32 %v10039_v59, %v10038_v29  ;;  %v10041_v56 = vpop.f32.mrb[42].mxu0  ;;  %v10148_v52 = vpop.f32.mrb[39].mxu1  ;;  %v5188_v29 = vld [vmem:[#allocation2 + $0x69] sm:$0xff] }
 0x4c6   :  { %v10042_v15 = vpop.f32.mrb[43].mxu0  ;;  %v10149_v40 = vadd.f32 %v10148_v52, %v10147_v58  ;;  %v14140_v46 = vadd.f32 %v10146_v10, %v10034_v35  ;;  %v5191_v10 = vld [vmem:[#allocation2 + $0x91] sm:$0xff] }
 0x4c7   :  { %v10043_v9 = vadd.f32 %v10042_v15, %v10041_v56  ;;  %6438 = vmatmul.mubr.bf16.gmra.mrb[144].mxu1 %v14083_v28  ;;  %v14146_v28 = vpack.c.bf16 %v5025_v36, %v5024_v43 }
 0x4c8   :  { %6285 = vmatmul.mubr.bf16.gmra.mrb[148].mxu0 %v5166_v34  ;;  %6445 = vmatprep.mubr.bf16.mxu1 %v5167_v30  ;;  %v14144_v44 = vadd.f32 %v10149_v40, %v10037_v12  ;;  %v6836_v12 = vld [vmem:[#allocation2 + $0x250] sm:$0xff] }
 0x4c9   :  { %6292 = vmatprep.mubr.bf16.mxu0 %v14105_v21  ;;  %v6867_v52 = vpack.c.bf16 %v6836_v12, %v6835_v20  ;;  %v6773_v20 = vld [vmem:[#allocation2 + $0x267] sm:$0xff]  ;;  %v6774_v12 = vld [vmem:[#allocation2 + $0x26f] sm:$0xff] }
 0x4ca   :  { %v10150_v16 = vpop.f32.mrb[40].mxu1 }
 0x4cb   :  { %v10044_v50 = vpop.f32.mrb[44].mxu0  ;;  %v10151_v23 = vpop.f32.mrb[41].mxu1 }
 0x4cc   :  { %v10045_v49 = vpop.f32.mrb[45].mxu0  ;;  %v10152_v24 = vadd.f32 %v10151_v23, %v10150_v16  ;;  %v10153_v39 = vpop.f32.mrb[42].mxu1  ;;  %v5192_v23 = vld [vmem:[#allocation2 + $0xa9] sm:$0xff] }
 0x4cd   :  { %v10046_v45 = vadd.f32 %v10045_v49, %v10044_v50  ;;  %v10047_v63 = vpop.f32.mrb[46].mxu0  ;;  %v10154_v55 = vpop.f32.mrb[43].mxu1 }
 0x4ce   :  { %v10048_v19 = vpop.f32.mrb[47].mxu0  ;;  %v10155_v62 = vadd.f32 %v10154_v55, %v10153_v39  ;;  %v14148_v26 = vadd.f32 %v10152_v24, %v10040_v47  ;;  %v5190_v47 = vld [vmem:[#allocation2 + $0x89] sm:$0xff]  ;;  %v5193_v24 = vld [vmem:[#allocation2 + $0xb1] sm:$0xff] }
 0x4cf   :  { %v10049_v21 = vadd.f32 %v10048_v19, %v10047_v63  ;;  %6446 = vmatmul.mubr.bf16.gmra.mrb[148].mxu1 %v14091_v51  ;;  %v5220_v43 = vpack.c.bf16 %v5191_v10, %v5190_v47  ;;  %v5194_v63 = vld [vmem:[#allocation2 + $0xc9] sm:$0xff]  ;;  %v5195_v39 = vld [vmem:[#allocation2 + $0xd1] sm:$0xff]  ;;  %v5221_v33 = vpack.c.bf16 %v5193_v24, %v5192_v23  ;;  %v11408_v24 = vld [vmem:[#allocation10 + $0xe0] sm:$0xff]  }
 0x4d0   :  { %6293 = vmatmul.mubr.bf16.gmra.mrb[152].mxu0 %v5167_v30  ;;  %6453 = vmatprep.mubr.bf16.mxu1 %v5168_v31  ;;  %v14152_v4 = vadd.f32 %v10155_v62, %v10043_v9  ;;  %v5219_v30 = vpack.c.bf16 %v5189_v2, %v5188_v29  ;;  %v11399_v19 = vld [vmem:[#allocation10 + $0xc8] sm:$0xff]   ;;  %v5222_v41 = vpack.c.bf16 %v5195_v39, %v5194_v63  ;;  %v11409_v63 = vld [vmem:[#allocation10 + $0x150] sm:$0xff]  }
 0x4d1   :  { %6300 = vmatprep.mubr.bf16.mxu0 %v14146_v28  ;;  %v6837_v62 = vld [vmem:[#allocation2 + $0x268] sm:$0xff] }
 0x4d2   :  { %v10156_v18 = vpop.f32.mrb[44].mxu1  ;;  %v11404_v47 = vld [vmem:[#allocation10 + $0x148] sm:$0xff]  }
 0x4d3   :  { %v10050_v8 = vpop.f32.mrb[48].mxu0  ;;  %v10157_v14 = vpop.f32.mrb[45].mxu1  ;;  %v11406_v23 = vld [vmem:[#allocation10 + $0x108] sm:$0xff]  }
 0x4d4   :  { %v10051_v3 = vpop.f32.mrb[49].mxu0  ;;  %v10158_v5 = vadd.f32 %v10157_v14, %v10156_v18  ;;  %v10159_v7 = vpop.f32.mrb[46].mxu1 }
 0x4d5   :  { %v10052_v48 = vadd.f32 %v10051_v3, %v10050_v8  ;;  %v10053_v37 = vpop.f32.mrb[50].mxu0  ;;  %v10160_v51 = vpop.f32.mrb[47].mxu1 }
 0x4d6   :  { %v10054_v11 = vpop.f32.mrb[51].mxu0  ;;  %v10161_v60 = vadd.f32 %v10160_v51, %v10159_v7  ;;  %v14154_v61 = vadd.f32 %v10158_v5, %v10046_v45  ;;  %v5196_v51 = vld [vmem:[#allocation2 + $0xe9] sm:$0xff] }
 0x4d7   :  { %v10055_v35 = vadd.f32 %v10054_v11, %v10053_v37  ;;  %6454 = vmatmul.mubr.bf16.gmra.mrb[152].mxu1 %v14099_v32 }
 0x4d8   :  { %6301 = vmatmul.mubr.bf16.gmra.mrb[156].mxu0 %v5168_v31  ;;  %6461 = vmatprep.mubr.bf16.mxu1 %v5169_v42  ;;  %v14157_v25 = vadd.f32 %v10161_v60, %v10049_v21  ;;  %v6838_v31 = vld [vmem:[#allocation2 + $0x270] sm:$0xff] }
 0x4d9   :  { %11066 = vmatprep.mubr.bf16.mxu0 %v5218_v6  ;;  %v6868_v7 = vpack.c.bf16 %v6838_v31, %v6837_v62  ;;  %v11401_v42 = vld [vmem:[#allocation10 + $0xd0] sm:$0xff]   ;;  %v11402_v6 = vld [vmem:[#allocation10 + $0x100] sm:$0xff]  }
 0x4da   :  { %v10162_v34 = vpop.f32.mrb[48].mxu1  ;;  %v6775_v62 = vld [vmem:[#allocation2 + $0x287] sm:$0xff]  ;;  %v6776_v31 = vld [vmem:[#allocation2 + $0x28f] sm:$0xff] }
 0x4db   :  { %v10056_v53 = vpop.f32.mrb[52].mxu0  ;;  %v10163_v54 = vpop.f32.mrb[49].mxu1 }
 0x4dc   :  { %v10057_v59 = vpop.f32.mrb[53].mxu0  ;;  %v10164_v58 = vadd.f32 %v10163_v54, %v10162_v34  ;;  %v10165_v32 = vpop.f32.mrb[50].mxu1  ;;  %v11403_v34 = vld [vmem:[#allocation10 + $0x90] sm:$0xff]   ;;  %v6839_v54 = vld [vmem:[#allocation2 + $0x288] sm:$0xff] }
 0x4dd   :  { %v10058_v56 = vadd.f32 %v10057_v59, %v10056_v53  ;;  %v10059_v15 = vpop.f32.mrb[54].mxu0  ;;  %v10166_v40 = vpop.f32.mrb[51].mxu1  ;;  %v5198_v53 = vld [vmem:[#allocation2 + $0x109] sm:$0xff]  ;;  %v5199_v59 = vld [vmem:[#allocation2 + $0x111] sm:$0xff] }
 0x4de   :  { %v10060_v9 = vpop.f32.mrb[55].mxu0  ;;  %v10167_v16 = vadd.f32 %v10166_v40, %v10165_v32  ;;  %v14159_v36 = vadd.f32 %v10164_v58, %v10052_v48  ;;  %v11400_v48 = vld [vmem:[#allocation10 + $0x88] sm:$0xff]  }
 0x4df   :  { %v10061_v50 = vadd.f32 %v10060_v9, %v10059_v15  ;;  %6462 = vmatmul.mubr.bf16.gmra.mrb[156].mxu1 %v5105_v38 }
 0x4e0   :  { %11067 = vmatmul.mubr.bf16.vlgmr.msra.gmra.mrb[160].mxu0 %v5219_v30  ;;  %7523 = vmatprep.mubr.bf16.mxu1 %v6867_v52  ;;  %v14161_v49 = vadd.f32 %v10167_v16, %v10055_v35  ;;  %v5197_v35 = vld [vmem:[#allocation2 + $0xf1] sm:$0xff]  ;;  %v5224_v16 = vpack.c.bf16 %v5199_v59, %v5198_v53  ;;  %v11414_v59 = vld [vmem:[#allocation10 + $0xa8] sm:$0xff]  }
 0x4e1   :  { %11070 = vmatprep.mubr.bf16.mxu0 %v5220_v43  ;;  %10595 = vmatpush3.bf16.msra.mxu0 %v11398_v0  ;;  %v5223_v9 = vpack.c.bf16 %v5197_v35, %v5196_v51  ;;  %v6869_v43 = vpack.c.bf16 %v6840_v17, %v6839_v54  ;;  %v11407_v0 = vld [vmem:[#allocation10 + $0x98] sm:$0xff]  }
 0x4e2   :  { %v10168_v45 = vpop.f32.mrb[52].mxu1  ;;  %10596 = vmatprep.subr.bf16.mxu0 %v11399_v19  ;;  %v5200_v19 = vld [vmem:[#allocation2 + $0x129] sm:$0xff]  ;;  %v11415_v54 = vld [vmem:[#allocation10 + $0x118] sm:$0xff]  }
 0x4e3   :  { %v10062_v13 = vpop.f32.mrb[56].mxu0  ;;  %v10169_v21 = vpop.f32.mrb[53].mxu1 }
 0x4e4   :  { %v10063_v55 = vpop.f32.mrb[57].mxu0  ;;  %v10170_v27 = vadd.f32 %v10169_v21, %v10168_v45  ;;  %v10171_v18 = vpop.f32.mrb[54].mxu1 }
 0x4e5   :  { %v10064_v22 = vadd.f32 %v10063_v55, %v10062_v13  ;;  %v10065_v8 = vpop.f32.mrb[58].mxu0  ;;  %v10172_v14 = vpop.f32.mrb[55].mxu1  ;;  %10597 = vmatpush3.bf16.msra.mxu0 %v11400_v48  ;;  %v5201_v55 = vld [vmem:[#allocation2 + $0x131] sm:$0xff]  ;;  %v11412_v48 = vld [vmem:[#allocation10 + $0xe8] sm:$0xff]  }
 0x4e6   :  { %v10066_v3 = vpop.f32.mrb[59].mxu0  ;;  %v10173_v37 = vadd.f32 %v10172_v14, %v10171_v18  ;;  %10598 = vmatprep.subr.bf16.mxu0 %v11401_v42  ;;  %v14163_v11 = vadd.f32 %v10170_v27, %v10058_v56  ;;  %v5202_v27 = vld [vmem:[#allocation2 + $0x149] sm:$0xff] }
 0x4e7   :  { %v10067_v5 = vadd.f32 %v10066_v3, %v10065_v8  ;;  %7524 = vmatmul.mubr.bf16.vlgmr.msra.gmra.mrb[160].mxu1 %v5105_v38  ;;  %v11405_v38 = vld [vmem:[#allocation10 + $0xd8] sm:$0xff]   ;;  %v11410_v8 = vld [vmem:[#allocation10 + $0xa0] sm:$0xff]   ;;  %v11411_v18 = vld [vmem:[#allocation10 + $0x110] sm:$0xff]  }
 0x4e8   :  { %11071 = vmatmul.mubr.bf16.gmra.mrb[164].mxu0 %v5221_v33  ;;  %7531 = vmatprep.mubr.bf16.mxu1 %v6868_v7  ;;  %v14165_v60 = vadd.f32 %v10173_v37, %v10061_v50  ;;  %v14169_v50 = vpack.c.bf16 %v6774_v12, %v6773_v20  ;;  %v6841_v33 = vld [vmem:[#allocation2 + $0x2a8] sm:$0xff]  ;;  %v11413_v37 = vld [vmem:[#allocation10 + $0x158] sm:$0xff]   ;;  %v5225_v20 = vpack.c.bf16 %v5201_v55, %v5200_v19 }
 0x4e9   :  { %11074 = vmatprep.mubr.bf16.mxu0 %v5222_v41  ;;  %10707 = vmatpush3.bf16.msra.mxu1 %v11402_v6  ;;  %v6842_v41 = vld [vmem:[#allocation2 + $0x2b0] sm:$0xff]  ;;  %v11421_v19 = vld [vmem:[#allocation10 + $0x168] sm:$0xff]  }
 0x4ea   :  { %10599 = vmatpush3.bf16.msra.mxu0 %v11403_v34  ;;  %v10174_v2 = vpop.f32.mrb[56].mxu1  ;;  %10708 = vmatprep.subr.bf16.mxu1 %v11404_v47  ;;  %v14176_v34 = vpack.c.bf16 %v6776_v31, %v6775_v62 }
 0x4eb   :  { %v10068_v29 = vpop.f32.mrb[60].mxu0  ;;  %10600 = vmatprep.subr.bf16.mxu0 %v11405_v38  ;;  %v10175_v56 = vpop.f32.mrb[57].mxu1  ;;  %v11416_v38 = vld [vmem:[#allocation10 + $0xf0] sm:$0xff]  }
 0x4ec   :  { %v10069_v10 = vpop.f32.mrb[61].mxu0  ;;  %v10176_v15 = vadd.f32 %v10175_v56, %v10174_v2  ;;  %v10177_v52 = vpop.f32.mrb[58].mxu1  ;;  %v6870_v2 = vpack.c.bf16 %v6842_v41, %v6841_v33 }
 0x4ed   :  { %v14167_v58 = vadd.f32 %v10069_v10, %v10068_v29  ;;  %v10071_v32 = vpop.f32.mrb[62].mxu0  ;;  %v10178_v30 = vpop.f32.mrb[59].mxu1  ;;  %10709 = vmatpush3.bf16.msra.mxu1 %v11406_v23  ;;  %v11417_v10 = vld [vmem:[#allocation10 + $0x160] sm:$0xff]  }
 0x4ee   :  { %v10072_v40 = vpop.f32.mrb[63].mxu0  ;;  %10601 = vmatpush3.bf16.msra.mxu0 %v11407_v0  ;;  %v10179_v45 = vadd.f32 %v10178_v30, %v10177_v52  ;;  %10710 = vmatprep.subr.bf16.mxu1 %v11409_v63  ;;  %v14171_v39 = vadd.f32 %v10176_v15, %v10064_v22  ;;  %v5203_v22 = vld [vmem:[#allocation2 + $0x151] sm:$0xff]  ;;  %v5204_v15 = vld [vmem:[#allocation2 + $0x169] sm:$0xff] }
 0x4ef   :  { %v10073_v13 = vadd.f32 %v10072_v40, %v10071_v32  ;;  %10602 = vmatprep.subr.bf16.mxu0 %v11408_v24  ;;  %7532 = vmatmul.mubr.bf16.gmra.mrb[164].mxu1 %v14169_v50  ;;  %v5226_v29 = vpack.c.bf16 %v5203_v22, %v5202_v27  ;;  %v5205_v32 = vld [vmem:[#allocation2 + $0x171] sm:$0xff]  ;;  %v5206_v30 = vld [vmem:[#allocation2 + $0x189] sm:$0xff] }
 0x4f0   :  { %11075 = vmatmul.mubr.bf16.gmra.mrb[168].mxu0 %v5223_v9  ;;  %7539 = vmatprep.mubr.bf16.mxu1 %v6869_v43  ;;  %v14174_v21 = vadd.f32 %v10179_v45, %v10067_v5  ;;  %v6777_v9 = vld [vmem:[#allocation2 + $0x2a7] sm:$0xff]  ;;  %v6778_v40 = vld [vmem:[#allocation2 + $0x2af] sm:$0xff]  ;;  %v11420_v63 = vld [vmem:[#allocation10 + $0xf8] sm:$0xff]  }
 0x4f1   :  { %11078 = vmatprep.mubr.bf16.mxu0 %v5224_v16  ;;  %10711 = vmatpush3.bf16.msra.mxu1 %v11411_v18  ;;  %v11418_v16 = vld [vmem:[#allocation10 + $0xb0] sm:$0xff]   ;;  %v11419_v43 = vld [vmem:[#allocation10 + $0x120] sm:$0xff]   ;;  %v6843_v45 = vld [vmem:[#allocation2 + $0x2c8] sm:$0xff]  ;;  %v5227_v18 = vpack.c.bf16 %v5205_v32, %v5204_v15  ;;  %v14184_v22 = vpack.c.bf16 %v6778_v40, %v6777_v9 }
 0x4f2   :  { %10603 = vmatpush3.bf16.msra.mxu0 %v11410_v8  ;;  %v10180_v14 = vpop.f32.mrb[60].mxu1  ;;  %10712 = vmatprep.subr.bf16.mxu1 %v11413_v37  ;;  %v6844_v24 = vld [vmem:[#allocation2 + $0x2d0] sm:$0xff]  ;;  %v11423_v37 = vld [vmem:[#allocation10 + $0x128] sm:$0xff]  }
 0x4f3   :  { %v10074_v3 = vpop.f32.mrb[64].mxu0  ;;  %10604 = vmatprep.subr.bf16.mxu0 %v11412_v48  ;;  %v10181_v42 = vpop.f32.mrb[61].mxu1  ;;  %v6871_v41 = vpack.c.bf16 %v6844_v24, %v6843_v45  ;;  %v11422_v48 = vld [vmem:[#allocation10 + $0xb8] sm:$0xff]   ;;  %v6845_v9 = vld [vmem:[#allocation2 + $0x2e8] sm:$0xff]  ;;  %v6846_v40 = vld [vmem:[#allocation2 + $0x2f0] sm:$0xff] }
 0x4f4   :  { %v10075_v7 = vpop.f32.mrb[65].mxu0  ;;  %v10182_v51 = vadd.f32 %v10181_v42, %v10180_v14  ;;  %v10183_v6 = vpop.f32.mrb[62].mxu1 }
 0x4f5   :  { %v10076_v5 = vadd.f32 %v10075_v7, %v10074_v3  ;;  %v10077_v35 = vpop.f32.mrb[66].mxu0  ;;  %v10184_v53 = vpop.f32.mrb[63].mxu1  ;;  %10713 = vmatpush3.bf16.msra.mxu1 %v11415_v54  ;;  %v6780_v54 = vld [vmem:[#allocation2 + $0x2cf] sm:$0xff] }
 0x4f6   :  { %v10078_v12 = vpop.f32.mrb[67].mxu0  ;;  %10605 = vmatpush3.bf16.msra.mxu0 %v11414_v59  ;;  %v10185_v47 = vadd.f32 %v10184_v53, %v10183_v6  ;;  %10714 = vmatprep.subr.bf16.mxu1 %v11417_v10  ;;  %v14179_v56 = vadd.f32 %v10182_v51, %v14167_v58  ;;  %v5207_v58 = vld [vmem:[#allocation2 + $0x191] sm:$0xff] }
 0x4f7   :  { %v10079_v17 = vadd.f32 %v10078_v12, %v10077_v35  ;;  %10606 = vmatprep.subr.bf16.mxu0 %v11416_v38  ;;  %7540 = vmatmul.mubr.bf16.gmra.mrb[168].mxu1 %v14176_v34  ;;  %v5228_v33 = vpack.c.bf16 %v5207_v58, %v5206_v30  ;;  %v11424_v35 = vld [vmem:[#allocation10 + $0x1c0] sm:$0xff]   ;;  %v11425_v6 = vld [vmem:[#allocation10 + $0x170] sm:$0xff]   ;;  %v11427_v10 = vld [vmem:[#allocation10 + $0x178] sm:$0xff]  }
 0x4f8   :  { %11079 = vmatmul.mubr.bf16.gmra.mrb[172].mxu0 %v5225_v20  ;;  %7547 = vmatprep.mubr.bf16.mxu1 %v6870_v2  ;;  %v14182_v52 = vadd.f32 %v10185_v47, %v10073_v13  ;;  %v5208_v12 = vld [vmem:[#allocation2 + $0x1a9] sm:$0xff]  ;;  %v5209_v53 = vld [vmem:[#allocation2 + $0x1b1] sm:$0xff] }
 0x4f9   :  { %11082 = vmatprep.mubr.bf16.mxu0 %v5226_v29  ;;  %10715 = vmatpush3.bf16.msra.mxu1 %v11419_v43  ;;  %v6779_v29 = vld [vmem:[#allocation2 + $0x2c7] sm:$0xff]  ;;  %v11426_v2 = vld [vmem:[#allocation10 + $0x130] sm:$0xff]   ;;  %v5229_v58 = vpack.c.bf16 %v5209_v53, %v5208_v12 }
 0x4fa   :  { %10607 = vmatpush3.bf16.msra.mxu0 %v11418_v16  ;;  %v10186_v0 = vpop.f32.mrb[64].mxu1  ;;  %10716 = vmatprep.subr.bf16.mxu1 %v11421_v19  ;;  %v5210_v47 = vld [vmem:[#allocation2 + $0x1c9] sm:$0xff]  ;;  %v5211_v38 = vld [vmem:[#allocation2 + $0x1d1] sm:$0xff]  ;;  %v14191_v45 = vpack.c.bf16 %v6780_v54, %v6779_v29 }
 0x4fb   :  { %v10080_v23 = vpop.f32.mrb[68].mxu0  ;;  %10608 = vmatprep.subr.bf16.mxu0 %v11420_v63  ;;  %v10187_v62 = vpop.f32.mrb[65].mxu1  ;;  %v5230_v24 = vpack.c.bf16 %v5211_v38, %v5210_v47  ;;  %v11428_v63 = vld [vmem:[#allocation10 + $0x138] sm:$0xff]  }
 0x4fc   :  { %v10081_v55 = vpop.f32.mrb[69].mxu0  ;;  %v10188_v31 = vadd.f32 %v10187_v62, %v10186_v0  ;;  %v10189_v8 = vpop.f32.mrb[66].mxu1 }
 0x4fd   :  { %v10082_v13 = vadd.f32 %v10081_v55, %v10080_v23  ;;  %v10083_v27 = vpop.f32.mrb[70].mxu0  ;;  %v10190_v14 = vpop.f32.mrb[67].mxu1  ;;  %10717 = vmatpush3.bf16.msra.mxu1 %v11423_v37 }
 0x4fe   :  { %v10084_v3 = vpop.f32.mrb[71].mxu0  ;;  %10609 = vmatpush3.bf16.msra.mxu0 %v11422_v48  ;;  %v14186_v7 = vadd.f32 %v10188_v31, %v10076_v5  ;;  %v10191_v51 = vadd.f32 %v10190_v14, %v10189_v8  ;;  %10718 = vmatprep.subr.bf16.mxu1 %v11425_v6  ;;  %v6872_v31 = vpack.c.bf16 %v6846_v40, %v6845_v9  ;;  %v5217_v9 = vld [vmem:[#allocation2 + $0x231] sm:$0xff] }
 0x4ff   :  { %v10085_v42 = vadd.f32 %v10084_v3, %v10083_v27  ;;  %10818 = vmatprep.subr.bf16.mxu0 %v11424_v35  ;;  %7548 = vmatmul.mubr.bf16.gmra.mrb[172].mxu1 %v14184_v22  ;;  %v14195_v27 = vld [vmem:[#allocation10 + $0x200] sm:$0xff]   ;;  %v6848_v35 = vld [vmem:[#allocation2 + $0x310] sm:$0xff] }
 0x500   :  { %11083 = vmatmul.mubr.bf16.gmra.mrb[176].mxu0 %v5227_v18  ;;  %v14189_v20 = vadd.f32 %v10191_v51, %v10079_v17  ;;  %7555 = vmatprep.mubr.bf16.mxu1 %v6871_v41  ;;  %v5212_v18 = vld [vmem:[#allocation2 + $0x1e9] sm:$0xff] }
 0x501   :  { %11086 = vmatprep.mubr.bf16.mxu0 %v5228_v33  ;;  %10719 = vmatpush3.bf16.msra.mxu1 %v11426_v2  ;;  %v5213_v33 = vld [vmem:[#allocation2 + $0x1f1] sm:$0xff]  ;;  %v6847_v51 = vld [vmem:[#allocation2 + $0x308] sm:$0xff] }
 0x502   :  { %v10192_v59 = vpop.f32.mrb[68].mxu1  ;;  %10720 = vmatprep.subr.bf16.mxu1 %v11427_v10  ;;  %v6782_v41 = vld [vmem:[#allocation2 + $0x2ef] sm:$0xff]  ;;  %v6873_v10 = vpack.c.bf16 %v6848_v35, %v6847_v51 }
 0x503   :  { %v10086_v5 = vpop.f32.mrb[72].mxu0  ;;  %v10193_v32 = vpop.f32.mrb[69].mxu1  ;;  %v6900_v51 = vld [vmem:[#allocation2 + $0x251] sm:$0xff] }
 0x504   :  { %v10087_v15 = vpop.f32.mrb[73].mxu0  ;;  %v10194_v30 = vadd.f32 %v10193_v32, %v10192_v59  ;;  %v10195_v43 = vpop.f32.mrb[70].mxu1  ;;  %v5216_v32 = vld [vmem:[#allocation2 + $0x229] sm:$0xff] }
 0x505   :  { %v10088_v17 = vadd.f32 %v10087_v15, %v10086_v5  ;;  %v10089_v16 = vpop.f32.mrb[74].mxu0  ;;  %v10196_v0 = vpop.f32.mrb[71].mxu1  ;;  %10721 = vmatpush3.bf16.msra.mxu1 %v11428_v63 }
 0x506   :  { %v10090_v23 = vpop.f32.mrb[75].mxu0  ;;  %v14193_v19 = vadd.f32 %v10194_v30, %v10082_v13  ;;  %v10197_v62 = vadd.f32 %v10196_v0, %v10195_v43  ;;  %11098 = vmatprep.subr.bf16.mxu1 %v14195_v27  ;;  %v6781_v13 = vld [vmem:[#allocation2 + $0x2e7] sm:$0xff]  ;;  %v6784_v43 = vld [vmem:[#allocation2 + $0x30f] sm:$0xff]  ;;  %v5233_v0 = vpack.c.bf16 %v5217_v9, %v5216_v32 }
 0x507   :  { %v10091_v55 = vadd.f32 %v10090_v23, %v10089_v16  ;;  %7556 = vmatmul.mubr.bf16.gmra.mrb[176].mxu1 %v14191_v45  ;;  %v14201_v59 = vpack.c.bf16 %v6782_v41, %v6781_v13  ;;  %v6783_v16 = vld [vmem:[#allocation2 + $0x307] sm:$0xff] }
 0x508   :  { %11087 = vmatmul.mubr.bf16.gmra.mrb[180].mxu0 %v5229_v58  ;;  %v14199_v8 = vadd.f32 %v10197_v62, %v10085_v42  ;;  %7563 = vmatprep.mubr.bf16.mxu1 %v6872_v31  ;;  %v5231_v42 = vpack.c.bf16 %v5213_v33, %v5212_v18  ;;  %v6849_v58 = vld [vmem:[#allocation2 + $0x328] sm:$0xff] }
 0x509   :  { %11090 = vmatprep.mubr.bf16.mxu0 %v5230_v24  ;;  %v6850_v24 = vld [vmem:[#allocation2 + $0x330] sm:$0xff] }
 0x50a   :  { %v10198_v14 = vpop.f32.mrb[72].mxu1  ;;  %v6874_v41 = vpack.c.bf16 %v6850_v24, %v6849_v58  ;;  %v6787_v58 = vld [vmem:[#allocation2 + $0x347] sm:$0xff] }
 0x50b   :  { %v10092_v3 = vpop.f32.mrb[76].mxu0  ;;  %v10199_v37 = vpop.f32.mrb[73].mxu1  ;;  %v11430_v24 = vld [vmem:[#allocation10 + $0x180] sm:$0xff]  }
 0x50c   :  { %v10093_v48 = vpop.f32.mrb[77].mxu0  ;;  %v10200_v12 = vadd.f32 %v10199_v37, %v10198_v14  ;;  %v10201_v29 = vpop.f32.mrb[74].mxu1  ;;  %v14209_v14 = vpack.c.bf16 %v6784_v43, %v6783_v16  ;;  %v6899_v37 = vld [vmem:[#allocation2 + $0x249] sm:$0xff] }
 0x50d   :  { %v10094_v6 = vadd.f32 %v10093_v48, %v10092_v3  ;;  %v10095_v53 = vpop.f32.mrb[78].mxu0  ;;  %v10202_v5 = vpop.f32.mrb[75].mxu1 }
 0x50e   :  { %v10096_v2 = vpop.f32.mrb[79].mxu0  ;;  %v14203_v54 = vadd.f32 %v10200_v12, %v10088_v17  ;;  %v10203_v38 = vadd.f32 %v10202_v5, %v10201_v29  ;;  %v6786_v29 = vld [vmem:[#allocation2 + $0x32f] sm:$0xff]  ;;  %v6931_v5 = vpack.c.bf16 %v6900_v51, %v6899_v37 }
 0x50f   :  { %v10097_v47 = vadd.f32 %v10096_v2, %v10095_v53  ;;  %7564 = vmatmul.mubr.bf16.gmra.mrb[180].mxu1 %v14201_v59  ;;  %v6785_v53 = vld [vmem:[#allocation2 + $0x327] sm:$0xff]  ;;  %v6854_v51 = vld [vmem:[#allocation2 + $0x370] sm:$0xff] }
 0x510   :  { %11091 = vmatmul.mubr.bf16.gmra.mrb[184].mxu0 %v5231_v42  ;;  %v14206_v15 = vadd.f32 %v10203_v38, %v10091_v55  ;;  %7571 = vmatprep.mubr.bf16.mxu1 %v6873_v10  ;;  %v6851_v42 = vld [vmem:[#allocation2 + $0x348] sm:$0xff]  ;;  %v6852_v38 = vld [vmem:[#allocation2 + $0x350] sm:$0xff]  ;;  %v14217_v16 = vpack.c.bf16 %v6786_v29, %v6785_v53 }
 0x511   :  { %11094 = vmatprep.mubr.bf16.mxu0 %v14146_v28  ;;  %v6853_v37 = vld [vmem:[#allocation2 + $0x368] sm:$0xff] }
 0x512   :  { %v10204_v30 = vpop.f32.mrb[76].mxu1 }
 0x513   :  { %v10098_v40 = vpop.f32.mrb[80].mxu0  ;;  %v10205_v17 = vpop.f32.mrb[77].mxu1 }
 0x514   :  { %v10099_v23 = vpop.f32.mrb[81].mxu0  ;;  %v10206_v62 = vadd.f32 %v10205_v17, %v10204_v30  ;;  %v10207_v18 = vpop.f32.mrb[78].mxu1  ;;  %v6875_v17 = vpack.c.bf16 %v6852_v38, %v6851_v42 }
 0x515   :  { %v10100_v63 = vadd.f32 %v10099_v23, %v10098_v40  ;;  %v10101_v31 = vpop.f32.mrb[82].mxu0  ;;  %v10208_v3 = vpop.f32.mrb[79].mxu1 }
 0x516   :  { %v10102_v55 = vpop.f32.mrb[83].mxu0  ;;  %v14211_v28 = vadd.f32 %v10206_v62, %v10094_v6  ;;  %v10209_v13 = vadd.f32 %v10208_v3, %v10207_v18  ;;  %v6788_v18 = vld [vmem:[#allocation2 + $0x34f] sm:$0xff] }
 0x517   :  { %v10103_v33 = vadd.f32 %v10102_v55, %v10101_v31  ;;  %7572 = vmatmul.mubr.bf16.gmra.mrb[184].mxu1 %v14209_v14  ;;  %v6901_v55 = vld [vmem:[#allocation2 + $0x269] sm:$0xff] }
 0x518   :  { %11095 = vmatmul.mubr.bf16.gmra.mrb[188].mxu0 %v5233_v0  ;;  %v14214_v48 = vadd.f32 %v10209_v13, %v10097_v47  ;;  %7579 = vmatprep.mubr.bf16.mxu1 %v6874_v41  ;;  %v11431_v3 = vld [vmem:[#allocation10 + $0x1c8] sm:$0xff]  }
 0x519   :  { %7684 = vmatprep.mubr.bf16.mxu0 %v14169_v50 }
 0x51a   :  { %v10210_v12 = vpop.f32.mrb[80].mxu1 }
 0x51b   :  { %v10104_v35 = vpop.f32.mrb[84].mxu0  ;;  %v10211_v6 = vpop.f32.mrb[81].mxu1 }
 0x51c   :  { %v10105_v2 = vpop.f32.mrb[85].mxu0  ;;  %v10212_v32 = vadd.f32 %v10211_v6, %v10210_v12  ;;  %v10213_v40 = vpop.f32.mrb[82].mxu1 }
 0x51d   :  { %v10106_v10 = vadd.f32 %v10105_v2, %v10104_v35  ;;  %v10107_v9 = vpop.f32.mrb[86].mxu0  ;;  %v10214_v30 = vpop.f32.mrb[83].mxu1  ;;  %v14225_v2 = vpack.c.bf16 %v6788_v18, %v6787_v58  ;;  %v6790_v58 = vld [vmem:[#allocation2 + $0x36f] sm:$0xff] }
 0x51e   :  { %v10108_v47 = vpop.f32.mrb[87].mxu0  ;;  %v14219_v50 = vadd.f32 %v10212_v32, %v10100_v63  ;;  %v10215_v23 = vadd.f32 %v10214_v30, %v10213_v40  ;;  %v6902_v63 = vld [vmem:[#allocation2 + $0x271] sm:$0xff]  ;;  %v6789_v30 = vld [vmem:[#allocation2 + $0x367] sm:$0xff] }
 0x51f   :  { %v10109_v43 = vadd.f32 %v10108_v47, %v10107_v9  ;;  %7580 = vmatmul.mubr.bf16.gmra.mrb[188].mxu1 %v14217_v16  ;;  %v14227_v6 = vpack.c.bf16 %v6902_v63, %v6901_v55  ;;  %v6876_v9 = vpack.c.bf16 %v6854_v51, %v6853_v37  ;;  %v11433_v40 = vld [vmem:[#allocation10 + $0x1d0] sm:$0xff]   ;;  %v6855_v63 = vld [vmem:[#allocation2 + $0x388] sm:$0xff] }
 0x520   :  { %7685 = vmatmul.mubr.bf16.vlgmr.msra.gmra.mrb[192].mxu0 %v6931_v5  ;;  %v14222_v0 = vadd.f32 %v10215_v23, %v10103_v33  ;;  %7587 = vmatprep.mubr.bf16.mxu1 %v6875_v17  ;;  %v11432_v5 = vld [vmem:[#allocation10 + $0x188] sm:$0xff]   ;;  %v11434_v23 = vld [vmem:[#allocation10 + $0x190] sm:$0xff]  }
 0x521   :  { %7692 = vmatprep.mubr.bf16.mxu0 %v14176_v34  ;;  %10819 = vmatpush3.bf16.msra.mxu0 %v11430_v24  ;;  %v6903_v24 = vld [vmem:[#allocation2 + $0x289] sm:$0xff] }
 0x522   :  { %v10216_v31 = vpop.f32.mrb[84].mxu1  ;;  %10820 = vmatprep.subr.bf16.mxu0 %v11431_v3  ;;  %v6856_v3 = vld [vmem:[#allocation2 + $0x390] sm:$0xff] }
 0x523   :  { %v10110_v62 = vpop.f32.mrb[88].mxu0  ;;  %v10217_v41 = vpop.f32.mrb[85].mxu1 }
 0x524   :  { %v10111_v13 = vpop.f32.mrb[89].mxu0  ;;  %v10218_v33 = vadd.f32 %v10217_v41, %v10216_v31  ;;  %v10219_v53 = vpop.f32.mrb[86].mxu1  ;;  %v11435_v31 = vld [vmem:[#allocation10 + $0x1d8] sm:$0xff]  }
 0x525   :  { %v10112_v35 = vadd.f32 %v10111_v13, %v10110_v62  ;;  %v10113_v12 = vpop.f32.mrb[90].mxu0  ;;  %v10220_v34 = vpop.f32.mrb[87].mxu1  ;;  %10821 = vmatpush3.bf16.msra.mxu0 %v11432_v5  ;;  %v6904_v62 = vld [vmem:[#allocation2 + $0x291] sm:$0xff] }
 0x526   :  { %v10114_v29 = vpop.f32.mrb[91].mxu0  ;;  %v14229_v42 = vadd.f32 %v10218_v33, %v10106_v10  ;;  %v10221_v32 = vadd.f32 %v10220_v34, %v10219_v53  ;;  %10822 = vmatprep.subr.bf16.mxu0 %v11433_v40  ;;  %v14236_v33 = vpack.c.bf16 %v6790_v58, %v6789_v30  ;;  %v11436_v53 = vld [vmem:[#allocation10 + $0x198] sm:$0xff]   ;;  %v6791_v30 = vld [vmem:[#allocation2 + $0x387] sm:$0xff] }
 0x527   :  { %v10115_v38 = vadd.f32 %v10114_v29, %v10113_v12  ;;  %7588 = vmatmul.mubr.bf16.gmra.mrb[192].mxu1 %v14225_v2  ;;  %v14238_v12 = vpack.c.bf16 %v6904_v62, %v6903_v24  ;;  %v6906_v24 = vld [vmem:[#allocation2 + $0x2b1] sm:$0xff]  ;;  %v6857_v62 = vld [vmem:[#allocation2 + $0x3a8] sm:$0xff] }
 0x528   :  { %7693 = vmatmul.mubr.bf16.gmra.mrb[196].mxu0 %v14227_v6  ;;  %v14233_v47 = vadd.f32 %v10221_v32, %v10109_v43  ;;  %7595 = vmatprep.mubr.bf16.mxu1 %v6876_v9  ;;  %v6877_v32 = vpack.c.bf16 %v6856_v3, %v6855_v63  ;;  %v11437_v9 = vld [vmem:[#allocation10 + $0x1e0] sm:$0xff]  }
 0x529   :  { %7700 = vmatprep.mubr.bf16.mxu0 %v14184_v22  ;;  %10823 = vmatpush3.bf16.msra.mxu0 %v11434_v23  ;;  %v6792_v23 = vld [vmem:[#allocation2 + $0x38f] sm:$0xff] }
 0x52a   :  { %v10222_v10 = vpop.f32.mrb[88].mxu1  ;;  %10824 = vmatprep.subr.bf16.mxu0 %v11435_v31  ;;  %v6858_v31 = vld [vmem:[#allocation2 + $0x3b0] sm:$0xff] }
 0x52b   :  { %v10116_v17 = vpop.f32.mrb[92].mxu0  ;;  %v10223_v55 = vpop.f32.mrb[89].mxu1 }
 0x52c   :  { %v10117_v18 = vpop.f32.mrb[93].mxu0  ;;  %v10224_v43 = vadd.f32 %v10223_v55, %v10222_v10  ;;  %v10225_v37 = vpop.f32.mrb[90].mxu1  ;;  %v11438_v10 = vld [vmem:[#allocation10 + $0x1a0] sm:$0xff]  }
 0x52d   :  { %v10118_v13 = vadd.f32 %v10117_v18, %v10116_v17  ;;  %v10119_v41 = vpop.f32.mrb[94].mxu0  ;;  %v10226_v22 = vpop.f32.mrb[91].mxu1  ;;  %10825 = vmatpush3.bf16.msra.mxu0 %v11436_v53  ;;  %v6905_v17 = vld [vmem:[#allocation2 + $0x2a9] sm:$0xff]  ;;  %v6878_v53 = vpack.c.bf16 %v6858_v31, %v6857_v62  ;;  %v6908_v62 = vld [vmem:[#allocation2 + $0x2d1] sm:$0xff] }
 0x52e   :  { %v10120_v51 = vpop.f32.mrb[95].mxu0  ;;  %v14240_v29 = vadd.f32 %v10224_v43, %v10112_v35  ;;  %v10227_v5 = vadd.f32 %v10226_v22, %v10225_v37  ;;  %10826 = vmatprep.subr.bf16.mxu0 %v11437_v9  ;;  %v11439_v18 = vld [vmem:[#allocation10 + $0x1e8] sm:$0xff]   ;;  %v14249_v22 = vpack.c.bf16 %v6906_v24, %v6905_v17  ;;  %v6860_v31 = vld [vmem:[#allocation2 + $0x3d0] sm:$0xff] }
 0x52f   :  { %v10121_v34 = vadd.f32 %v10120_v51, %v10119_v41  ;;  %7596 = vmatmul.mubr.bf16.gmra.mrb[196].mxu1 %v14236_v33  ;;  %v14247_v51 = vpack.c.bf16 %v6792_v23, %v6791_v30  ;;  %v6793_v23 = vld [vmem:[#allocation2 + $0x3a7] sm:$0xff] }
 0x530   :  { %7701 = vmatmul.mubr.bf16.gmra.mrb[200].mxu0 %v14238_v12  ;;  %v14244_v40 = vadd.f32 %v10227_v5, %v10115_v38  ;;  %7603 = vmatprep.mubr.bf16.mxu1 %v6877_v32  ;;  %v11440_v5 = vld [vmem:[#allocation10 + $0x1a8] sm:$0xff]  }
 0x531   :  { %7708 = vmatprep.mubr.bf16.mxu0 %v14191_v45  ;;  %10827 = vmatpush3.bf16.msra.mxu0 %v11438_v10  ;;  %v6907_v17 = vld [vmem:[#allocation2 + $0x2c9] sm:$0xff] }
 0x532   :  { %16312 = vst [vmem:[#allocation28_spill] sm:$0xff] %v14244_v40  ;;  %v10228_v35 = vpop.f32.mrb[92].mxu1  ;;  %10828 = vmatprep.subr.bf16.mxu0 %v11439_v18  ;;  %v11441_v40 = vld [vmem:[#allocation10 + $0x1f0] sm:$0xff]  }
 0x533   :  { %v10250_v58 = vpop.f32.mrb[96].mxu0  ;;  %v10229_v55 = vpop.f32.mrb[93].mxu1 }
 0x534   :  { %v10251_v63 = vpop.f32.mrb[97].mxu0  ;;  %v10230_v3 = vadd.f32 %v10229_v55, %v10228_v35  ;;  %v10231_v43 = vpop.f32.mrb[94].mxu1  ;;  %v11443_v55 = vld [vmem:[#allocation10 + $0x1f8] sm:$0xff]  }
 0x535   :  { %v10252_v38 = vadd.f32 %v10251_v63, %v10250_v58  ;;  %v10253_v41 = vpop.f32.mrb[98].mxu0  ;;  %v10232_v37 = vpop.f32.mrb[95].mxu1  ;;  %10829 = vmatpush3.bf16.msra.mxu0 %v11440_v5  ;;  %v11442_v58 = vld [vmem:[#allocation10 + $0x1b0] sm:$0xff]   ;;  %v11444_v5 = vld [vmem:[#allocation10 + $0x1b8] sm:$0xff]  }
 0x536   :  { %v10254_v45 = vpop.f32.mrb[99].mxu0  ;;  %v14251_v32 = vadd.f32 %v10230_v3, %v10118_v13  ;;  %v10233_v10 = vadd.f32 %v10232_v37, %v10231_v43  ;;  %10830 = vmatprep.subr.bf16.mxu0 %v11441_v40  ;;  %v6794_v13 = vld [vmem:[#allocation2 + $0x3af] sm:$0xff] }
 0x537   :  { %v6183_v9 = vadd.f32 %v10252_v38, %v14133_v57  ;;  %v10255_v18 = vadd.f32 %v10254_v45, %v10253_v41  ;;  %7604 = vmatmul.mubr.bf16.gmra.mrb[200].mxu1 %v14247_v51  ;;  %v6859_v40 = vld [vmem:[#allocation2 + $0x3c8] sm:$0xff]  ;;  %v14260_v37 = vpack.c.bf16 %v6794_v13, %v6793_v23  ;;  %v14262_v45 = vpack.c.bf16 %v6908_v62, %v6907_v17 }
 0x538   :  { %7709 = vmatmul.mubr.bf16.gmra.mrb[204].mxu0 %v14249_v22  ;;  %v14256_v35 = vadd.f32 %v10233_v10, %v10121_v34  ;;  %7611 = vmatprep.mubr.bf16.mxu1 %v6878_v53  ;;  %v6879_v53 = vpack.c.bf16 %v6860_v31, %v6859_v40  ;;  %v6795_v13 = vld [vmem:[#allocation2 + $0x3c7] sm:$0xff]  ;;  %v6796_v17 = vld [vmem:[#allocation2 + $0x3cf] sm:$0xff] }
 0x539   :  { %v6186_v30 = vadd.f32 %v10255_v18, %v14138_v1  ;;  %7716 = vmatprep.mubr.bf16.mxu0 %v14201_v59  ;;  %10831 = vmatpush3.bf16.msra.mxu0 %v11442_v58  ;;  %v6910_v40 = vld [vmem:[#allocation2 + $0x2f1] sm:$0xff]  ;;  %v6861_v31 = vld [vmem:[#allocation2 + $0x3e8] sm:$0xff] }
 0x53a   :  { %v10362_v24 = vpop.f32.mrb[96].mxu1  ;;  %10832 = vmatprep.subr.bf16.mxu0 %v11443_v55 }
 0x53b   :  { %v10256_v57 = vpop.f32.mrb[100].mxu0  ;;  %v10363_v34 = vpop.f32.mrb[97].mxu1 }
 0x53c   :  { %v10257_v63 = vpop.f32.mrb[101].mxu0  ;;  %v10364_v38 = vadd.f32 %v10363_v34, %v10362_v24  ;;  %v10365_v43 = vpop.f32.mrb[98].mxu1  ;;  %v6909_v24 = vld [vmem:[#allocation2 + $0x2e9] sm:$0xff] }
 0x53d   :  { %v10258_v3 = vadd.f32 %v10257_v63, %v10256_v57  ;;  %v10259_v1 = vpop.f32.mrb[102].mxu0  ;;  %v10366_v59 = vpop.f32.mrb[99].mxu1  ;;  %10833 = vmatpush3.bf16.msra.mxu0 %v11444_v5 }
 0x53e   :  { %v10260_v41 = vpop.f32.mrb[103].mxu0  ;;  %v10367_v58 = vadd.f32 %v10366_v59, %v10365_v43  ;;  %v14265_v55 = vadd.f32 %v10364_v38, %v6183_v9  ;;  %v6862_v9 = vld [vmem:[#allocation2 + $0x3f0] sm:$0xff]  ;;  %v14273_v59 = vpack.c.bf16 %v6796_v17, %v6795_v13  ;;  %v6797_v17 = vld [vmem:[#allocation2 + $0x3e7] sm:$0xff] }
 0x53f   :  { %v6191_v10 = vadd.f32 %v10258_v3, %v14140_v46  ;;  %v10261_v18 = vadd.f32 %v10260_v41, %v10259_v1  ;;  %7612 = vmatmul.mubr.bf16.gmra.mrb[204].mxu1 %v14260_v37 }
 0x540   :  { %7717 = vmatmul.mubr.bf16.gmra.mrb[208].mxu0 %v14262_v45  ;;  %7619 = vmatprep.mubr.bf16.mxu1 %v6879_v53  ;;  %v14271_v23 = vadd.f32 %v10367_v58, %v6186_v30  ;;  %v6880_v30 = vpack.c.bf16 %v6862_v9, %v6861_v31  ;;  %v6912_v31 = vld [vmem:[#allocation2 + $0x311] sm:$0xff]  ;;  %v6863_v9 = vld [vmem:[#allocation2 + $0x408] sm:$0xff] }
 0x541   :  { %v6194_v57 = vadd.f32 %v10261_v18, %v14144_v44  ;;  %7724 = vmatprep.mubr.bf16.mxu0 %v14209_v14  ;;  %v14275_v14 = vpack.c.bf16 %v6910_v40, %v6909_v24  ;;  %v6798_v24 = vld [vmem:[#allocation2 + $0x3ef] sm:$0xff] }
 0x542   :  { %16313 = vst [vmem:[#allocation27_spill] sm:$0xff] %v14271_v23  ;;  %v10368_v46 = vpop.f32.mrb[100].mxu1 }
 0x543   :  { %v10262_v62 = vpop.f32.mrb[104].mxu0  ;;  %v10369_v34 = vpop.f32.mrb[101].mxu1 }
 0x544   :  { %v10263_v63 = vpop.f32.mrb[105].mxu0  ;;  %v10370_v38 = vadd.f32 %v10369_v34, %v10368_v46  ;;  %v10371_v43 = vpop.f32.mrb[102].mxu1  ;;  %v6911_v46 = vld [vmem:[#allocation2 + $0x309] sm:$0xff] }
 0x545   :  { %v10264_v3 = vadd.f32 %v10263_v63, %v10262_v62  ;;  %v10265_v1 = vpop.f32.mrb[106].mxu0  ;;  %v10372_v41 = vpop.f32.mrb[103].mxu1 }
 0x546   :  { %v10266_v44 = vpop.f32.mrb[107].mxu0  ;;  %v10373_v18 = vadd.f32 %v10372_v41, %v10371_v43  ;;  %v14278_v58 = vadd.f32 %v10370_v38, %v6191_v10  ;;  %v6864_v10 = vld [vmem:[#allocation2 + $0x410] sm:$0xff]  ;;  %v14286_v41 = vpack.c.bf16 %v6798_v24, %v6797_v17  ;;  %v6799_v24 = vld [vmem:[#allocation2 + $0x407] sm:$0xff] }
 0x547   :  { %v6199_v53 = vadd.f32 %v10264_v3, %v14148_v26  ;;  %v10267_v5 = vadd.f32 %v10266_v44, %v10265_v1  ;;  %7620 = vmatmul.mubr.bf16.gmra.mrb[208].mxu1 %v14273_v59 }
 0x548   :  { %7725 = vmatmul.mubr.bf16.gmra.mrb[212].mxu0 %v14275_v14  ;;  %7627 = vmatprep.mubr.bf16.mxu1 %v6880_v30  ;;  %v14284_v13 = vadd.f32 %v10373_v18, %v6194_v57  ;;  %v6881_v57 = vpack.c.bf16 %v6864_v10, %v6863_v9  ;;  %v6913_v9 = vld [vmem:[#allocation2 + $0x329] sm:$0xff]  ;;  %v6914_v10 = vld [vmem:[#allocation2 + $0x331] sm:$0xff] }
 0x549   :  { %v6202_v62 = vadd.f32 %v10267_v5, %v14152_v4  ;;  %7732 = vmatprep.mubr.bf16.mxu0 %v14217_v16  ;;  %v14288_v16 = vpack.c.bf16 %v6912_v31, %v6911_v46  ;;  %v6800_v46 = vld [vmem:[#allocation2 + $0x40f] sm:$0xff] }
 0x54a   :  { %v10374_v26 = vpop.f32.mrb[104].mxu1 }
 0x54b   :  { %v10268_v40 = vpop.f32.mrb[108].mxu0  ;;  %v10375_v34 = vpop.f32.mrb[105].mxu1 }
 0x54c   :  { %v10269_v63 = vpop.f32.mrb[109].mxu0  ;;  %v10376_v38 = vadd.f32 %v10375_v34, %v10374_v26  ;;  %v10377_v43 = vpop.f32.mrb[106].mxu1  ;;  %v6866_v26 = vld [vmem:[#allocation2 + $0x430] sm:$0xff] }
 0x54d   :  { %v10270_v3 = vadd.f32 %v10269_v63, %v10268_v40  ;;  %v10271_v1 = vpop.f32.mrb[110].mxu0  ;;  %v10378_v44 = vpop.f32.mrb[107].mxu1 }
 0x54e   :  { %v10272_v4 = vpop.f32.mrb[111].mxu0  ;;  %v10379_v18 = vadd.f32 %v10378_v44, %v10377_v43  ;;  %v14291_v23 = vadd.f32 %v10376_v38, %v6199_v53  ;;  %v6865_v53 = vld [vmem:[#allocation2 + $0x428] sm:$0xff]  ;;  %v14299_v44 = vpack.c.bf16 %v6800_v46, %v6799_v24 }
 0x54f   :  { %v6207_v30 = vadd.f32 %v10270_v3, %v14154_v61  ;;  %v10273_v5 = vadd.f32 %v10272_v4, %v10271_v1  ;;  %7628 = vmatmul.mubr.bf16.gmra.mrb[212].mxu1 %v14286_v41  ;;  %v6801_v46 = vld [vmem:[#allocation2 + $0x427] sm:$0xff] }
 0x550   :  { %7733 = vmatmul.mubr.bf16.gmra.mrb[216].mxu0 %v14288_v16  ;;  %7635 = vmatprep.mubr.bf16.mxu1 %v6881_v57  ;;  %v14297_v17 = vadd.f32 %v10379_v18, %v6202_v62  ;;  %v6882_v62 = vpack.c.bf16 %v6866_v26, %v6865_v53 }
 0x551   :  { %v6210_v40 = vadd.f32 %v10273_v5, %v14157_v25  ;;  %7740 = vmatprep.mubr.bf16.mxu0 %v14225_v2  ;;  %v14301_v2 = vpack.c.bf16 %v6914_v10, %v6913_v9  ;;  %v6802_v9 = vld [vmem:[#allocation2 + $0x42f] sm:$0xff] }
 0x552   :  { %16314 = vst [vmem:[#allocation25_spill] sm:$0xff] %v14297_v17  ;;  %v10380_v61 = vpop.f32.mrb[108].mxu1  ;;  %v6916_v10 = vld [vmem:[#allocation2 + $0x351] sm:$0xff] }
 0x553   :  { %v10274_v31 = vpop.f32.mrb[112].mxu0  ;;  %v10381_v34 = vpop.f32.mrb[109].mxu1 }
 0x554   :  { %v10275_v63 = vpop.f32.mrb[113].mxu0  ;;  %v10382_v38 = vadd.f32 %v10381_v34, %v10380_v61  ;;  %v10383_v43 = vpop.f32.mrb[110].mxu1 }
 0x555   :  { %v10276_v3 = vadd.f32 %v10275_v63, %v10274_v31  ;;  %v10277_v1 = vpop.f32.mrb[114].mxu0  ;;  %v10384_v4 = vpop.f32.mrb[111].mxu1 }
 0x556   :  { %v10278_v25 = vpop.f32.mrb[115].mxu0  ;;  %v10385_v18 = vadd.f32 %v10384_v4, %v10383_v43  ;;  %v14304_v17 = vadd.f32 %v10382_v38, %v6207_v30 }
 0x557   :  { %v6215_v57 = vadd.f32 %v10276_v3, %v14159_v36  ;;  %v10279_v5 = vadd.f32 %v10278_v25, %v10277_v1  ;;  %7636 = vmatmul.mubr.bf16.gmra.mrb[216].mxu1 %v14299_v44  ;;  %v6915_v36 = vld [vmem:[#allocation2 + $0x349] sm:$0xff] }
 0x558   :  { %7741 = vmatmul.mubr.bf16.gmra.mrb[220].mxu0 %v14301_v2  ;;  %7643 = vmatprep.mubr.bf16.mxu1 %v6882_v62  ;;  %v14310_v24 = vadd.f32 %v10385_v18, %v6210_v40  ;;  %v14314_v25 = vpack.c.bf16 %v6916_v10, %v6915_v36  ;;  %v7028_v36 = vld [vmem:[#allocation2 + $0x270] sm:$0xff] }
 0x559   :  { %v6218_v31 = vadd.f32 %v10279_v5, %v14161_v49  ;;  %7748 = vmatprep.mubr.bf16.mxu0 %v14236_v33  ;;  %v14312_v49 = vpack.c.bf16 %v6802_v9, %v6801_v46  ;;  %v6917_v46 = vld [vmem:[#allocation2 + $0x369] sm:$0xff] }
 0x55a   :  { %v10386_v26 = vpop.f32.mrb[112].mxu1  ;;  %v7027_v9 = vld [vmem:[#allocation2 + $0x268] sm:$0xff] }
 0x55b   :  { %v10280_v61 = vpop.f32.mrb[116].mxu0  ;;  %v10387_v30 = vpop.f32.mrb[113].mxu1 }
 0x55c   :  { %v10281_v53 = vpop.f32.mrb[117].mxu0  ;;  %v10388_v34 = vadd.f32 %v10387_v30, %v10386_v26  ;;  %v10389_v38 = vpop.f32.mrb[114].mxu1 }
 0x55d   :  { %v10282_v63 = vadd.f32 %v10281_v53, %v10280_v61  ;;  %v10283_v3 = vpop.f32.mrb[118].mxu0  ;;  %v10390_v43 = vpop.f32.mrb[115].mxu1 }
 0x55e   :  { %v10284_v1 = vpop.f32.mrb[119].mxu0  ;;  %v10391_v4 = vadd.f32 %v10390_v43, %v10389_v38  ;;  %v14317_v62 = vadd.f32 %v10388_v34, %v6215_v57 }
 0x55f   :  { %v6223_v33 = vadd.f32 %v10282_v63, %v14163_v11  ;;  %v10285_v40 = vadd.f32 %v10284_v1, %v10283_v3  ;;  %7644 = vmatmul.mubr.bf16.gmra.mrb[220].mxu1 %v14312_v49  ;;  %v6918_v11 = vld [vmem:[#allocation2 + $0x371] sm:$0xff] }
 0x560   :  { %7749 = vmatmul.mubr.bf16.gmra.mrb[224].mxu0 %v14314_v25  ;;  %7845 = vmatprep.mubr.bf16.mxu1 %v14227_v6  ;;  %v14324_v18 = vadd.f32 %v10391_v4, %v6218_v31  ;;  %v14326_v38 = vpack.c.bf16 %v6918_v11, %v6917_v46  ;;  %v6919_v46 = vld [vmem:[#allocation2 + $0x389] sm:$0xff] }
 0x561   :  { %v6226_v5 = vadd.f32 %v10285_v40, %v14165_v60  ;;  %7756 = vmatprep.mubr.bf16.mxu0 %v14247_v51  ;;  %v7059_v51 = vpack.c.bf16 %v7028_v36, %v7027_v9  ;;  %v7029_v11 = vld [vmem:[#allocation2 + $0x288] sm:$0xff] }
 0x562   :  { %v10392_v26 = vpop.f32.mrb[116].mxu1  ;;  %v11445_v9 = vld [vmem:[#allocation10 + $0x208] sm:$0xff]  }
 0x563   :  { %v10286_v61 = vpop.f32.mrb[120].mxu0  ;;  %v10393_v10 = vpop.f32.mrb[117].mxu1 }
 0x564   :  { %v10287_v57 = vpop.f32.mrb[121].mxu0  ;;  %v10394_v30 = vadd.f32 %v10393_v10, %v10392_v26  ;;  %v10395_v34 = vpop.f32.mrb[118].mxu1  ;;  %v6920_v26 = vld [vmem:[#allocation2 + $0x391] sm:$0xff] }
 0x565   :  { %v10288_v53 = vadd.f32 %v10287_v57, %v10286_v61  ;;  %v10289_v63 = vpop.f32.mrb[122].mxu0  ;;  %v10396_v60 = vpop.f32.mrb[119].mxu1 }
 0x566   :  { %v10290_v3 = vpop.f32.mrb[123].mxu0  ;;  %v10397_v1 = vadd.f32 %v10396_v60, %v10395_v34  ;;  %v14329_v43 = vadd.f32 %v10394_v30, %v6223_v33  ;;  %v7030_v33 = vld [vmem:[#allocation2 + $0x290] sm:$0xff] }
 0x567   :  { %v6231_v6 = vadd.f32 %v10288_v53, %v14171_v39  ;;  %v10291_v31 = vadd.f32 %v10290_v3, %v10289_v63  ;;  %7846 = vmatmul.mubr.bf16.vlgmr.msra.gmra.mrb[224].mxu1 %v7059_v51  ;;  %v14340_v63 = vpack.c.bf16 %v7030_v33, %v7029_v11  ;;  %v11446_v60 = vld [vmem:[#allocation10 + $0x210] sm:$0xff]   ;;  %v11447_v11 = vld [vmem:[#allocation10 + $0x218] sm:$0xff]  }
 0x568   :  { %7757 = vmatmul.mubr.bf16.gmra.mrb[228].mxu0 %v14326_v38  ;;  %7853 = vmatprep.mubr.bf16.mxu1 %v14238_v12  ;;  %v14335_v4 = vadd.f32 %v10397_v1, %v6226_v5  ;;  %v14338_v5 = vpack.c.bf16 %v6920_v26, %v6919_v46  ;;  %v6921_v46 = vld [vmem:[#allocation2 + $0x3a9] sm:$0xff] }
 0x569   :  { %v6234_v40 = vadd.f32 %v10291_v31, %v14174_v21  ;;  %7764 = vmatprep.mubr.bf16.mxu0 %v14260_v37  ;;  %11099 = vmatpush3.bf16.msra.mxu1 %v14195_v27  ;;  %v7031_v26 = vld [vmem:[#allocation2 + $0x2a8] sm:$0xff] }
 0x56a   :  { %v10398_v39 = vpop.f32.mrb[120].mxu1  ;;  %11100 = vmatprep.subr.bf16.mxu1 %v11445_v9 }
 0x56b   :  { %v10292_v61 = vpop.f32.mrb[124].mxu0  ;;  %v10399_v57 = vpop.f32.mrb[121].mxu1 }
 0x56c   :  { %v10293_v36 = vpop.f32.mrb[125].mxu0  ;;  %v10400_v21 = vadd.f32 %v10399_v57, %v10398_v39  ;;  %v10401_v37 = vpop.f32.mrb[122].mxu1  ;;  %v6922_v39 = vld [vmem:[#allocation2 + $0x3b1] sm:$0xff] }
 0x56d   :  { %v10294_v10 = vadd.f32 %v10293_v36, %v10292_v61  ;;  %v10295_v53 = vpop.f32.mrb[126].mxu0  ;;  %v10402_v12 = vpop.f32.mrb[123].mxu1  ;;  %11101 = vmatpush3.bf16.msra.mxu1 %v11445_v9 }
 0x56e   :  { %v10296_v30 = vpop.f32.mrb[127].mxu0  ;;  %v10403_v3 = vadd.f32 %v10402_v12, %v10401_v37  ;;  %11102 = vmatprep.subr.bf16.mxu1 %v11446_v60  ;;  %v14343_v51 = vadd.f32 %v10400_v21, %v6231_v6  ;;  %v7032_v6 = vld [vmem:[#allocation2 + $0x2b0] sm:$0xff]  ;;  %v11448_v12 = vld [vmem:[#allocation10 + $0x220] sm:$0xff]  }
 0x56f   :  { %v6239_v27 = vadd.f32 %v10294_v10, %v14179_v56  ;;  %v10297_v34 = vadd.f32 %v10296_v30, %v10295_v53  ;;  %7854 = vmatmul.mubr.bf16.gmra.mrb[228].mxu1 %v14340_v63 }
 0x570   :  { %7765 = vmatmul.mubr.bf16.gmra.mrb[232].mxu0 %v14338_v5  ;;  %7861 = vmatprep.mubr.bf16.mxu1 %v14249_v22  ;;  %v14350_v1 = vadd.f32 %v10403_v3, %v6234_v40  ;;  %v14352_v22 = vpack.c.bf16 %v6922_v39, %v6921_v46  ;;  %v14354_v40 = vpack.c.bf16 %v7032_v6, %v7031_v26  ;;  %v6923_v46 = vld [vmem:[#allocation2 + $0x3c9] sm:$0xff] }
 0x571   :  { %v6242_v31 = vadd.f32 %v10297_v34, %v14182_v52  ;;  %7772 = vmatprep.mubr.bf16.mxu0 %v14273_v59  ;;  %11103 = vmatpush3.bf16.msra.mxu1 %v11446_v60  ;;  %v7033_v39 = vld [vmem:[#allocation2 + $0x2c8] sm:$0xff] }
 0x572   :  { %v10404_v61 = vpop.f32.mrb[124].mxu1  ;;  %11104 = vmatprep.subr.bf16.mxu1 %v11447_v11  ;;  %v11449_v26 = vld [vmem:[#allocation10 + $0x228] sm:$0xff]  }
 0x573   :  { %v10298_v56 = vpop.f32.mrb[128].mxu0  ;;  %v10405_v9 = vpop.f32.mrb[125].mxu1 }
 0x574   :  { %v10299_v33 = vpop.f32.mrb[129].mxu0  ;;  %v10406_v57 = vadd.f32 %v10405_v9, %v10404_v61  ;;  %v10407_v10 = vpop.f32.mrb[126].mxu1  ;;  %v6924_v61 = vld [vmem:[#allocation2 + $0x3d1] sm:$0xff] }
 0x575   :  { %v10300_v36 = vadd.f32 %v10299_v33, %v10298_v56  ;;  %v10301_v52 = vpop.f32.mrb[130].mxu0  ;;  %v10408_v21 = vpop.f32.mrb[127].mxu1  ;;  %11105 = vmatpush3.bf16.msra.mxu1 %v11447_v11 }
 0x576   :  { %v10302_v59 = vpop.f32.mrb[131].mxu0  ;;  %v10409_v30 = vadd.f32 %v10408_v21, %v10407_v10  ;;  %11106 = vmatprep.subr.bf16.mxu1 %v11448_v12  ;;  %v14357_v34 = vadd.f32 %v10406_v57, %v6239_v27  ;;  %v7034_v27 = vld [vmem:[#allocation2 + $0x2d0] sm:$0xff] }
 0x577   :  { %v6247_v53 = vadd.f32 %v10300_v36, %v14186_v7  ;;  %v10303_v37 = vadd.f32 %v10302_v59, %v10301_v52  ;;  %7862 = vmatmul.mubr.bf16.gmra.mrb[232].mxu1 %v14354_v40  ;;  %v11450_v21 = vld [vmem:[#allocation10 + $0x230] sm:$0xff]  }
 0x578   :  { %7773 = vmatmul.mubr.bf16.gmra.mrb[236].mxu0 %v14352_v22  ;;  %7869 = vmatprep.mubr.bf16.mxu1 %v14262_v45  ;;  %v14364_v60 = vadd.f32 %v10409_v30, %v6242_v31  ;;  %v14366_v45 = vpack.c.bf16 %v6924_v61, %v6923_v46  ;;  %v14368_v31 = vpack.c.bf16 %v7034_v27, %v7033_v39  ;;  %v6925_v46 = vld [vmem:[#allocation2 + $0x3e9] sm:$0xff]  ;;  %v11451_v39 = vld [vmem:[#allocation10 + $0x238] sm:$0xff]  }
 0x579   :  { %v6250_v3 = vadd.f32 %v10303_v37, %v14189_v20  ;;  %7780 = vmatprep.mubr.bf16.mxu0 %v14286_v41  ;;  %11107 = vmatpush3.bf16.msra.mxu1 %v11448_v12  ;;  %v7035_v61 = vld [vmem:[#allocation2 + $0x2e8] sm:$0xff] }
 0x57a   :  { %v10410_v56 = vpop.f32.mrb[128].mxu1  ;;  %11108 = vmatprep.subr.bf16.mxu1 %v11449_v26 }
 0x57b   :  { %v10304_v7 = vpop.f32.mrb[132].mxu0  ;;  %v10411_v11 = vpop.f32.mrb[129].mxu1 }
 0x57c   :  { %v10305_v6 = vpop.f32.mrb[133].mxu0  ;;  %v10412_v9 = vadd.f32 %v10411_v11, %v10410_v56  ;;  %v10413_v36 = vpop.f32.mrb[130].mxu1  ;;  %v6926_v56 = vld [vmem:[#allocation2 + $0x3f1] sm:$0xff] }
 0x57d   :  { %v10306_v33 = vadd.f32 %v10305_v6, %v10304_v7  ;;  %v10307_v20 = vpop.f32.mrb[134].mxu0  ;;  %v10414_v57 = vpop.f32.mrb[131].mxu1  ;;  %11109 = vmatpush3.bf16.msra.mxu1 %v11449_v26 }
 0x57e   :  { %v10308_v41 = vpop.f32.mrb[135].mxu0  ;;  %v10415_v59 = vadd.f32 %v10414_v57, %v10413_v36  ;;  %11110 = vmatprep.subr.bf16.mxu1 %v11450_v21  ;;  %v14371_v37 = vadd.f32 %v10412_v9, %v6247_v53  ;;  %v7036_v53 = vld [vmem:[#allocation2 + $0x2f0] sm:$0xff] }
 0x57f   :  { %v6255_v52 = vadd.f32 %v10306_v33, %v14193_v19  ;;  %v10309_v10 = vadd.f32 %v10308_v41, %v10307_v20  ;;  %7870 = vmatmul.mubr.bf16.gmra.mrb[236].mxu1 %v14368_v31 }
 0x580   :  { %7781 = vmatmul.mubr.bf16.gmra.mrb[240].mxu0 %v14366_v45  ;;  %7877 = vmatprep.mubr.bf16.mxu1 %v14275_v14  ;;  %v14378_v12 = vadd.f32 %v10415_v59, %v6250_v3  ;;  %v14380_v14 = vpack.c.bf16 %v6926_v56, %v6925_v46  ;;  %v14382_v3 = vpack.c.bf16 %v7036_v53, %v7035_v61  ;;  %v6928_v46 = vld [vmem:[#allocation2 + $0x411] sm:$0xff] }
 0x581   :  { %v6258_v30 = vadd.f32 %v10309_v10, %v14199_v8  ;;  %7788 = vmatprep.mubr.bf16.mxu0 %v14299_v44  ;;  %11111 = vmatpush3.bf16.msra.mxu1 %v11450_v21  ;;  %v6927_v21 = vld [vmem:[#allocation2 + $0x409] sm:$0xff] }
 0x582   :  { %v10416_v7 = vpop.f32.mrb[132].mxu1  ;;  %11112 = vmatprep.subr.bf16.mxu1 %v11451_v39  ;;  %v7038_v56 = vld [vmem:[#allocation2 + $0x310] sm:$0xff] }
 0x583   :  { %v10310_v19 = vpop.f32.mrb[136].mxu0  ;;  %v10417_v26 = vpop.f32.mrb[133].mxu1  ;;  %v6994_v61 = vld [vmem:[#allocation2 + $0x44f] sm:$0xff] }
 0x584   :  { %v10311_v27 = vpop.f32.mrb[137].mxu0  ;;  %v10418_v11 = vadd.f32 %v10417_v26, %v10416_v7  ;;  %v10419_v33 = vpop.f32.mrb[134].mxu1 }
 0x585   :  { %v10312_v6 = vadd.f32 %v10311_v27, %v10310_v19  ;;  %v10313_v8 = vpop.f32.mrb[138].mxu0  ;;  %v10420_v9 = vpop.f32.mrb[135].mxu1  ;;  %11113 = vmatpush3.bf16.msra.mxu1 %v11451_v39  ;;  %v7037_v19 = vld [vmem:[#allocation2 + $0x308] sm:$0xff] }
 0x586   :  { %v10314_v44 = vpop.f32.mrb[139].mxu0  ;;  %v10421_v41 = vadd.f32 %v10420_v9, %v10419_v33  ;;  %v14385_v57 = vadd.f32 %v10418_v11, %v6255_v52  ;;  %v6993_v52 = vld [vmem:[#allocation2 + $0x447] sm:$0xff] }
 0x587   :  { %v6263_v20 = vadd.f32 %v10312_v6, %v14203_v54  ;;  %v10315_v36 = vadd.f32 %v10314_v44, %v10313_v8  ;;  %7878 = vmatmul.mubr.bf16.gmra.mrb[240].mxu1 %v14382_v3  ;;  %v14394_v8 = vpack.c.bf16 %v6928_v46, %v6927_v21  ;;  %v6930_v46 = vld [vmem:[#allocation2 + $0x431] sm:$0xff] }
 0x588   :  { %7789 = vmatmul.mubr.bf16.gmra.mrb[244].mxu0 %v14380_v14  ;;  %7885 = vmatprep.mubr.bf16.mxu1 %v14288_v16  ;;  %v14392_v59 = vadd.f32 %v10421_v41, %v6258_v30  ;;  %v14396_v16 = vpack.c.bf16 %v7038_v56, %v7037_v19  ;;  %v7010_v30 = vpack.c.bf16 %v6994_v61, %v6993_v52  ;;  %v7040_v56 = vld [vmem:[#allocation2 + $0x330] sm:$0xff] }
 0x589   :  { %v6266_v10 = vadd.f32 %v10315_v36, %v14206_v15  ;;  %7796 = vmatprep.mubr.bf16.mxu0 %v14312_v49 }
 0x58a   :  { %v10422_v7 = vpop.f32.mrb[136].mxu1 }
 0x58b   :  { %v10316_v54 = vpop.f32.mrb[140].mxu0  ;;  %v10423_v39 = vpop.f32.mrb[137].mxu1 }
 0x58c   :  { %v10317_v53 = vpop.f32.mrb[141].mxu0  ;;  %v10424_v26 = vadd.f32 %v10423_v39, %v10422_v7  ;;  %v10425_v15 = vpop.f32.mrb[138].mxu1  ;;  %v6929_v7 = vld [vmem:[#allocation2 + $0x429] sm:$0xff] }
 0x58d   :  { %v10318_v27 = vadd.f32 %v10317_v53, %v10316_v54  ;;  %v10319_v6 = vpop.f32.mrb[142].mxu0  ;;  %v10426_v49 = vpop.f32.mrb[139].mxu1 }
 0x58e   :  { %v10320_v11 = vpop.f32.mrb[143].mxu0  ;;  %v10427_v9 = vadd.f32 %v10426_v49, %v10425_v15  ;;  %v14399_v36 = vadd.f32 %v10424_v26, %v6263_v20 }
 0x58f   :  { %v6271_v33 = vadd.f32 %v10318_v27, %v14211_v28  ;;  %v10321_v44 = vadd.f32 %v10320_v11, %v10319_v6  ;;  %7886 = vmatmul.mubr.bf16.gmra.mrb[244].mxu1 %v14396_v16  ;;  %v7039_v28 = vld [vmem:[#allocation2 + $0x328] sm:$0xff] }
 0x590   :  { %7797 = vmatmul.mubr.bf16.gmra.mrb[248].mxu0 %v14394_v8  ;;  %7893 = vmatprep.mubr.bf16.mxu1 %v14301_v2  ;;  %v14405_v21 = vadd.f32 %v10427_v9, %v6266_v10  ;;  %v14409_v15 = vpack.c.bf16 %v7040_v56, %v7039_v28  ;;  %v7041_v9 = vld [vmem:[#allocation2 + $0x348] sm:$0xff] }
 0x591   :  { %v6274_v41 = vadd.f32 %v10321_v44, %v14214_v48  ;;  %7804 = vmatprep.mubr.bf16.mxu0 %v7010_v30  ;;  %v14407_v48 = vpack.c.bf16 %v6930_v46, %v6929_v7  ;;  %v7156_v7 = vld [vmem:[#allocation2 + $0x28f] sm:$0xff] }
 0x592   :  { %v10428_v54 = vpop.f32.mrb[140].mxu1 }
 0x593   :  { %v10322_v19 = vpop.f32.mrb[144].mxu0  ;;  %v10429_v20 = vpop.f32.mrb[141].mxu1 }
 0x594   :  { %v10323_v52 = vpop.f32.mrb[145].mxu0  ;;  %v10430_v53 = vadd.f32 %v10429_v20, %v10428_v54  ;;  %v10431_v27 = vpop.f32.mrb[142].mxu1  ;;  %v7155_v54 = vld [vmem:[#allocation2 + $0x287] sm:$0xff] }
 0x595   :  { %v10324_v61 = vadd.f32 %v10323_v52, %v10322_v19  ;;  %v10325_v39 = vpop.f32.mrb[146].mxu0  ;;  %v10432_v6 = vpop.f32.mrb[143].mxu1 }
 0x596   :  { %v10326_v26 = vpop.f32.mrb[147].mxu0  ;;  %v10433_v11 = vadd.f32 %v10432_v6, %v10431_v27  ;;  %v14412_v49 = vadd.f32 %v10430_v53, %v6271_v33 }
 0x597   :  { %v6279_v2 = vadd.f32 %v10324_v61, %v14219_v50  ;;  %v10327_v10 = vadd.f32 %v10326_v26, %v10325_v39  ;;  %7894 = vmatmul.mubr.bf16.gmra.mrb[248].mxu1 %v14409_v15  ;;  %v7042_v50 = vld [vmem:[#allocation2 + $0x350] sm:$0xff] }
 0x598   :  { %7805 = vmatmul.mubr.bf16.gmra.mrb[252].mxu0 %v14407_v48  ;;  %7901 = vmatprep.mubr.bf16.mxu1 %v14314_v25  ;;  %v14419_v44 = vadd.f32 %v10433_v11, %v6274_v41  ;;  %v14421_v39 = vpack.c.bf16 %v7042_v50, %v7041_v9  ;;  %v7187_v25 = vpack.c.bf16 %v7156_v7, %v7155_v54  ;;  %v7043_v11 = vld [vmem:[#allocation2 + $0x368] sm:$0xff] }
 0x599   :  { %v6282_v30 = vadd.f32 %v10327_v10, %v14222_v0  ;;  %8006 = vmatprep.mubr.bf16.mxu0 %v14340_v63  ;;  %v7158_v50 = vld [vmem:[#allocation2 + $0x2af] sm:$0xff] }
 0x59a   :  { %v10434_v19 = vpop.f32.mrb[144].mxu1 }
 0x59b   :  { %v10328_v46 = vpop.f32.mrb[148].mxu0  ;;  %v10435_v28 = vpop.f32.mrb[145].mxu1 }
 0x59c   :  { %v10329_v33 = vpop.f32.mrb[149].mxu0  ;;  %v10436_v52 = vadd.f32 %v10435_v28, %v10434_v19  ;;  %v10437_v61 = vpop.f32.mrb[146].mxu1  ;;  %v7044_v19 = vld [vmem:[#allocation2 + $0x370] sm:$0xff] }
 0x59d   :  { %v10330_v56 = vadd.f32 %v10329_v33, %v10328_v46  ;;  %v10331_v20 = vpop.f32.mrb[150].mxu0  ;;  %v10438_v0 = vpop.f32.mrb[147].mxu1 }
 0x59e   :  { %v10332_v53 = vpop.f32.mrb[151].mxu0  ;;  %v10439_v27 = vadd.f32 %v10438_v0, %v10437_v61  ;;  %v14424_v26 = vadd.f32 %v10436_v52, %v6279_v2  ;;  %v16315_v0 = vld [vmem:[#allocation28_spill] sm:$0xff] }
 0x59f   :  { %v6287_v63 = vadd.f32 %v10330_v56, %v14229_v42  ;;  %v10333_v41 = vadd.f32 %v10332_v53, %v10331_v20  ;;  %7902 = vmatmul.mubr.bf16.gmra.mrb[252].mxu1 %v14421_v39  ;;  %v7157_v42 = vld [vmem:[#allocation2 + $0x2a7] sm:$0xff]  ;;  %v14432_v20 = vpack.c.bf16 %v7044_v19, %v7043_v11  ;;  %v7160_v19 = vld [vmem:[#allocation2 + $0x2cf] sm:$0xff] }
 0x5a0   :  { %8007 = vmatmul.mubr.bf16.vlgmr.msra.gmra.mrb[0].mxu0 %v7187_v25  ;;  %7909 = vmatprep.mubr.bf16.mxu1 %v14326_v38  ;;  %v14430_v10 = vadd.f32 %v10439_v27, %v6282_v30  ;;  %v7188_v38 = vpack.c.bf16 %v7158_v50, %v7157_v42  ;;  %v7045_v27 = vld [vmem:[#allocation2 + $0x388] sm:$0xff] }
 0x5a1   :  { %v6290_v6 = vadd.f32 %v10333_v41, %v14233_v47  ;;  %8014 = vmatprep.mubr.bf16.mxu0 %v14354_v40 }
 0x5a2   :  { %v10440_v46 = vpop.f32.mrb[148].mxu1 }
 0x5a3   :  { %v10334_v9 = vpop.f32.mrb[152].mxu0  ;;  %v10441_v2 = vpop.f32.mrb[149].mxu1 }
 0x5a4   :  { %v10335_v54 = vpop.f32.mrb[153].mxu0  ;;  %v10442_v33 = vadd.f32 %v10441_v2, %v10440_v46  ;;  %v10443_v56 = vpop.f32.mrb[150].mxu1  ;;  %v7046_v46 = vld [vmem:[#allocation2 + $0x390] sm:$0xff] }
 0x5a5   :  { %v10336_v7 = vadd.f32 %v10335_v54, %v10334_v9  ;;  %v10337_v28 = vpop.f32.mrb[154].mxu0  ;;  %v10444_v47 = vpop.f32.mrb[151].mxu1 }
 0x5a6   :  { %v10338_v52 = vpop.f32.mrb[155].mxu0  ;;  %v10445_v61 = vadd.f32 %v10444_v47, %v10443_v56  ;;  %v14435_v53 = vadd.f32 %v10442_v33, %v6287_v63  ;;  %v14443_v56 = vpack.c.bf16 %v7046_v46, %v7045_v27 }
 0x5a7   :  { %v6295_v40 = vadd.f32 %v10336_v7, %v14240_v29  ;;  %v10339_v30 = vadd.f32 %v10338_v52, %v10337_v28  ;;  %7910 = vmatmul.mubr.bf16.gmra.mrb[0].mxu1 %v14432_v20  ;;  %v7159_v29 = vld [vmem:[#allocation2 + $0x2c7] sm:$0xff] }
 0x5a8   :  { %8015 = vmatmul.mubr.bf16.gmra.mrb[4].mxu0 %v7188_v38  ;;  %7917 = vmatprep.mubr.bf16.mxu1 %v14338_v5  ;;  %v14441_v41 = vadd.f32 %v10445_v61, %v6290_v6  ;;  %v7189_v5 = vpack.c.bf16 %v7160_v19, %v7159_v29  ;;  %v7047_v61 = vld [vmem:[#allocation2 + $0x3a8] sm:$0xff] }
 0x5a9   :  { %v6298_v25 = vadd.f32 %v10339_v30, %v16315_v0  ;;  %8022 = vmatprep.mubr.bf16.mxu0 %v14368_v31 }
 0x5aa   :  { %v10446_v9 = vpop.f32.mrb[152].mxu1 }
 0x5ab   :  { %v10340_v11 = vpop.f32.mrb[156].mxu0  ;;  %v10447_v63 = vpop.f32.mrb[153].mxu1 }
 0x5ac   :  { %v10341_v42 = vpop.f32.mrb[157].mxu0  ;;  %v10448_v54 = vadd.f32 %v10447_v63, %v10446_v9  ;;  %v10449_v7 = vpop.f32.mrb[154].mxu1  ;;  %v7162_v9 = vld [vmem:[#allocation2 + $0x2ef] sm:$0xff] }
 0x5ad   :  { %v10342_v50 = vadd.f32 %v10341_v42, %v10340_v11  ;;  %v10343_v2 = vpop.f32.mrb[158].mxu0  ;;  %v10450_v28 = vpop.f32.mrb[155].mxu1  ;;  %v7048_v11 = vld [vmem:[#allocation2 + $0x3b0] sm:$0xff] }
 0x5ae   :  { %v10344_v33 = vpop.f32.mrb[159].mxu0  ;;  %v10451_v52 = vadd.f32 %v10450_v28, %v10449_v7  ;;  %v14446_v47 = vadd.f32 %v10448_v54, %v6295_v40  ;;  %v16317_v7 = vld [vmem:[#allocation27_spill] sm:$0xff] }
 0x5af   :  { %v6303_v31 = vadd.f32 %v10342_v50, %v14251_v32  ;;  %v10345_v6 = vadd.f32 %v10344_v33, %v10343_v2  ;;  %7918 = vmatmul.mubr.bf16.gmra.mrb[4].mxu1 %v14443_v56  ;;  %v7161_v32 = vld [vmem:[#allocation2 + $0x2e7] sm:$0xff]  ;;  %v14463_v50 = vpack.c.bf16 %v7048_v11, %v7047_v61  ;;  %v7164_v61 = vld [vmem:[#allocation2 + $0x30f] sm:$0xff] }
 0x5b0   :  { %8023 = vmatmul.mubr.bf16.gmra.mrb[8].mxu0 %v7189_v5  ;;  %7925 = vmatprep.mubr.bf16.mxu1 %v14352_v22  ;;  %v14452_v30 = vadd.f32 %v10451_v52, %v6298_v25  ;;  %v7190_v54 = vpack.c.bf16 %v7162_v9, %v7161_v32  ;;  %v7163_v52 = vld [vmem:[#allocation2 + $0x307] sm:$0xff] }
 0x5b1   :  { %v6306_v38 = vadd.f32 %v10345_v6, %v14256_v35  ;;  %8030 = vmatprep.mubr.bf16.mxu0 %v14382_v3  ;;  %v7050_v6 = vld [vmem:[#allocation2 + $0x3d0] sm:$0xff] }
 0x5b2   :  { %v10452_v0 = vpop.f32.mrb[156].mxu1 }
 0x5b3   :  { %v11068_v27 = vpop.f32.mrb[160].mxu0  ;;  %v10453_v46 = vpop.f32.mrb[157].mxu1 }
 0x5b4   :  { %v14455_v40 = vadd.f32 %v11068_v27, %v14278_v58  ;;  %v6504_v29 = vpop.f32.mrb[161].mxu0  ;;  %v10454_v19 = vadd.f32 %v10453_v46, %v10452_v0  ;;  %v10455_v22 = vpop.f32.mrb[158].mxu1 }
 0x5b5   :  { %v14458_v35 = vadd.f32 %v6504_v29, %v14265_v55  ;;  %v11069_v42 = vpop.f32.mrb[162].mxu0  ;;  %v10456_v25 = vpop.f32.mrb[159].mxu1 }
 0x5b6   :  { %v14461_v3 = vadd.f32 %v11069_v42, %v14284_v13  ;;  %v6507_v63 = vpop.f32.mrb[163].mxu0  ;;  %v10457_v2 = vadd.f32 %v10456_v25, %v10455_v22  ;;  %v14468_v33 = vadd.f32 %v10454_v19, %v6303_v31  ;;  %v7049_v13 = vld [vmem:[#allocation2 + $0x3c8] sm:$0xff]  ;;  %v7191_v19 = vpack.c.bf16 %v7164_v61, %v7163_v52  ;;  %v16318_v22 = vld [vmem:[#allocation25_spill] sm:$0xff] }
 0x5b7   :  { %v14466_v58 = vadd.f32 %v6507_v63, %v16317_v7  ;;  %7926 = vmatmul.mubr.bf16.gmra.mrb[8].mxu1 %v14463_v50  ;;  %v14486_v29 = vpack.c.bf16 %v7050_v6, %v7049_v13  ;;  %v7052_v63 = vld [vmem:[#allocation2 + $0x3f0] sm:$0xff] }
 0x5b8   :  { %16316 = vst [vmem:[#allocation30_spill] sm:$0xff] %v14461_v3  ;;  %8031 = vmatmul.mubr.bf16.gmra.mrb[12].mxu0 %v7190_v54  ;;  %7933 = vmatprep.mubr.bf16.mxu1 %v14366_v45  ;;  %v14473_v55 = vadd.f32 %v10457_v2, %v6306_v38  ;;  %v7165_v54 = vld [vmem:[#allocation2 + $0x327] sm:$0xff]  ;;  %v7166_v2 = vld [vmem:[#allocation2 + $0x32f] sm:$0xff] }
 0x5b9   :  { %8038 = vmatprep.mubr.bf16.mxu0 %v14396_v16 }
 0x5ba   :  { %v10498_v5 = vpop.f32.mrb[160].mxu1 }
 0x5bb   :  { %v11072_v28 = vpop.f32.mrb[164].mxu0  ;;  %v10499_v27 = vpop.f32.mrb[161].mxu1 }
 0x5bc   :  { %v14476_v0 = vadd.f32 %v11072_v28, %v14304_v17  ;;  %v6520_v31 = vpop.f32.mrb[165].mxu0  ;;  %v14481_v32 = vadd.f32 %v10499_v27, %v10498_v5  ;;  %v10501_v16 = vpop.f32.mrb[162].mxu1 }
 0x5bd   :  { %v14479_v11 = vadd.f32 %v6520_v31, %v14291_v23  ;;  %v11073_v45 = vpop.f32.mrb[166].mxu0  ;;  %v10502_v46 = vpop.f32.mrb[163].mxu1  ;;  %v7051_v23 = vld [vmem:[#allocation2 + $0x3e8] sm:$0xff] }
 0x5be   :  { %v14484_v38 = vadd.f32 %v11073_v45, %v14310_v24  ;;  %v6523_v9 = vpop.f32.mrb[167].mxu0  ;;  %v14491_v42 = vadd.f32 %v10502_v46, %v10501_v16  ;;  %v14507_v27 = vpack.c.bf16 %v7052_v63, %v7051_v23  ;;  %v7192_v45 = vpack.c.bf16 %v7166_v2, %v7165_v54  ;;  %v7054_v46 = vld [vmem:[#allocation2 + $0x410] sm:$0xff] }
 0x5bf   :  { %v14489_v17 = vadd.f32 %v6523_v9, %v16318_v22  ;;  %7934 = vmatmul.mubr.bf16.gmra.mrb[12].mxu1 %v14486_v29  ;;  %v7168_v22 = vld [vmem:[#allocation2 + $0x34f] sm:$0xff] }
 0x5c0   :  { %8039 = vmatmul.mubr.bf16.gmra.mrb[16].mxu0 %v7191_v19  ;;  %7941 = vmatprep.mubr.bf16.mxu1 %v14380_v14  ;;  %v7167_v19 = vld [vmem:[#allocation2 + $0x347] sm:$0xff] }
 0x5c1   :  { %8046 = vmatprep.mubr.bf16.mxu0 %v14409_v15 }
 0x5c2   :  { %v10504_v25 = vpop.f32.mrb[164].mxu1 }
 0x5c3   :  { %v11076_v24 = vpop.f32.mrb[168].mxu0  ;;  %v10505_v28 = vpop.f32.mrb[165].mxu1 }
 0x5c4   :  { %v14497_v7 = vadd.f32 %v11076_v24, %v14329_v43  ;;  %v6536_v13 = vpop.f32.mrb[169].mxu0  ;;  %v14502_v6 = vadd.f32 %v10505_v28, %v10504_v25  ;;  %v10507_v14 = vpop.f32.mrb[166].mxu1 }
 0x5c5   :  { %v14500_v5 = vadd.f32 %v6536_v13, %v14317_v62  ;;  %v11077_v52 = vpop.f32.mrb[170].mxu0  ;;  %v10508_v31 = vpop.f32.mrb[167].mxu1  ;;  %v7053_v62 = vld [vmem:[#allocation2 + $0x408] sm:$0xff] }
 0x5c6   :  { %v14505_v15 = vadd.f32 %v11077_v52, %v14335_v4  ;;  %v6539_v61 = vpop.f32.mrb[171].mxu0  ;;  %v14512_v16 = vadd.f32 %v10508_v31, %v10507_v14  ;;  %v14528_v28 = vpack.c.bf16 %v7054_v46, %v7053_v62  ;;  %v7193_v52 = vpack.c.bf16 %v7168_v22, %v7167_v19  ;;  %v7055_v31 = vld [vmem:[#allocation2 + $0x428] sm:$0xff]  ;;  %v7122_v19 = vld [vmem:[#allocation2 + $0x451] sm:$0xff] }
 0x5c7   :  { %v14510_v43 = vadd.f32 %v6539_v61, %v14324_v18  ;;  %7942 = vmatmul.mubr.bf16.gmra.mrb[16].mxu1 %v14507_v27  ;;  %v7170_v62 = vld [vmem:[#allocation2 + $0x36f] sm:$0xff] }
 0x5c8   :  { %16319 = vst [vmem:[#allocation29_spill] sm:$0xff] %v14505_v15  ;;  %8047 = vmatmul.mubr.bf16.gmra.mrb[20].mxu0 %v7192_v45  ;;  %7949 = vmatprep.mubr.bf16.mxu1 %v14394_v8  ;;  %v7169_v45 = vld [vmem:[#allocation2 + $0x367] sm:$0xff] }
 0x5c9   :  { %8054 = vmatprep.mubr.bf16.mxu0 %v14421_v39  ;;  %v7121_v46 = vld [vmem:[#allocation2 + $0x449] sm:$0xff] }
 0x5ca   :  { %v10510_v9 = vpop.f32.mrb[168].mxu1 }
 0x5cb   :  { %v11080_v4 = vpop.f32.mrb[172].mxu0  ;;  %v10511_v24 = vpop.f32.mrb[169].mxu1 }
 0x5cc   :  { %v14518_v23 = vadd.f32 %v11080_v4, %v14357_v34  ;;  %v6552_v18 = vpop.f32.mrb[173].mxu0  ;;  %v14523_v63 = vadd.f32 %v10511_v24, %v10510_v9  ;;  %v10513_v8 = vpop.f32.mrb[170].mxu1 }
 0x5cd   :  { %v14521_v25 = vadd.f32 %v6552_v18, %v14343_v51  ;;  %v11081_v54 = vpop.f32.mrb[174].mxu0  ;;  %v10514_v13 = vpop.f32.mrb[171].mxu1  ;;  %v7056_v51 = vld [vmem:[#allocation2 + $0x430] sm:$0xff] }
 0x5ce   :  { %16320 = vst [vmem:[#allocation32_spill] sm:$0xff] %v14518_v23  ;;  %v14526_v39 = vadd.f32 %v11081_v54, %v14364_v60  ;;  %v6555_v2 = vpop.f32.mrb[175].mxu0  ;;  %v14533_v14 = vadd.f32 %v10514_v13, %v10513_v8 }
 0x5cf   :  { %16321 = vst [vmem:[#allocation36_spill] sm:$0xff] %v14521_v25  ;;  %v14531_v34 = vadd.f32 %v6555_v2, %v14350_v1  ;;  %7950 = vmatmul.mubr.bf16.gmra.mrb[20].mxu1 %v14528_v28  ;;  %v14549_v2 = vpack.c.bf16 %v7056_v51, %v7055_v31  ;;  %v7058_v51 = vld [vmem:[#allocation2 + $0x450] sm:$0xff]  ;;  %v7171_v31 = vld [vmem:[#allocation2 + $0x387] sm:$0xff] }
 0x5d0   :  { %16322 = vst [vmem:[#allocation31_spill] sm:$0xff] %v14526_v39  ;;  %8055 = vmatmul.mubr.bf16.gmra.mrb[24].mxu0 %v7193_v52  ;;  %7957 = vmatprep.mubr.bf16.mxu1 %v14407_v48  ;;  %v14554_v52 = vpack.c.bf16 %v7122_v19, %v7121_v46  ;;  %v7284_v46 = vld [vmem:[#allocation2 + $0x291] sm:$0xff] }
 0x5d1   :  { %16323 = vst [vmem:[#allocation34_spill] sm:$0xff] %v14531_v34  ;;  %8062 = vmatprep.mubr.bf16.mxu0 %v14432_v20 }
 0x5d2   :  { %v10516_v61 = vpop.f32.mrb[172].mxu1 }
 0x5d3   :  { %v11084_v60 = vpop.f32.mrb[176].mxu0  ;;  %v10517_v9 = vpop.f32.mrb[173].mxu1 }
 0x5d4   :  { %v14539_v4 = vadd.f32 %v11084_v60, %v14385_v57  ;;  %v6568_v1 = vpop.f32.mrb[177].mxu0  ;;  %v14544_v18 = vadd.f32 %v10517_v9, %v10516_v61  ;;  %v10519_v20 = vpop.f32.mrb[174].mxu1  ;;  %v7194_v57 = vpack.c.bf16 %v7170_v62, %v7169_v45  ;;  %v7172_v45 = vld [vmem:[#allocation2 + $0x38f] sm:$0xff] }
 0x5d5   :  { %v14542_v22 = vadd.f32 %v6568_v1, %v14371_v37  ;;  %v11085_v48 = vpop.f32.mrb[178].mxu0  ;;  %v10520_v8 = vpop.f32.mrb[175].mxu1  ;;  %v7057_v37 = vld [vmem:[#allocation2 + $0x448] sm:$0xff] }
 0x5d6   :  { %16324 = vst [vmem:[#allocation35_spill] sm:$0xff] %v14539_v4  ;;  %v14547_v24 = vadd.f32 %v11085_v48, %v14392_v59  ;;  %v6571_v54 = vpop.f32.mrb[179].mxu0  ;;  %v14556_v60 = vadd.f32 %v10520_v8, %v10519_v20  ;;  %v7283_v9 = vld [vmem:[#allocation2 + $0x289] sm:$0xff] }
 0x5d7   :  { %16325 = vst [vmem:[#allocation33_spill] sm:$0xff] %v14542_v22  ;;  %v14552_v13 = vadd.f32 %v6571_v54, %v14378_v12  ;;  %7958 = vmatmul.mubr.bf16.gmra.mrb[24].mxu1 %v14549_v2 }
 0x5d8   :  { %16326 = vst [vmem:[#allocation42_spill] sm:$0xff] %v14547_v24  ;;  %8063 = vmatmul.mubr.bf16.gmra.mrb[28].mxu0 %v7194_v57  ;;  %7965 = vmatprep.mubr.bf16.mxu1 %v14554_v52  ;;  %v14572_v24 = vpack.c.bf16 %v7058_v51, %v7057_v37  ;;  %v7286_v37 = vld [vmem:[#allocation2 + $0x2b1] sm:$0xff] }
 0x5d9   :  { %16327 = vst [vmem:[#allocation16_spill] sm:$0xff] %v14552_v13  ;;  %8070 = vmatprep.mubr.bf16.mxu0 %v14443_v56 }
 0x5da   :  { %v10522_v61 = vpop.f32.mrb[176].mxu1 }
 0x5db   :  { %v11088_v59 = vpop.f32.mrb[180].mxu0  ;;  %v10523_v1 = vpop.f32.mrb[177].mxu1 }
 0x5dc   :  { %v14562_v12 = vadd.f32 %v11088_v59, %v14412_v49  ;;  %v6584_v62 = vpop.f32.mrb[181].mxu0  ;;  %v14567_v48 = vadd.f32 %v10523_v1, %v10522_v61  ;;  %v10525_v56 = vpop.f32.mrb[178].mxu1  ;;  %v7195_v49 = vpack.c.bf16 %v7172_v45, %v7171_v31  ;;  %v7285_v1 = vld [vmem:[#allocation2 + $0x2a9] sm:$0xff] }
 0x5dd   :  { %v14565_v19 = vadd.f32 %v6584_v62, %v14399_v36  ;;  %v11089_v20 = vpop.f32.mrb[182].mxu0  ;;  %v10526_v57 = vpop.f32.mrb[179].mxu1  ;;  %v7173_v36 = vld [vmem:[#allocation2 + $0x3a7] sm:$0xff]  ;;  %v7174_v62 = vld [vmem:[#allocation2 + $0x3af] sm:$0xff] }
 0x5de   :  { %16328 = vst [vmem:[#allocation17_spill] sm:$0xff] %v14562_v12  ;;  %v14570_v54 = vadd.f32 %v11089_v20, %v14419_v44  ;;  %v6587_v8 = vpop.f32.mrb[183].mxu0  ;;  %v7315_v12 = vpack.c.bf16 %v7284_v46, %v7283_v9  ;;  %v14577_v4 = vadd.f32 %v10526_v57, %v10525_v56  ;;  %v7287_v45 = vld [vmem:[#allocation2 + $0x2c9] sm:$0xff]  ;;  %v7288_v9 = vld [vmem:[#allocation2 + $0x2d1] sm:$0xff] }
 0x5df   :  { %16329 = vst [vmem:[#allocation19_spill] sm:$0xff] %v14565_v19  ;;  %v14575_v59 = vadd.f32 %v6587_v8, %v14405_v21  ;;  %7966 = vmatmul.mubr.bf16.gmra.mrb[28].mxu1 %v14572_v24 }
 0x5e0   :  { %16330 = vst [vmem:[#allocation21_spill] sm:$0xff] %v14570_v54  ;;  %8071 = vmatmul.mubr.bf16.gmra.mrb[32].mxu0 %v7195_v49  ;;  %11114 = vmatprep.mubr.bf16.mxu1 %v7315_v12  ;;  %v7196_v49 = vpack.c.bf16 %v7174_v62, %v7173_v36  ;;  %v7316_v54 = vpack.c.bf16 %v7286_v37, %v7285_v1  ;;  %v7291_v1 = vld [vmem:[#allocation2 + $0x309] sm:$0xff]  ;;  %v7292_v37 = vld [vmem:[#allocation2 + $0x311] sm:$0xff] }
 0x5e1   :  { %16331 = vst [vmem:[#allocation18_spill] sm:$0xff] %v14575_v59  ;;  %8078 = vmatprep.mubr.bf16.mxu0 %v14463_v50 }
 0x5e2   :  { %v10528_v61 = vpop.f32.mrb[180].mxu1 }
 0x5e3   :  { %v11092_v44 = vpop.f32.mrb[184].mxu0  ;;  %v10529_v31 = vpop.f32.mrb[181].mxu1 }
 0x5e4   :  { %v14582_v51 = vadd.f32 %v11092_v44, %v14435_v53  ;;  %v6600_v21 = vpop.f32.mrb[185].mxu0  ;;  %v14587_v20 = vadd.f32 %v10529_v31, %v10528_v61  ;;  %v10531_v12 = vpop.f32.mrb[182].mxu1  ;;  %v7317_v44 = vpack.c.bf16 %v7288_v9, %v7287_v45  ;;  %v7289_v31 = vld [vmem:[#allocation2 + $0x2e9] sm:$0xff] }
 0x5e5   :  { %v14585_v46 = vadd.f32 %v6600_v21, %v14424_v26  ;;  %v11093_v50 = vpop.f32.mrb[186].mxu0  ;;  %v10532_v57 = vpop.f32.mrb[183].mxu1  ;;  %v7175_v26 = vld [vmem:[#allocation2 + $0x3c7] sm:$0xff] }
 0x5e6   :  { %16332 = vst [vmem:[#allocation20_spill] sm:$0xff] %v14582_v51  ;;  %v14590_v56 = vadd.f32 %v11093_v50, %v14441_v41  ;;  %v6603_v8 = vpop.f32.mrb[187].mxu0  ;;  %v14595_v51 = vadd.f32 %v10532_v57, %v10531_v12  ;;  %v7176_v41 = vld [vmem:[#allocation2 + $0x3cf] sm:$0xff] }
 0x5e7   :  { %16333 = vst [vmem:[#allocation22_spill] sm:$0xff] %v14585_v46  ;;  %v14593_v53 = vadd.f32 %v6603_v8, %v14430_v10  ;;  %11115 = vmatmul.mubr.bf16.vlgmr.msra.gmra.mrb[32].mxu1 %v7316_v54  ;;  %v7290_v50 = vld [vmem:[#allocation2 + $0x2f1] sm:$0xff] }
 0x5e8   :  { %16334 = vst [vmem:[#allocation15_spill] sm:$0xff] %v14590_v56  ;;  %8079 = vmatmul.mubr.bf16.gmra.mrb[36].mxu0 %v7196_v49  ;;  %11118 = vmatprep.mubr.bf16.mxu1 %v7317_v44  ;;  %v7197_v49 = vpack.c.bf16 %v7176_v41, %v7175_v26  ;;  %v7318_v44 = vpack.c.bf16 %v7290_v50, %v7289_v31  ;;  %v7295_v41 = vld [vmem:[#allocation2 + $0x349] sm:$0xff]  ;;  %v7296_v31 = vld [vmem:[#allocation2 + $0x351] sm:$0xff] }
 0x5e9   :  { %16335 = vst [vmem:[#allocation23_spill] sm:$0xff] %v14593_v53  ;;  %8086 = vmatprep.mubr.bf16.mxu0 %v14486_v29 }
 0x5ea   :  { %v10534_v21 = vpop.f32.mrb[184].mxu1 }
 0x5eb   :  { %v11096_v61 = vpop.f32.mrb[188].mxu0  ;;  %v10535_v10 = vpop.f32.mrb[185].mxu1 }
 0x5ec   :  { %v14599_v36 = vadd.f32 %v11096_v61, %v14468_v33  ;;  %v6616_v62 = vpop.f32.mrb[189].mxu0  ;;  %v14604_v54 = vadd.f32 %v10535_v10, %v10534_v21  ;;  %v10537_v9 = vpop.f32.mrb[186].mxu1  ;;  %v7319_v61 = vpack.c.bf16 %v7292_v37, %v7291_v1  ;;  %v7293_v10 = vld [vmem:[#allocation2 + $0x329] sm:$0xff] }
 0x5ed   :  { %v14602_v45 = vadd.f32 %v6616_v62, %v14446_v47  ;;  %v11097_v29 = vpop.f32.mrb[190].mxu0  ;;  %v10538_v57 = vpop.f32.mrb[187].mxu1  ;;  %v7177_v47 = vld [vmem:[#allocation2 + $0x3e7] sm:$0xff] }
 0x5ee   :  { %16336 = vst [vmem:[#allocation26_spill] sm:$0xff] %v14599_v36  ;;  %v14607_v12 = vadd.f32 %v11097_v29, %v14473_v55  ;;  %v6619_v8 = vpop.f32.mrb[191].mxu0  ;;  %v14612_v36 = vadd.f32 %v10538_v57, %v10537_v9  ;;  %v7178_v55 = vld [vmem:[#allocation2 + $0x3ef] sm:$0xff] }
 0x5ef   :  { %16337 = vst [vmem:[#allocation37_spill] sm:$0xff] %v14602_v45  ;;  %v14610_v33 = vadd.f32 %v6619_v8, %v14452_v30  ;;  %11119 = vmatmul.mubr.bf16.gmra.mrb[36].mxu1 %v7318_v44  ;;  %v7294_v29 = vld [vmem:[#allocation2 + $0x331] sm:$0xff]  ;;  %v7198_v57 = vpack.c.bf16 %v7178_v55, %v7177_v47  ;;  %v7297_v55 = vld [vmem:[#allocation2 + $0x369] sm:$0xff] }
 0x5f0   :  { %16338 = vst [vmem:[#allocation39_spill] sm:$0xff] %v14607_v12  ;;  %8087 = vmatmul.mubr.bf16.gmra.mrb[40].mxu0 %v7197_v49  ;;  %11122 = vmatprep.mubr.bf16.mxu1 %v7319_v61  ;;  %v7321_v61 = vpack.c.bf16 %v7296_v31, %v7295_v41  ;;  %v7180_v47 = vld [vmem:[#allocation2 + $0x40f] sm:$0xff] }
 0x5f1   :  { %16339 = vst [vmem:[#allocation24_spill] sm:$0xff] %v14610_v33  ;;  %8094 = vmatprep.mubr.bf16.mxu0 %v14507_v27  ;;  %v7320_v27 = vpack.c.bf16 %v7294_v29, %v7293_v10  ;;  %v7298_v10 = vld [vmem:[#allocation2 + $0x371] sm:$0xff] }
 0x5f2   :  { %v10540_v21 = vpop.f32.mrb[188].mxu1 }
 0x5f3   :  { %v10610_v62 = vpop.f32.mrb[192].mxu0  ;;  %v10541_v12 = vpop.f32.mrb[189].mxu1 }
 0x5f4   :  { %v10611_v26 = vpop.f32.mrb[193].mxu0  ;;  %v14615_v30 = vadd.f32 %v10541_v12, %v10540_v21  ;;  %v10543_v1 = vpop.f32.mrb[190].mxu1  ;;  %v7179_v21 = vld [vmem:[#allocation2 + $0x407] sm:$0xff] }
 0x5f5   :  { %v10612_v50 = vadd.f32 %v10611_v26, %v10610_v62  ;;  %v10613_v37 = vpop.f32.mrb[194].mxu0  ;;  %v10544_v9 = vpop.f32.mrb[191].mxu1 }
 0x5f6   :  { %v10614_v8 = vpop.f32.mrb[195].mxu0  ;;  %v14620_v44 = vadd.f32 %v10544_v9, %v10543_v1  ;;  %v7300_v1 = vld [vmem:[#allocation2 + $0x391] sm:$0xff] }
 0x5f7   :  { %v14618_v49 = vadd.f32 %v10612_v50, %v14481_v32  ;;  %v10615_v33 = vadd.f32 %v10614_v8, %v10613_v37  ;;  %11123 = vmatmul.mubr.bf16.gmra.mrb[40].mxu1 %v7320_v27  ;;  %v7299_v50 = vld [vmem:[#allocation2 + $0x389] sm:$0xff] }
 0x5f8   :  { %8095 = vmatmul.mubr.bf16.gmra.mrb[44].mxu0 %v7198_v57  ;;  %11126 = vmatprep.mubr.bf16.mxu1 %v7321_v61  ;;  %v7199_v57 = vpack.c.bf16 %v7180_v47, %v7179_v21  ;;  %v7323_v61 = vpack.c.bf16 %v7300_v1, %v7299_v50  ;;  %v7182_v21 = vld [vmem:[#allocation2 + $0x42f] sm:$0xff] }
 0x5f9   :  { %8102 = vmatprep.mubr.bf16.mxu0 %v14528_v28  ;;  %v14624_v12 = vadd.f32 %v10615_v33, %v14491_v42  ;;  %v7322_v42 = vpack.c.bf16 %v7298_v10, %v7297_v55  ;;  %v7301_v47 = vld [vmem:[#allocation2 + $0x3a9] sm:$0xff]  ;;  %v7302_v55 = vld [vmem:[#allocation2 + $0x3b1] sm:$0xff] }
 0x5fa   :  { %v10546_v62 = vpop.f32.mrb[192].mxu1 }
 0x5fb   :  { %v10616_v26 = vpop.f32.mrb[196].mxu0  ;;  %v10547_v32 = vpop.f32.mrb[193].mxu1 }
 0x5fc   :  { %v10617_v29 = vpop.f32.mrb[197].mxu0  ;;  %v14626_v41 = vadd.f32 %v10547_v32, %v10546_v62  ;;  %v10549_v37 = vpop.f32.mrb[194].mxu1 }
 0x5fd   :  { %v10618_v31 = vadd.f32 %v10617_v29, %v10616_v26  ;;  %v10619_v9 = vpop.f32.mrb[198].mxu0  ;;  %v10550_v28 = vpop.f32.mrb[195].mxu1  ;;  %v7181_v26 = vld [vmem:[#allocation2 + $0x427] sm:$0xff] }
 0x5fe   :  { %v10620_v8 = vpop.f32.mrb[199].mxu0  ;;  %v14631_v27 = vadd.f32 %v10550_v28, %v10549_v37  ;;  %v7304_v37 = vld [vmem:[#allocation2 + $0x3d1] sm:$0xff] }
 0x5ff   :  { %v14629_v33 = vadd.f32 %v10618_v31, %v14502_v6  ;;  %v10621_v45 = vadd.f32 %v10620_v8, %v10619_v9  ;;  %11127 = vmatmul.mubr.bf16.gmra.mrb[44].mxu1 %v7322_v42  ;;  %v7303_v31 = vld [vmem:[#allocation2 + $0x3c9] sm:$0xff] }
 0x600   :  { %8103 = vmatmul.mubr.bf16.gmra.mrb[48].mxu0 %v7199_v57  ;;  %11130 = vmatprep.mubr.bf16.mxu1 %v7323_v61  ;;  %v7200_v57 = vpack.c.bf16 %v7182_v21, %v7181_v26  ;;  %v7325_v56 = vpack.c.bf16 %v7304_v37, %v7303_v31  ;;  %v7308_v31 = vld [vmem:[#allocation2 + $0x411] sm:$0xff] }
 0x601   :  { %8110 = vmatprep.mubr.bf16.mxu0 %v14549_v2  ;;  %v14635_v62 = vadd.f32 %v10621_v45, %v14512_v16  ;;  %v7324_v16 = vpack.c.bf16 %v7302_v55, %v7301_v47  ;;  %v7184_v47 = vld [vmem:[#allocation2 + $0x44f] sm:$0xff] }
 0x602   :  { %v10552_v32 = vpop.f32.mrb[196].mxu1  ;;  %v7306_v55 = vld [vmem:[#allocation2 + $0x3f1] sm:$0xff] }
 0x603   :  { %v10622_v29 = vpop.f32.mrb[200].mxu0  ;;  %v10553_v6 = vpop.f32.mrb[197].mxu1 }
 0x604   :  { %v10623_v10 = vpop.f32.mrb[201].mxu0  ;;  %v14637_v50 = vadd.f32 %v10553_v6, %v10552_v32  ;;  %v10555_v9 = vpop.f32.mrb[198].mxu1  ;;  %v7183_v32 = vld [vmem:[#allocation2 + $0x447] sm:$0xff]  ;;  %v7250_v6 = vld [vmem:[#allocation2 + $0x470] sm:$0xff] }
 0x605   :  { %v10624_v1 = vadd.f32 %v10623_v10, %v10622_v29  ;;  %v10625_v28 = vpop.f32.mrb[202].mxu0  ;;  %v10556_v2 = vpop.f32.mrb[199].mxu1  ;;  %v7249_v29 = vld [vmem:[#allocation2 + $0x468] sm:$0xff] }
 0x606   :  { %v10626_v8 = vpop.f32.mrb[203].mxu0  ;;  %v14642_v42 = vadd.f32 %v10556_v2, %v10555_v9  ;;  %v7307_v9 = vld [vmem:[#allocation2 + $0x409] sm:$0xff] }
 0x607   :  { %v14640_v45 = vadd.f32 %v10624_v1, %v14523_v63  ;;  %v10627_v61 = vadd.f32 %v10626_v8, %v10625_v28  ;;  %11131 = vmatmul.mubr.bf16.gmra.mrb[48].mxu1 %v7324_v16  ;;  %v7305_v63 = vld [vmem:[#allocation2 + $0x3e9] sm:$0xff]  ;;  %v7266_v8 = vpack.c.bf16 %v7250_v6, %v7249_v29  ;;  %v7327_v19 = vpack.c.bf16 %v7308_v31, %v7307_v9 }
 0x608   :  { %8111 = vmatmul.mubr.bf16.gmra.mrb[52].mxu0 %v7200_v57  ;;  %11134 = vmatprep.mubr.bf16.mxu1 %v7325_v56  ;;  %v7201_v57 = vpack.c.bf16 %v7184_v47, %v7183_v32  ;;  %v7326_v16 = vpack.c.bf16 %v7306_v55, %v7305_v63  ;;  %v7309_v6 = vld [vmem:[#allocation2 + $0x429] sm:$0xff] }
 0x609   :  { %v14645_v53 = vadd.f32 %v10627_v61, %v14533_v14  ;;  %8118 = vmatprep.mubr.bf16.mxu0 %v14572_v24  ;;  %v11452_v63 = vld [vmem:[#allocation2 + $0x7] sm:$0xff] }
 0x60a   :  { %v10558_v26 = vpop.f32.mrb[200].mxu1 }
 0x60b   :  { %v10628_v21 = vpop.f32.mrb[204].mxu0  ;;  %v10559_v10 = vpop.f32.mrb[201].mxu1 }
 0x60c   :  { %v10629_v1 = vpop.f32.mrb[205].mxu0  ;;  %v14648_v37 = vadd.f32 %v10559_v10, %v10558_v26  ;;  %v10561_v14 = vpop.f32.mrb[202].mxu1  ;;  %v7310_v10 = vld [vmem:[#allocation2 + $0x431] sm:$0xff] }
 0x60d   :  { %v10630_v28 = vadd.f32 %v10629_v1, %v10628_v21  ;;  %v10631_v2 = vpop.f32.mrb[206].mxu0  ;;  %v10562_v24 = vpop.f32.mrb[203].mxu1 }
 0x60e   :  { %v10632_v56 = vpop.f32.mrb[207].mxu0  ;;  %v14653_v46 = vadd.f32 %v10562_v24, %v10561_v14  ;;  %v7313_v24 = vld [vmem:[#allocation2 + $0x469] sm:$0xff] }
 0x60f   :  { %v14651_v61 = vadd.f32 %v10630_v28, %v14544_v18  ;;  %v10633_v59 = vadd.f32 %v10632_v56, %v10631_v2  ;;  %11135 = vmatmul.mubr.bf16.gmra.mrb[52].mxu1 %v7326_v16  ;;  %v7202_v18 = vpack.c.bf16 %v11452_v63, %v11452_v63  ;;  %v7328_v2 = vpack.c.bf16 %v7310_v10, %v7309_v6  ;;  %v7314_v56 = vld [vmem:[#allocation2 + $0x471] sm:$0xff] }
 0x610   :  { %8119 = vmatmul.mubr.bf16.gmra.mrb[56].mxu0 %v7201_v57  ;;  %11138 = vmatprep.mubr.bf16.mxu1 %v7327_v19  ;;  %v7330_v6 = vpack.c.bf16 %v7314_v56, %v7313_v24 }
 0x611   :  { %v14656_v26 = vadd.f32 %v10633_v59, %v14556_v60  ;;  %8126 = vmatprep.mubr.bf16.mxu0 %v7266_v8 }
 0x612   :  { %v10564_v21 = vpop.f32.mrb[204].mxu1 }
 0x613   :  { %v10634_v29 = vpop.f32.mrb[208].mxu0  ;;  %v10565_v32 = vpop.f32.mrb[205].mxu1 }
 0x614   :  { %v10635_v47 = vpop.f32.mrb[209].mxu0  ;;  %v14658_v55 = vadd.f32 %v10565_v32, %v10564_v21  ;;  %v10567_v28 = vpop.f32.mrb[206].mxu1 }
 0x615   :  { %v10636_v1 = vadd.f32 %v10635_v47, %v10634_v29  ;;  %v10637_v9 = vpop.f32.mrb[210].mxu0  ;;  %v10568_v31 = vpop.f32.mrb[207].mxu1 }
 0x616   :  { %v10638_v14 = vpop.f32.mrb[211].mxu0  ;;  %v14663_v19 = vadd.f32 %v10568_v31, %v10567_v28 }
 0x617   :  { %v14661_v60 = vadd.f32 %v10636_v1, %v14567_v48  ;;  %v10639_v59 = vadd.f32 %v10638_v14, %v10637_v9  ;;  %11139 = vmatmul.mubr.bf16.gmra.mrb[56].mxu1 %v7328_v2 }
 0x618   :  { %8127 = vmatmul.mubr.bf16.gmra.mrb[60].mxu0 %v7202_v18  ;;  %11142 = vmatprep.mubr.bf16.mxu1 %v14554_v52 }
 0x619   :  { %v14666_v8 = vadd.f32 %v10639_v59, %v14577_v4 }
 0x61a   :  { %v10570_v57 = vpop.f32.mrb[208].mxu1 }
 0x61b   :  { %v10640_v16 = vpop.f32.mrb[212].mxu0  ;;  %v10571_v21 = vpop.f32.mrb[209].mxu1 }
 0x61c   :  { %v10641_v29 = vpop.f32.mrb[213].mxu0  ;;  %v14669_v10 = vadd.f32 %v10571_v21, %v10570_v57  ;;  %v10573_v32 = vpop.f32.mrb[210].mxu1 }
 0x61d   :  { %v10642_v48 = vadd.f32 %v10641_v29, %v10640_v16  ;;  %v10643_v47 = vpop.f32.mrb[214].mxu0  ;;  %v10574_v63 = vpop.f32.mrb[211].mxu1 }
 0x61e   :  { %v10644_v18 = vpop.f32.mrb[215].mxu0  ;;  %v14674_v4 = vadd.f32 %v10574_v63, %v10573_v32 }
 0x61f   :  { %v14672_v1 = vadd.f32 %v10642_v48, %v14587_v20  ;;  %v10645_v52 = vadd.f32 %v10644_v18, %v10643_v47  ;;  %11143 = vmatmul.mubr.bf16.gmra.mrb[60].mxu1 %v7330_v6 }
 0x621   :  { %v14677_v28 = vadd.f32 %v10645_v52, %v14595_v51 }
 0x622   :  { %v10576_v9 = vpop.f32.mrb[212].mxu1 }
 0x623   :  { %v10646_v31 = vpop.f32.mrb[216].mxu0  ;;  %v10577_v14 = vpop.f32.mrb[213].mxu1 }
 0x624   :  { %v10647_v2 = vpop.f32.mrb[217].mxu0  ;;  %v14679_v59 = vadd.f32 %v10577_v14, %v10576_v9  ;;  %v10579_v56 = vpop.f32.mrb[214].mxu1 }
 0x625   :  { %v10648_v24 = vadd.f32 %v10647_v2, %v10646_v31  ;;  %v10649_v57 = vpop.f32.mrb[218].mxu0  ;;  %v10580_v16 = vpop.f32.mrb[215].mxu1 }
 0x626   :  { %v10650_v21 = vpop.f32.mrb[219].mxu0  ;;  %v14684_v29 = vadd.f32 %v10580_v16, %v10579_v56 }
 0x627   :  { %v14682_v20 = vadd.f32 %v10648_v24, %v14604_v54  ;;  %v10651_v6 = vadd.f32 %v10650_v21, %v10649_v57 }
 0x629   :  { %v14687_v51 = vadd.f32 %v10651_v6, %v14612_v36 }
 0x62a   :  { %v10582_v48 = vpop.f32.mrb[216].mxu1 }
 0x62b   :  { %v10652_v32 = vpop.f32.mrb[220].mxu0  ;;  %v10583_v47 = vpop.f32.mrb[217].mxu1 }
 0x62c   :  { %v10653_v63 = vpop.f32.mrb[221].mxu0  ;;  %v14689_v18 = vadd.f32 %v10583_v47, %v10582_v48  ;;  %v10585_v9 = vpop.f32.mrb[218].mxu1 }
 0x62d   :  { %v10654_v52 = vadd.f32 %v10653_v63, %v10652_v32  ;;  %v10655_v31 = vpop.f32.mrb[222].mxu0  ;;  %v10586_v14 = vpop.f32.mrb[219].mxu1 }
 0x62e   :  { %v10656_v2 = vpop.f32.mrb[223].mxu0  ;;  %v14694_v24 = vadd.f32 %v10586_v14, %v10585_v9 }
 0x62f   :  { %v14692_v54 = vadd.f32 %v10654_v52, %v14615_v30  ;;  %v10657_v56 = vadd.f32 %v10656_v2, %v10655_v31 }
 0x631   :  { %v14697_v36 = vadd.f32 %v10657_v56, %v14620_v44 }
 0x632   :  { %v10588_v57 = vpop.f32.mrb[220].mxu1 }
 0x633   :  { %v10658_v16 = vpop.f32.mrb[224].mxu0  ;;  %v10589_v21 = vpop.f32.mrb[221].mxu1 }
 0x634   :  { %v10659_v6 = vpop.f32.mrb[225].mxu0  ;;  %v14699_v48 = vadd.f32 %v10589_v21, %v10588_v57  ;;  %v10591_v47 = vpop.f32.mrb[222].mxu1 }
 0x635   :  { %v10660_v32 = vadd.f32 %v10659_v6, %v10658_v16  ;;  %v10661_v63 = vpop.f32.mrb[226].mxu0  ;;  %v10592_v13 = vpop.f32.mrb[223].mxu1 }
 0x636   :  { %v10662_v22 = vpop.f32.mrb[227].mxu0  ;;  %v14704_v52 = vadd.f32 %v10592_v13, %v10591_v47 }
 0x637   :  { %v14702_v30 = vadd.f32 %v10660_v32, %v14626_v41  ;;  %v10663_v9 = vadd.f32 %v10662_v22, %v10661_v63 }
 0x639   :  { %v14707_v44 = vadd.f32 %v10663_v9, %v14631_v27 }
 0x63a   :  { %v10722_v14 = vpop.f32.mrb[224].mxu1 }
 0x63b   :  { %v10664_v31 = vpop.f32.mrb[228].mxu0  ;;  %v10723_v56 = vpop.f32.mrb[225].mxu1 }
 0x63c   :  { %v10665_v2 = vpop.f32.mrb[229].mxu0  ;;  %v10724_v21 = vadd.f32 %v10723_v56, %v10722_v14  ;;  %v10725_v6 = vpop.f32.mrb[226].mxu1 }
 0x63d   :  { %v10666_v57 = vadd.f32 %v10665_v2, %v10664_v31  ;;  %v10667_v16 = vpop.f32.mrb[230].mxu0  ;;  %v10726_v23 = vpop.f32.mrb[227].mxu1 }
 0x63e   :  { %v10668_v39 = vpop.f32.mrb[231].mxu0  ;;  %v14713_v13 = vadd.f32 %v10724_v21, %v14618_v49  ;;  %v10727_v41 = vadd.f32 %v10726_v23, %v10725_v6 }
 0x63f   :  { %v14710_v34 = vadd.f32 %v10666_v57, %v14637_v50  ;;  %v10669_v22 = vadd.f32 %v10668_v39, %v10667_v16 }
 0x640   :  { %v14719_v32 = vadd.f32 %v10727_v41, %v14624_v12 }
 0x641   :  { %v14716_v27 = vadd.f32 %v10669_v22, %v14642_v42 }
 0x642   :  { %v10728_v63 = vpop.f32.mrb[228].mxu1 }
 0x643   :  { %v10670_v47 = vpop.f32.mrb[232].mxu0  ;;  %v10729_v31 = vpop.f32.mrb[229].mxu1 }
 0x644   :  { %v10671_v9 = vpop.f32.mrb[233].mxu0  ;;  %v10730_v2 = vadd.f32 %v10729_v31, %v10728_v63  ;;  %v10731_v50 = vpop.f32.mrb[230].mxu1 }
 0x645   :  { %v10672_v14 = vadd.f32 %v10671_v9, %v10670_v47  ;;  %v10673_v56 = vpop.f32.mrb[234].mxu0  ;;  %v10732_v25 = vpop.f32.mrb[231].mxu1 }
 0x646   :  { %v10674_v57 = vpop.f32.mrb[235].mxu0  ;;  %v14725_v23 = vadd.f32 %v10730_v2, %v14629_v33  ;;  %v10733_v42 = vadd.f32 %v10732_v25, %v10731_v50 }
 0x647   :  { %v14722_v49 = vadd.f32 %v10672_v14, %v14648_v37  ;;  %v10675_v39 = vadd.f32 %v10674_v57, %v10673_v56 }
 0x648   :  { %v14731_v21 = vadd.f32 %v10733_v42, %v14635_v62 }
 0x649   :  { %v14728_v12 = vadd.f32 %v10675_v39, %v14653_v46 }
 0x64a   :  { %v10734_v6 = vpop.f32.mrb[232].mxu1 }
 0x64b   :  { %v10676_v16 = vpop.f32.mrb[236].mxu0  ;;  %v10735_v41 = vpop.f32.mrb[233].mxu1 }
 0x64c   :  { %v10677_v22 = vpop.f32.mrb[237].mxu0  ;;  %v10736_v63 = vadd.f32 %v10735_v41, %v10734_v6  ;;  %v10737_v37 = vpop.f32.mrb[234].mxu1 }
 0x64d   :  { %v10678_v47 = vadd.f32 %v10677_v22, %v10676_v16  ;;  %v10679_v9 = vpop.f32.mrb[238].mxu0  ;;  %v10738_v14 = vpop.f32.mrb[235].mxu1 }
 0x64e   :  { %v10680_v31 = vpop.f32.mrb[239].mxu0  ;;  %v14737_v25 = vadd.f32 %v10736_v63, %v14640_v45  ;;  %v10739_v2 = vadd.f32 %v10738_v14, %v10737_v37 }
 0x64f   :  { %v14734_v33 = vadd.f32 %v10678_v47, %v14658_v55  ;;  %v10681_v46 = vadd.f32 %v10680_v31, %v10679_v9 }
 0x650   :  { %v14743_v56 = vadd.f32 %v10739_v2, %v14645_v53 }
 0x651   :  { %v14740_v62 = vadd.f32 %v10681_v46, %v14663_v19 }
 0x652   :  { %v10740_v57 = vpop.f32.mrb[236].mxu1 }
 0x653   :  { %v10682_v50 = vpop.f32.mrb[240].mxu0  ;;  %v10741_v42 = vpop.f32.mrb[237].mxu1 }
 0x654   :  { %v10683_v39 = vpop.f32.mrb[241].mxu0  ;;  %v10742_v6 = vadd.f32 %v10741_v42, %v10740_v57  ;;  %v10743_v55 = vpop.f32.mrb[238].mxu1 }
 0x655   :  { %v10684_v16 = vadd.f32 %v10683_v39, %v10682_v50  ;;  %v10685_v22 = vpop.f32.mrb[242].mxu0  ;;  %v10744_v47 = vpop.f32.mrb[239].mxu1 }
 0x656   :  { %v10686_v41 = vpop.f32.mrb[243].mxu0  ;;  %v14749_v63 = vadd.f32 %v10742_v6, %v14651_v61  ;;  %v10745_v9 = vadd.f32 %v10744_v47, %v10743_v55 }
 0x657   :  { %v14746_v45 = vadd.f32 %v10684_v16, %v14669_v10  ;;  %v10687_v19 = vadd.f32 %v10686_v41, %v10685_v22 }
 0x658   :  { %v14755_v37 = vadd.f32 %v10745_v9, %v14656_v26 }
 0x659   :  { %v14752_v53 = vadd.f32 %v10687_v19, %v14674_v4 }
 0x65a   :  { %v10746_v14 = vpop.f32.mrb[240].mxu1 }
 0x65b   :  { %v10688_v31 = vpop.f32.mrb[244].mxu0  ;;  %v10747_v2 = vpop.f32.mrb[241].mxu1 }
 0x65c   :  { %v10689_v46 = vpop.f32.mrb[245].mxu0  ;;  %v10748_v57 = vadd.f32 %v10747_v2, %v10746_v14  ;;  %v10749_v10 = vpop.f32.mrb[242].mxu1 }
 0x65d   :  { %v10690_v50 = vadd.f32 %v10689_v46, %v10688_v31  ;;  %v10691_v39 = vpop.f32.mrb[246].mxu0  ;;  %v10750_v16 = vpop.f32.mrb[243].mxu1 }
 0x65e   :  { %v10692_v42 = vpop.f32.mrb[247].mxu0  ;;  %v14761_v6 = vadd.f32 %v10748_v57, %v14661_v60  ;;  %v10751_v22 = vadd.f32 %v10750_v16, %v10749_v10 }
 0x65f   :  { %v14758_v61 = vadd.f32 %v10690_v50, %v14679_v59  ;;  %v10693_v4 = vadd.f32 %v10692_v42, %v10691_v39 }
 0x660   :  { %v14767_v55 = vadd.f32 %v10751_v22, %v14666_v8 }
 0x661   :  { %v14764_v26 = vadd.f32 %v10693_v4, %v14684_v29 }
 0x662   :  { %v10752_v47 = vpop.f32.mrb[244].mxu1 }
 0x663   :  { %v10694_v41 = vpop.f32.mrb[248].mxu0  ;;  %v10753_v9 = vpop.f32.mrb[245].mxu1 }
 0x664   :  { %v10695_v19 = vpop.f32.mrb[249].mxu0  ;;  %v10754_v14 = vadd.f32 %v10753_v9, %v10752_v47  ;;  %v10755_v59 = vpop.f32.mrb[246].mxu1 }
 0x665   :  { %v10696_v31 = vadd.f32 %v10695_v19, %v10694_v41  ;;  %v10697_v46 = vpop.f32.mrb[250].mxu0  ;;  %v10756_v50 = vpop.f32.mrb[247].mxu1 }
 0x666   :  { %v10698_v2 = vpop.f32.mrb[251].mxu0  ;;  %v14773_v57 = vadd.f32 %v10754_v14, %v14672_v1  ;;  %v10757_v39 = vadd.f32 %v10756_v50, %v10755_v59  ;;  %v6701_v50 = vmul.f32 %v14458_v35, %v14458_v35 }
 0x667   :  { %v14770_v60 = vadd.f32 %v10696_v31, %v14689_v18  ;;  %v10699_v29 = vadd.f32 %v10698_v2, %v10697_v46 }
 0x668   :  { %v14779_v10 = vadd.f32 %v10757_v39, %v14677_v28  ;;  %v6702_v28 = vmul.f32 %v14466_v58, %v14466_v58 }
 0x669   :  { %v14776_v8 = vadd.f32 %v10699_v29, %v14694_v24 }
 0x66a   :  { %v10758_v16 = vpop.f32.mrb[248].mxu1  ;;  %v6733_v39 = vadd.f32 %v6702_v28, %v6701_v50 }
 0x66b   :  { %v10700_v42 = vpop.f32.mrb[252].mxu0  ;;  %v10759_v22 = vpop.f32.mrb[249].mxu1 }
 0x66c   :  { %v10701_v4 = vpop.f32.mrb[253].mxu0  ;;  %v10760_v47 = vadd.f32 %v10759_v22, %v10758_v16  ;;  %v10761_v18 = vpop.f32.mrb[250].mxu1 }
 0x66d   :  { %v10702_v41 = vadd.f32 %v10701_v4, %v10700_v42  ;;  %v10703_v19 = vpop.f32.mrb[254].mxu0  ;;  %v10762_v31 = vpop.f32.mrb[251].mxu1 }
 0x66e   :  { %v10704_v9 = vpop.f32.mrb[255].mxu0  ;;  %v14785_v14 = vadd.f32 %v10760_v47, %v14682_v20  ;;  %v10763_v46 = vadd.f32 %v10762_v31, %v10761_v18 }
 0x66f   :  { %v14782_v1 = vadd.f32 %v10702_v41, %v14699_v48  ;;  %v10705_v24 = vadd.f32 %v10704_v9, %v10703_v19  ;;  %v6663_v48 = vadd.f32 %v14466_v58, %v14458_v35 }
 0x670   :  { %v14793_v2 = vadd.f32 %v10763_v46, %v14687_v51 }
 0x671   :  { %v14790_v59 = vadd.f32 %v10705_v24, %v14704_v52  ;;  %v6703_v52 = vmul.f32 %v14455_v40, %v14455_v40  ;;  %v6664_v51 = vadd.f32 %v6663_v48, %v14455_v40  ;;  %v6704_v48 = vmul.f32 %v14461_v3, %v14461_v3 }
 0x672   :  { %v10764_v29 = vpop.f32.mrb[252].mxu1 }
 0x673   :  { %v10834_v20 = vpop.f32.mrb[0].mxu0  ;;  %v10765_v42 = vpop.f32.mrb[253].mxu1  ;;  %v6734_v28 = vadd.f32 %v6733_v39, %v6703_v52 }
 0x674   :  { %v10835_v16 = vpop.f32.mrb[1].mxu0  ;;  %v10766_v4 = vadd.f32 %v10765_v42, %v10764_v29  ;;  %v10767_v41 = vpop.f32.mrb[254].mxu1 }
 0x675   :  { %v10836_v22 = vadd.f32 %v10835_v16, %v10834_v20  ;;  %v10837_v47 = vpop.f32.mrb[2].mxu0  ;;  %v10768_v19 = vpop.f32.mrb[255].mxu1  ;;  %v6665_v20 = vadd.f32 %v6664_v51, %v14461_v3  ;;  %v6705_v16 = vmul.f32 %v14479_v11, %v14479_v11 }
 0x676   :  { %v10838_v18 = vpop.f32.mrb[3].mxu0  ;;  %v14803_v9 = vadd.f32 %v10766_v4, %v14692_v54  ;;  %v10769_v31 = vadd.f32 %v10768_v19, %v10767_v41  ;;  %v6735_v4 = vadd.f32 %v6734_v28, %v6704_v48  ;;  %v6706_v28 = vmul.f32 %v14489_v17, %v14489_v17 }
 0x677   :  { %v10839_v24 = vadd.f32 %v10838_v18, %v10837_v47  ;;  %v14806_v46 = vadd.f32 %v10836_v22, %v14713_v13 }
 0x678   :  { %v14809_v50 = vadd.f32 %v10769_v31, %v14697_v36  ;;  %v6736_v3 = vadd.f32 %v6735_v4, %v6705_v16  ;;  %v6707_v4 = vmul.f32 %v14476_v0, %v14476_v0 }
 0x679   :  { %v14812_v29 = vadd.f32 %v10839_v24, %v14719_v32  ;;  %v6666_v32 = vadd.f32 %v6665_v20, %v14479_v11 }
 0x67a   :  { %v10770_v42 = vpop.f32.mrb[0].mxu1 }
 0x67b   :  { %v10840_v54 = vpop.f32.mrb[4].mxu0  ;;  %v10771_v13 = vpop.f32.mrb[1].mxu1  ;;  %v6667_v20 = vadd.f32 %v6666_v32, %v14489_v17 }
 0x67c   :  { %v10841_v22 = vpop.f32.mrb[5].mxu0  ;;  %v10772_v39 = vadd.f32 %v10771_v13, %v10770_v42  ;;  %v10773_v36 = vpop.f32.mrb[2].mxu1  ;;  %v6737_v13 = vadd.f32 %v6736_v3, %v6706_v28 }
 0x67d   :  { %v10842_v41 = vadd.f32 %v10841_v22, %v10840_v54  ;;  %v10843_v47 = vpop.f32.mrb[6].mxu0  ;;  %v10774_v52 = vpop.f32.mrb[3].mxu1 }
 0x67e   :  { %v10844_v19 = vpop.f32.mrb[7].mxu0  ;;  %v14821_v18 = vadd.f32 %v10772_v39, %v14702_v30  ;;  %v10775_v51 = vadd.f32 %v10774_v52, %v10773_v36 }
 0x67f   :  { %v10845_v31 = vadd.f32 %v10844_v19, %v10843_v47  ;;  %v14824_v24 = vadd.f32 %v10842_v41, %v14725_v23 }
 0x680   :  { %v14829_v48 = vadd.f32 %v10775_v51, %v14707_v44  ;;  %v6668_v44 = vadd.f32 %v6667_v20, %v14476_v0  ;;  %v6738_v51 = vadd.f32 %v6737_v13, %v6707_v4  ;;  %v6708_v20 = vmul.f32 %v14484_v38, %v14484_v38 }
 0x681   :  { %v14832_v42 = vadd.f32 %v10845_v31, %v14731_v21 }
 0x682   :  { %v10776_v54 = vpop.f32.mrb[4].mxu1 }
 0x683   :  { %v10846_v30 = vpop.f32.mrb[8].mxu0  ;;  %v10777_v22 = vpop.f32.mrb[5].mxu1 }
 0x684   :  { %v10847_v39 = vpop.f32.mrb[9].mxu0  ;;  %v10778_v36 = vadd.f32 %v10777_v22, %v10776_v54  ;;  %v10779_v41 = vpop.f32.mrb[6].mxu1  ;;  %v6669_v54 = vadd.f32 %v6668_v44, %v14484_v38  ;;  %v6709_v22 = vmul.f32 %v14500_v5, %v14500_v5 }
 0x685   :  { %v10848_v23 = vadd.f32 %v10847_v39, %v10846_v30  ;;  %v10849_v16 = vpop.f32.mrb[10].mxu0  ;;  %v10780_v47 = vpop.f32.mrb[7].mxu1  ;;  %v6739_v39 = vadd.f32 %v6738_v51, %v6708_v20  ;;  %v6710_v51 = vmul.f32 %v14510_v43, %v14510_v43 }
 0x686   :  { %v10850_v52 = vpop.f32.mrb[11].mxu0  ;;  %v14839_v21 = vadd.f32 %v10778_v36, %v14710_v34  ;;  %v10781_v32 = vadd.f32 %v10780_v47, %v10779_v41 }
 0x687   :  { %v10851_v19 = vadd.f32 %v10850_v52, %v10849_v16  ;;  %v14842_v3 = vadd.f32 %v10848_v23, %v14737_v25 }
 0x688   :  { %v14845_v31 = vadd.f32 %v10781_v32, %v14716_v27 }
 0x689   :  { %v14848_v28 = vadd.f32 %v10851_v19, %v14743_v56  ;;  %v6670_v56 = vadd.f32 %v6669_v54, %v14500_v5  ;;  %v6740_v19 = vadd.f32 %v6739_v39, %v6709_v22  ;;  %v6711_v39 = vmul.f32 %v14497_v7, %v14497_v7 }
 0x68a   :  { %v10782_v30 = vpop.f32.mrb[8].mxu1 }
 0x68b   :  { %v10852_v34 = vpop.f32.mrb[12].mxu0  ;;  %v10783_v25 = vpop.f32.mrb[9].mxu1  ;;  %v6671_v54 = vadd.f32 %v6670_v56, %v14510_v43 }
 0x68c   :  { %v10853_v36 = vpop.f32.mrb[13].mxu0  ;;  %v10784_v13 = vadd.f32 %v10783_v25, %v10782_v30  ;;  %v10785_v27 = vpop.f32.mrb[10].mxu1  ;;  %v6741_v25 = vadd.f32 %v6740_v19, %v6710_v51 }
 0x68d   :  { %v10854_v23 = vadd.f32 %v10853_v36, %v10852_v34  ;;  %v10855_v41 = vpop.f32.mrb[14].mxu0  ;;  %v10786_v16 = vpop.f32.mrb[11].mxu1 }
 0x68e   :  { %v10856_v4 = vpop.f32.mrb[15].mxu0  ;;  %v14857_v47 = vadd.f32 %v10784_v13, %v14722_v49  ;;  %v10787_v44 = vadd.f32 %v10786_v16, %v10785_v27 }
 0x68f   :  { %v10857_v52 = vadd.f32 %v10856_v4, %v10855_v41  ;;  %v14860_v32 = vadd.f32 %v10854_v23, %v14749_v63 }
 0x690   :  { %v14865_v20 = vadd.f32 %v10787_v44, %v14728_v12  ;;  %v6672_v12 = vadd.f32 %v6671_v54, %v14497_v7  ;;  %v6712_v54 = vmul.f32 %v14505_v15, %v14505_v15 }
 0x691   :  { %v14868_v30 = vadd.f32 %v10857_v52, %v14755_v37  ;;  %v6742_v52 = vadd.f32 %v6741_v25, %v6711_v39 }
 0x692   :  { %v10788_v34 = vpop.f32.mrb[12].mxu1 }
 0x693   :  { %v10858_v49 = vpop.f32.mrb[16].mxu0  ;;  %v10789_v36 = vpop.f32.mrb[13].mxu1 }
 0x694   :  { %v10859_v13 = vpop.f32.mrb[17].mxu0  ;;  %v10790_v27 = vadd.f32 %v10789_v36, %v10788_v34  ;;  %v10791_v23 = vpop.f32.mrb[14].mxu1  ;;  %v6673_v34 = vadd.f32 %v6672_v12, %v14505_v15  ;;  %v16340_v36 = vld [vmem:[#allocation36_spill] sm:$0xff] }
 0x695   :  { %v10860_v63 = vadd.f32 %v10859_v13, %v10858_v49  ;;  %v10861_v22 = vpop.f32.mrb[18].mxu0  ;;  %v10792_v41 = vpop.f32.mrb[15].mxu1  ;;  %v6713_v13 = vmul.f32 %v16340_v36, %v16340_v36 }
 0x696   :  { %v10862_v16 = vpop.f32.mrb[19].mxu0  ;;  %v14875_v37 = vadd.f32 %v10790_v27, %v14734_v33  ;;  %v10793_v56 = vadd.f32 %v10792_v41, %v10791_v23  ;;  %v6743_v27 = vadd.f32 %v6742_v52, %v6712_v54  ;;  %v16341_v52 = vld [vmem:[#allocation34_spill] sm:$0xff] }
 0x697   :  { %v10863_v4 = vadd.f32 %v10862_v16, %v10861_v22  ;;  %v14878_v44 = vadd.f32 %v10860_v63, %v14761_v6  ;;  %v6714_v54 = vmul.f32 %v16341_v52, %v16341_v52 }
 0x698   :  { %v14881_v19 = vadd.f32 %v10793_v56, %v14740_v62  ;;  %v6744_v15 = vadd.f32 %v6743_v27, %v6713_v13  ;;  %v16342_v27 = vld [vmem:[#allocation32_spill] sm:$0xff] }
 0x699   :  { %v14884_v51 = vadd.f32 %v10863_v4, %v14767_v55  ;;  %v6674_v55 = vadd.f32 %v6673_v34, %v16340_v36 }
 0x69a   :  { %v10794_v49 = vpop.f32.mrb[16].mxu1 }
 0x69b   :  { %v10864_v33 = vpop.f32.mrb[20].mxu0  ;;  %v10795_v6 = vpop.f32.mrb[17].mxu1  ;;  %v6675_v34 = vadd.f32 %v6674_v55, %v16341_v52 }
 0x69c   :  { %v10865_v63 = vpop.f32.mrb[21].mxu0  ;;  %v10796_v25 = vadd.f32 %v10795_v6, %v10794_v49  ;;  %v10797_v62 = vpop.f32.mrb[18].mxu1 }
 0x69d   :  { %v10866_v23 = vadd.f32 %v10865_v63, %v10864_v33  ;;  %v10867_v22 = vpop.f32.mrb[22].mxu0  ;;  %v10798_v39 = vpop.f32.mrb[19].mxu1  ;;  %v6745_v63 = vadd.f32 %v6744_v15, %v6714_v54 }
 0x69e   :  { %v10868_v41 = vpop.f32.mrb[23].mxu0  ;;  %v14893_v16 = vadd.f32 %v10796_v25, %v14746_v45  ;;  %v10799_v12 = vadd.f32 %v10798_v39, %v10797_v62  ;;  %v6715_v39 = vmul.f32 %v16342_v27, %v16342_v27 }
 0x69f   :  { %v10869_v56 = vadd.f32 %v10868_v41, %v10867_v22  ;;  %v14896_v4 = vadd.f32 %v10866_v23, %v14773_v57 }
 0x6a0   :  { %v14901_v49 = vadd.f32 %v10799_v12, %v14752_v53  ;;  %v6676_v53 = vadd.f32 %v6675_v34, %v16342_v27  ;;  %v6746_v54 = vadd.f32 %v6745_v63, %v6715_v39 }
 0x6a1   :  { %v14904_v33 = vadd.f32 %v10869_v56, %v14779_v10 }
 0x6a2   :  { %v10800_v6 = vpop.f32.mrb[20].mxu1 }
 0x6a3   :  { %v10870_v45 = vpop.f32.mrb[24].mxu0  ;;  %v10801_v25 = vpop.f32.mrb[21].mxu1 }
 0x6a4   :  { %v10871_v62 = vpop.f32.mrb[25].mxu0  ;;  %v10802_v22 = vadd.f32 %v10801_v25, %v10800_v6  ;;  %v10803_v23 = vpop.f32.mrb[22].mxu1  ;;  %v16343_v25 = vld [vmem:[#allocation31_spill] sm:$0xff] }
 0x6a5   :  { %v10872_v57 = vadd.f32 %v10871_v62, %v10870_v45  ;;  %v10873_v13 = vpop.f32.mrb[26].mxu0  ;;  %v10804_v41 = vpop.f32.mrb[23].mxu1  ;;  %v6716_v34 = vmul.f32 %v16343_v25, %v16343_v25  ;;  %v6677_v62 = vadd.f32 %v6676_v53, %v16343_v25 }
 0x6a6   :  { %v10874_v12 = vpop.f32.mrb[27].mxu0  ;;  %v14911_v10 = vadd.f32 %v10802_v22, %v14758_v61  ;;  %v10805_v55 = vadd.f32 %v10804_v41, %v10803_v23  ;;  %v16344_v22 = vld [vmem:[#allocation33_spill] sm:$0xff] }
 0x6a7   :  { %v10875_v56 = vadd.f32 %v10874_v12, %v10873_v13  ;;  %v14914_v15 = vadd.f32 %v10872_v57, %v14785_v14  ;;  %v6717_v23 = vmul.f32 %v16344_v22, %v16344_v22  ;;  %v6747_v13 = vadd.f32 %v6746_v54, %v6716_v34  ;;  %v16345_v54 = vld [vmem:[#allocation16_spill] sm:$0xff] }
 0x6a8   :  { %v14917_v6 = vadd.f32 %v10805_v55, %v14764_v26  ;;  %v6718_v34 = vmul.f32 %v16345_v54, %v16345_v54 }
 0x6a9   :  { %v14920_v45 = vadd.f32 %v10875_v56, %v14793_v2  ;;  %v6678_v2 = vadd.f32 %v6677_v62, %v16344_v22  ;;  %v6748_v36 = vadd.f32 %v6747_v13, %v6717_v23  ;;  %v16346_v13 = vld [vmem:[#allocation35_spill] sm:$0xff] }
 0x6aa   :  { %v10806_v27 = vpop.f32.mrb[24].mxu1 }
 0x6ab   :  { %v10876_v61 = vpop.f32.mrb[28].mxu0  ;;  %v10807_v14 = vpop.f32.mrb[25].mxu1  ;;  %v6679_v62 = vadd.f32 %v6678_v2, %v16345_v54 }
 0x6ac   :  { %v10877_v57 = vpop.f32.mrb[29].mxu0  ;;  %v10808_v63 = vadd.f32 %v10807_v14, %v10806_v27  ;;  %v10809_v26 = vpop.f32.mrb[26].mxu1 }
 0x6ad   :  { %v10878_v39 = vadd.f32 %v10877_v57, %v10876_v61  ;;  %v10879_v41 = vpop.f32.mrb[30].mxu0  ;;  %v10810_v12 = vpop.f32.mrb[27].mxu1  ;;  %v6749_v57 = vadd.f32 %v6748_v36, %v6718_v34 }
 0x6ae   :  { %v10880_v55 = vpop.f32.mrb[31].mxu0  ;;  %v14929_v56 = vadd.f32 %v10808_v63, %v14770_v60  ;;  %v10811_v53 = vadd.f32 %v10810_v12, %v10809_v26  ;;  %v6719_v12 = vmul.f32 %v16346_v13, %v16346_v13 }
 0x6af   :  { %v10881_v25 = vadd.f32 %v10880_v55, %v10879_v41  ;;  %v14932_v52 = vadd.f32 %v10878_v39, %v14803_v9 }
 0x6b0   :  { %v14937_v27 = vadd.f32 %v10811_v53, %v14776_v8  ;;  %v6680_v8 = vadd.f32 %v6679_v62, %v16346_v13  ;;  %v6750_v34 = vadd.f32 %v6749_v57, %v6719_v12 }
 0x6b1   :  { %v14940_v61 = vadd.f32 %v10881_v25, %v14809_v50 }
 0x6b2   :  { %v10812_v14 = vpop.f32.mrb[28].mxu1 }
 0x6b3   :  { %v10882_v60 = vpop.f32.mrb[32].mxu0  ;;  %v10813_v63 = vpop.f32.mrb[29].mxu1 }
 0x6b4   :  { %v10883_v26 = vpop.f32.mrb[33].mxu0  ;;  %v10814_v41 = vadd.f32 %v10813_v63, %v10812_v14  ;;  %v10815_v39 = vpop.f32.mrb[30].mxu1  ;;  %v16347_v63 = vld [vmem:[#allocation42_spill] sm:$0xff] }
 0x6b5   :  { %v10884_v9 = vadd.f32 %v10883_v26, %v10882_v60  ;;  %v10885_v23 = vpop.f32.mrb[34].mxu0  ;;  %v10816_v55 = vpop.f32.mrb[31].mxu1  ;;  %v6720_v62 = vmul.f32 %v16347_v63, %v16347_v63  ;;  %v6681_v26 = vadd.f32 %v6680_v8, %v16347_v63 }
 0x6b6   :  { %v10886_v53 = vpop.f32.mrb[35].mxu0  ;;  %v14947_v50 = vadd.f32 %v10814_v41, %v14782_v1  ;;  %v10817_v25 = vadd.f32 %v10816_v55, %v10815_v39  ;;  %v16348_v41 = vld [vmem:[#allocation19_spill] sm:$0xff] }
 0x6b7   :  { %v10887_v2 = vadd.f32 %v10886_v53, %v10885_v23  ;;  %v14950_v36 = vadd.f32 %v10884_v9, %v14821_v18  ;;  %v6721_v39 = vmul.f32 %v16348_v41, %v16348_v41  ;;  %v6751_v23 = vadd.f32 %v6750_v34, %v6720_v62  ;;  %v16353_v62 = vld [vmem:[#allocation18_spill] sm:$0xff] }
 0x6b8   :  { %v14953_v14 = vadd.f32 %v10817_v25, %v14790_v59  ;;  %v6682_v53 = vadd.f32 %v6681_v26, %v16348_v41 }
 0x6b9   :  { %v14956_v60 = vadd.f32 %v10887_v2, %v14829_v48 }
 0x6ba   :  { %v11116_v1 = vpop.f32.mrb[32].mxu1 }
 0x6bb   :  { %v10888_v13 = vpop.f32.mrb[36].mxu0  ;;  %v14964_v18 = vadd.f32 %v11116_v1, %v14824_v24  ;;  %v8169_v59 = vpop.f32.mrb[33].mxu1 }
 0x6bc   :  { %v10889_v57 = vpop.f32.mrb[37].mxu0  ;;  %v14967_v48 = vadd.f32 %v8169_v59, %v14806_v46  ;;  %v11117_v55 = vpop.f32.mrb[34].mxu1  ;;  %v6722_v46 = vmul.f32 %v16353_v62, %v16353_v62 }
 0x6bd   :  { %16349 = vst [vmem:[#allocation38_spill] sm:$0xff] %v14964_v18  ;;  %v10890_v9 = vadd.f32 %v10889_v57, %v10888_v13  ;;  %v10891_v12 = vpop.f32.mrb[38].mxu0  ;;  %v14971_v8 = vadd.f32 %v11117_v55, %v14832_v42  ;;  %v8172_v2 = vpop.f32.mrb[35].mxu1  ;;  %v6752_v13 = vadd.f32 %v6751_v23, %v6721_v39 }
 0x6be   :  { %16350 = vst [vmem:[#allocation40_spill] sm:$0xff] %v14967_v48  ;;  %v10892_v25 = vpop.f32.mrb[39].mxu0  ;;  %v14974_v34 = vadd.f32 %v8172_v2, %v14812_v29  ;;  %v8366_v1 = vmul.f32 %v14967_v48, %v14967_v48  ;;  %v6683_v29 = vadd.f32 %v6682_v53, %v16353_v62 }
 0x6bf   :  { %16351 = vst [vmem:[#allocation41_spill] sm:$0xff] %v14971_v8  ;;  %v10893_v63 = vadd.f32 %v10892_v25, %v10891_v12  ;;  %v14977_v24 = vadd.f32 %v10890_v9, %v14839_v21  ;;  %v8368_v21 = vmul.f32 %v14964_v18, %v14964_v18  ;;  %v6753_v12 = vadd.f32 %v6752_v13, %v6722_v46 }
 0x6c0   :  { %16352 = vst [vmem:[#allocation45_spill] sm:$0xff] %v14974_v34  ;;  %v8328_v42 = vadd.f32 %v14974_v34, %v14967_v48  ;;  %v8367_v26 = vmul.f32 %v14974_v34, %v14974_v34  ;;  %v8369_v55 = vmul.f32 %v14971_v8, %v14971_v8 }
 0x6c1   :  { %v14988_v57 = vadd.f32 %v10893_v63, %v14845_v31 }
 0x6c2   :  { %v8329_v39 = vadd.f32 %v8328_v42, %v14964_v18  ;;  %v8398_v23 = vadd.f32 %v8367_v26, %v8366_v1  ;;  %v11120_v9 = vpop.f32.mrb[36].mxu1  ;;  %v16355_v26 = vld [vmem:[#allocation17_spill] sm:$0xff] }
 0x6c3   :  { %v10894_v59 = vpop.f32.mrb[40].mxu0  ;;  %v14997_v25 = vadd.f32 %v11120_v9, %v14860_v32  ;;  %v8185_v31 = vpop.f32.mrb[37].mxu1  ;;  %v6723_v13 = vmul.f32 %v16355_v26, %v16355_v26  ;;  %v6684_v46 = vadd.f32 %v6683_v29, %v16355_v26 }
 0x6c4   :  { %v10895_v2 = vpop.f32.mrb[41].mxu0  ;;  %v8399_v63 = vadd.f32 %v8398_v23, %v8368_v21  ;;  %v15000_v53 = vadd.f32 %v8185_v31, %v14842_v3  ;;  %v8330_v48 = vadd.f32 %v8329_v39, %v14971_v8  ;;  %v11121_v1 = vpop.f32.mrb[38].mxu1  ;;  %v16357_v8 = vld [vmem:[#allocation21_spill] sm:$0xff] }
 0x6c5   :  { %v10896_v34 = vadd.f32 %v10895_v2, %v10894_v59  ;;  %v10897_v42 = vpop.f32.mrb[42].mxu0  ;;  %v15007_v18 = vadd.f32 %v11121_v1, %v14868_v30  ;;  %v8188_v9 = vpop.f32.mrb[39].mxu1  ;;  %v6754_v31 = vadd.f32 %v6753_v12, %v6723_v13 }
 0x6c6   :  { %16354 = vst [vmem:[#allocation44_spill] sm:$0xff] %v15000_v53  ;;  %v10898_v32 = vpop.f32.mrb[43].mxu0  ;;  %v8331_v21 = vadd.f32 %v8330_v48, %v15000_v53  ;;  %v8370_v3 = vmul.f32 %v15000_v53, %v15000_v53  ;;  %v8400_v23 = vadd.f32 %v8399_v63, %v8369_v55  ;;  %v15013_v39 = vadd.f32 %v8188_v9, %v14848_v28  ;;  %v16359_v9 = vld [vmem:[#allocation22_spill] sm:$0xff] }
 0x6c7   :  { %v10899_v59 = vadd.f32 %v10898_v32, %v10897_v42  ;;  %v15016_v2 = vadd.f32 %v10896_v34, %v14857_v47  ;;  %v6724_v55 = vmul.f32 %v16357_v8, %v16357_v8  ;;  %v6685_v63 = vadd.f32 %v6684_v46, %v16357_v8 }
 0x6c8   :  { %16356 = vst [vmem:[#allocation28_spill] sm:$0xff] %v15013_v39  ;;  %v8401_v29 = vadd.f32 %v8400_v23, %v8370_v3  ;;  %v8332_v1 = vadd.f32 %v8331_v21, %v15013_v39  ;;  %v8371_v48 = vmul.f32 %v15013_v39, %v15013_v39  ;;  %v8372_v47 = vmul.f32 %v14997_v25, %v14997_v25 }
 0x6c9   :  { %v15019_v30 = vadd.f32 %v10899_v59, %v14865_v20  ;;  %v6725_v21 = vmul.f32 %v16359_v9, %v16359_v9  ;;  %v6755_v3 = vadd.f32 %v6754_v31, %v6724_v55  ;;  %v8373_v53 = vmul.f32 %v15007_v18, %v15007_v18 }
 0x6ca   :  { %v11124_v42 = vpop.f32.mrb[40].mxu1  ;;  %v8333_v34 = vadd.f32 %v8332_v1, %v14997_v25  ;;  %v8402_v12 = vadd.f32 %v8401_v29, %v8371_v48 }
 0x6cb   :  { %v10900_v28 = vpop.f32.mrb[44].mxu0  ;;  %v15031_v20 = vadd.f32 %v11124_v42, %v14896_v4  ;;  %v8201_v32 = vpop.f32.mrb[41].mxu1 }
 0x6cc   :  { %v10901_v13 = vpop.f32.mrb[45].mxu0  ;;  %v15036_v46 = vadd.f32 %v8201_v32, %v14878_v44  ;;  %v11125_v39 = vpop.f32.mrb[42].mxu1  ;;  %v8403_v1 = vadd.f32 %v8402_v12, %v8372_v47  ;;  %v8334_v29 = vadd.f32 %v8333_v34, %v15007_v18  ;;  %v6686_v34 = vadd.f32 %v6685_v63, %v16359_v9 }
 0x6cd   :  { %16358 = vst [vmem:[#allocation27_spill] sm:$0xff] %v15031_v20  ;;  %v10902_v23 = vadd.f32 %v10901_v13, %v10900_v28  ;;  %v10903_v59 = vpop.f32.mrb[46].mxu0  ;;  %v15042_v4 = vadd.f32 %v11125_v39, %v14904_v33  ;;  %v8204_v42 = vpop.f32.mrb[43].mxu1 }
 0x6ce   :  { %v10904_v48 = vpop.f32.mrb[47].mxu0  ;;  %v8374_v31 = vmul.f32 %v15036_v46, %v15036_v46  ;;  %v15047_v44 = vadd.f32 %v8204_v42, %v14884_v51  ;;  %v8335_v13 = vadd.f32 %v8334_v29, %v15036_v46  ;;  %v8404_v47 = vadd.f32 %v8403_v1, %v8373_v53  ;;  %v16362_v42 = vld [vmem:[#allocation23_spill] sm:$0xff] }
 0x6cf   :  { %16360 = vst [vmem:[#allocation25_spill] sm:$0xff] %v15042_v4  ;;  %v10905_v55 = vadd.f32 %v10904_v48, %v10903_v59  ;;  %v15050_v28 = vadd.f32 %v10902_v23, %v14875_v37  ;;  %v6756_v59 = vadd.f32 %v6755_v3, %v6725_v21  ;;  %v8376_v37 = vmul.f32 %v15031_v20, %v15031_v20 }
 0x6d0   :  { %16361 = vst [vmem:[#allocation33_spill] sm:$0xff] %v15047_v44  ;;  %v8375_v33 = vmul.f32 %v15047_v44, %v15047_v44  ;;  %v8405_v12 = vadd.f32 %v8404_v47, %v8374_v31  ;;  %v8336_v32 = vadd.f32 %v8335_v13, %v15047_v44  ;;  %v6726_v31 = vmul.f32 %v16362_v42, %v16362_v42 }
 0x6d1   :  { %v15057_v39 = vadd.f32 %v10905_v55, %v14881_v19  ;;  %v6687_v19 = vadd.f32 %v6686_v34, %v16362_v42  ;;  %v8377_v47 = vmul.f32 %v15042_v4, %v15042_v4 }
 0x6d2   :  { %v11128_v48 = vpop.f32.mrb[44].mxu1  ;;  %v8337_v23 = vadd.f32 %v8336_v32, %v15031_v20  ;;  %v8406_v53 = vadd.f32 %v8405_v12, %v8375_v33 }
 0x6d3   :  { %v10906_v51 = vpop.f32.mrb[48].mxu0  ;;  %v15064_v63 = vadd.f32 %v11128_v48, %v14932_v52  ;;  %v8217_v29 = vpop.f32.mrb[45].mxu1 }
 0x6d4   :  { %v10907_v1 = vpop.f32.mrb[49].mxu0  ;;  %v15070_v21 = vadd.f32 %v8217_v29, %v14914_v15  ;;  %v11129_v13 = vpop.f32.mrb[46].mxu1  ;;  %v8407_v33 = vadd.f32 %v8406_v53, %v8376_v37  ;;  %v8338_v52 = vadd.f32 %v8337_v23, %v15042_v4  ;;  %v16365_v53 = vld [vmem:[#allocation20_spill] sm:$0xff]  ;;  %v6757_v4 = vadd.f32 %v6756_v59, %v6726_v31 }
 0x6d5   :  { %v10908_v55 = vadd.f32 %v10907_v1, %v10906_v51  ;;  %v10909_v3 = vpop.f32.mrb[50].mxu0  ;;  %v15076_v12 = vadd.f32 %v11129_v13, %v14940_v61  ;;  %v8220_v34 = vpop.f32.mrb[47].mxu1  ;;  %v6688_v23 = vadd.f32 %v6687_v19, %v16365_v53  ;;  %v8380_v59 = vmul.f32 %v15064_v63, %v15064_v63 }
 0x6d6   :  { %16363 = vst [vmem:[#allocation16_spill] sm:$0xff] %v15070_v21  ;;  %v10910_v32 = vpop.f32.mrb[51].mxu0  ;;  %v8378_v48 = vmul.f32 %v15070_v21, %v15070_v21  ;;  %v15081_v15 = vadd.f32 %v8220_v34, %v14920_v45  ;;  %v8339_v29 = vadd.f32 %v8338_v52, %v15070_v21  ;;  %v8408_v37 = vadd.f32 %v8407_v33, %v8377_v47 }
 0x6d7   :  { %v10911_v51 = vadd.f32 %v10910_v32, %v10909_v3  ;;  %v15084_v1 = vadd.f32 %v10908_v55, %v14893_v16  ;;  %v6727_v45 = vmul.f32 %v16365_v53, %v16365_v53  ;;  %v16366_v16 = vld [vmem:[#allocation15_spill] sm:$0xff]  ;;  %v8381_v21 = vmul.f32 %v15076_v12, %v15076_v12 }
 0x6d8   :  { %16364 = vst [vmem:[#allocation19_spill] sm:$0xff] %v15081_v15  ;;  %v8379_v61 = vmul.f32 %v15081_v15, %v15081_v15  ;;  %v8409_v20 = vadd.f32 %v8408_v37, %v8378_v48  ;;  %v8340_v3 = vadd.f32 %v8339_v29, %v15081_v15  ;;  %v6728_v55 = vmul.f32 %v16366_v16, %v16366_v16 }
 0x6d9   :  { %v15091_v13 = vadd.f32 %v10911_v51, %v14901_v49  ;;  %v6758_v34 = vadd.f32 %v6757_v4, %v6727_v45  ;;  %v6689_v48 = vadd.f32 %v6688_v23, %v16366_v16 }
 0x6da   :  { %v11132_v47 = vpop.f32.mrb[48].mxu1  ;;  %v8341_v19 = vadd.f32 %v8340_v3, %v15064_v63  ;;  %v8410_v31 = vadd.f32 %v8409_v20, %v8379_v61 }
 0x6db   :  { %v10912_v52 = vpop.f32.mrb[52].mxu0  ;;  %v15102_v49 = vadd.f32 %v11132_v47, %v14977_v24  ;;  %v8233_v32 = vpop.f32.mrb[49].mxu1 }
 0x6dc   :  { %v10913_v33 = vpop.f32.mrb[53].mxu0  ;;  %v15106_v29 = vadd.f32 %v8233_v32, %v14950_v36  ;;  %v11133_v15 = vpop.f32.mrb[50].mxu1  ;;  %v8411_v44 = vadd.f32 %v8410_v31, %v8380_v59  ;;  %v8342_v20 = vadd.f32 %v8341_v19, %v15076_v12  ;;  %v16368_v59 = vld [vmem:[#allocation37_spill] sm:$0xff]  ;;  %v6759_v31 = vadd.f32 %v6758_v34, %v6728_v55 }
 0x6dd   :  { %v10914_v51 = vadd.f32 %v10913_v33, %v10912_v52  ;;  %v10915_v37 = vpop.f32.mrb[54].mxu0  ;;  %v15112_v24 = vadd.f32 %v11133_v15, %v14988_v57  ;;  %v8236_v3 = vpop.f32.mrb[51].mxu1  ;;  %v6729_v19 = vmul.f32 %v16368_v59, %v16368_v59 }
 0x6de   :  { %v10916_v61 = vpop.f32.mrb[55].mxu0  ;;  %v8382_v4 = vmul.f32 %v15106_v29, %v15106_v29  ;;  %v15117_v36 = vadd.f32 %v8236_v3, %v14956_v60  ;;  %v8343_v52 = vadd.f32 %v8342_v20, %v15106_v29  ;;  %v8412_v47 = vadd.f32 %v8411_v44, %v8381_v21 }
 0x6df   :  { %16367 = vst [vmem:[#allocation18_spill] sm:$0xff] %v15112_v24  ;;  %v10917_v23 = vadd.f32 %v10916_v61, %v10915_v37  ;;  %v8113_v45 = vadd.f32 %v10914_v51, %v14911_v10  ;;  %v6690_v60 = vadd.f32 %v6689_v48, %v16368_v59  ;;  %v8384_v10 = vmul.f32 %v15102_v49, %v15102_v49 }
 0x6e0   :  { %v8383_v57 = vmul.f32 %v15117_v36, %v15117_v36  ;;  %v8413_v33 = vadd.f32 %v8412_v47, %v8382_v4  ;;  %v8344_v32 = vadd.f32 %v8343_v52, %v15117_v36  ;;  %v6760_v20 = vadd.f32 %v6759_v31, %v6729_v19 }
 0x6e1   :  { %v8116_v15 = vadd.f32 %v10917_v23, %v14917_v6  ;;  %v16369_v6 = vld [vmem:[#allocation24_spill] sm:$0xff]  ;;  %v8385_v47 = vmul.f32 %v15112_v24, %v15112_v24 }
 0x6e2   :  { %v11136_v61 = vpop.f32.mrb[52].mxu1  ;;  %v8345_v44 = vadd.f32 %v8344_v32, %v15102_v49  ;;  %v8414_v21 = vadd.f32 %v8413_v33, %v8383_v57  ;;  %v6730_v3 = vmul.f32 %v16369_v6, %v16369_v6 }
 0x6e3   :  { %v10918_v37 = vpop.f32.mrb[56].mxu0  ;;  %v15132_v55 = vadd.f32 %v11136_v61, %v15050_v28  ;;  %v8249_v51 = vpop.f32.mrb[53].mxu1 }
 0x6e4   :  { %v10919_v34 = vpop.f32.mrb[57].mxu0  ;;  %v15137_v48 = vadd.f32 %v8249_v51, %v15016_v2  ;;  %v11137_v52 = vpop.f32.mrb[54].mxu1  ;;  %v8415_v32 = vadd.f32 %v8414_v21, %v8384_v10  ;;  %v8346_v57 = vadd.f32 %v8345_v44, %v15112_v24  ;;  %v6691_v10 = vadd.f32 %v6690_v60, %v16369_v6 }
 0x6e5   :  { %v10920_v4 = vadd.f32 %v10919_v34, %v10918_v37  ;;  %v10921_v23 = vpop.f32.mrb[58].mxu0  ;;  %v15143_v28 = vadd.f32 %v11137_v52, %v15057_v39  ;;  %v8252_v19 = vpop.f32.mrb[55].mxu1  ;;  %v6761_v44 = vadd.f32 %v6760_v20, %v6730_v3 }
 0x6e6   :  { %v10922_v33 = vpop.f32.mrb[59].mxu0  ;;  %v8386_v31 = vmul.f32 %v15137_v48, %v15137_v48  ;;  %v15148_v2 = vadd.f32 %v8252_v19, %v15019_v30  ;;  %v8347_v34 = vadd.f32 %v8346_v57, %v15137_v48  ;;  %v8416_v51 = vadd.f32 %v8415_v32, %v8385_v47 }
 0x6e7   :  { %v10923_v37 = vadd.f32 %v10922_v33, %v10921_v23  ;;  %v8121_v61 = vadd.f32 %v10920_v4, %v14929_v56  ;;  %v16371_v23 = vld [vmem:[#allocation26_spill] sm:$0xff]  ;;  %v8388_v56 = vmul.f32 %v15132_v55, %v15132_v55 }
 0x6e8   :  { %16370 = vst [vmem:[#allocation17_spill] sm:$0xff] %v15148_v2  ;;  %v8387_v39 = vmul.f32 %v15148_v2, %v15148_v2  ;;  %v8417_v52 = vadd.f32 %v8416_v51, %v8386_v31  ;;  %v8348_v24 = vadd.f32 %v8347_v34, %v15148_v2  ;;  %v6731_v30 = vmul.f32 %v16371_v23, %v16371_v23 }
 0x6e9   :  { %v8124_v21 = vadd.f32 %v10923_v37, %v14937_v27  ;;  %v6692_v27 = vadd.f32 %v6691_v10, %v16371_v23  ;;  %v8389_v51 = vmul.f32 %v15143_v28, %v15143_v28 }
 0x6ea   :  { %v11140_v19 = vpop.f32.mrb[56].mxu1  ;;  %v8349_v4 = vadd.f32 %v8348_v24, %v15132_v55  ;;  %v8418_v60 = vadd.f32 %v8417_v52, %v8387_v39  ;;  %v6762_v32 = vadd.f32 %v6761_v44, %v6731_v30 }
 0x6eb   :  { %v10924_v33 = vpop.f32.mrb[60].mxu0  ;;  %v15162_v20 = vadd.f32 %v11140_v19, %v8113_v45  ;;  %v8265_v47 = vpop.f32.mrb[57].mxu1 }
 0x6ec   :  { %v10925_v3 = vpop.f32.mrb[61].mxu0  ;;  %v15166_v31 = vadd.f32 %v8265_v47, %v15084_v1  ;;  %v11141_v34 = vpop.f32.mrb[58].mxu1  ;;  %v8419_v2 = vadd.f32 %v8418_v60, %v8388_v56  ;;  %v8350_v24 = vadd.f32 %v8349_v4, %v15143_v28 }
 0x6ed   :  { %16372 = vst [vmem:[#allocation21_spill] sm:$0xff] %v15162_v20  ;;  %v10926_v57 = vadd.f32 %v10925_v3, %v10924_v33  ;;  %v10927_v37 = vpop.f32.mrb[62].mxu0  ;;  %v15171_v39 = vadd.f32 %v11141_v34, %v8116_v15  ;;  %v8268_v52 = vpop.f32.mrb[59].mxu1  ;;  %v16376_v3 = vld [vmem:[#allocation39_spill] sm:$0xff] }
 0x6ee   :  { %16373 = vst [vmem:[#allocation22_spill] sm:$0xff] %v15166_v31  ;;  %v10928_v45 = vpop.f32.mrb[63].mxu0  ;;  %v8390_v10 = vmul.f32 %v15166_v31, %v15166_v31  ;;  %v15176_v30 = vadd.f32 %v8268_v52, %v15091_v13  ;;  %v8351_v33 = vadd.f32 %v8350_v24, %v15166_v31  ;;  %v8420_v19 = vadd.f32 %v8419_v2, %v8389_v51 }
 0x6ef   :  { %16374 = vst [vmem:[#allocation23_spill] sm:$0xff] %v15171_v39  ;;  %v10929_v44 = vadd.f32 %v10928_v45, %v10927_v37  ;;  %v8129_v1 = vadd.f32 %v10926_v57, %v14947_v50  ;;  %v6732_v56 = vmul.f32 %v16376_v3, %v16376_v3  ;;  %v6693_v15 = vadd.f32 %v6692_v27, %v16376_v3 }
 0x6f0   :  { %16375 = vst [vmem:[#allocation20_spill] sm:$0xff] %v15176_v30  ;;  %v8391_v4 = vmul.f32 %v15176_v30, %v15176_v30  ;;  %v8421_v47 = vadd.f32 %v8420_v19, %v8390_v10  ;;  %v8352_v37 = vadd.f32 %v8351_v33, %v15176_v30  ;;  %v8392_v50 = vmul.f32 %v15162_v20, %v15162_v20 }
 0x6f1   :  { %v8132_v60 = vadd.f32 %v10929_v44, %v14953_v14  ;;  %v6763_v13 = vadd.f32 %v6762_v32, %v6732_v56  ;;  %v6694_v27 = vrot.slane %v6693_v15, 4  ;;  %v8393_v14 = vmul.f32 %v15171_v39, %v15171_v39 }
 0x6f2   :  { %v11144_v34 = vpop.f32.mrb[60].mxu1  ;;  %v8353_v2 = vadd.f32 %v8352_v37, %v15162_v20  ;;  %v8422_v57 = vadd.f32 %v8421_v47, %v8391_v4 }
 0x6f3   :  { %v15190_v51 = vadd.f32 %v11144_v34, %v8129_v1  ;;  %v8281_v24 = vpop.f32.mrb[61].mxu1  ;;  %v6764_v1 = vrot.slane %v6763_v13, 4  ;;  %v6695_v37 = vadd.f32 %v6694_v27, %v6693_v15 }
 0x6f4   :  { %v15192_v45 = vadd.f32 %v8281_v24, %v8121_v61  ;;  %v11145_v52 = vpop.f32.mrb[62].mxu1  ;;  %v8423_v10 = vadd.f32 %v8422_v57, %v8392_v50  ;;  %v8354_v32 = vadd.f32 %v8353_v2, %v15171_v39 }
 0x6f5   :  { %16377 = vst [vmem:[#allocation15_spill] sm:$0xff] %v15190_v51  ;;  %v15197_v44 = vadd.f32 %v11145_v52, %v8132_v60  ;;  %v8284_v33 = vpop.f32.mrb[63].mxu1  ;;  %v6765_v20 = vadd.f32 %v6764_v1, %v6763_v13  ;;  %v8396_v50 = vmul.f32 %v15190_v51, %v15190_v51  ;;  %v6696_v57 = vrot.slane %v6695_v37, 2 }
 0x6f6   :  { %16378 = vst [vmem:[#allocation37_spill] sm:$0xff] %v15192_v45  ;;  %v8394_v19 = vmul.f32 %v15192_v45, %v15192_v45  ;;  %v8285_v56 = vadd.f32 %v8284_v33, %v8124_v21  ;;  %v8355_v4 = vadd.f32 %v8354_v32, %v15192_v45  ;;  %v8424_v47 = vadd.f32 %v8423_v10, %v8393_v14 }
 0x6f7   :  { %16379 = vst [vmem:[#allocation24_spill] sm:$0xff] %v15197_v44  ;;  %v8397_v52 = vmul.f32 %v15197_v44, %v15197_v44  ;;  %v6766_v32 = vrot.slane %v6765_v20, 2  ;;  %v6697_v15 = vadd.f32 %v6696_v57, %v6695_v37 }
 0x6f8   :  { %v8395_v61 = vmul.f32 %v8285_v56, %v8285_v56  ;;  %v8425_v34 = vadd.f32 %v8424_v47, %v8394_v19  ;;  %v8356_v24 = vadd.f32 %v8355_v4, %v8285_v56 }
 0x6f9   :  { %v6767_v13 = vadd.f32 %v6766_v32, %v6765_v20  ;;  %v6698_v47 = vrot.slane %v6697_v15, 1  ;;  %v4672_v32 = vld [vmem:[%s15998_s5] sm:$0x1]  ;;  %s11556_s5 = smov [#allocation11]  }
 0x6fa   :  { %v8357_v60 = vadd.f32 %v8356_v24, %v15190_v51  ;;  %v8426_v2 = vadd.f32 %v8425_v34, %v8395_v61 }
 0x6fb   :  { %v6768_v61 = vrot.slane %v6767_v13, 1  ;;  %v6699_v39 = vadd.f32 %v6698_v47, %v6697_v15 }
 0x6fc   :  { %v8358_v21 = vadd.f32 %v8357_v60, %v15197_v44  ;;  %v8427_v33 = vadd.f32 %v8426_v2, %v8396_v50 }
 0x6fd   :  { %v6769_v60 = vadd.f32 %v6768_v61, %v6767_v13  ;;  %v16381_v13 = vld [vmem:[#allocation30_spill] sm:$0xff]  ;;  %v16382_v61 = vld [vmem:[#allocation29_spill] sm:$0xff] }
 0x6fe   :  { %v8359_v14 = vrot.slane %v8358_v21, 4  ;;  %v8428_v10 = vadd.f32 %v8427_v33, %v8397_v52 }
 0x700   :  { %v8360_v27 = vadd.f32 %v8359_v14, %v8358_v21  ;;  %v8429_v19 = vrot.slane %v8428_v10, 4 }
 0x702   :  { %v8361_v1 = vrot.slane %v8360_v27, 2  ;;  %v8430_v4 = vadd.f32 %v8429_v19, %v8428_v10 }
 0x704   :  { %v8362_v45 = vadd.f32 %v8361_v1, %v8360_v27  ;;  %v8431_v24 = vrot.slane %v8430_v4, 2 }
 0x706   :  { %v8363_v34 = vrot.slane %v8362_v45, 1  ;;  %v8432_v51 = vadd.f32 %v8431_v24, %v8430_v4 }
 0x708   :  { %v8364_v30 = vadd.f32 %v8363_v34, %v8362_v45  ;;  %v8433_v31 = vrot.slane %v8432_v51, 1  ;;  %v4673_v45 = vld [vmem:[%s15999_s6] sm:$0x1]  ;;  %v16383_v34 = vld [vmem:[#allocation36_spill] sm:$0xff]  ;;  %s8909_s6 = sshll.u32 %s11556_s5, 4  ;;  %s8910_s6 = int_to_ptr.vmem [resolvable:$true] %s8909_s6 }
 0x709   :  { %s11519_s21 = scalar_lea.vmem %s8910_s6, 8192  ;;  %p11524_p11 = scmp.lt.s32.totalorder %s8910_s6, %s8910_s6 }
 0x70a   :  { %v8365_v50 = vadd.f32 %v8364_v30, %v6699_v39  ;;  %v8434_v2 = vadd.f32 %v8433_v31, %v8432_v51  ;;  %v16380_v31 = vld [vmem:[#allocation43_spill] sm:$0xff]  ;;  %p11520_p10 = scmp.ne.s32.totalorder %s8910_s6, %s11519_s21  ;;  %p11525_p12 = scmp.lt.s32.totalorder %s11519_s21, %s11519_s21 }
 0x70c   :  { %v8435_v44 = vadd.f32 %v8434_v2, %v6769_v60  ;;  %v8436_v52 = vmul.f32 0.001953125, %v8365_v50  ;;  %v16384_v60 = vld [vmem:[#allocation34_spill] sm:$0xff]  ;;  %p11526_p13 = por %p11525_p12, %p11524_p11 }
 0x70e   :  { %v8437_v37 = vmul.f32 0.001953125, %v8435_v44  ;;  %v8438_v57 = vmul.f32 %v8436_v52, %v8436_v52  ;;  %p11527_p0 = pnand %p11526_p13, %p11520_p10 }
 0x710   :  { %v8439_v21 = vsub.f32 %v8437_v37, %v8438_v57 }
 0x712   :  { %v8440_v20 = vmax.f32 %v8439_v21, 0.0  ;;  %v16387_v21 = vld [vmem:[#allocation35_spill] sm:$0xff] }
 0x714   :  { %v8441_v33 = vadd.f32 1e-05, %v8440_v20 }
 0x716   :  { %11301 = vrsqrt.f32 %v8441_v33  ;;  %v16388_v33 = vld [vmem:[#allocation42_spill] sm:$0xff] }
 0x720   :  { %v11302_v14 = vpop.eup %11301 }
 0x721   :  { %v8443_v10 = vmul.f32 %v11302_v14, %v4672_v32 }
 0x723   :  { %v8444_v39 = vmul.f32 %v8443_v10, %v8436_v52  ;;  %v15215_v30 = vrot.slane %v8443_v10, %v16380_v31 }
 0x725   :  { %v8445_v51 = vsub.f32 %v4673_v45, %v8444_v39  ;;  %v8639_v44 = vmul.f32 %v15215_v30, %v8285_v56  ;;  %v15220_v15 = vmul.f32 %v15215_v30, %v14458_v35  ;;  %v15224_v27 = vmul.f32 %v15215_v30, %v14466_v58 }
 0x726   :  { %v15228_v19 = vmul.f32 %v15215_v30, %v14455_v40  ;;  %v15232_v1 = vmul.f32 %v15215_v30, %v16381_v13  ;;  %v15236_v4 = vmul.f32 %v15215_v30, %v14479_v11  ;;  %v15240_v35 = vmul.f32 %v15215_v30, %v14489_v17  ;;  %v8507_v11 = vld [vmem:[#allocation5 + $0x1e8] sm:$0xff]  ;;  %v16391_v13 = vld [vmem:[#allocation38_spill] sm:$0xff] }
 0x727   :  { %v15243_v56 = vrot.slane %v8445_v51, %v16380_v31  ;;  %v15247_v58 = vmul.f32 %v15215_v30, %v14476_v0  ;;  %v15251_v40 = vmul.f32 %v15215_v30, %v14484_v38  ;;  %v15255_v47 = vmul.f32 %v15215_v30, %v14500_v5  ;;  %v16389_v51 = vld [vmem:[#allocation40_spill] sm:$0xff] }
 0x728   :  { %v15259_v17 = vmul.f32 %v15215_v30, %v14510_v43  ;;  %v15263_v24 = vmul.f32 %v15215_v30, %v14497_v7  ;;  %v15267_v0 = vmul.f32 %v15215_v30, %v16382_v61  ;;  %v15271_v38 = vmul.f32 %v15215_v30, %v16383_v34  ;;  %v16385_v43 = vld [vmem:[#allocation32_spill] sm:$0xff]  ;;  %v16386_v7 = vld [vmem:[#allocation31_spill] sm:$0xff] }
 0x729   :  { %v8709_v5 = vadd.f32 %v15243_v56, %v8639_v44  ;;  %v15276_v50 = vmul.f32 %v15215_v30, %v16384_v60  ;;  %v15280_v2 = vmul.f32 %v15215_v30, %v16385_v43  ;;  %v15284_v52 = vmul.f32 %v15215_v30, %v16386_v7  ;;  %v16390_v44 = vld [vmem:[#allocation45_spill] sm:$0xff]  ;;  %v16393_v61 = vld [vmem:[#allocation44_spill] sm:$0xff] }
 0x72a   :  { %v15288_v37 = vmul.f32 %v15215_v30, %v16344_v22  ;;  %v15292_v57 = vmul.f32 %v15215_v30, %v16345_v54  ;;  %v15296_v20 = vmul.f32 %v15215_v30, %v16387_v21  ;;  %v15300_v32 = vmul.f32 %v15215_v30, %v16388_v33  ;;  %v16394_v34 = vld [vmem:[#allocation28_spill] sm:$0xff]  ;;  %v16395_v21 = vld [vmem:[#allocation33_spill] sm:$0xff] }
 0x72b   :  { %v8773_v14 = vadd.f32 %v8709_v5, %v8507_v11  ;;  %v15304_v10 = vmul.f32 %v15215_v30, %v16348_v41  ;;  %v15308_v22 = vmul.f32 %v15215_v30, %v16353_v62  ;;  %v15312_v54 = vmul.f32 %v15215_v30, %v16355_v26  ;;  %v16392_v11 = vld [vmem:[#allocation41_spill] sm:$0xff] }
 0x72c   :  { %v15316_v45 = vmul.f32 %v15215_v30, %v16357_v8  ;;  %v15320_v39 = vmul.f32 %v15215_v30, %v16359_v9  ;;  %v15324_v41 = vmul.f32 %v15215_v30, %v16362_v42  ;;  %v15328_v62 = vmul.f32 %v15215_v30, %v16365_v53 }
 0x72d   :  { %v8837_v31 = vmax.f32 %v8773_v14, 0.0  ;;  %v15332_v26 = vmul.f32 %v15215_v30, %v16366_v16  ;;  %v15336_v8 = vmul.f32 %v15215_v30, %v16368_v59  ;;  %v15340_v9 = vmul.f32 %v15215_v30, %v16369_v6  ;;  %v16396_v14 = vld [vmem:[#allocation27_spill] sm:$0xff] }
 0x72e   :  { %v15344_v42 = vmul.f32 %v15215_v30, %v16371_v23  ;;  %v15348_v53 = vmul.f32 %v15215_v30, %v16376_v3  ;;  %v15352_v16 = vmul.f32 %v15215_v30, %v16389_v51  ;;  %v15356_v59 = vmul.f32 %v15215_v30, %v16390_v44  ;;  %v16397_v51 = vld [vmem:[#allocation25_spill] sm:$0xff]  ;;  %v16398_v44 = vld [vmem:[#allocation16_spill] sm:$0xff] }
 0x72f   :  { %8901 = vst [vmem:[#allocation11 + $0x1e8] sm:$0xff] %v8837_v31  ;;  %v15360_v6 = vmul.f32 %v15215_v30, %v16391_v13  ;;  %v15364_v23 = vmul.f32 %v15215_v30, %v16392_v11  ;;  %v15368_v3 = vmul.f32 %v15215_v30, %v16393_v61  ;;  %v15372_v5 = vmul.f32 %v15215_v30, %v16394_v34  ;;  %v16399_v13 = vld [vmem:[#allocation19_spill] sm:$0xff] }
 0x730   :  { %v15376_v60 = vmul.f32 %v15215_v30, %v14997_v25  ;;  %v15380_v43 = vmul.f32 %v15215_v30, %v15007_v18  ;;  %v15384_v7 = vmul.f32 %v15215_v30, %v15036_v46  ;;  %v15388_v33 = vmul.f32 %v15215_v30, %v16395_v21 }
 0x731   :  { %v15392_v31 = vmul.f32 %v15215_v30, %v16396_v14  ;;  %v15396_v25 = vmul.f32 %v15215_v30, %v16397_v51  ;;  %v15400_v18 = vmul.f32 %v15215_v30, %v16398_v44  ;;  %v15404_v46 = vmul.f32 %v15215_v30, %v16399_v13  ;;  %v16400_v51 = vld [vmem:[#allocation18_spill] sm:$0xff]  ;;  %v16403_v44 = vld [vmem:[#allocation17_spill] sm:$0xff] }
 0x732   :  { %v15408_v11 = vmul.f32 %v15215_v30, %v15064_v63  ;;  %v15412_v61 = vmul.f32 %v15215_v30, %v15076_v12  ;;  %v15416_v34 = vmul.f32 %v15215_v30, %v15106_v29  ;;  %v15420_v21 = vmul.f32 %v15215_v30, %v15117_v36  ;;  %v16407_v13 = vld [vmem:[#allocation22_spill] sm:$0xff] }
 0x733   :  { %v15424_v14 = vmul.f32 %v15215_v30, %v15102_v49  ;;  %v15428_v63 = vmul.f32 %v15215_v30, %v16400_v51  ;;  %v15432_v12 = vmul.f32 %v15215_v30, %v15137_v48  ;;  %v15436_v29 = vmul.f32 %v15215_v30, %v16403_v44 }
 0x734   :  { %v15440_v36 = vmul.f32 %v15215_v30, %v15132_v55  ;;  %v15444_v49 = vmul.f32 %v15215_v30, %v15143_v28  ;;  %v15448_v51 = vmul.f32 %v15215_v30, %v16407_v13 }
 0x735   :  { %16401 = vst [vmem:[#allocation26_spill] sm:$0xff] %v15428_v63  ;;  %16402 = vst [vmem:[#allocation39_spill] sm:$0xff] %v15432_v12  ;;  %v16409_v63 = vld [vmem:[#allocation20_spill] sm:$0xff]  ;;  %v16410_v12 = vld [vmem:[#allocation21_spill] sm:$0xff] }
 0x736   :  { %16404 = vst [vmem:[#allocation43_spill] sm:$0xff] %v15436_v29  ;;  %16405 = vst [vmem:[#allocation30_spill] sm:$0xff] %v15440_v36  ;;  %v15452_v48 = vmul.f32 %v15215_v30, %v16409_v63  ;;  %v15456_v44 = vmul.f32 %v15215_v30, %v16410_v12  ;;  %v16411_v29 = vld [vmem:[#allocation23_spill] sm:$0xff]  ;;  %v16412_v36 = vld [vmem:[#allocation37_spill] sm:$0xff]  ;;  %v15476_v12 = vadd.f32 %v15243_v56, %v15220_v15 }
 0x737   :  { %16406 = vst [vmem:[#allocation29_spill] sm:$0xff] %v15444_v49  ;;  %16408 = vst [vmem:[#allocation36_spill] sm:$0xff] %v15448_v51  ;;  %v15460_v55 = vmul.f32 %v15215_v30, %v16411_v29  ;;  %v15464_v28 = vmul.f32 %v15215_v30, %v16412_v36  ;;  %v16413_v49 = vld [vmem:[#allocation15_spill] sm:$0xff]  ;;  %v16414_v51 = vld [vmem:[#allocation24_spill] sm:$0xff]  ;;  %v15480_v29 = vadd.f32 %v15243_v56, %v15224_v27 }
 0x738   :  { %v15468_v13 = vmul.f32 %v15215_v30, %v16413_v49  ;;  %v15472_v63 = vmul.f32 %v15215_v30, %v16414_v51  ;;  %v15484_v36 = vadd.f32 %v15243_v56, %v15228_v19  ;;  %v15488_v49 = vadd.f32 %v15243_v56, %v15232_v1  ;;  %v8448_v51 = vld [vmem:[#allocation5 + $0x10] sm:$0xff] }
 0x739   :  { %v15492_v30 = vadd.f32 %v15243_v56, %v15236_v4  ;;  %v15496_v15 = vadd.f32 %v15243_v56, %v15240_v35  ;;  %v15500_v27 = vadd.f32 %v15243_v56, %v15247_v58  ;;  %v15504_v19 = vadd.f32 %v15243_v56, %v15251_v40 }
 0x73a   :  { %v15508_v1 = vadd.f32 %v15243_v56, %v15255_v47  ;;  %v15512_v4 = vadd.f32 %v15243_v56, %v15259_v17  ;;  %v15516_v35 = vadd.f32 %v15243_v56, %v15263_v24  ;;  %v15520_v58 = vadd.f32 %v15243_v56, %v15267_v0 }
 0x73b   :  { %v15524_v40 = vadd.f32 %v15243_v56, %v15271_v38  ;;  %v15528_v47 = vadd.f32 %v15243_v56, %v15276_v50  ;;  %v15532_v17 = vadd.f32 %v15243_v56, %v15280_v2  ;;  %v15536_v24 = vadd.f32 %v15243_v56, %v15284_v52 }
 0x73c   :  { %v15540_v0 = vadd.f32 %v15243_v56, %v15288_v37  ;;  %v15544_v38 = vadd.f32 %v15243_v56, %v15292_v57  ;;  %v15548_v50 = vadd.f32 %v15243_v56, %v15296_v20  ;;  %v15552_v2 = vadd.f32 %v15243_v56, %v15300_v32 }
 0x73d   :  { %v15556_v52 = vadd.f32 %v15243_v56, %v15304_v10  ;;  %v15560_v37 = vadd.f32 %v15243_v56, %v15308_v22  ;;  %v15564_v57 = vadd.f32 %v15243_v56, %v15312_v54  ;;  %v15568_v20 = vadd.f32 %v15243_v56, %v15316_v45 }
 0x73e   :  { %v15572_v32 = vadd.f32 %v15243_v56, %v15320_v39  ;;  %v15576_v10 = vadd.f32 %v15243_v56, %v15324_v41  ;;  %v15580_v22 = vadd.f32 %v15243_v56, %v15328_v62  ;;  %v15584_v54 = vadd.f32 %v15243_v56, %v15332_v26 }
 0x73f   :  { %v15588_v45 = vadd.f32 %v15243_v56, %v15336_v8  ;;  %v15592_v39 = vadd.f32 %v15243_v56, %v15340_v9  ;;  %v15596_v41 = vadd.f32 %v15243_v56, %v15344_v42  ;;  %v15600_v62 = vadd.f32 %v15243_v56, %v15348_v53 }
 0x740   :  { %v15604_v26 = vadd.f32 %v15243_v56, %v15352_v16  ;;  %v15608_v8 = vadd.f32 %v15243_v56, %v15356_v59  ;;  %v15612_v9 = vadd.f32 %v15243_v56, %v15360_v6  ;;  %v15616_v42 = vadd.f32 %v15243_v56, %v15364_v23 }
 0x741   :  { %16415 = vst [vmem:[#allocation34_spill] sm:$0xff] %v15596_v41  ;;  %16416 = vst [vmem:[#allocation32_spill] sm:$0xff] %v15600_v62  ;;  %v15620_v53 = vadd.f32 %v15243_v56, %v15368_v3  ;;  %v15624_v16 = vadd.f32 %v15243_v56, %v15372_v5  ;;  %v15628_v59 = vadd.f32 %v15243_v56, %v15376_v60  ;;  %v8449_v60 = vld [vmem:[#allocation5 + $0x18] sm:$0xff]  ;;  %v8463_v62 = vld [vmem:[#allocation5 + $0x88] sm:$0xff] }
 0x742   :  { %16417 = vst [vmem:[#allocation31_spill] sm:$0xff] %v15604_v26  ;;  %16418 = vst [vmem:[#allocation35_spill] sm:$0xff] %v15608_v8  ;;  %v15632_v6 = vadd.f32 %v15243_v56, %v15380_v43  ;;  %v15636_v23 = vadd.f32 %v15243_v56, %v15384_v7  ;;  %v15640_v3 = vadd.f32 %v15243_v56, %v15388_v33  ;;  %v8459_v8 = vld [vmem:[#allocation5 + $0x68] sm:$0xff]  ;;  %v16444_v26 = vld [vmem:[#allocation29_spill] sm:$0xff] }
 0x743   :  { %16419 = vst [vmem:[#allocation42_spill] sm:$0xff] %v15612_v9  ;;  %16420 = vst [vmem:[#allocation40_spill] sm:$0xff] %v15616_v42  ;;  %v15644_v5 = vadd.f32 %v15243_v56, %v15392_v31  ;;  %v15648_v43 = vadd.f32 %v15243_v56, %v15396_v25  ;;  %v15652_v7 = vadd.f32 %v15243_v56, %v15400_v18  ;;  %v8458_v42 = vld [vmem:[#allocation5 + $0x60] sm:$0xff]  ;;  %v8461_v9 = vld [vmem:[#allocation5 + $0x78] sm:$0xff] }
 0x744   :  { %16421 = vst [vmem:[#allocation45_spill] sm:$0xff] %v15620_v53  ;;  %16422 = vst [vmem:[#allocation38_spill] sm:$0xff] %v15624_v16  ;;  %v8446_v16 = vld [vmem:[#allocation5] sm:$0xff]  ;;  %v15656_v33 = vadd.f32 %v15243_v56, %v15404_v46  ;;  %v15660_v31 = vadd.f32 %v15243_v56, %v15408_v11  ;;  %v15664_v25 = vadd.f32 %v15243_v56, %v15412_v61  ;;  %v16436_v53 = vld [vmem:[#allocation26_spill] sm:$0xff] }
 0x745   :  { %16423 = vst [vmem:[#allocation41_spill] sm:$0xff] %v15628_v59  ;;  %16424 = vst [vmem:[#allocation44_spill] sm:$0xff] %v15632_v6  ;;  %v8447_v59 = vld [vmem:[#allocation5 + $0x8] sm:$0xff]  ;;  %v15668_v18 = vadd.f32 %v15243_v56, %v15416_v34  ;;  %v15672_v46 = vadd.f32 %v15243_v56, %v15420_v21  ;;  %v15676_v11 = vadd.f32 %v15243_v56, %v15424_v14 }
 0x746   :  { %16425 = vst [vmem:[#allocation28_spill] sm:$0xff] %v15636_v23  ;;  %16426 = vst [vmem:[#allocation33_spill] sm:$0xff] %v15640_v3  ;;  %v8450_v3 = vld [vmem:[#allocation5 + $0x20] sm:$0xff]  ;;  %v8453_v23 = vld [vmem:[#allocation5 + $0x38] sm:$0xff]  ;;  %v15680_v61 = vadd.f32 %v15243_v56, %v16436_v53  ;;  %v15696_v53 = vadd.f32 %v15243_v56, %v16444_v26  ;;  %v15712_v26 = vadd.f32 %v15243_v56, %v15460_v55 }
 0x747   :  { %16427 = vst [vmem:[#allocation27_spill] sm:$0xff] %v15644_v5  ;;  %16428 = vst [vmem:[#allocation25_spill] sm:$0xff] %v15648_v43  ;;  %v8452_v5 = vld [vmem:[#allocation5 + $0x30] sm:$0xff]  ;;  %v8451_v6 = vld [vmem:[#allocation5 + $0x28] sm:$0xff]  ;;  %v15727_v41 = vadd.f32 %v15476_v12, %v8446_v16  ;;  %v15730_v55 = vadd.f32 %v15480_v29, %v8447_v59  ;;  %v15748_v29 = vadd.f32 %v15504_v19, %v8453_v23 }
 0x748   :  { %16429 = vst [vmem:[#allocation16_spill] sm:$0xff] %v15652_v7  ;;  %16430 = vst [vmem:[#allocation19_spill] sm:$0xff] %v15656_v33  ;;  %v8454_v33 = vld [vmem:[#allocation5 + $0x40] sm:$0xff]  ;;  %v8457_v7 = vld [vmem:[#allocation5 + $0x58] sm:$0xff]  ;;  %v15745_v12 = vadd.f32 %v15500_v27, %v8452_v5  ;;  %v15766_v5 = vadd.f32 %v15528_v47, %v8459_v8 }
 0x749   :  { %16431 = vst [vmem:[#allocation18_spill] sm:$0xff] %v15660_v31  ;;  %16432 = vst [vmem:[#allocation17_spill] sm:$0xff] %v15664_v25  ;;  %v8456_v31 = vld [vmem:[#allocation5 + $0x50] sm:$0xff]  ;;  %v8455_v43 = vld [vmem:[#allocation5 + $0x48] sm:$0xff] }
 0x74a   :  { %16433 = vst [vmem:[#allocation22_spill] sm:$0xff] %v15668_v18  ;;  %16434 = vst [vmem:[#allocation20_spill] sm:$0xff] %v15672_v46  ;;  %v16438_v25 = vld [vmem:[#allocation39_spill] sm:$0xff]  ;;  %v16442_v46 = vld [vmem:[#allocation30_spill] sm:$0xff] }
 0x74b   :  { %16435 = vst [vmem:[#allocation21_spill] sm:$0xff] %v15676_v11  ;;  %16437 = vst [vmem:[#allocation23_spill] sm:$0xff] %v15680_v61  ;;  %v15684_v34 = vadd.f32 %v15243_v56, %v16438_v25  ;;  %v16440_v18 = vld [vmem:[#allocation43_spill] sm:$0xff]  ;;  %v15692_v14 = vadd.f32 %v15243_v56, %v16442_v46  ;;  %v8460_v11 = vld [vmem:[#allocation5 + $0x70] sm:$0xff]  ;;  %v15708_v46 = vadd.f32 %v15243_v56, %v15456_v44 }
 0x74c   :  { %v15688_v21 = vadd.f32 %v15243_v56, %v16440_v18  ;;  %16445 = vst [vmem:[#allocation26_spill] sm:$0xff] %v15696_v53  ;;  %v16446_v61 = vld [vmem:[#allocation36_spill] sm:$0xff]  ;;  %v15704_v18 = vadd.f32 %v15243_v56, %v15452_v48  ;;  %16450 = vst [vmem:[#allocation29_spill] sm:$0xff] %v15712_v26  ;;  %v15720_v48 = vadd.f32 %v15243_v56, %v15468_v13  ;;  %v8474_v16 = vld [vmem:[#allocation5 + $0xe0] sm:$0xff] }
 0x74d   :  { %16439 = vst [vmem:[#allocation37_spill] sm:$0xff] %v15684_v34  ;;  %16443 = vst [vmem:[#allocation24_spill] sm:$0xff] %v15692_v14  ;;  %v15700_v25 = vadd.f32 %v15243_v56, %v16446_v61  ;;  %v8464_v14 = vld [vmem:[#allocation5 + $0x90] sm:$0xff]  ;;  %v8465_v34 = vld [vmem:[#allocation5 + $0x98] sm:$0xff]  ;;  %v15716_v61 = vadd.f32 %v15243_v56, %v15464_v28  ;;  %v15724_v44 = vadd.f32 %v15243_v56, %v15472_v63 }
 0x74e   :  { %16441 = vst [vmem:[#allocation15_spill] sm:$0xff] %v15688_v21  ;;  %16448 = vst [vmem:[#allocation43_spill] sm:$0xff] %v15704_v18  ;;  %v8462_v21 = vld [vmem:[#allocation5 + $0x80] sm:$0xff]  ;;  %v8467_v53 = vld [vmem:[#allocation5 + $0xa8] sm:$0xff]  ;;  %v15733_v28 = vadd.f32 %v15484_v36, %v8448_v51  ;;  %v15736_v13 = vadd.f32 %v15488_v49, %v8449_v60  ;;  %v15742_v26 = vadd.f32 %v15496_v15, %v8451_v6 }
 0x74f   :  { %16447 = vst [vmem:[#allocation39_spill] sm:$0xff] %v15700_v25  ;;  %16449 = vst [vmem:[#allocation30_spill] sm:$0xff] %v15708_v46  ;;  %v8468_v46 = vld [vmem:[#allocation5 + $0xb0] sm:$0xff]  ;;  %v8466_v18 = vld [vmem:[#allocation5 + $0xa0] sm:$0xff]  ;;  %v15751_v51 = vadd.f32 %v15508_v1, %v8454_v33  ;;  %v15754_v60 = vadd.f32 %v15512_v4, %v8455_v43  ;;  %v15760_v15 = vadd.f32 %v15520_v58, %v8457_v7 }
 0x750   :  { %16451 = vst [vmem:[#allocation36_spill] sm:$0xff] %v15716_v61  ;;  %16452 = vst [vmem:[#allocation46_spill] sm:$0xff] %v15720_v48  ;;  %v8469_v25 = vld [vmem:[#allocation5 + $0xb8] sm:$0xff]  ;;  %v8472_v48 = vld [vmem:[#allocation5 + $0xd0] sm:$0xff]  ;;  %v15769_v1 = vadd.f32 %v15532_v17, %v8460_v11  ;;  %v15772_v4 = vadd.f32 %v15536_v24, %v8461_v9  ;;  %v15775_v7 = vadd.f32 %v15540_v0, %v8462_v21 }
 0x751   :  { %16453 = vst [vmem:[#allocation47_spill] sm:$0xff] %v15724_v44  ;;  %v8470_v61 = vld [vmem:[#allocation5 + $0xc0] sm:$0xff]  ;;  %v8473_v56 = vld [vmem:[#allocation5 + $0xd8] sm:$0xff]  ;;  %v8471_v63 = vld [vmem:[#allocation5 + $0xc8] sm:$0xff]  ;;  %v15739_v44 = vadd.f32 %v15492_v30, %v8450_v3  ;;  %v15757_v30 = vadd.f32 %v15516_v35, %v8456_v31  ;;  %v15763_v3 = vadd.f32 %v15524_v40, %v8458_v42  ;;  %v15778_v33 = vadd.f32 %v15544_v38, %v8463_v62 }
 0x752   :  { %v8476_v36 = vld [vmem:[#allocation5 + $0xf0] sm:$0xff]  ;;  %v8477_v49 = vld [vmem:[#allocation5 + $0xf8] sm:$0xff]  ;;  %v8475_v59 = vld [vmem:[#allocation5 + $0xe8] sm:$0xff]  ;;  %v15781_v40 = vadd.f32 %v15548_v50, %v8464_v14  ;;  %v15784_v47 = vadd.f32 %v15552_v2, %v8465_v34  ;;  %v15787_v24 = vadd.f32 %v15556_v52, %v8466_v18  ;;  %v15790_v9 = vadd.f32 %v15560_v37, %v8467_v53 }
 0x753   :  { %v8480_v27 = vld [vmem:[#allocation5 + $0x110] sm:$0xff]  ;;  %v8478_v6 = vld [vmem:[#allocation5 + $0x100] sm:$0xff]  ;;  %v8481_v19 = vld [vmem:[#allocation5 + $0x118] sm:$0xff]  ;;  %v15793_v0 = vadd.f32 %v15564_v57, %v8468_v46  ;;  %v15796_v38 = vadd.f32 %v15568_v20, %v8469_v25  ;;  %v15799_v2 = vadd.f32 %v15572_v32, %v8470_v61  ;;  %v15802_v11 = vadd.f32 %v15576_v10, %v8471_v63 }
 0x754   :  { %v8479_v23 = vld [vmem:[#allocation5 + $0x108] sm:$0xff]  ;;  %v8484_v35 = vld [vmem:[#allocation5 + $0x130] sm:$0xff]  ;;  %v8482_v43 = vld [vmem:[#allocation5 + $0x120] sm:$0xff]  ;;  %v15805_v52 = vadd.f32 %v15580_v22, %v8472_v48  ;;  %v15808_v37 = vadd.f32 %v15584_v54, %v8473_v56  ;;  %v15811_v20 = vadd.f32 %v15588_v45, %v8474_v16  ;;  %v15814_v14 = vadd.f32 %v15592_v39, %v8475_v59 }
 0x755   :  { %v8485_v58 = vld [vmem:[#allocation5 + $0x138] sm:$0xff]  ;;  %v8483_v17 = vld [vmem:[#allocation5 + $0x128] sm:$0xff]  ;;  %v8488_v8 = vld [vmem:[#allocation5 + $0x150] sm:$0xff] }
 0x756   :  { %v8486_v42 = vld [vmem:[#allocation5 + $0x140] sm:$0xff]  ;;  %v8489_v50 = vld [vmem:[#allocation5 + $0x158] sm:$0xff]  ;;  %v8487_v62 = vld [vmem:[#allocation5 + $0x148] sm:$0xff] }
 0x757   :  { %v8492_v31 = vld [vmem:[#allocation5 + $0x170] sm:$0xff]  ;;  %v8490_v57 = vld [vmem:[#allocation5 + $0x160] sm:$0xff]  ;;  %v8493_v34 = vld [vmem:[#allocation5 + $0x178] sm:$0xff] }
 0x758   :  { %v8491_v21 = vld [vmem:[#allocation5 + $0x168] sm:$0xff]  ;;  %v16454_v32 = vld [vmem:[#allocation34_spill] sm:$0xff]  ;;  %v8496_v22 = vld [vmem:[#allocation5 + $0x190] sm:$0xff] }
 0x759   :  { %v15817_v53 = vadd.f32 %v16454_v32, %v8476_v36  ;;  %v16456_v10 = vld [vmem:[#allocation32_spill] sm:$0xff]  ;;  %v8494_v18 = vld [vmem:[#allocation5 + $0x180] sm:$0xff]  ;;  %v8497_v46 = vld [vmem:[#allocation5 + $0x198] sm:$0xff] }
 0x75a   :  { %v15820_v25 = vadd.f32 %v16456_v10, %v8477_v49  ;;  %v16458_v54 = vld [vmem:[#allocation31_spill] sm:$0xff]  ;;  %v16461_v45 = vld [vmem:[#allocation42_spill] sm:$0xff]  ;;  %v16463_v39 = vld [vmem:[#allocation40_spill] sm:$0xff] }
 0x75b   :  { %16455 = vst [vmem:[#allocation34_spill] sm:$0xff] %v15817_v53  ;;  %v15823_v61 = vadd.f32 %v16458_v54, %v8478_v6  ;;  %v16459_v48 = vld [vmem:[#allocation35_spill] sm:$0xff]  ;;  %v15829_v63 = vadd.f32 %v16461_v45, %v8480_v27  ;;  %v15832_v16 = vadd.f32 %v16463_v39, %v8481_v19  ;;  %v8495_v36 = vld [vmem:[#allocation5 + $0x188] sm:$0xff]  ;;  %v8500_v59 = vld [vmem:[#allocation5 + $0x1b0] sm:$0xff] }
 0x75c   :  { %16457 = vst [vmem:[#allocation32_spill] sm:$0xff] %v15820_v25  ;;  %v15826_v56 = vadd.f32 %v16459_v48, %v8479_v23  ;;  %v8498_v32 = vld [vmem:[#allocation5 + $0x1a0] sm:$0xff]  ;;  %v16465_v49 = vld [vmem:[#allocation45_spill] sm:$0xff]  ;;  %v16466_v25 = vld [vmem:[#allocation38_spill] sm:$0xff] }
 0x75d   :  { %16462 = vst [vmem:[#allocation35_spill] sm:$0xff] %v15829_v63  ;;  %16464 = vst [vmem:[#allocation42_spill] sm:$0xff] %v15832_v16  ;;  %v15835_v10 = vadd.f32 %v16465_v49, %v8482_v43  ;;  %v15838_v53 = vadd.f32 %v16466_v25, %v8483_v17  ;;  %v16468_v6 = vld [vmem:[#allocation41_spill] sm:$0xff]  ;;  %v16470_v23 = vld [vmem:[#allocation44_spill] sm:$0xff] }
 0x75e   :  { %16460 = vst [vmem:[#allocation31_spill] sm:$0xff] %v15826_v56  ;;  %v15841_v54 = vadd.f32 %v16468_v6, %v8484_v35  ;;  %v15844_v48 = vadd.f32 %v16470_v23, %v8485_v58  ;;  %v8501_v27 = vld [vmem:[#allocation5 + $0x1b8] sm:$0xff]  ;;  %v8499_v45 = vld [vmem:[#allocation5 + $0x1a8] sm:$0xff]  ;;  %v8504_v63 = vld [vmem:[#allocation5 + $0x1d0] sm:$0xff] }
 0x75f   :  { %16467 = vst [vmem:[#allocation40_spill] sm:$0xff] %v15838_v53  ;;  %v16472_v19 = vld [vmem:[#allocation28_spill] sm:$0xff]  ;;  %v16473_v16 = vld [vmem:[#allocation33_spill] sm:$0xff]  ;;  %v16475_v43 = vld [vmem:[#allocation27_spill] sm:$0xff] }
 0x760   :  { %16469 = vst [vmem:[#allocation45_spill] sm:$0xff] %v15841_v54  ;;  %16471 = vst [vmem:[#allocation38_spill] sm:$0xff] %v15844_v48  ;;  %v15847_v39 = vadd.f32 %v16472_v19, %v8486_v42  ;;  %v15850_v56 = vadd.f32 %v16473_v16, %v8487_v62  ;;  %v15853_v49 = vadd.f32 %v16475_v43, %v8488_v8  ;;  %v16477_v17 = vld [vmem:[#allocation25_spill] sm:$0xff]  ;;  %v8502_v35 = vld [vmem:[#allocation5 + $0x1c0] sm:$0xff] }
 0x761   :  { %v15856_v25 = vadd.f32 %v16477_v17, %v8489_v50  ;;  %v8505_v6 = vld [vmem:[#allocation5 + $0x1d8] sm:$0xff]  ;;  %v8503_v54 = vld [vmem:[#allocation5 + $0x1c8] sm:$0xff]  ;;  %v16480_v48 = vld [vmem:[#allocation19_spill] sm:$0xff] }
 0x762   :  { %16474 = vst [vmem:[#allocation41_spill] sm:$0xff] %v15850_v56  ;;  %16476 = vst [vmem:[#allocation44_spill] sm:$0xff] %v15853_v49  ;;  %v16479_v58 = vld [vmem:[#allocation16_spill] sm:$0xff]  ;;  %v15862_v53 = vadd.f32 %v16480_v48, %v8491_v21  ;;  %v16481_v42 = vld [vmem:[#allocation18_spill] sm:$0xff] }
 0x763   :  { %16478 = vst [vmem:[#allocation28_spill] sm:$0xff] %v15856_v25  ;;  %v15859_v23 = vadd.f32 %v16479_v58, %v8490_v57  ;;  %v15865_v19 = vadd.f32 %v16481_v42, %v8492_v31  ;;  %v16483_v62 = vld [vmem:[#allocation17_spill] sm:$0xff]  ;;  %v8506_v43 = vld [vmem:[#allocation5 + $0x1e0] sm:$0xff]  ;;  %v8509_v49 = vld [vmem:[#allocation5 + $0x1f8] sm:$0xff] }
 0x764   :  { %v15868_v16 = vadd.f32 %v16483_v62, %v8493_v34  ;;  %v8508_v8 = vld [vmem:[#allocation5 + $0x1f0] sm:$0xff]  ;;  %v16485_v50 = vld [vmem:[#allocation22_spill] sm:$0xff]  ;;  %v16486_v25 = vld [vmem:[#allocation20_spill] sm:$0xff] }
 0x765   :  { %16482 = vst [vmem:[#allocation33_spill] sm:$0xff] %v15865_v19  ;;  %v15871_v17 = vadd.f32 %v16485_v50, %v8494_v18  ;;  %v15874_v56 = vadd.f32 %v16486_v25, %v8495_v36  ;;  %v16487_v57 = vld [vmem:[#allocation21_spill] sm:$0xff]  ;;  %v16488_v21 = vld [vmem:[#allocation23_spill] sm:$0xff]  ;;  %v16492_v18 = vld [vmem:[#allocation26_spill] sm:$0xff] }
 0x766   :  { %16484 = vst [vmem:[#allocation27_spill] sm:$0xff] %v15868_v16  ;;  %v15877_v58 = vadd.f32 %v16487_v57, %v8496_v22  ;;  %v15880_v48 = vadd.f32 %v16488_v21, %v8497_v46  ;;  %v16489_v31 = vld [vmem:[#allocation37_spill] sm:$0xff]  ;;  %v16490_v34 = vld [vmem:[#allocation15_spill] sm:$0xff]  ;;  %v16491_v16 = vld [vmem:[#allocation24_spill] sm:$0xff]  ;;  %v15892_v50 = vadd.f32 %v16492_v18, %v8501_v27 }
 0x767   :  { %v15883_v42 = vadd.f32 %v16489_v31, %v8498_v32  ;;  %v15886_v62 = vadd.f32 %v16490_v34, %v8499_v45  ;;  %v15889_v19 = vadd.f32 %v16491_v16, %v8500_v59  ;;  %v16493_v36 = vld [vmem:[#allocation39_spill] sm:$0xff]  ;;  %v16495_v46 = vld [vmem:[#allocation30_spill] sm:$0xff]  ;;  %v16496_v32 = vld [vmem:[#allocation29_spill] sm:$0xff] }
 0x768   :  { %v15895_v25 = vadd.f32 %v16493_v36, %v8502_v35  ;;  %v16494_v22 = vld [vmem:[#allocation43_spill] sm:$0xff]  ;;  %v15901_v21 = vadd.f32 %v16495_v46, %v8504_v63  ;;  %v15904_v31 = vadd.f32 %v16496_v32, %v8505_v6  ;;  %v16497_v45 = vld [vmem:[#allocation36_spill] sm:$0xff]  ;;  %v16498_v59 = vld [vmem:[#allocation46_spill] sm:$0xff]  ;;  %v8776_v35 = vmax.f32 %v15727_v41, 0.0 }
 0x769   :  { %v15898_v57 = vadd.f32 %v16494_v22, %v8503_v54  ;;  %v15907_v34 = vadd.f32 %v16497_v45, %v8506_v43  ;;  %v15910_v16 = vadd.f32 %v16498_v59, %v8508_v8  ;;  %v16499_v27 = vld [vmem:[#allocation47_spill] sm:$0xff]  ;;  %v8777_v54 = vmax.f32 %v15730_v55, 0.0  ;;  %v16504_v32 = vld [vmem:[#allocation42_spill] sm:$0xff] }
 0x76a   :  { %v15913_v18 = vadd.f32 %v16499_v27, %v8509_v49  ;;  %v8778_v36 = vmax.f32 %v15733_v28, 0.0  ;;  %v8779_v63 = vmax.f32 %v15736_v13, 0.0  ;;  %v8780_v6 = vmax.f32 %v15739_v44, 0.0  ;;  %8840 = vst [vmem:[#allocation11] sm:$0xff] %v8776_v35  ;;  %v16506_v35 = vld [vmem:[#allocation45_spill] sm:$0xff] }
 0x76b   :  { %v8781_v22 = vmax.f32 %v15742_v26, 0.0  ;;  %v8782_v43 = vmax.f32 %v15745_v12, 0.0  ;;  %v8783_v8 = vmax.f32 %v15748_v29, 0.0  ;;  %v8784_v46 = vmax.f32 %v15751_v51, 0.0  ;;  %8841 = vst [vmem:[#allocation11 + $0x8] sm:$0xff] %v8777_v54  ;;  %v16507_v54 = vld [vmem:[#allocation38_spill] sm:$0xff] }
 0x76c   :  { %v8785_v49 = vmax.f32 %v15754_v60, 0.0  ;;  %v8786_v41 = vmax.f32 %v15757_v30, 0.0  ;;  %v8787_v55 = vmax.f32 %v15760_v15, 0.0  ;;  %v8788_v28 = vmax.f32 %v15763_v3, 0.0  ;;  %8842 = vst [vmem:[#allocation11 + $0x10] sm:$0xff] %v8778_v36  ;;  %8843 = vst [vmem:[#allocation11 + $0x18] sm:$0xff] %v8779_v63 }
 0x76d   :  { %8844 = vst [vmem:[#allocation11 + $0x20] sm:$0xff] %v8780_v6  ;;  %v8789_v26 = vmax.f32 %v15766_v5, 0.0  ;;  %v8790_v44 = vmax.f32 %v15769_v1, 0.0  ;;  %v8791_v13 = vmax.f32 %v15772_v4, 0.0  ;;  %v8792_v12 = vmax.f32 %v15775_v7, 0.0  ;;  %8845 = vst [vmem:[#allocation11 + $0x28] sm:$0xff] %v8781_v22 }
 0x76e   :  { %8846 = vst [vmem:[#allocation11 + $0x30] sm:$0xff] %v8782_v43  ;;  %8847 = vst [vmem:[#allocation11 + $0x38] sm:$0xff] %v8783_v8  ;;  %v8793_v29 = vmax.f32 %v15778_v33, 0.0  ;;  %v8794_v51 = vmax.f32 %v15781_v40, 0.0  ;;  %v8795_v60 = vmax.f32 %v15784_v47, 0.0  ;;  %v8796_v30 = vmax.f32 %v15787_v24, 0.0 }
 0x76f   :  { %8848 = vst [vmem:[#allocation11 + $0x40] sm:$0xff] %v8784_v46  ;;  %8849 = vst [vmem:[#allocation11 + $0x48] sm:$0xff] %v8785_v49  ;;  %v8797_v15 = vmax.f32 %v15790_v9, 0.0  ;;  %v8798_v3 = vmax.f32 %v15793_v0, 0.0  ;;  %v8799_v5 = vmax.f32 %v15796_v38, 0.0  ;;  %v8800_v1 = vmax.f32 %v15799_v2, 0.0 }
 0x770   :  { %8850 = vst [vmem:[#allocation11 + $0x50] sm:$0xff] %v8786_v41  ;;  %8851 = vst [vmem:[#allocation11 + $0x58] sm:$0xff] %v8787_v55  ;;  %v8801_v4 = vmax.f32 %v15802_v11, 0.0  ;;  %v8802_v7 = vmax.f32 %v15805_v52, 0.0  ;;  %v8803_v33 = vmax.f32 %v15808_v37, 0.0  ;;  %v8804_v40 = vmax.f32 %v15811_v20, 0.0 }
 0x771   :  { %8852 = vst [vmem:[#allocation11 + $0x60] sm:$0xff] %v8788_v28  ;;  %8853 = vst [vmem:[#allocation11 + $0x68] sm:$0xff] %v8789_v26  ;;  %v8805_v47 = vmax.f32 %v15814_v14, 0.0  ;;  %v16500_v24 = vld [vmem:[#allocation34_spill] sm:$0xff]  ;;  %v16501_v0 = vld [vmem:[#allocation32_spill] sm:$0xff]  ;;  %v8808_v2 = vmax.f32 %v15823_v61, 0.0 }
 0x772   :  { %8854 = vst [vmem:[#allocation11 + $0x70] sm:$0xff] %v8790_v44  ;;  %8855 = vst [vmem:[#allocation11 + $0x78] sm:$0xff] %v8791_v13  ;;  %v8806_v9 = vmax.f32 %v16500_v24, 0.0  ;;  %v8807_v38 = vmax.f32 %v16501_v0, 0.0  ;;  %v16502_v11 = vld [vmem:[#allocation31_spill] sm:$0xff]  ;;  %v8811_v45 = vmax.f32 %v16504_v32, 0.0 }
 0x773   :  { %8856 = vst [vmem:[#allocation11 + $0x80] sm:$0xff] %v8792_v12  ;;  %8857 = vst [vmem:[#allocation11 + $0x88] sm:$0xff] %v8793_v29  ;;  %v8809_v52 = vmax.f32 %v16502_v11, 0.0  ;;  %v16503_v37 = vld [vmem:[#allocation35_spill] sm:$0xff]  ;;  %v8812_v59 = vmax.f32 %v15835_v10, 0.0  ;;  %v16505_v14 = vld [vmem:[#allocation40_spill] sm:$0xff] }
 0x774   :  { %8858 = vst [vmem:[#allocation11 + $0x90] sm:$0xff] %v8794_v51  ;;  %8859 = vst [vmem:[#allocation11 + $0x98] sm:$0xff] %v8795_v60  ;;  %v8810_v20 = vmax.f32 %v16503_v37, 0.0  ;;  %v8813_v27 = vmax.f32 %v16505_v14, 0.0  ;;  %v8814_v61 = vmax.f32 %v16506_v35, 0.0  ;;  %v8815_v36 = vmax.f32 %v16507_v54, 0.0 }
 0x775   :  { %8860 = vst [vmem:[#allocation11 + $0xa0] sm:$0xff] %v8796_v30  ;;  %8861 = vst [vmem:[#allocation11 + $0xa8] sm:$0xff] %v8797_v15  ;;  %v8816_v63 = vmax.f32 %v15847_v39, 0.0  ;;  %v16508_v6 = vld [vmem:[#allocation41_spill] sm:$0xff]  ;;  %v16509_v43 = vld [vmem:[#allocation44_spill] sm:$0xff]  ;;  %v8820_v49 = vmax.f32 %v15859_v23, 0.0 }
 0x776   :  { %8862 = vst [vmem:[#allocation11 + $0xb0] sm:$0xff] %v8798_v3  ;;  %8863 = vst [vmem:[#allocation11 + $0xb8] sm:$0xff] %v8799_v5  ;;  %v8817_v22 = vmax.f32 %v16508_v6, 0.0  ;;  %v8818_v10 = vmax.f32 %v16509_v43, 0.0  ;;  %v16510_v8 = vld [vmem:[#allocation28_spill] sm:$0xff]  ;;  %v8821_v41 = vmax.f32 %v15862_v53, 0.0 }
 0x777   :  { %8864 = vst [vmem:[#allocation11 + $0xc0] sm:$0xff] %v8800_v1  ;;  %8865 = vst [vmem:[#allocation11 + $0xc8] sm:$0xff] %v8801_v4  ;;  %v8819_v46 = vmax.f32 %v16510_v8, 0.0  ;;  %v16511_v55 = vld [vmem:[#allocation33_spill] sm:$0xff]  ;;  %v16512_v28 = vld [vmem:[#allocation27_spill] sm:$0xff]  ;;  %v8824_v44 = vmax.f32 %v15871_v17, 0.0 }
 0x778   :  { %8866 = vst [vmem:[#allocation11 + $0xd0] sm:$0xff] %v8802_v7  ;;  %8867 = vst [vmem:[#allocation11 + $0xd8] sm:$0xff] %v8803_v33  ;;  %v8822_v39 = vmax.f32 %v16511_v55, 0.0  ;;  %v8823_v26 = vmax.f32 %v16512_v28, 0.0  ;;  %v8825_v13 = vmax.f32 %v15874_v56, 0.0  ;;  %v8826_v23 = vmax.f32 %v15877_v58, 0.0 }
 0x779   :  { %8868 = vst [vmem:[#allocation11 + $0xe0] sm:$0xff] %v8804_v40  ;;  %8869 = vst [vmem:[#allocation11 + $0xe8] sm:$0xff] %v8805_v47  ;;  %v8827_v12 = vmax.f32 %v15880_v48, 0.0  ;;  %v8828_v29 = vmax.f32 %v15883_v42, 0.0  ;;  %v8829_v53 = vmax.f32 %v15886_v62, 0.0  ;;  %v8830_v17 = vmax.f32 %v15889_v19, 0.0 }
 0x77a   :  { %8870 = vst [vmem:[#allocation11 + $0xf0] sm:$0xff] %v8806_v9  ;;  %8871 = vst [vmem:[#allocation11 + $0xf8] sm:$0xff] %v8807_v38  ;;  %v8831_v51 = vmax.f32 %v15892_v50, 0.0  ;;  %v8832_v56 = vmax.f32 %v15895_v25, 0.0  ;;  %v8833_v58 = vmax.f32 %v15898_v57, 0.0  ;;  %v8834_v48 = vmax.f32 %v15901_v21, 0.0 }
 0x77b   :  { %8872 = vst [vmem:[#allocation11 + $0x100] sm:$0xff] %v8808_v2  ;;  %8873 = vst [vmem:[#allocation11 + $0x108] sm:$0xff] %v8809_v52  ;;  %v8835_v42 = vmax.f32 %v15904_v31, 0.0  ;;  %v8836_v60 = vmax.f32 %v15907_v34, 0.0  ;;  %v8838_v19 = vmax.f32 %v15910_v16, 0.0  ;;  %v8839_v62 = vmax.f32 %v15913_v18, 0.0 }
 0x77c   :  { %8874 = vst [vmem:[#allocation11 + $0x110] sm:$0xff] %v8810_v20  ;;  %8875 = vst [vmem:[#allocation11 + $0x118] sm:$0xff] %v8811_v45 }
 0x77d   :  { %8876 = vst [vmem:[#allocation11 + $0x120] sm:$0xff] %v8812_v59  ;;  %8877 = vst [vmem:[#allocation11 + $0x128] sm:$0xff] %v8813_v27 }
 0x77e   :  { %8878 = vst [vmem:[#allocation11 + $0x130] sm:$0xff] %v8814_v61  ;;  %8879 = vst [vmem:[#allocation11 + $0x138] sm:$0xff] %v8815_v36 }
 0x77f   :  { %8880 = vst [vmem:[#allocation11 + $0x140] sm:$0xff] %v8816_v63  ;;  %8881 = vst [vmem:[#allocation11 + $0x148] sm:$0xff] %v8817_v22 }
 0x780   :  { %8882 = vst [vmem:[#allocation11 + $0x150] sm:$0xff] %v8818_v10  ;;  %8883 = vst [vmem:[#allocation11 + $0x158] sm:$0xff] %v8819_v46 }
 0x781   :  { %8884 = vst [vmem:[#allocation11 + $0x160] sm:$0xff] %v8820_v49  ;;  %8885 = vst [vmem:[#allocation11 + $0x168] sm:$0xff] %v8821_v41 }
 0x782   :  { %8886 = vst [vmem:[#allocation11 + $0x170] sm:$0xff] %v8822_v39  ;;  %8887 = vst [vmem:[#allocation11 + $0x178] sm:$0xff] %v8823_v26 }
 0x783   :  { %8888 = vst [vmem:[#allocation11 + $0x180] sm:$0xff] %v8824_v44  ;;  %8889 = vst [vmem:[#allocation11 + $0x188] sm:$0xff] %v8825_v13 }
 0x784   :  { %8890 = vst [vmem:[#allocation11 + $0x190] sm:$0xff] %v8826_v23  ;;  %8891 = vst [vmem:[#allocation11 + $0x198] sm:$0xff] %v8827_v12 }
 0x785   :  { %8892 = vst [vmem:[#allocation11 + $0x1a0] sm:$0xff] %v8828_v29  ;;  %8893 = vst [vmem:[#allocation11 + $0x1a8] sm:$0xff] %v8829_v53 }
 0x786   :  { %8894 = vst [vmem:[#allocation11 + $0x1b0] sm:$0xff] %v8830_v17  ;;  %8895 = vst [vmem:[#allocation11 + $0x1b8] sm:$0xff] %v8831_v51 }
 0x787   :  { %8896 = vst [vmem:[#allocation11 + $0x1c0] sm:$0xff] %v8832_v56  ;;  %8897 = vst [vmem:[#allocation11 + $0x1c8] sm:$0xff] %v8833_v58 }
 0x788   :  { %8898 = vst [vmem:[#allocation11 + $0x1d0] sm:$0xff] %v8834_v48  ;;  %8899 = vst [vmem:[#allocation11 + $0x1d8] sm:$0xff] %v8835_v42 }
 0x789   :  { %8900 = vst [vmem:[#allocation11 + $0x1e0] sm:$0xff] %v8836_v60  ;;  %8902 = vst [vmem:[#allocation11 + $0x1f0] sm:$0xff] %v8838_v19 }
 0x78a   :  { %8903 = vst [vmem:[#allocation11 + $0x1f8] sm:$0xff] %v8839_v62 }
 0x78b   :  { %11530 = shalt.err (!%p11527_p0)
}
 0x78c   :  { %s11531_s24 = scalar_lea.hbm %s16000_s7, 8192 }
 0x78d   :  { %p11532_p1 = scmp.ne.s32.totalorder %s16000_s7, %s11531_s24  ;;  %p11535_p2 = scmp.lt.u32.totalorder %s11531_s24, %s16000_s7 }
 0x78f   :  { %p11537_p3 = pnand %p11535_p2, %p11532_p1 }
 0x791   :  { %11540 = shalt.err (!%p11537_p3)
}
 0x792   :  { %8915 = dma.vmem_to_hbm [thread:$0]  %s8910_s6, 8192, %s16000_s7, [#allocation7], %s11551_s1, %s11551_s1, %s11552_s25  }
 0x793   :  { %11545 = dma.done.wait [#allocation7], 8192  }
 0x794   :  { %11546 = vsyncadd [#allocation7], 4294959104 }
 0x795   :  { %8919 = vsyncpa [#allocation6], 1 }
 0x796   :  { %8920 = vsyncpa [#allocation9], 1 }
 0x797   :  { %8921 = vsyncpa [#allocation7], 1 }

</bundles_post_ra>
